<compile_context>
chip_gen: v7x
topology: tpu7x:2x2x1
jax: 0.10.0
libtpu: 0.0.40
codegen_flags: <defaults>
</compile_context>

<pallas_src>
import functools

import jax
import jax.numpy as jnp
from jax.experimental import pallas as pl
from jax.experimental.pallas import tpu as pltpu


def window_attention_kernel(x_ref, wqkv_ref, wproj_ref, bproj_ref, bias_ref, o_ref,
                            *, num_heads, tokens_per_window, exact_softmax):
    """One grid step handles TB windows.

    x_ref    : (TB*N, C)   compute dtype
    wqkv_ref : (C, 3C)     compute dtype, attention scale pre-folded into q columns
    wproj_ref: (C, C)      compute dtype
    bproj_ref: (1, C)      f32
    bias_ref : (H, N, N)   f32 relative-position bias per head
    o_ref    : (TB*N, C)
    """
    M, C = x_ref.shape
    N = tokens_per_window
    TB = M // N
    H = num_heads
    d = C // H
    cd = wqkv_ref.dtype                    # matmul operand dtype (bf16 or f32)

    # --- qkv projection: one (TB*N, C) @ (C, 3C) MXU matmul, f32 accumulation. ---
    qkv = jnp.dot(x_ref[...], wqkv_ref[...], preferred_element_type=jnp.float32)
    qkv = qkv.astype(cd)                   # single cast of the whole slab

    # --- gather heads into the batch dimension: (TB*H, N, d) q / k / v. ---
    def stack_heads(col0):
        parts = [qkv[:, col0 + h * d: col0 + (h + 1) * d].reshape(TB, N, d)
                 for h in range(H)]
        # stack on a new major axis (cheap) then merge leading dims (cheap).
        return jnp.stack(parts, axis=1).reshape(TB * H, N, d)

    q = stack_heads(0)                     # scale already folded into the q columns
    k = stack_heads(C)
    v = stack_heads(2 * C)

    # --- attention: two 3-D batched einsums over the merged (window, head) batch. ---
    logits = jnp.einsum('bnd,bmd->bnm', q, k,
                        preferred_element_type=jnp.float32)          # (TB*H, N, N)
    bias = jnp.broadcast_to(bias_ref[...][None], (TB, H, N, N)).reshape(TB * H, N, N)
    logits = logits + bias                                           # single broadcast

    # Numerically-stable softmax, all in f32.
    logits = logits - jnp.max(logits, axis=-1, keepdims=True)
    p = jnp.exp(logits)
    s = jnp.sum(p, axis=-1, keepdims=True)
    if exact_softmax:
        p = p / s
    else:
        p = p * pl.reciprocal(s, approx=True)      # EUP slot, co-issues with MXU/VPU

    o = jnp.einsum('bnm,bmd->bnd', p.astype(cd), v,
                   preferred_element_type=jnp.float32)               # (TB*H, N, d)

    # --- re-assemble heads on the lane dim and run ONE full-width output projection. ---
    o = o.reshape(TB, H, N, d)
    o_all = jnp.concatenate([o[:, h].reshape(M, d) for h in range(H)], axis=-1)  # (M, C)
    y = jnp.dot(o_all.astype(cd), wproj_ref[...], preferred_element_type=jnp.float32)
    y = y + bproj_ref[...].astype(jnp.float32)     # (1, C) broadcasts over rows
    o_ref[...] = y.astype(o_ref.dtype)


def _select_tiling(B, N, C, num_heads, compute_dtype):
    """Generation-aware choice of TB (windows per grid step) and an explicit VMEM limit."""
    try:
        kind = jax.devices()[0].device_kind.lower()
    except Exception:  # pragma: no cover - detection failure -> conservative defaults
        kind = ""
    # v7x has 2 TensorCores per chip; v4/v5p megacore also benefit from an even grid.
    multi_tc = any(t in kind for t in ("v7", "v4", "v5p"))
    # v7x-class parts have 64 MiB physical VMEM; older generations have 128 MiB.
    big_vmem = any(t in kind for t in ("v2", "v3", "v4", "v5", "v6"))
    vmem_limit = (64 if big_vmem else 32) * 1024 * 1024

    cd_size = jnp.dtype(compute_dtype).itemsize
    H = num_heads

    def est_bytes(tb):
        m = tb * N
        io_blocks = 2 * m * C * (cd_size + 4)                   # x + out, double-buffered
        weights = 2 * (3 * C * C + C * C) * cd_size + 2 * (H * N * N + C) * 4
        scratch = (m * 3 * C * (4 + cd_size)                    # qkv f32 + cast
                   + 3 * m * C * cd_size                        # stacked q/k/v
                   + 4 * tb * H * N * N * 4                     # bias bcast, logits, p
                   + 3 * m * C * 4)                             # attn@v, reassembly, y
        return io_blocks + weights + scratch

    divisors = [t for t in range(1, B + 1) if B % t == 0]
    fits = [t for t in divisors
            if t * N <= max(512, N) and est_bytes(t) <= vmem_limit // 2]
    if not fits:
        fits = [1]
    tb = max(fits)                         # single TC: fewest, largest steps (grid may be 1)
    if multi_tc:
        even = [t for t in fits if (B // t) % 2 == 0]
        # prefer >=2 steps per core with >=256 rows/step when B allows; else just even grid.
        deep = [t for t in even if (B // t) >= 4 and t * N >= 256]
        if deep:
            tb = max(deep)
        elif even:
            tb = max(even)
    return tb, vmem_limit


def window_attention_pallas(x, w_qkv, w_proj, b_proj, rel_bias, *, num_heads,
                            block_windows=None, compute_dtype=jnp.bfloat16):
    B, N, C = x.shape
    assert C % num_heads == 0
    head_dim = C // num_heads
    scale = float(head_dim) ** (-0.5)

    TB, vmem_limit = _select_tiling(B, N, C, num_heads, compute_dtype)
    if block_windows is not None:
        TB = block_windows
    assert B % TB == 0, "block_windows must divide the number of windows"

    # Fold the attention scale into the q-columns of the qkv weight (zero runtime cost),
    # then cast matmul operands to the compute dtype.  Bias terms stay f32.
    w_qkv_s = w_qkv.at[:, :C].multiply(scale).astype(compute_dtype)
    w_proj_c = w_proj.astype(compute_dtype)
    b_proj_2d = b_proj.reshape(1, C).astype(jnp.float32)
    rel_bias_f32 = rel_bias.astype(jnp.float32)

    # 2-D lane-friendly I/O: reshape/cast at the XLA boundary, not inside the kernel.
    x2d = x.reshape(B * N, C).astype(compute_dtype)

    exact_softmax = jnp.dtype(compute_dtype) == jnp.dtype(jnp.float32)
    kernel = functools.partial(window_attention_kernel,
                               num_heads=num_heads,
                               tokens_per_window=N,
                               exact_softmax=exact_softmax)

    out2d = pl.pallas_call(
        kernel,
        out_shape=jax.ShapeDtypeStruct((B * N, C), x.dtype),
        grid_spec=pltpu.PrefetchScalarGridSpec(
            num_scalar_prefetch=0,
            grid=(B // TB,),
            in_specs=[
                pl.BlockSpec((TB * N, C), lambda b: (b, 0)),            # x block
                pl.BlockSpec((C, 3 * C), lambda b: (0, 0)),             # w_qkv (resident)
                pl.BlockSpec((C, C), lambda b: (0, 0)),                 # w_proj (resident)
                pl.BlockSpec((1, C), lambda b: (0, 0)),                 # proj bias
                pl.BlockSpec((num_heads, N, N), lambda b: (0, 0, 0)),   # rel-pos bias
            ],
            out_specs=pl.BlockSpec((TB * N, C), lambda b: (b, 0)),
        ),
        compiler_params=pltpu.CompilerParams(
            dimension_semantics=("parallel",),
            vmem_limit_bytes=vmem_limit),
    )(x2d, w_qkv_s, w_proj_c, b_proj_2d, rel_bias_f32)
    return out2d.reshape(B, N, C)


def build_relative_position_bias(table, window_size, num_heads):
    """Plain-JAX glue replicating the PyTorch buffer construction + gather."""
    W = window_size
    coords_h = jnp.arange(W)
    coords_w = jnp.arange(W)
    coords = jnp.stack(jnp.meshgrid(coords_h, coords_w, indexing="ij"))   # (2, W, W)
    coords_flat = coords.reshape(2, -1)                                   # (2, N)
    rel = coords_flat[:, :, None] - coords_flat[:, None, :]               # (2, N, N)
    rel = rel.transpose(1, 2, 0)                                          # (N, N, 2)
    rel = rel.at[:, :, 0].add(W - 1)
    rel = rel.at[:, :, 1].add(W - 1)
    rel = rel.at[:, :, 0].multiply(2 * W - 1)
    rel_index = rel.sum(-1)                                               # (N, N)

    N = W * W
    bias = table[rel_index.reshape(-1)].reshape(N, N, num_heads)          # (N, N, H)
    return bias.transpose(2, 0, 1)                                        # (H, N, N)


def reference_window_attention(x, w_qkv, w_proj, b_proj, rel_bias, num_heads):
    """Pure-JAX reference matching the PyTorch forward."""
    B, N, C = x.shape
    d = C // num_heads
    scale = float(d) ** (-0.5)
    qkv = x @ w_qkv                                                       # (B, N, 3C)
    q, k, v = jnp.split(qkv, 3, axis=-1)

    def split_heads(t):
        return t.reshape(B, N, num_heads, d).transpose(0, 2, 1, 3)        # (B, H, N, d)

    q, k, v = map(split_heads, (q, k, v))
    attn = jnp.einsum("bhnd,bhmd->bhnm", q, k) * scale
    attn = attn + rel_bias[None]
    attn = jax.nn.softmax(attn, axis=-1)
    out = jnp.einsum("bhnm,bhmd->bhnd", attn, v)
    out = out.transpose(0, 2, 1, 3).reshape(B, N, C)
    return out @ w_proj + b_proj


if __name__ == "__main__":
    # Config consistent with the module: dim=32, num_heads=4, window_size=4 (N=16),
    # B=16 windows (so B*N = 256 token rows total).
    dim = 32
    num_heads = 4
    window_size = 4
    N = window_size * window_size
    B = 16

    key = jax.random.PRNGKey(0)
    k_x, k_qkv, k_proj, k_bproj, k_table = jax.random.split(key, 5)

    x = jax.random.normal(k_x, (B, N, dim), dtype=jnp.float32)

    # nn.Linear stores weight as (out, in); we keep (in, out) so y = x @ W.
    w_qkv = jax.random.normal(k_qkv, (dim, 3 * dim), dtype=jnp.float32) * 0.02
    w_proj = jax.random.normal(k_proj, (dim, dim), dtype=jnp.float32) * 0.02
    b_proj = jax.random.normal(k_bproj, (dim,), dtype=jnp.float32) * 0.02
    # trunc_normal_(std=0.02) analogue for the relative position bias table.
    table = 0.02 * jax.random.truncated_normal(
        k_table, -2.0, 2.0,
        ((2 * window_size - 1) * (2 * window_size - 1), num_heads), jnp.float32)

    rel_bias = build_relative_position_bias(table, window_size, num_heads)  # (H, N, N)

    ref = reference_window_attention(x, w_qkv, w_proj, b_proj, rel_bias, num_heads)

    # f32 matmul operands + exact softmax: must track the reference closely (tolerances
    # leave headroom for MXU pass-precision differences vs the XLA reference einsums).
    out_f32 = window_attention_pallas(
        x, w_qkv, w_proj, b_proj, rel_bias,
        num_heads=num_heads, compute_dtype=jnp.float32)
    out_f32 = jax.block_until_ready(out_f32)
    assert jnp.allclose(out_f32, ref, atol=1e-3, rtol=1e-3), "f32 mismatch vs reference"

    # Default path: bf16 matmul operands on every generation; softmax/accumulation f32.
    out_bf16 = window_attention_pallas(
        x, w_qkv, w_proj, b_proj, rel_bias, num_heads=num_heads)
    out_bf16 = jax.block_until_ready(out_bf16)
    assert jnp.allclose(out_bf16, ref, atol=3e-2, rtol=5e-2), "bf16 mismatch vs reference"

    print("KERNEL_OK")
</pallas_src>

<mosaic_0001>
module attributes {stable_mosaic.version = 11 : i64} {
  func.func @window_attention_kernel(%arg0: i32, %arg1: memref<256x32xf32, #tpu.memory_space<vmem>>, %arg2: memref<32x96xf32, #tpu.memory_space<vmem>>, %arg3: memref<32x32xf32, #tpu.memory_space<vmem>>, %arg4: memref<1x32xf32, #tpu.memory_space<vmem>>, %arg5: memref<4x16x16xf32, #tpu.memory_space<vmem>>, %arg6: memref<256x32xf32, #tpu.memory_space<vmem>>) attributes {dimension_semantics = [#tpu.dimension_semantics<parallel>], iteration_bounds = array<i64: 1>, scalar_prefetch = 0 : i64, scratch_operands = 0 : i64, tpu.core_type = #tpu.core_type<tc>, window_params = [{transform_indices = @transform_0, window_bounds = array<i64: 256, 32>}, {pipeline_mode = #tpu.pipeline_mode<synchronous>, transform_indices = @transform_1, window_bounds = array<i64: 32, 96>}, {pipeline_mode = #tpu.pipeline_mode<synchronous>, transform_indices = @transform_2, window_bounds = array<i64: 32, 32>}, {pipeline_mode = #tpu.pipeline_mode<synchronous>, transform_indices = @transform_3, window_bounds = array<i64: 1, 32>}, {pipeline_mode = #tpu.pipeline_mode<synchronous>, transform_indices = @transform_4, window_bounds = array<i64: 4, 16, 16>}, {transform_indices = @transform_5, window_bounds = array<i64: 256, 32>}]} {
    %c0 = arith.constant 0 : index
    %c0_0 = arith.constant 0 : index
    %0 = vector.load %arg1[%c0, %c0_0] : memref<256x32xf32, #tpu.memory_space<vmem>>, vector<256x32xf32>
    %c0_1 = arith.constant 0 : index
    %c0_2 = arith.constant 0 : index
    %1 = vector.load %arg2[%c0_1, %c0_2] : memref<32x96xf32, #tpu.memory_space<vmem>>, vector<32x96xf32>
    %cst = arith.constant dense<0.000000e+00> : vector<256x96xf32>
    %2 = tpu.matmul %0, %1, %cst {dimension_numbers = #tpu.dot_dimension_numbers<[1], [0], [0], [1], [0, 0, 1, 1], [], []>} : vector<256x32xf32>, vector<32x96xf32>, vector<256x96xf32> -> vector<256x96xf32>
    %3 = vector.extract_strided_slice %2 {offsets = [0, 0], sizes = [256, 8], strides = [1, 1]} : vector<256x96xf32> to vector<256x8xf32>
    %4 = vector.shape_cast %3 : vector<256x8xf32> to vector<16x16x8xf32>
    %5 = vector.extract_strided_slice %2 {offsets = [0, 8], sizes = [256, 8], strides = [1, 1]} : vector<256x96xf32> to vector<256x8xf32>
    %6 = vector.shape_cast %5 : vector<256x8xf32> to vector<16x16x8xf32>
    %7 = vector.extract_strided_slice %2 {offsets = [0, 16], sizes = [256, 8], strides = [1, 1]} : vector<256x96xf32> to vector<256x8xf32>
    %8 = vector.shape_cast %7 : vector<256x8xf32> to vector<16x16x8xf32>
    %9 = vector.extract_strided_slice %2 {offsets = [0, 24], sizes = [256, 8], strides = [1, 1]} : vector<256x96xf32> to vector<256x8xf32>
    %10 = vector.shape_cast %9 : vector<256x8xf32> to vector<16x16x8xf32>
    %11 = vector.shape_cast %4 : vector<16x16x8xf32> to vector<16x1x16x8xf32>
    %12 = vector.shape_cast %6 : vector<16x16x8xf32> to vector<16x1x16x8xf32>
    %13 = vector.shape_cast %8 : vector<16x16x8xf32> to vector<16x1x16x8xf32>
    %14 = vector.shape_cast %10 : vector<16x16x8xf32> to vector<16x1x16x8xf32>
    %15 = tpu.concatenate %11, %12, %13, %14 in 1 : vector<16x1x16x8xf32>, vector<16x1x16x8xf32>, vector<16x1x16x8xf32>, vector<16x1x16x8xf32> -> vector<16x4x16x8xf32>
    %16 = vector.shape_cast %15 : vector<16x4x16x8xf32> to vector<64x16x8xf32>
    %17 = vector.extract_strided_slice %2 {offsets = [0, 32], sizes = [256, 8], strides = [1, 1]} : vector<256x96xf32> to vector<256x8xf32>
    %18 = vector.shape_cast %17 : vector<256x8xf32> to vector<16x16x8xf32>
    %19 = vector.extract_strided_slice %2 {offsets = [0, 40], sizes = [256, 8], strides = [1, 1]} : vector<256x96xf32> to vector<256x8xf32>
    %20 = vector.shape_cast %19 : vector<256x8xf32> to vector<16x16x8xf32>
    %21 = vector.extract_strided_slice %2 {offsets = [0, 48], sizes = [256, 8], strides = [1, 1]} : vector<256x96xf32> to vector<256x8xf32>
    %22 = vector.shape_cast %21 : vector<256x8xf32> to vector<16x16x8xf32>
    %23 = vector.extract_strided_slice %2 {offsets = [0, 56], sizes = [256, 8], strides = [1, 1]} : vector<256x96xf32> to vector<256x8xf32>
    %24 = vector.shape_cast %23 : vector<256x8xf32> to vector<16x16x8xf32>
    %25 = vector.shape_cast %18 : vector<16x16x8xf32> to vector<16x1x16x8xf32>
    %26 = vector.shape_cast %20 : vector<16x16x8xf32> to vector<16x1x16x8xf32>
    %27 = vector.shape_cast %22 : vector<16x16x8xf32> to vector<16x1x16x8xf32>
    %28 = vector.shape_cast %24 : vector<16x16x8xf32> to vector<16x1x16x8xf32>
    %29 = tpu.concatenate %25, %26, %27, %28 in 1 : vector<16x1x16x8xf32>, vector<16x1x16x8xf32>, vector<16x1x16x8xf32>, vector<16x1x16x8xf32> -> vector<16x4x16x8xf32>
    %30 = vector.shape_cast %29 : vector<16x4x16x8xf32> to vector<64x16x8xf32>
    %31 = vector.extract_strided_slice %2 {offsets = [0, 64], sizes = [256, 8], strides = [1, 1]} : vector<256x96xf32> to vector<256x8xf32>
    %32 = vector.shape_cast %31 : vector<256x8xf32> to vector<16x16x8xf32>
    %33 = vector.extract_strided_slice %2 {offsets = [0, 72], sizes = [256, 8], strides = [1, 1]} : vector<256x96xf32> to vector<256x8xf32>
    %34 = vector.shape_cast %33 : vector<256x8xf32> to vector<16x16x8xf32>
    %35 = vector.extract_strided_slice %2 {offsets = [0, 80], sizes = [256, 8], strides = [1, 1]} : vector<256x96xf32> to vector<256x8xf32>
    %36 = vector.shape_cast %35 : vector<256x8xf32> to vector<16x16x8xf32>
    %37 = vector.extract_strided_slice %2 {offsets = [0, 88], sizes = [256, 8], strides = [1, 1]} : vector<256x96xf32> to vector<256x8xf32>
    %38 = vector.shape_cast %37 : vector<256x8xf32> to vector<16x16x8xf32>
    %39 = vector.shape_cast %32 : vector<16x16x8xf32> to vector<16x1x16x8xf32>
    %40 = vector.shape_cast %34 : vector<16x16x8xf32> to vector<16x1x16x8xf32>
    %41 = vector.shape_cast %36 : vector<16x16x8xf32> to vector<16x1x16x8xf32>
    %42 = vector.shape_cast %38 : vector<16x16x8xf32> to vector<16x1x16x8xf32>
    %43 = tpu.concatenate %39, %40, %41, %42 in 1 : vector<16x1x16x8xf32>, vector<16x1x16x8xf32>, vector<16x1x16x8xf32>, vector<16x1x16x8xf32> -> vector<16x4x16x8xf32>
    %44 = vector.shape_cast %43 : vector<16x4x16x8xf32> to vector<64x16x8xf32>
    "tpu.trace_start"() <{level = 10 : i32, message = "bnd,bmd->bnm"}> : () -> ()
    %cst_3 = arith.constant dense<0.000000e+00> : vector<64x16x16xf32>
    %45 = tpu.matmul %16, %30, %cst_3 {dimension_numbers = #tpu.dot_dimension_numbers<[2], [2], [1], [1], [0, 0, 0, 1, 1, 1], [0], [0]>} : vector<64x16x8xf32>, vector<64x16x8xf32>, vector<64x16x16xf32> -> vector<64x16x16xf32>
    "tpu.trace_stop"() : () -> ()
    %c0_4 = arith.constant 0 : index
    %c0_5 = arith.constant 0 : index
    %c0_6 = arith.constant 0 : index
    %46 = vector.load %arg5[%c0_4, %c0_5, %c0_6] : memref<4x16x16xf32, #tpu.memory_space<vmem>>, vector<4x16x16xf32>
    %47 = vector.shape_cast %46 : vector<4x16x16xf32> to vector<1x4x16x16xf32>
    %48 = vector.shape_cast %47 : vector<1x4x16x16xf32> to vector<1x4x16x16xf32>
    %49 = vector.broadcast %48 : vector<1x4x16x16xf32> to vector<16x4x16x16xf32>
    %50 = vector.shape_cast %49 : vector<16x4x16x16xf32> to vector<64x16x16xf32>
    %51 = arith.addf %45, %50 : vector<64x16x16xf32>
    %cst_7 = arith.constant dense<0xFF800000> : vector<64x16xf32>
    %52 = vector.multi_reduction <maximumf>, %51, %cst_7 [2] : vector<64x16x16xf32> to vector<64x16xf32>
    %53 = vector.shape_cast %52 : vector<64x16xf32> to vector<64x16x1xf32>
    %54 = vector.broadcast %53 : vector<64x16x1xf32> to vector<64x16x16xf32>
    %55 = arith.subf %51, %54 : vector<64x16x16xf32>
    %56 = math.exp %55 : vector<64x16x16xf32>
    %cst_8 = arith.constant dense<0.000000e+00> : vector<64x16xf32>
    %57 = vector.multi_reduction <add>, %56, %cst_8 [2] : vector<64x16x16xf32> to vector<64x16xf32>
    %58 = vector.shape_cast %57 : vector<64x16xf32> to vector<64x16x1xf32>
    %59 = vector.broadcast %58 : vector<64x16x1xf32> to vector<64x16x16xf32>
    %60 = arith.divf %56, %59 : vector<64x16x16xf32>
    "tpu.trace_start"() <{level = 10 : i32, message = "bnm,bmd->bnd"}> : () -> ()
    %cst_9 = arith.constant dense<0.000000e+00> : vector<64x16x8xf32>
    %61 = tpu.matmul %60, %44, %cst_9 {dimension_numbers = #tpu.dot_dimension_numbers<[2], [1], [1], [2], [0, 0, 0, 1, 1, 2], [0], [0]>} : vector<64x16x16xf32>, vector<64x16x8xf32>, vector<64x16x8xf32> -> vector<64x16x8xf32>
    "tpu.trace_stop"() : () -> ()
    %62 = vector.shape_cast %61 : vector<64x16x8xf32> to vector<16x4x16x8xf32>
    %63 = vector.extract_strided_slice %62 {offsets = [0, 0, 0, 0], sizes = [16, 1, 16, 8], strides = [1, 1, 1, 1]} : vector<16x4x16x8xf32> to vector<16x1x16x8xf32>
    %64 = vector.shape_cast %63 : vector<16x1x16x8xf32> to vector<16x16x8xf32>
    %65 = vector.shape_cast %64 : vector<16x16x8xf32> to vector<256x8xf32>
    %66 = vector.extract_strided_slice %62 {offsets = [0, 1, 0, 0], sizes = [16, 1, 16, 8], strides = [1, 1, 1, 1]} : vector<16x4x16x8xf32> to vector<16x1x16x8xf32>
    %67 = vector.shape_cast %66 : vector<16x1x16x8xf32> to vector<16x16x8xf32>
    %68 = vector.shape_cast %67 : vector<16x16x8xf32> to vector<256x8xf32>
    %69 = vector.extract_strided_slice %62 {offsets = [0, 2, 0, 0], sizes = [16, 1, 16, 8], strides = [1, 1, 1, 1]} : vector<16x4x16x8xf32> to vector<16x1x16x8xf32>
    %70 = vector.shape_cast %69 : vector<16x1x16x8xf32> to vector<16x16x8xf32>
    %71 = vector.shape_cast %70 : vector<16x16x8xf32> to vector<256x8xf32>
    %72 = vector.extract_strided_slice %62 {offsets = [0, 3, 0, 0], sizes = [16, 1, 16, 8], strides = [1, 1, 1, 1]} : vector<16x4x16x8xf32> to vector<16x1x16x8xf32>
    %73 = vector.shape_cast %72 : vector<16x1x16x8xf32> to vector<16x16x8xf32>
    %74 = vector.shape_cast %73 : vector<16x16x8xf32> to vector<256x8xf32>
    %75 = tpu.concatenate %65, %68, %71, %74 in 1 : vector<256x8xf32>, vector<256x8xf32>, vector<256x8xf32>, vector<256x8xf32> -> vector<256x32xf32>
    %c0_10 = arith.constant 0 : index
    %c0_11 = arith.constant 0 : index
    %76 = vector.load %arg3[%c0_10, %c0_11] : memref<32x32xf32, #tpu.memory_space<vmem>>, vector<32x32xf32>
    %cst_12 = arith.constant dense<0.000000e+00> : vector<256x32xf32>
    %77 = tpu.matmul %75, %76, %cst_12 {dimension_numbers = #tpu.dot_dimension_numbers<[1], [0], [0], [1], [0, 0, 1, 1], [], []>} : vector<256x32xf32>, vector<32x32xf32>, vector<256x32xf32> -> vector<256x32xf32>
    %c0_13 = arith.constant 0 : index
    %c0_14 = arith.constant 0 : index
    %78 = vector.load %arg4[%c0_13, %c0_14] : memref<1x32xf32, #tpu.memory_space<vmem>>, vector<1x32xf32>
    %79 = vector.broadcast %78 : vector<1x32xf32> to vector<256x32xf32>
    %80 = arith.addf %77, %79 : vector<256x32xf32>
    %c0_15 = arith.constant 0 : index
    %c0_16 = arith.constant 0 : index
    %81 = vector.load %arg6[%c0_15, %c0_16] : memref<256x32xf32, #tpu.memory_space<vmem>>, vector<256x32xf32>
    tpu.vector_store %arg6[%c0_15, %c0_16], %80 {strides = array<i32>} : memref<256x32xf32, #tpu.memory_space<vmem>>, vector<256x32xf32>,
    return
  }
  func.func @transform_0(%arg0: i32) -> (i32, i32) {
    %c0_i32 = arith.constant 0 : i32
    %c0_i32_0 = arith.constant 0 : i32
    return %arg0, %c0_i32 : i32, i32
  }
  func.func @transform_1(%arg0: i32) -> (i32, i32) {
    %c0_i32 = arith.constant 0 : i32
    %c0_i32_0 = arith.constant 0 : i32
    %c0_i32_1 = arith.constant 0 : i32
    return %c0_i32, %c0_i32_0 : i32, i32
  }
  func.func @transform_2(%arg0: i32) -> (i32, i32) {
    %c0_i32 = arith.constant 0 : i32
    %c0_i32_0 = arith.constant 0 : i32
    %c0_i32_1 = arith.constant 0 : i32
    return %c0_i32, %c0_i32_0 : i32, i32
  }
  func.func @transform_3(%arg0: i32) -> (i32, i32) {
    %c0_i32 = arith.constant 0 : i32
    %c0_i32_0 = arith.constant 0 : i32
    %c0_i32_1 = arith.constant 0 : i32
    return %c0_i32, %c0_i32_0 : i32, i32
  }
  func.func @transform_4(%arg0: i32) -> (i32, i32, i32) {
    %c0_i32 = arith.constant 0 : i32
    %c0_i32_0 = arith.constant 0 : i32
    %c0_i32_1 = arith.constant 0 : i32
    %c0_i32_2 = arith.constant 0 : i32
    return %c0_i32, %c0_i32_0, %c0_i32_1 : i32, i32, i32
  }
  func.func @transform_5(%arg0: i32) -> (i32, i32) {
    %c0_i32 = arith.constant 0 : i32
    %c0_i32_0 = arith.constant 0 : i32
    return %arg0, %c0_i32 : i32, i32
  }
}

</mosaic_0001>

<bundles_post_ra>
// kernel: tpu_custom_call.1
= control target key start
LH: loop header
LB: loop body
LE: loop exit
PB: predicated region body
PF: predicated region fallthrough
CT: control target
= control target key end

     0   :  { %vm56_vm0 = vcmask 261120   ;;  %vm614_vm1 = vcmask 64512   ;;  %s17878_s12 = smov 120   ;;  %s17880_s13 = smov 104   ;;  %vm6179_vm3 = vcmask 130048   ;;  %vm13604_vm4 = vcmask 195584   ;;  %s22893_s1 = inlined_call_operand.vmem [shape: f32[32,96], index: 1, kind: input, shape index: {}]   ;;  %s22894_s0 = inlined_call_operand.vmem [shape: f32[256,32], index: 0, kind: input, shape index: {}]   ;;  %s22895_s4 = inlined_call_operand.vmem [shape: f32[4,16,16], index: 4, kind: input, shape index: {}]   ;;  %s22896_s2 = inlined_call_operand.vmem [shape: f32[32,32], index: 2, kind: input, shape index: {}]   ;;  %s22897_s3 = inlined_call_operand.vmem [shape: f32[1,32], index: 3, kind: input, shape index: {}]   ;;  %s22898_s5 = inlined_call_operand.vmem [shape: f32[256,32], index: 5, kind: output, shape index: {}]  }
   0x1   :  { %v52_v0 = vld [vmem:[%s22893_s1] sm:$0xff]  ;;  %v53_v1 = vld [vmem:[%s22893_s1 + $0x8] sm:$0xff]  ;;  %v54_v2 = vld [vmem:[%s22893_s1 + $0x10] sm:$0xff]  ;;  %s17881_s14 = smov 64   ;;  %s17882_s15 = smov 96  }
   0x2   :  { %v16046_v3 = vpack.c.bf16 %v53_v1, %v52_v0  ;;  %v55_v4 = vld [vmem:[%s22893_s1 + $0x18] sm:$0xff]  ;;  %v20_v5 = vld [vmem:[%s22894_s0] sm:$0xff]  ;;  %v21_v8 = vld [vmem:[%s22894_s0 + $0x8] sm:$0xff]  ;;  %s17884_s1 = smov 16   ;;  %s17885_s30 = smov 24  }
   0x3   :  { %v36_v6 = vld [vmem:[%s22894_s0 + $0x80] sm:$0xff]  ;;  %v16050_v7 = vpack.c.bf16 %v55_v4, %v54_v2  ;;  %15046 = vmatprep.mubr.msk.f32.mxu0 %vm56_vm0, %v20_v5  ;;  %v37_v9 = vld [vmem:[%s22894_s0 + $0x88] sm:$0xff]  ;;  %v22_v10 = vld [vmem:[%s22894_s0 + $0x10] sm:$0xff] }
   0x4   :  { %15070 = vmatprep.mubr.msk.f32.mxu1 %vm56_vm0, %v36_v6  ;;  %16047 = vmatprep.subr.bf16.mxu0 %v16046_v3  ;;  %v38_v11 = vld [vmem:[%s22894_s0 + $0x90] sm:$0xff]  ;;  %v23_v12 = vld [vmem:[%s22894_s0 + $0x18] sm:$0xff]  ;;  %v24_v14 = vld [vmem:[%s22894_s0 + $0x20] sm:$0xff] }
   0x5   :  { %16702 = vmatprep.subr.bf16.mxu1 %v16046_v3  ;;  %16049 = vmatpush3.bf16.msra.mxu0 %v16046_v3  ;;  %v39_v13 = vld [vmem:[%s22894_s0 + $0x98] sm:$0xff]  ;;  %v40_v15 = vld [vmem:[%s22894_s0 + $0xa0] sm:$0xff]  ;;  %v25_v16 = vld [vmem:[%s22894_s0 + $0x28] sm:$0xff] }
   0x6   :  { %16704 = vmatpush3.bf16.msra.mxu1 %v16046_v3  ;;  %16051 = vmatprep.subr.bf16.mxu0 %v16050_v7  ;;  %v41_v17 = vld [vmem:[%s22894_s0 + $0xa8] sm:$0xff]  ;;  %v26_v18 = vld [vmem:[%s22894_s0 + $0x30] sm:$0xff]  ;;  %v27_v20 = vld [vmem:[%s22894_s0 + $0x38] sm:$0xff] }
   0x7   :  { %16703 = vmatprep.subr.bf16.mxu1 %v16050_v7  ;;  %v42_v19 = vld [vmem:[%s22894_s0 + $0xb0] sm:$0xff]  ;;  %v43_v21 = vld [vmem:[%s22894_s0 + $0xb8] sm:$0xff]  ;;  %v28_v22 = vld [vmem:[%s22894_s0 + $0x40] sm:$0xff] }
   0x8   :  { %v44_v23 = vld [vmem:[%s22894_s0 + $0xc0] sm:$0xff]  ;;  %v29_v24 = vld [vmem:[%s22894_s0 + $0x48] sm:$0xff]  ;;  %v30_v26 = vld [vmem:[%s22894_s0 + $0x50] sm:$0xff] }
   0x9   :  { %16053 = vmatpush3.bf16.msra.mxu0 %v16050_v7  ;;  %v45_v25 = vld [vmem:[%s22894_s0 + $0xc8] sm:$0xff]  ;;  %v46_v27 = vld [vmem:[%s22894_s0 + $0xd0] sm:$0xff]  ;;  %v31_v28 = vld [vmem:[%s22894_s0 + $0x58] sm:$0xff] }
   0xa   :  { %16705 = vmatpush3.bf16.msra.mxu1 %v16050_v7  ;;  %v47_v29 = vld [vmem:[%s22894_s0 + $0xd8] sm:$0xff]  ;;  %v32_v30 = vld [vmem:[%s22894_s0 + $0x60] sm:$0xff]  ;;  %v33_v32 = vld [vmem:[%s22894_s0 + $0x68] sm:$0xff] }
   0xb   :  { %v48_v31 = vld [vmem:[%s22894_s0 + $0xe0] sm:$0xff]  ;;  %v49_v33 = vld [vmem:[%s22894_s0 + $0xe8] sm:$0xff]  ;;  %v34_v34 = vld [vmem:[%s22894_s0 + $0x70] sm:$0xff] }
   0xc   :  { %15047 = vmatmul.mubr.msk.f32.vlgmr.msra.gmra.mrb[0].mxu0 %vm56_vm0, %v21_v8  ;;  %v50_v35 = vld [vmem:[%s22894_s0 + $0xf0] sm:$0xff]  ;;  %v35_v36 = vld [vmem:[%s22894_s0 + $0x78] sm:$0xff]  ;;  %vm18353_vm2 = vmpackc.low %vm614_vm1, %vm614_vm1 }
   0xd   :  { %15071 = vmatmul.mubr.msk.f32.vlgmr.msra.gmra.mrb[0].mxu1 %vm56_vm0, %v37_v9  ;;  %15049 = vmatprep.mubr.msk.f32.mxu0 %vm56_vm0, %v22_v10  ;;  %v51_v37 = vld [vmem:[%s22894_s0 + $0xf8] sm:$0xff]  ;;  %s17879_s0 = smov 112  }
   0xe   :  { %15073 = vmatprep.mubr.msk.f32.mxu1 %vm56_vm0, %v38_v11 }
  0x10   :  { %15050 = vmatmul.mubr.msk.f32.gmra.mrb[2].mxu0 %vm56_vm0, %v23_v12 }
  0x11   :  { %15074 = vmatmul.mubr.msk.f32.gmra.mrb[2].mxu1 %vm56_vm0, %v39_v13  ;;  %15052 = vmatprep.mubr.msk.f32.mxu0 %vm56_vm0, %v24_v14 }
  0x12   :  { %15076 = vmatprep.mubr.msk.f32.mxu1 %vm56_vm0, %v40_v15 }
  0x14   :  { %15053 = vmatmul.mubr.msk.f32.gmra.mrb[4].mxu0 %vm56_vm0, %v25_v16 }
  0x15   :  { %15077 = vmatmul.mubr.msk.f32.gmra.mrb[4].mxu1 %vm56_vm0, %v41_v17  ;;  %15055 = vmatprep.mubr.msk.f32.mxu0 %vm56_vm0, %v26_v18 }
  0x16   :  { %15079 = vmatprep.mubr.msk.f32.mxu1 %vm56_vm0, %v42_v19 }
  0x18   :  { %15056 = vmatmul.mubr.msk.f32.gmra.mrb[6].mxu0 %vm56_vm0, %v27_v20 }
  0x19   :  { %15080 = vmatmul.mubr.msk.f32.gmra.mrb[6].mxu1 %vm56_vm0, %v43_v21  ;;  %15058 = vmatprep.mubr.msk.f32.mxu0 %vm56_vm0, %v28_v22 }
  0x1a   :  { %15082 = vmatprep.mubr.msk.f32.mxu1 %vm56_vm0, %v44_v23 }
  0x1c   :  { %15059 = vmatmul.mubr.msk.f32.gmra.mrb[8].mxu0 %vm56_vm0, %v29_v24 }
  0x1d   :  { %15083 = vmatmul.mubr.msk.f32.gmra.mrb[8].mxu1 %vm56_vm0, %v45_v25  ;;  %15061 = vmatprep.mubr.msk.f32.mxu0 %vm56_vm0, %v30_v26 }
  0x1e   :  { %15085 = vmatprep.mubr.msk.f32.mxu1 %vm56_vm0, %v46_v27 }
  0x20   :  { %15062 = vmatmul.mubr.msk.f32.gmra.mrb[10].mxu0 %vm56_vm0, %v31_v28 }
  0x21   :  { %15086 = vmatmul.mubr.msk.f32.gmra.mrb[10].mxu1 %vm56_vm0, %v47_v29  ;;  %15064 = vmatprep.mubr.msk.f32.mxu0 %vm56_vm0, %v32_v30 }
  0x22   :  { %15088 = vmatprep.mubr.msk.f32.mxu1 %vm56_vm0, %v48_v31 }
  0x24   :  { %15065 = vmatmul.mubr.msk.f32.gmra.mrb[12].mxu0 %vm56_vm0, %v33_v32 }
  0x25   :  { %15089 = vmatmul.mubr.msk.f32.gmra.mrb[12].mxu1 %vm56_vm0, %v49_v33  ;;  %15067 = vmatprep.mubr.msk.f32.mxu0 %vm56_vm0, %v34_v34 }
  0x26   :  { %15091 = vmatprep.mubr.msk.f32.mxu1 %vm56_vm0, %v50_v35 }
  0x28   :  { %15068 = vmatmul.mubr.msk.f32.gmra.mrb[14].mxu0 %vm56_vm0, %v35_v36 }
  0x29   :  { %15092 = vmatmul.mubr.msk.f32.gmra.mrb[14].mxu1 %vm56_vm0, %v51_v37 }
  0xdf   :  { %v18056_v38 = vpop.f32.mrb[0].mxu0 }
  0xe0   :  { %v18058_v39 = vpop.f32.mrb[0].mxu1  ;;  %412 = vrot.lane.b32.xlu0 %v18056_v38, %s17878_s12  ;;  %v219_v40 = vpop.f32.mrb[1].mxu0 }
  0xe1   :  { %23204 = vst [vmem:[#allocation2_spill] sm:$0xff] %v18058_v39  ;;  %444 = vrot.lane.b32.xlu1 %v18058_v39, %s17878_s12  ;;  %v18064_v41 = vpop.f32.mrb[1].mxu1  ;;  %15098 = vmatprep.mubr.msk.f32.mxu1 %vm614_vm1, %v219_v40  ;;  %v16724_v42 = vpack.i.bf16 %v18056_v38, %v219_v40 }
  0xe2   :  { %23205 = vst [vmem:[#allocation3_spill] sm:$0xff] %v18064_v41  ;;  %v18070_v43 = vpack.i.bf16 %v18058_v39, %v18064_v41 }
  0xe3   :  { %v18072_v44 = vpop.f32.mrb[2].mxu0 }
  0xe4   :  { %23206 = vst [vmem:[#allocation4_spill] sm:$0xff] %v18070_v43  ;;  %v18074_v45 = vpop.f32.mrb[2].mxu1  ;;  %410 = vrot.lane.b32.xlu0 %v219_v40, %s17878_s12  ;;  %v18081_v47 = vpop.f32.mrb[3].mxu0 }
  0xe5   :  { %23207 = vst [vmem:[#allocation5_spill] sm:$0xff] %v18074_v45  ;;  %476 = vrot.lane.b32.xlu1 %v18056_v38, %s17879_s0  ;;  %v18079_v46 = vpop.f32.mrb[3].mxu1  ;;  %v16739_v48 = vpack.i.bf16 %v18072_v44, %v18081_v47 }
  0xe6   :  { %23208 = vst [vmem:[#allocation6_spill] sm:$0xff] %v18079_v46  ;;  %v18087_v49 = vpack.i.bf16 %v18074_v45, %v18079_v46 }
  0xe7   :  { %v18089_v50 = vpop.f32.mrb[4].mxu0 }
  0xe8   :  { %23209 = vst [vmem:[#allocation7_spill] sm:$0xff] %v18087_v49  ;;  %v18091_v51 = vpop.f32.mrb[4].mxu1  ;;  %442 = vrot.lane.b32.xlu0 %v18064_v41, %s17878_s12  ;;  %v18097_v52 = vpop.f32.mrb[5].mxu0 }
  0xe9   :  { %23210 = vst [vmem:[#allocation8_spill] sm:$0xff] %v18091_v51  ;;  %508 = vrot.lane.b32.xlu1 %v18058_v39, %s17879_s0  ;;  %v18099_v53 = vpop.f32.mrb[5].mxu1  ;;  %15154 = vmatprep.mubr.msk.f32.mxu0 %vm614_vm1, %v18097_v52  ;;  %v18105_v54 = vpack.i.bf16 %v18089_v50, %v18097_v52 }
  0xea   :  { %23211 = vst [vmem:[#allocation9_spill] sm:$0xff] %v18099_v53  ;;  %v18109_v55 = vpack.i.bf16 %v18091_v51, %v18099_v53 }
  0xeb   :  { %v18111_v56 = vpop.f32.mrb[6].mxu0 }
  0xec   :  { %23212 = vst [vmem:[#allocation10_spill] sm:$0xff] %v18109_v55  ;;  %v18113_v57 = vpop.f32.mrb[6].mxu1  ;;  %474 = vrot.lane.b32.xlu0 %v219_v40, %s17879_s0  ;;  %v18118_v58 = vpop.f32.mrb[7].mxu0 }
  0xed   :  { %23213 = vst [vmem:[#allocation11_spill] sm:$0xff] %v18113_v57  ;;  %540 = vrot.lane.b32.xlu1 %v18056_v38, %s17880_s13  ;;  %v18120_v59 = vpop.f32.mrb[7].mxu1  ;;  %v18124_v60 = vpack.i.bf16 %v18111_v56, %v18118_v58 }
  0xee   :  { %23214 = vst [vmem:[#allocation12_spill] sm:$0xff] %v18120_v59  ;;  %v18128_v61 = vpack.i.bf16 %v18113_v57, %v18120_v59 }
  0xef   :  { %23215 = vst [vmem:[#allocation13_spill] sm:$0xff] %v18124_v60  ;;  %v18130_v62 = vpop.f32.mrb[8].mxu0 }
  0xf0   :  { %23216 = vst [vmem:[#allocation14_spill] sm:$0xff] %v18128_v61  ;;  %23217 = vst [vmem:[#allocation15_spill] sm:$0xff] %v18130_v62  ;;  %v18132_v63 = vpop.f32.mrb[8].mxu1  ;;  %506 = vrot.lane.b32.xlu0 %v18064_v41, %s17879_s0  ;;  %v18138_v0 = vpop.f32.mrb[9].mxu0 }
  0xf1   :  { %23218 = vst [vmem:[#allocation16_spill] sm:$0xff] %v18132_v63  ;;  %572 = vrot.lane.b32.xlu1 %v18058_v39, %s17880_s13  ;;  %23219 = vst [vmem:[#allocation17_spill] sm:$0xff] %v18138_v0  ;;  %v18140_v1 = vpop.f32.mrb[9].mxu1  ;;  %v18144_v2 = vpack.i.bf16 %v18130_v62, %v18138_v0 }
  0xf2   :  { %23220 = vst [vmem:[#allocation18_spill] sm:$0xff] %v18140_v1  ;;  %v18148_v3 = vpack.i.bf16 %v18132_v63, %v18140_v1 }
  0xf3   :  { %23221 = vst [vmem:[#allocation19_spill] sm:$0xff] %v18144_v2  ;;  %v18150_v4 = vpop.f32.mrb[10].mxu0 }
  0xf4   :  { %23222 = vst [vmem:[#allocation20_spill] sm:$0xff] %v18148_v3  ;;  %23223 = vst [vmem:[#allocation21_spill] sm:$0xff] %v18150_v4  ;;  %v18152_v5 = vpop.f32.mrb[10].mxu1  ;;  %538 = vrot.lane.b32.xlu0 %v219_v40, %s17880_s13  ;;  %v18156_v6 = vpop.f32.mrb[11].mxu0 }
  0xf5   :  { %23224 = vst [vmem:[#allocation22_spill] sm:$0xff] %v18152_v5  ;;  %16725 = vrot.lane.b32.xlu1 %v16724_v42, %s17881_s14  ;;  %23225 = vst [vmem:[#allocation23_spill] sm:$0xff] %v18156_v6  ;;  %v18164_v8 = vpop.f32.mrb[11].mxu1  ;;  %v18177_v10 = vpack.i.bf16 %v18150_v4, %v18156_v6 }
  0xf6   :  { %23227 = vst [vmem:[#allocation25_spill] sm:$0xff] %v18164_v8  ;;  %v18185_v11 = vpack.i.bf16 %v18152_v5, %v18164_v8 }
  0xf7   :  { %v18162_v7 = vpop.f32.mrb[12].mxu0  ;;  %23229 = vst [vmem:[#allocation27_spill] sm:$0xff] %v18177_v10 }
  0xf8   :  { %570 = vrot.lane.b32.xlu0 %v18064_v41, %s17880_s13  ;;  %23226 = vst [vmem:[#allocation24_spill] sm:$0xff] %v18162_v7  ;;  %v18166_v9 = vpop.f32.mrb[12].mxu1  ;;  %23230 = vst [vmem:[#allocation28_spill] sm:$0xff] %v18185_v11  ;;  %v18195_v12 = vpop.f32.mrb[13].mxu0 }
  0xf9   :  { %416 = vrot.lane.b32.xlu1 %v18072_v44, %s17878_s12  ;;  %23228 = vst [vmem:[#allocation26_spill] sm:$0xff] %v18166_v9  ;;  %23231 = vst [vmem:[#allocation29_spill] sm:$0xff] %v18195_v12  ;;  %v18203_v14 = vpop.f32.mrb[13].mxu1  ;;  %v18223_v16 = vpack.i.bf16 %v18162_v7, %v18195_v12 }
  0xfa   :  { %23233 = vst [vmem:[#allocation31_spill] sm:$0xff] %v18203_v14  ;;  %v18231_v17 = vpack.i.bf16 %v18166_v9, %v18203_v14 }
  0xfb   :  { %v18201_v13 = vpop.f32.mrb[14].mxu0  ;;  %23235 = vst [vmem:[#allocation33_spill] sm:$0xff] %v18223_v16 }
  0xfc   :  { %16715 = vrot.lane.b32.xlu0 %v16724_v42, %s17882_s15  ;;  %23232 = vst [vmem:[#allocation30_spill] sm:$0xff] %v18201_v13  ;;  %v18205_v15 = vpop.f32.mrb[14].mxu1  ;;  %23236 = vst [vmem:[#allocation34_spill] sm:$0xff] %v18231_v17  ;;  %v18257_v18 = vpop.f32.mrb[15].mxu0 }
  0xfd   :  { %448 = vrot.lane.b32.xlu1 %v18074_v45, %s17878_s12  ;;  %23234 = vst [vmem:[#allocation32_spill] sm:$0xff] %v18205_v15  ;;  %23237 = vst [vmem:[#allocation35_spill] sm:$0xff] %v18257_v18  ;;  %v18265_v19 = vpack.i.bf16 %v18201_v13, %v18257_v18  ;;  %v18267_v20 = vpop.f32.mrb[15].mxu1 }
  0xfe   :  { %23239 = vst [vmem:[#allocation37_spill] sm:$0xff] %v18267_v20  ;;  %v18275_v21 = vpack.i.bf16 %v18205_v15, %v18267_v20 }
  0xff   :  { %23238 = vst [vmem:[#allocation36_spill] sm:$0xff] %v18265_v19 }
 0x100   :  { %16720 = vrot.lane.b32.xlu0 %v18070_v43, %s17882_s15  ;;  %23240 = vst [vmem:[#allocation38_spill] sm:$0xff] %v18275_v21 }
 0x101   :  { %480 = vrot.lane.b32.xlu1 %v18072_v44, %s17879_s0 }
 0x104   :  { %446 = vrot.lane.b32.xlu0 %v18079_v46, %s17878_s12 }
 0x105   :  { %512 = vrot.lane.b32.xlu1 %v18074_v45, %s17879_s0 }
 0x108   :  { %478 = vrot.lane.b32.xlu0 %v18081_v47, %s17879_s0 }
 0x109   :  { %544 = vrot.lane.b32.xlu1 %v18072_v44, %s17880_s13 }
 0x10c   :  { %510 = vrot.lane.b32.xlu0 %v18079_v46, %s17879_s0 }
 0x10d   :  { %576 = vrot.lane.b32.xlu1 %v18074_v45, %s17880_s13 }
 0x110   :  { %542 = vrot.lane.b32.xlu0 %v18081_v47, %s17880_s13 }
 0x111   :  { %414 = vrot.lane.b32.xlu1 %v18081_v47, %s17878_s12 }
 0x114   :  { %574 = vrot.lane.b32.xlu0 %v18079_v46, %s17880_s13 }
 0x115   :  { %16740 = vrot.lane.b32.xlu1 %v16739_v48, %s17881_s14 }
 0x118   :  { %16730 = vrot.lane.b32.xlu0 %v16739_v48, %s17882_s15 }
 0x119   :  { %420 = vrot.lane.b32.xlu1 %v18089_v50, %s17878_s12 }
 0x11c   :  { %16735 = vrot.lane.b32.xlu0 %v18087_v49, %s17882_s15 }
 0x11d   :  { %452 = vrot.lane.b32.xlu1 %v18091_v51, %s17878_s12 }
 0x120   :  { %418 = vrot.lane.b32.xlu0 %v18097_v52, %s17878_s12 }
 0x121   :  { %484 = vrot.lane.b32.xlu1 %v18089_v50, %s17879_s0 }
 0x124   :  { %450 = vrot.lane.b32.xlu0 %v18099_v53, %s17878_s12 }
 0x125   :  { %516 = vrot.lane.b32.xlu1 %v18091_v51, %s17879_s0 }
 0x128   :  { %482 = vrot.lane.b32.xlu0 %v18097_v52, %s17879_s0 }
 0x129   :  { %548 = vrot.lane.b32.xlu1 %v18089_v50, %s17880_s13 }
 0x12c   :  { %514 = vrot.lane.b32.xlu0 %v18099_v53, %s17879_s0 }
 0x12d   :  { %580 = vrot.lane.b32.xlu1 %v18091_v51, %s17880_s13 }
 0x130   :  { %546 = vrot.lane.b32.xlu0 %v18097_v52, %s17880_s13 }
 0x131   :  { %424 = vrot.lane.b32.xlu1 %v18111_v56, %s17878_s12 }
 0x134   :  { %578 = vrot.lane.b32.xlu0 %v18099_v53, %s17880_s13 }
 0x135   :  { %456 = vrot.lane.b32.xlu1 %v18113_v57, %s17878_s12 }
 0x138   :  { %16745 = vrot.lane.b32.xlu0 %v18105_v54, %s17882_s15 }
 0x139   :  { %488 = vrot.lane.b32.xlu1 %v18111_v56, %s17879_s0 }
 0x13c   :  { %16750 = vrot.lane.b32.xlu0 %v18109_v55, %s17882_s15 }
 0x13d   :  { %520 = vrot.lane.b32.xlu1 %v18113_v57, %s17879_s0 }
 0x140   :  { %422 = vrot.lane.b32.xlu0 %v18118_v58, %s17878_s12 }
 0x141   :  { %552 = vrot.lane.b32.xlu1 %v18111_v56, %s17880_s13 }
 0x144   :  { %454 = vrot.lane.b32.xlu0 %v18120_v59, %s17878_s12 }
 0x145   :  { %584 = vrot.lane.b32.xlu1 %v18113_v57, %s17880_s13 }
 0x148   :  { %486 = vrot.lane.b32.xlu0 %v18118_v58, %s17879_s0 }
 0x149   :  { %428 = vrot.lane.b32.xlu1 %v18130_v62, %s17878_s12 }
 0x14c   :  { %518 = vrot.lane.b32.xlu0 %v18120_v59, %s17879_s0 }
 0x14d   :  { %460 = vrot.lane.b32.xlu1 %v18132_v63, %s17878_s12 }
 0x150   :  { %550 = vrot.lane.b32.xlu0 %v18118_v58, %s17880_s13 }
 0x151   :  { %492 = vrot.lane.b32.xlu1 %v18130_v62, %s17879_s0 }
 0x152   :  { %v18291_v23 = vpop.permute.xlu0 %412 }
 0x153   :  { %v18289_v22 = vpop.permute.xlu1 %444 }
 0x154   :  { %23241 = vst [vmem:[#allocation39_spill] sm:$0xff] %v18289_v22  ;;  %582 = vrot.lane.b32.xlu0 %v18120_v59, %s17880_s13 }
 0x155   :  { %524 = vrot.lane.b32.xlu1 %v18132_v63, %s17879_s0 }
 0x156   :  { %v18299_v25 = vpop.permute.xlu0 %410 }
 0x157   :  { %v18297_v24 = vpop.permute.xlu1 %476 }
 0x158   :  { %16755 = vrot.lane.b32.xlu0 %v18124_v60, %s17882_s15 }
 0x159   :  { %556 = vrot.lane.b32.xlu1 %v18130_v62, %s17880_s13 }
 0x15a   :  { %v18307_v27 = vpop.permute.xlu0 %442 }
 0x15b   :  { %v18305_v26 = vpop.permute.xlu1 %508  ;;  %23243 = vst [vmem:[#allocation41_spill] sm:$0xff] %v18307_v27  ;;  %v18497_v62 = vpack.i.bf16 %v18289_v22, %v18307_v27 }
 0x15c   :  { %23242 = vst [vmem:[#allocation40_spill] sm:$0xff] %v18305_v26  ;;  %16760 = vrot.lane.b32.xlu0 %v18128_v61, %s17882_s15 }
 0x15d   :  { %588 = vrot.lane.b32.xlu1 %v18132_v63, %s17880_s13  ;;  %23272 = vst [vmem:[#allocation68_spill] sm:$0xff] %v18497_v62 }
 0x15e   :  { %v18315_v29 = vpop.permute.xlu0 %474 }
 0x15f   :  { %v18313_v28 = vpop.permute.xlu1 %540 }
 0x160   :  { %426 = vrot.lane.b32.xlu0 %v18138_v0, %s17878_s12 }
 0x161   :  { %432 = vrot.lane.b32.xlu1 %v18150_v4, %s17878_s12 }
 0x162   :  { %v18323_v31 = vpop.permute.xlu0 %506 }
 0x163   :  { %v18321_v30 = vpop.permute.xlu1 %572  ;;  %23245 = vst [vmem:[#allocation43_spill] sm:$0xff] %v18323_v31 }
 0x164   :  { %23244 = vst [vmem:[#allocation42_spill] sm:$0xff] %v18321_v30  ;;  %458 = vrot.lane.b32.xlu0 %v18140_v1, %s17878_s12 }
 0x165   :  { %464 = vrot.lane.b32.xlu1 %v18152_v5, %s17878_s12 }
 0x166   :  { %v18331_v33 = vpop.permute.xlu0 %538 }
 0x167   :  { %v18329_v32 = vpop.permute.xlu1 %16725 }
 0x168   :  { %23246 = vst [vmem:[#allocation44_spill] sm:$0xff] %v18329_v32  ;;  %490 = vrot.lane.b32.xlu0 %v18138_v0, %s17879_s0 }
 0x169   :  { %496 = vrot.lane.b32.xlu1 %v18150_v4, %s17879_s0 }
 0x16a   :  { %v18337_v34 = vpop.permute.xlu0 %570 }
 0x16b   :  { %23247 = vst [vmem:[#allocation45_spill] sm:$0xff] %v18337_v34  ;;  %v18339_v35 = vpop.permute.xlu1 %416 }
 0x16c   :  { %522 = vrot.lane.b32.xlu0 %v18140_v1, %s17879_s0 }
 0x16d   :  { %528 = vrot.lane.b32.xlu1 %v18152_v5, %s17879_s0 }
 0x16e   :  { %v16716_v36 = vpop.permute.xlu0 %16715 }
 0x16f   :  { %v18345_v37 = vpop.permute.xlu1 %448  ;;  %v16718_v40 = vunpack.i.h.bf16 %v16716_v36  ;;  %v16717_v42 = vunpack.i.l.bf16 %v16716_v36 }
 0x170   :  { %23248 = vst [vmem:[#allocation46_spill] sm:$0xff] %v18345_v37  ;;  %554 = vrot.lane.b32.xlu0 %v18138_v0, %s17880_s13 }
 0x171   :  { %560 = vrot.lane.b32.xlu1 %v18150_v4, %s17880_s13  ;;  %v16054_v52 = vpack.c.bf16 %v16718_v40, %v16717_v42 }
 0x172   :  { %v18357_v61 = vpop.permute.xlu0 %16720 }
 0x173   :  { %23251 = vst [vmem:[#allocation47_spill] sm:$0xff] %v18357_v61  ;;  %v18359_v55 = vpop.permute.xlu1 %480  ;;  %16056 = vmatprep.subr.msk.bf16.mxu1 %vm18353_vm2, %v16054_v52 }
 0x174   :  { %16059 = vmatpush3.bf16.xpose.msk.msra.mxu1 %vm18353_vm2, %v16054_v52  ;;  %586 = vrot.lane.b32.xlu0 %v18140_v1, %s17880_s13 }
 0x175   :  { %592 = vrot.lane.b32.xlu1 %v18152_v5, %s17880_s13 }
 0x176   :  { %v18369_v36 = vpop.permute.xlu0 %446 }
 0x177   :  { %23252 = vst [vmem:[#allocation48_spill] sm:$0xff] %v18369_v36  ;;  %v18371_v49 = vpop.permute.xlu1 %512 }
 0x178   :  { %23253 = vst [vmem:[#allocation49_spill] sm:$0xff] %v18371_v49  ;;  %16765 = vrot.lane.b32.xlu0 %v18144_v2, %s17882_s15 }
 0x179   :  { %436 = vrot.lane.b32.xlu1 %v18162_v7, %s17878_s12 }
 0x17a   :  { %v18379_v42 = vpop.permute.xlu0 %478 }
 0x17b   :  { %v18377_v40 = vpop.permute.xlu1 %544  ;;  %15099 = vmatmul.mubr.msk.f32.vlgmr.msra.gmra.mrb[16].mxu1 %vm614_vm1, %v18056_v38 }
 0x17c   :  { %23254 = vst [vmem:[#allocation50_spill] sm:$0xff] %v18377_v40  ;;  %15105 = vmatprep.mubr.msk.f32.mxu1 %vm614_vm1, %v18299_v25  ;;  %16770 = vrot.lane.b32.xlu0 %v18148_v3, %s17882_s15 }
 0x17d   :  { %468 = vrot.lane.b32.xlu1 %v18166_v9, %s17878_s12 }
 0x17e   :  { %v18391_v43 = vpop.permute.xlu0 %510 }
 0x17f   :  { %v18389_v52 = vpop.permute.xlu1 %576  ;;  %23256 = vst [vmem:[#allocation52_spill] sm:$0xff] %v18391_v43 }
 0x180   :  { %23255 = vst [vmem:[#allocation51_spill] sm:$0xff] %v18389_v52  ;;  %430 = vrot.lane.b32.xlu0 %v18156_v6, %s17878_s12 }
 0x181   :  { %500 = vrot.lane.b32.xlu1 %v18162_v7, %s17879_s0 }
 0x182   :  { %v18397_v38 = vpop.permute.xlu0 %542 }
 0x183   :  { %23257 = vst [vmem:[#allocation53_spill] sm:$0xff] %v18397_v38  ;;  %v18399_v2 = vpop.permute.xlu1 %414 }
 0x184   :  { %462 = vrot.lane.b32.xlu0 %v18164_v8, %s17878_s12 }
 0x185   :  { %532 = vrot.lane.b32.xlu1 %v18166_v9, %s17879_s0 }
 0x186   :  { %v18405_v3 = vpop.permute.xlu0 %574 }
 0x187   :  { %23258 = vst [vmem:[#allocation54_spill] sm:$0xff] %v18405_v3  ;;  %v18407_v60 = vpop.permute.xlu1 %16740 }
 0x188   :  { %23259 = vst [vmem:[#allocation55_spill] sm:$0xff] %v18407_v60  ;;  %494 = vrot.lane.b32.xlu0 %v18156_v6, %s17879_s0 }
 0x189   :  { %564 = vrot.lane.b32.xlu1 %v18162_v7, %s17880_s13 }
 0x18a   :  { %v18413_v32 = vpop.permute.xlu0 %16730 }
 0x18b   :  { %v18415_v5 = vpop.permute.xlu1 %420 }
 0x18c   :  { %23260 = vst [vmem:[#allocation56_spill] sm:$0xff] %v18415_v5  ;;  %526 = vrot.lane.b32.xlu0 %v18164_v8, %s17879_s0 }
 0x18d   :  { %596 = vrot.lane.b32.xlu1 %v18166_v9, %s17880_s13 }
 0x18e   :  { %v18421_v63 = vpop.permute.xlu0 %16735 }
 0x18f   :  { %23261 = vst [vmem:[#allocation57_spill] sm:$0xff] %v18421_v63  ;;  %v18423_v1 = vpop.permute.xlu1 %452  ;;  %v18475_v63 = vpack.i.bf16 %v18291_v23, %v18299_v25 }
 0x190   :  { %23262 = vst [vmem:[#allocation58_spill] sm:$0xff] %v18423_v1  ;;  %558 = vrot.lane.b32.xlu0 %v18156_v6, %s17880_s13 }
 0x191   :  { %440 = vrot.lane.b32.xlu1 %v18201_v13, %s17878_s12 }
 0x192   :  { %v18431_v57 = vpop.permute.xlu0 %418 }
 0x193   :  { %v18429_v60 = vpop.permute.xlu1 %484  ;;  %23263 = vst [vmem:[#allocation59_spill] sm:$0xff] %v18431_v57 }
 0x194   :  { %590 = vrot.lane.b32.xlu0 %v18164_v8, %s17880_s13 }
 0x195   :  { %472 = vrot.lane.b32.xlu1 %v18205_v15, %s17878_s12 }
 0x196   :  { %v18439_v59 = vpop.permute.xlu0 %450 }
 0x197   :  { %v18437_v9 = vpop.permute.xlu1 %516  ;;  %23265 = vst [vmem:[#allocation61_spill] sm:$0xff] %v18439_v59 }
 0x198   :  { %23264 = vst [vmem:[#allocation60_spill] sm:$0xff] %v18437_v9  ;;  %16775 = vrot.lane.b32.xlu0 %v18177_v10, %s17882_s15 }
 0x199   :  { %504 = vrot.lane.b32.xlu1 %v18201_v13, %s17879_s0 }
 0x19a   :  { %v18447_v53 = vpop.permute.xlu0 %482 }
 0x19b   :  { %v18445_v51 = vpop.permute.xlu1 %548 }
 0x19c   :  { %16780 = vrot.lane.b32.xlu0 %v18185_v11, %s17882_s15 }
 0x19d   :  { %536 = vrot.lane.b32.xlu1 %v18205_v15, %s17879_s0 }
 0x19e   :  { %v18455_v45 = vpop.permute.xlu0 %514 }
 0x19f   :  { %v18453_v8 = vpop.permute.xlu1 %580  ;;  %23267 = vst [vmem:[#allocation63_spill] sm:$0xff] %v18455_v45 }
 0x1a0   :  { %23266 = vst [vmem:[#allocation62_spill] sm:$0xff] %v18453_v8  ;;  %434 = vrot.lane.b32.xlu0 %v18195_v12, %s17878_s12 }
 0x1a1   :  { %568 = vrot.lane.b32.xlu1 %v18201_v13, %s17880_s13 }
 0x1a2   :  { %v18461_v10 = vpop.permute.xlu0 %546 }
 0x1a3   :  { %v18463_v46 = vpop.permute.xlu1 %424 }
 0x1a4   :  { %466 = vrot.lane.b32.xlu0 %v18203_v14, %s17878_s12 }
 0x1a5   :  { %600 = vrot.lane.b32.xlu1 %v18205_v15, %s17880_s13  ;;  %v18485_v15 = vpack.i.bf16 %v18313_v28, %v18331_v33 }
 0x1a6   :  { %v18469_v11 = vpop.permute.xlu0 %578 }
 0x1a7   :  { %23268 = vst [vmem:[#allocation64_spill] sm:$0xff] %v18469_v11  ;;  %v18471_v39 = vpop.permute.xlu1 %456 }
 0x1a8   :  { %23269 = vst [vmem:[#allocation65_spill] sm:$0xff] %v18471_v39  ;;  %498 = vrot.lane.b32.xlu0 %v18195_v12, %s17879_s0 }
 0x1a9   :  { %16805 = vrot.lane.b32.xlu1 %v18475_v63, %s17882_s15 }
 0x1aa   :  { %v16746_v41 = vpop.permute.xlu0 %16745 }
 0x1ab   :  { %v18481_v13 = vpop.permute.xlu1 %488  ;;  %v16748_v61 = vunpack.i.h.bf16 %v16746_v41  ;;  %v16747_v7 = vunpack.i.l.bf16 %v16746_v41 }
 0x1ac   :  { %530 = vrot.lane.b32.xlu0 %v18203_v14, %s17879_s0 }
 0x1ad   :  { %v16102_v25 = vpack.c.bf16 %v16748_v61, %v16747_v7  ;;  %16815 = vrot.lane.b32.xlu1 %v18485_v15, %s17882_s15  ;;  %v18513_v7 = vpack.i.bf16 %v18321_v30, %v18337_v34  ;;  %v18538_v30 = vpack.i.bf16 %v18339_v35, %v18399_v2 }
 0x1ae   :  { %v18491_v4 = vpop.permute.xlu0 %16750 }
 0x1af   :  { %23270 = vst [vmem:[#allocation66_spill] sm:$0xff] %v18491_v4  ;;  %v18493_v6 = vpop.permute.xlu1 %520  ;;  %16104 = vmatprep.subr.msk.bf16.mxu0 %vm18353_vm2, %v16102_v25  ;;  %23273 = vst [vmem:[#allocation69_spill] sm:$0xff] %v18513_v7  ;;  %v18562_v4 = vpack.i.bf16 %v18345_v37, %v18369_v36 }
 0x1b0   :  { %23271 = vst [vmem:[#allocation67_spill] sm:$0xff] %v18493_v6  ;;  %16107 = vmatpush3.bf16.xpose.msk.msra.mxu0 %vm18353_vm2, %v16102_v25  ;;  %562 = vrot.lane.b32.xlu0 %v18195_v12, %s17880_s13 }
 0x1b1   :  { %16820 = vrot.lane.b32.xlu1 %v18497_v62, %s17882_s15  ;;  %v16839_v62 = vpack.i.bf16 %v18297_v24, %v18315_v29  ;;  %23278 = vst [vmem:[#allocation74_spill] sm:$0xff] %v18562_v4 }
 0x1b2   :  { %v18509_v61 = vpop.permute.xlu0 %422 }
 0x1b3   :  { %v18507_v41 = vpop.permute.xlu1 %552 }
 0x1b4   :  { %594 = vrot.lane.b32.xlu0 %v18203_v14, %s17880_s13 }
 0x1b5   :  { %16830 = vrot.lane.b32.xlu1 %v18513_v7, %s17882_s15 }
 0x1b6   :  { %v18521_v22 = vpop.permute.xlu0 %454 }
 0x1b7   :  { %v18519_v25 = vpop.permute.xlu1 %584  ;;  %23275 = vst [vmem:[#allocation71_spill] sm:$0xff] %v18521_v22  ;;  %15155 = vmatmul.mubr.msk.f32.vlgmr.msra.gmra.mrb[16].mxu0 %vm614_vm1, %v18089_v50 }
 0x1b8   :  { %23274 = vst [vmem:[#allocation70_spill] sm:$0xff] %v18519_v25  ;;  %15168 = vmatprep.mubr.msk.f32.mxu0 %vm614_vm1, %v18447_v53  ;;  %16785 = vrot.lane.b32.xlu0 %v18223_v16, %s17882_s15  ;;  %v18550_v16 = vpack.i.bf16 %v18377_v40, %v18397_v38  ;;  %v18574_v40 = vpack.i.bf16 %v18389_v52, %v18405_v3 }
 0x1b9   :  { %16840 = vrot.lane.b32.xlu1 %v16839_v62, %s17881_s14  ;;  %v18610_v38 = vpack.i.bf16 %v18423_v1, %v18439_v59  ;;  %v18661_v59 = vpack.i.bf16 %v18471_v39, %v18521_v22 }
 0x1ba   :  { %v18532_v14 = vpop.permute.xlu0 %486  ;;  %23281 = vst [vmem:[#allocation77_spill] sm:$0xff] %v18574_v40 }
 0x1bb   :  { %v18534_v7 = vpop.permute.xlu1 %428  ;;  %23285 = vst [vmem:[#allocation81_spill] sm:$0xff] %v18610_v38  ;;  %23294 = vst [vmem:[#allocation90_spill] sm:$0xff] %v18661_v59 }
 0x1bc   :  { %16790 = vrot.lane.b32.xlu0 %v18231_v17, %s17882_s15 }
 0x1bd   :  { %16850 = vrot.lane.b32.xlu1 %v18538_v30, %s17882_s15 }
 0x1be   :  { %v18544_v50 = vpop.permute.xlu0 %518 }
 0x1bf   :  { %23276 = vst [vmem:[#allocation72_spill] sm:$0xff] %v18544_v50  ;;  %v18546_v34 = vpop.permute.xlu1 %460 }
 0x1c0   :  { %23277 = vst [vmem:[#allocation73_spill] sm:$0xff] %v18546_v34  ;;  %438 = vrot.lane.b32.xlu0 %v18257_v18, %s17878_s12 }
 0x1c1   :  { %16860 = vrot.lane.b32.xlu1 %v18550_v16, %s17882_s15 }
 0x1c2   :  { %v18556_v27 = vpop.permute.xlu0 %550 }
 0x1c3   :  { %v18558_v17 = vpop.permute.xlu1 %492 }
 0x1c4   :  { %470 = vrot.lane.b32.xlu0 %v18267_v20, %s17878_s12 }
 0x1c5   :  { %16865 = vrot.lane.b32.xlu1 %v18562_v4, %s17882_s15  ;;  %v18586_v4 = vpack.i.bf16 %v18415_v5, %v18431_v57 }
 0x1c6   :  { %v18568_v12 = vpop.permute.xlu0 %582 }
 0x1c7   :  { %23279 = vst [vmem:[#allocation75_spill] sm:$0xff] %v18568_v12  ;;  %v18570_v0 = vpop.permute.xlu1 %524 }
 0x1c8   :  { %23280 = vst [vmem:[#allocation76_spill] sm:$0xff] %v18570_v0  ;;  %502 = vrot.lane.b32.xlu0 %v18257_v18, %s17879_s0 }
 0x1c9   :  { %16875 = vrot.lane.b32.xlu1 %v18574_v40, %s17882_s15  ;;  %v18598_v40 = vpack.i.bf16 %v18445_v51, %v18461_v10 }
 0x1ca   :  { %v18580_v37 = vpop.permute.xlu0 %16755 }
 0x1cb   :  { %v18582_v36 = vpop.permute.xlu1 %556  ;;  %23284 = vst [vmem:[#allocation80_spill] sm:$0xff] %v18598_v40 }
 0x1cc   :  { %534 = vrot.lane.b32.xlu0 %v18267_v20, %s17879_s0 }
 0x1cd   :  { %16880 = vrot.lane.b32.xlu1 %v18586_v4, %s17882_s15 }
 0x1ce   :  { %v18592_v52 = vpop.permute.xlu0 %16760 }
 0x1cf   :  { %23282 = vst [vmem:[#allocation78_spill] sm:$0xff] %v18592_v52  ;;  %v18594_v3 = vpop.permute.xlu1 %588 }
 0x1d0   :  { %23283 = vst [vmem:[#allocation79_spill] sm:$0xff] %v18594_v3  ;;  %566 = vrot.lane.b32.xlu0 %v18257_v18, %s17880_s13 }
 0x1d1   :  { %16890 = vrot.lane.b32.xlu1 %v18598_v40, %s17882_s15  ;;  %v18622_v40 = vpack.i.bf16 %v18453_v8, %v18469_v11  ;;  %v18653_v11 = vpack.i.bf16 %v18305_v26, %v18323_v31 }
 0x1d2   :  { %v18604_v5 = vpop.permute.xlu0 %426 }
 0x1d3   :  { %v18606_v57 = vpop.permute.xlu1 %432  ;;  %23288 = vst [vmem:[#allocation84_spill] sm:$0xff] %v18622_v40  ;;  %23293 = vst [vmem:[#allocation89_spill] sm:$0xff] %v18653_v11 }
 0x1d4   :  { %598 = vrot.lane.b32.xlu0 %v18267_v20, %s17880_s13 }
 0x1d5   :  { %16895 = vrot.lane.b32.xlu1 %v18610_v38, %s17882_s15  ;;  %v18634_v38 = vpack.i.bf16 %v18463_v46, %v18509_v61 }
 0x1d6   :  { %v18616_v52 = vpop.permute.xlu0 %458 }
 0x1d7   :  { %23286 = vst [vmem:[#allocation82_spill] sm:$0xff] %v18616_v52  ;;  %v18618_v18 = vpop.permute.xlu1 %464  ;;  %23289 = vst [vmem:[#allocation85_spill] sm:$0xff] %v18634_v38  ;;  %v18715_v22 = vpack.i.bf16 %v18546_v34, %v18616_v52  ;;  %v18767_v52 = vpack.i.bf16 %v18493_v6, %v18544_v50 }
 0x1d8   :  { %23287 = vst [vmem:[#allocation83_spill] sm:$0xff] %v18618_v18  ;;  %16795 = vrot.lane.b32.xlu0 %v18265_v19, %s17882_s15 }
 0x1d9   :  { %16905 = vrot.lane.b32.xlu1 %v18622_v40, %s17882_s15  ;;  %v18646_v40 = vpack.i.bf16 %v18507_v41, %v18556_v27  ;;  %23304 = vst [vmem:[#allocation100_spill] sm:$0xff] %v18715_v22  ;;  %23314 = vst [vmem:[#allocation110_spill] sm:$0xff] %v18767_v52 }
 0x1da   :  { %v18628_v1 = vpop.permute.xlu0 %490 }
 0x1db   :  { %v18630_v20 = vpop.permute.xlu1 %496  ;;  %23292 = vst [vmem:[#allocation88_spill] sm:$0xff] %v18646_v40 }
 0x1dc   :  { %16800 = vrot.lane.b32.xlu0 %v18275_v21, %s17882_s15 }
 0x1dd   :  { %16910 = vrot.lane.b32.xlu1 %v18634_v38, %s17882_s15 }
 0x1de   :  { %v18640_v8 = vpop.permute.xlu0 %522 }
 0x1df   :  { %23290 = vst [vmem:[#allocation86_spill] sm:$0xff] %v18640_v8  ;;  %v18642_v19 = vpop.permute.xlu1 %528 }
 0x1e0   :  { %23291 = vst [vmem:[#allocation87_spill] sm:$0xff] %v18642_v19  ;;  %16810 = vrot.lane.b32.xlu0 %v16839_v62, %s17882_s15 }
 0x1e1   :  { %16920 = vrot.lane.b32.xlu1 %v18646_v40, %s17882_s15  ;;  %v18671_v40 = vpack.i.bf16 %v18519_v25, %v18568_v12 }
 0x1e2   :  { %v18655_v21 = vpop.permute.xlu0 %554 }
 0x1e3   :  { %v18657_v38 = vpop.permute.xlu1 %560  ;;  %23296 = vst [vmem:[#allocation92_spill] sm:$0xff] %v18671_v40 }
 0x1e4   :  { %16825 = vrot.lane.b32.xlu0 %v18653_v11, %s17882_s15  ;;  %v18683_v11 = vpack.i.bf16 %v18534_v7, %v18604_v5 }
 0x1e5   :  { %16925 = vrot.lane.b32.xlu1 %v18661_v59, %s17882_s15 }
 0x1e6   :  { %v18667_v62 = vpop.permute.xlu0 %586  ;;  %23298 = vst [vmem:[#allocation94_spill] sm:$0xff] %v18683_v11 }
 0x1e7   :  { %23295 = vst [vmem:[#allocation91_spill] sm:$0xff] %v18667_v62  ;;  %v18673_v26 = vpop.permute.xlu1 %592 }
 0x1e8   :  { %23297 = vst [vmem:[#allocation93_spill] sm:$0xff] %v18673_v26  ;;  %16835 = vrot.lane.b32.xlu0 %v18475_v63, %s17881_s14  ;;  %v18693_v63 = vpack.i.bf16 %v18359_v55, %v18379_v42 }
 0x1e9   :  { %16935 = vrot.lane.b32.xlu1 %v18671_v40, %s17882_s15  ;;  %v18699_v40 = vpack.i.bf16 %v18582_v36, %v18655_v21 }
 0x1ea   :  { %v18679_v39 = vpop.permute.xlu0 %16765 }
 0x1eb   :  { %v18685_v59 = vpop.permute.xlu1 %436  ;;  %23301 = vst [vmem:[#allocation97_spill] sm:$0xff] %v18699_v40 }
 0x1ec   :  { %23299 = vst [vmem:[#allocation95_spill] sm:$0xff] %v18685_v59  ;;  %16845 = vrot.lane.b32.xlu0 %v18485_v15, %s17881_s14  ;;  %v18709_v15 = vpack.i.bf16 %v18371_v49, %v18391_v43  ;;  %v18731_v43 = vpack.i.bf16 %v18594_v3, %v18667_v62 }
 0x1ed   :  { %16940 = vrot.lane.b32.xlu1 %v18683_v11, %s17882_s15 }
 0x1ee   :  { %v18695_v25 = vpop.permute.xlu0 %16770  ;;  %23303 = vst [vmem:[#allocation99_spill] sm:$0xff] %v18709_v15  ;;  %23307 = vst [vmem:[#allocation103_spill] sm:$0xff] %v18731_v43 }
 0x1ef   :  { %23300 = vst [vmem:[#allocation96_spill] sm:$0xff] %v18695_v25  ;;  %v18701_v12 = vpop.permute.xlu1 %468 }
 0x1f0   :  { %23302 = vst [vmem:[#allocation98_spill] sm:$0xff] %v18701_v12  ;;  %16855 = vrot.lane.b32.xlu0 %v18693_v63, %s17882_s15 }
 0x1f1   :  { %16950 = vrot.lane.b32.xlu1 %v18699_v40, %s17882_s15  ;;  %v18725_v40 = vpack.i.bf16 %v18429_v60, %v18447_v53 }
 0x1f2   :  { %v18711_v11 = vpop.permute.xlu0 %430 }
 0x1f3   :  { %v18717_v25 = vpop.permute.xlu1 %500  ;;  %23305 = vst [vmem:[#allocation101_spill] sm:$0xff] %v18725_v40 }
 0x1f4   :  { %16870 = vrot.lane.b32.xlu0 %v18709_v15, %s17882_s15  ;;  %v18747_v15 = vpack.i.bf16 %v18606_v57, %v18711_v11 }
 0x1f5   :  { %16955 = vrot.lane.b32.xlu1 %v18715_v22, %s17882_s15  ;;  %v18741_v22 = vpack.i.bf16 %v18437_v9, %v18455_v45 }
 0x1f6   :  { %v18727_v49 = vpop.permute.xlu0 %462  ;;  %23310 = vst [vmem:[#allocation106_spill] sm:$0xff] %v18747_v15 }
 0x1f7   :  { %23306 = vst [vmem:[#allocation102_spill] sm:$0xff] %v18727_v49  ;;  %v18733_v34 = vpop.permute.xlu1 %532  ;;  %23309 = vst [vmem:[#allocation105_spill] sm:$0xff] %v18741_v22  ;;  %v18789_v50 = vpack.i.bf16 %v18618_v18, %v18727_v49 }
 0x1f8   :  { %23308 = vst [vmem:[#allocation104_spill] sm:$0xff] %v18733_v34  ;;  %16885 = vrot.lane.b32.xlu0 %v18725_v40, %s17882_s15 }
 0x1f9   :  { %16965 = vrot.lane.b32.xlu1 %v18731_v43, %s17882_s15  ;;  %v18757_v43 = vpack.i.bf16 %v18481_v13, %v18532_v14  ;;  %23319 = vst [vmem:[#allocation115_spill] sm:$0xff] %v18789_v50 }
 0x1fa   :  { %v18743_v53 = vpop.permute.xlu0 %494 }
 0x1fb   :  { %v18749_v3 = vpop.permute.xlu1 %564  ;;  %23311 = vst [vmem:[#allocation107_spill] sm:$0xff] %v18757_v43 }
 0x1fc   :  { %16900 = vrot.lane.b32.xlu0 %v18741_v22, %s17882_s15 }
 0x1fd   :  { %16970 = vrot.lane.b32.xlu1 %v18747_v15, %s17882_s15 }
 0x1fe   :  { %v18759_v40 = vpop.permute.xlu0 %526 }
 0x1ff   :  { %23312 = vst [vmem:[#allocation108_spill] sm:$0xff] %v18759_v40  ;;  %v18761_v62 = vpop.permute.xlu1 %596 }
 0x200   :  { %23313 = vst [vmem:[#allocation109_spill] sm:$0xff] %v18761_v62  ;;  %16915 = vrot.lane.b32.xlu0 %v18757_v43, %s17882_s15  ;;  %v18783_v43 = vpack.i.bf16 %v18558_v17, %v18628_v1 }
 0x202   :  { %v18769_v9 = vpop.permute.xlu0 %558  ;;  %23317 = vst [vmem:[#allocation113_spill] sm:$0xff] %v18783_v43 }
 0x203   :  { %v18773_v22 = vpack.i.bf16 %v18657_v38, %v18769_v9  ;;  %v18775_v15 = vpop.permute.xlu1 %440 }
 0x204   :  { %23316 = vst [vmem:[#allocation112_spill] sm:$0xff] %v18775_v15  ;;  %16930 = vrot.lane.b32.xlu0 %v18767_v52, %s17882_s15  ;;  %v18799_v52 = vpack.i.bf16 %v18570_v0, %v18640_v8 }
 0x205   :  { %23315 = vst [vmem:[#allocation111_spill] sm:$0xff] %v18773_v22  ;;  %16980 = vrot.lane.b32.xlu1 %v18773_v22, %s17882_s15 }
 0x206   :  { %v18785_v6 = vpop.permute.xlu0 %590  ;;  %23321 = vst [vmem:[#allocation117_spill] sm:$0xff] %v18799_v52 }
 0x207   :  { %23318 = vst [vmem:[#allocation114_spill] sm:$0xff] %v18785_v6  ;;  %v18791_v45 = vpop.permute.xlu1 %472  ;;  %v18805_v31 = vpack.i.bf16 %v18673_v26, %v18785_v6  ;;  %v18825_v26 = vpack.i.bf16 %v18642_v19, %v18759_v40 }
 0x208   :  { %23320 = vst [vmem:[#allocation116_spill] sm:$0xff] %v18791_v45  ;;  %16945 = vrot.lane.b32.xlu0 %v18783_v43, %s17882_s15 }
 0x209   :  { %16985 = vrot.lane.b32.xlu1 %v18789_v50, %s17882_s15  ;;  %23322 = vst [vmem:[#allocation118_spill] sm:$0xff] %v18805_v31  ;;  %v18815_v50 = vpack.i.bf16 %v18630_v20, %v18743_v53  ;;  %23326 = vst [vmem:[#allocation122_spill] sm:$0xff] %v18825_v26 }
 0x20a   :  { %v18801_v22 = vpop.permute.xlu0 %16775 }
 0x20b   :  { %v18807_v18 = vpop.permute.xlu1 %504  ;;  %23323 = vst [vmem:[#allocation119_spill] sm:$0xff] %v18815_v50 }
 0x20c   :  { %16960 = vrot.lane.b32.xlu0 %v18799_v52, %s17882_s15 }
 0x20d   :  { %16995 = vrot.lane.b32.xlu1 %v18805_v31, %s17882_s15 }
 0x20e   :  { %v18817_v43 = vpop.permute.xlu0 %16780 }
 0x20f   :  { %23324 = vst [vmem:[#allocation120_spill] sm:$0xff] %v18817_v43  ;;  %v18819_v49 = vpop.permute.xlu1 %536 }
 0x210   :  { %23325 = vst [vmem:[#allocation121_spill] sm:$0xff] %v18819_v49  ;;  %16975 = vrot.lane.b32.xlu0 %v18815_v50, %s17882_s15 }
 0x212   :  { %v18827_v6 = vpop.permute.xlu0 %434 }
 0x213   :  { %23327 = vst [vmem:[#allocation123_spill] sm:$0xff] %v18827_v6  ;;  %v18831_v31 = vpack.i.bf16 %v18685_v59, %v18827_v6  ;;  %v18833_v52 = vpop.permute.xlu1 %568 }
 0x214   :  { %23329 = vst [vmem:[#allocation125_spill] sm:$0xff] %v18833_v52  ;;  %16990 = vrot.lane.b32.xlu0 %v18825_v26, %s17882_s15 }
 0x215   :  { %23328 = vst [vmem:[#allocation124_spill] sm:$0xff] %v18831_v31  ;;  %17000 = vrot.lane.b32.xlu1 %v18831_v31, %s17882_s15 }
 0x216   :  { %v18839_v0 = vpop.permute.xlu0 %466 }
 0x217   :  { %23330 = vst [vmem:[#allocation126_spill] sm:$0xff] %v18839_v0  ;;  %v18841_v50 = vpop.permute.xlu1 %600 }
 0x218   :  { %23331 = vst [vmem:[#allocation127_spill] sm:$0xff] %v18841_v50 }
 0x21a   :  { %v18843_v19 = vpop.permute.xlu0 %498 }
 0x21b   :  { %v18847_v40 = vpack.i.bf16 %v18717_v25, %v18843_v19  ;;  %v16806_v8 = vpop.permute.xlu1 %16805 }
 0x21c   :  { %v16808_v43 = vunpack.i.h.bf16 %v16806_v8  ;;  %v16807_v59 = vunpack.i.l.bf16 %v16806_v8 }
 0x21d   :  { %23332 = vst [vmem:[#allocation128_spill] sm:$0xff] %v18847_v40  ;;  %17005 = vrot.lane.b32.xlu0 %v18847_v40, %s17882_s15  ;;  %v18875_v40 = vpack.i.bf16 %v18701_v12, %v18839_v0 }
 0x21e   :  { %v16060_v26 = vpack.c.bf16 %v16808_v43, %v16807_v59  ;;  %v18851_v6 = vpop.permute.xlu0 %530 }
 0x21f   :  { %23333 = vst [vmem:[#allocation129_spill] sm:$0xff] %v18851_v6  ;;  %v18855_v31 = vpack.i.bf16 %v18733_v34, %v18851_v6  ;;  %23337 = vst [vmem:[#allocation133_spill] sm:$0xff] %v18875_v40 }
 0x220   :  { %16062 = vmatprep.subr.msk.bf16.mxu1 %vm18353_vm2, %v16060_v26 }
 0x221   :  { %23334 = vst [vmem:[#allocation130_spill] sm:$0xff] %v18855_v31  ;;  %16065 = vmatpush3.bf16.xpose.msk.msra.mxu1 %vm18353_vm2, %v16060_v26  ;;  %17020 = vrot.lane.b32.xlu0 %v18855_v31, %s17882_s15  ;;  %v16816_v26 = vpop.permute.xlu1 %16815 }
 0x222   :  { %v18863_v8 = vpop.permute.xlu0 %562 }
 0x223   :  { %v18867_v43 = vpack.i.bf16 %v18749_v3, %v18863_v8 }
 0x225   :  { %23335 = vst [vmem:[#allocation131_spill] sm:$0xff] %v18867_v43  ;;  %17010 = vrot.lane.b32.xlu1 %v18867_v43, %s17882_s15  ;;  %v18893_v0 = vpop.permute.xlu1 %16820 }
 0x226   :  { %v18871_v59 = vpop.permute.xlu0 %594 }
 0x227   :  { %23336 = vst [vmem:[#allocation132_spill] sm:$0xff] %v18871_v59  ;;  %v18887_v43 = vpack.i.bf16 %v18761_v62, %v18871_v59 }
 0x228   :  { %15106 = vmatmul.mubr.msk.f32.vlgmr.msra.gmra.mrb[18].mxu1 %vm614_vm1, %v18291_v23 }
 0x229   :  { %15112 = vmatprep.mubr.msk.f32.mxu1 %vm614_vm1, %v18315_v29  ;;  %17015 = vrot.lane.b32.xlu1 %v18875_v40, %s17882_s15  ;;  %23338 = vst [vmem:[#allocation134_spill] sm:$0xff] %v18887_v43  ;;  %v18901_v40 = vpop.permute.xlu1 %16830 }
 0x22a   :  { %v18883_v31 = vpop.permute.xlu0 %16785  ;;  %23341 = vst [vmem:[#allocation137_spill] sm:$0xff] %v18901_v40 }
 0x22d   :  { %17025 = vrot.lane.b32.xlu1 %v18887_v43, %s17882_s15  ;;  %v18909_v43 = vpop.permute.xlu1 %16840 }
 0x22e   :  { %v18891_v12 = vpop.permute.xlu0 %16790  ;;  %23343 = vst [vmem:[#allocation139_spill] sm:$0xff] %v18909_v43 }
 0x22f   :  { %23339 = vst [vmem:[#allocation135_spill] sm:$0xff] %v18891_v12 }
 0x232   :  { %v18895_v23 = vpop.permute.xlu0 %438 }
 0x233   :  { %v18899_v29 = vpack.i.bf16 %v18775_v15, %v18895_v23 }
 0x235   :  { %23340 = vst [vmem:[#allocation136_spill] sm:$0xff] %v18899_v29  ;;  %17030 = vrot.lane.b32.xlu1 %v18899_v29, %s17882_s15  ;;  %v16851_v29 = vpop.permute.xlu1 %16850 }
 0x236   :  { %v18905_v62 = vpop.permute.xlu0 %470 }
 0x237   :  { %23342 = vst [vmem:[#allocation138_spill] sm:$0xff] %v18905_v62 }
 0x23a   :  { %v18907_v59 = vpop.permute.xlu0 %502 }
 0x23b   :  { %v18913_v34 = vpack.i.bf16 %v18807_v18, %v18907_v59 }
 0x23d   :  { %23344 = vst [vmem:[#allocation140_spill] sm:$0xff] %v18913_v34  ;;  %17035 = vrot.lane.b32.xlu0 %v18913_v34, %s17882_s15 }
 0x23e   :  { %v18917_v6 = vpop.permute.xlu0 %534 }
 0x23f   :  { %23345 = vst [vmem:[#allocation141_spill] sm:$0xff] %v18917_v6  ;;  %v18921_v12 = vpack.i.bf16 %v18819_v49, %v18917_v6  ;;  %v18937_v49 = vpop.permute.xlu1 %16860  ;;  %v18941_v6 = vpack.i.bf16 %v18791_v45, %v18905_v62 }
 0x241   :  { %23346 = vst [vmem:[#allocation142_spill] sm:$0xff] %v18921_v12  ;;  %17050 = vrot.lane.b32.xlu0 %v18921_v12, %s17882_s15  ;;  %23350 = vst [vmem:[#allocation146_spill] sm:$0xff] %v18941_v6 }
 0x242   :  { %v18925_v40 = vpop.permute.xlu0 %566 }
 0x243   :  { %23347 = vst [vmem:[#allocation143_spill] sm:$0xff] %v18925_v40  ;;  %v18929_v43 = vpack.i.bf16 %v18833_v52, %v18925_v40  ;;  %v16818_v52 = vunpack.i.h.bf16 %v16816_v26 }
 0x245   :  { %23348 = vst [vmem:[#allocation144_spill] sm:$0xff] %v18929_v43  ;;  %17055 = vrot.lane.b32.xlu0 %v18538_v30, %s17881_s14  ;;  %17040 = vrot.lane.b32.xlu1 %v18929_v43, %s17882_s15  ;;  %v18953_v43 = vpop.permute.xlu1 %16865 }
 0x246   :  { %v18935_v34 = vpop.permute.xlu0 %598  ;;  %23352 = vst [vmem:[#allocation148_spill] sm:$0xff] %v18953_v43 }
 0x247   :  { %23349 = vst [vmem:[#allocation145_spill] sm:$0xff] %v18935_v34  ;;  %v18951_v30 = vpack.i.bf16 %v18841_v50, %v18935_v34  ;;  %v16817_v50 = vunpack.i.l.bf16 %v16816_v26 }
 0x249   :  { %17070 = vrot.lane.b32.xlu0 %v18550_v16, %s17881_s14  ;;  %17045 = vrot.lane.b32.xlu1 %v18941_v6, %s17882_s15  ;;  %23351 = vst [vmem:[#allocation147_spill] sm:$0xff] %v18951_v30  ;;  %v18965_v34 = vpop.permute.xlu1 %16875 }
 0x24a   :  { %v18947_v12 = vpop.permute.xlu0 %16795  ;;  %23354 = vst [vmem:[#allocation150_spill] sm:$0xff] %v18965_v34 }
 0x24d   :  { %17080 = vrot.lane.b32.xlu0 %v18586_v4, %s17881_s14  ;;  %17060 = vrot.lane.b32.xlu1 %v18951_v30, %s17882_s15  ;;  %v16072_v30 = vpack.c.bf16 %v16818_v52, %v16817_v50 }
 0x24e   :  { %v18959_v45 = vpop.f32.mrb[16].mxu1  ;;  %v18961_v16 = vpop.permute.xlu0 %16800 }
 0x24f   :  { %23353 = vst [vmem:[#allocation149_spill] sm:$0xff] %v18961_v16  ;;  %v689_v62 = vpop.f32.mrb[17].mxu1  ;;  %v16758_v16 = vunpack.i.h.bf16 %v18580_v37 }
 0x251   :  { %17065 = vrot.lane.b32.xlu1 %v18693_v63, %s17881_s14  ;;  %v18975_v63 = vpop.permute.xlu1 %16880 }
 0x252   :  { %v16811_v6 = vpop.permute.xlu0 %16810 }
 0x253   :  { %v16813_v43 = vunpack.i.h.bf16 %v16811_v6  ;;  %v16812_v40 = vunpack.i.l.bf16 %v16811_v6  ;;  %v16733_v6 = vunpack.i.h.bf16 %v18413_v32 }
 0x255   :  { %v16066_v15 = vpack.c.bf16 %v16813_v43, %v16812_v40  ;;  %17075 = vrot.lane.b32.xlu1 %v18105_v54, %s17881_s14  ;;  %v16732_v54 = vunpack.i.l.bf16 %v18413_v32  ;;  %v18985_v50 = vpop.permute.xlu1 %16890  ;;  %v16853_v43 = vunpack.i.h.bf16 %v16851_v29  ;;  %v16852_v32 = vunpack.i.l.bf16 %v16851_v29 }
 0x256   :  { %v18969_v4 = vpop.permute.xlu0 %16825 }
 0x257   :  { %16068 = vmatprep.subr.msk.bf16.mxu1 %vm18353_vm2, %v16066_v15  ;;  %v16078_v52 = vpack.c.bf16 %v16733_v6, %v16732_v54  ;;  %v18998_v6 = vld [vmem:[%s22895_s4] sm:$0xff] }
 0x258   :  { %16071 = vmatpush3.bf16.xpose.msk.msra.mxu1 %vm18353_vm2, %v16066_v15 }
 0x259   :  { %16074 = vmatprep.subr.msk.bf16.mxu1 %vm18353_vm2, %v16072_v30  ;;  %v19000_v54 = vpop.permute.xlu1 %16895 }
 0x25a   :  { %v18979_v26 = vpop.permute.xlu0 %16835  ;;  %23357 = vst [vmem:[#allocation153_spill] sm:$0xff] %v19000_v54 }
 0x25b   :  { %23355 = vst [vmem:[#allocation151_spill] sm:$0xff] %v18979_v26 }
 0x25d   :  { %v19017_v29 = vpop.permute.xlu1 %16905 }
 0x25e   :  { %v18983_v40 = vpop.permute.xlu0 %16845 }
 0x25f   :  { %23356 = vst [vmem:[#allocation152_spill] sm:$0xff] %v18983_v40  ;;  %15113 = vmatmul.mubr.msk.f32.vlgmr.msra.gmra.mrb[20].mxu1 %vm614_vm1, %v18297_v24  ;;  %v19003_v24 = vadd.f32 %v689_v62, %v18998_v6  ;;  %v16084_v40 = vpack.c.bf16 %v16853_v43, %v16852_v32 }
 0x260   :  { %16077 = vmatpush3.bf16.xpose.msk.msra.mxu1 %vm18353_vm2, %v16072_v30  ;;  %15119 = vmatprep.mubr.msk.f32.mxu1 %vm614_vm1, %v18331_v33 }
 0x261   :  { %16080 = vmatprep.subr.msk.bf16.mxu1 %vm18353_vm2, %v16078_v52  ;;  %23358 = vst [vmem:[#allocation154_spill] sm:$0xff] %v19003_v24  ;;  %v6180_v62 = vsel %vm6179_vm3, %v19003_v24, -inf }
 0x262   :  { %v16856_v15 = vpop.permute.xlu0 %16855 }
 0x263   :  { %v16858_v43 = vunpack.i.h.bf16 %v16856_v15  ;;  %v16857_v32 = vunpack.i.l.bf16 %v16856_v15  ;;  %v19031_v15 = vpop.permute.xlu1 %16910 }
 0x265   :  { %v16090_v34 = vpack.c.bf16 %v16858_v43, %v16857_v32 }
 0x266   :  { %v19005_v30 = vpop.permute.xlu0 %16870 }
 0x267   :  { %15120 = vmatmul.mubr.msk.f32.vlgmr.msra.gmra.mrb[22].mxu1 %vm614_vm1, %v18313_v28 }
 0x268   :  { %16083 = vmatpush3.bf16.xpose.msk.msra.mxu1 %vm18353_vm2, %v16078_v52  ;;  %15126 = vmatprep.mubr.msk.f32.mxu1 %vm614_vm1, %v18081_v47  ;;  %v16757_v52 = vunpack.i.l.bf16 %v18580_v37 }
 0x269   :  { %16086 = vmatprep.subr.msk.bf16.mxu1 %vm18353_vm2, %v16084_v40 }
 0x26a   :  { %v16886_v33 = vpop.permute.xlu0 %16885  ;;  %v16126_v24 = vpack.c.bf16 %v16758_v16, %v16757_v52  ;;  %v16863_v16 = vunpack.i.h.bf16 %v18937_v49 }
 0x26b   :  { %v16888_v26 = vunpack.i.h.bf16 %v16886_v33  ;;  %v16887_v28 = vunpack.i.l.bf16 %v16886_v33  ;;  %v19050_v33 = vpop.permute.xlu1 %16920 }
 0x26c   :  { %6181 = vmax.xlane.f32.xlu0 %v6180_v62 }
 0x26d   :  { %v16114_v54 = vpack.c.bf16 %v16888_v26, %v16887_v28  ;;  %v16892_v28 = vunpack.i.l.bf16 %v18985_v50 }
 0x26e   :  { %v19021_v47 = vpop.permute.xlu0 %16900 }
 0x26f   :  { %15127 = vmatmul.mubr.msk.f32.vlgmr.msra.gmra.mrb[24].mxu1 %vm614_vm1, %v18072_v44  ;;  %16116 = vmatprep.subr.msk.bf16.mxu0 %vm18353_vm2, %v16114_v54  ;;  %v19040_v44 = vld [vmem:[%s22895_s4 + $0x8] sm:$0xff] }
 0x270   :  { %16089 = vmatpush3.bf16.xpose.msk.msra.mxu1 %vm18353_vm2, %v16084_v40  ;;  %15133 = vmatprep.mubr.msk.f32.mxu1 %vm614_vm1, %v18399_v2  ;;  %v16862_v2 = vunpack.i.l.bf16 %v18937_v49  ;;  %v19048_v26 = vadd.f32 %v18959_v45, %v19040_v44  ;;  %v16883_v49 = vunpack.i.h.bf16 %v18975_v63 }
 0x271   :  { %16119 = vmatpush3.bf16.xpose.msk.msra.mxu0 %vm18353_vm2, %v16114_v54  ;;  %16092 = vmatprep.subr.msk.bf16.mxu1 %vm18353_vm2, %v16090_v34 }
 0x272   :  { %16128 = vmatprep.subr.msk.bf16.mxu0 %vm18353_vm2, %v16126_v24  ;;  %v16916_v37 = vpop.permute.xlu0 %16915  ;;  %v16096_v62 = vpack.c.bf16 %v16863_v16, %v16862_v2  ;;  %v6183_v45 = vsel %vm6179_vm3, %v19048_v26, -inf  ;;  %v23360_v16 = vld [vmem:[#allocation50_spill] sm:$0xff] }
 0x273   :  { %v16918_v40 = vunpack.i.h.bf16 %v16916_v37  ;;  %v16917_v54 = vunpack.i.l.bf16 %v16916_v37 }
 0x275   :  { %v16138_v43 = vpack.c.bf16 %v16918_v40, %v16917_v54  ;;  %v23361_v54 = vld [vmem:[#allocation59_spill] sm:$0xff] }
 0x277   :  { %15134 = vmatmul.mubr.msk.f32.vlgmr.msra.gmra.mrb[26].mxu1 %vm614_vm1, %v18339_v35  ;;  %v16768_v35 = vunpack.i.h.bf16 %v18679_v39 }
 0x278   :  { %15169 = vmatmul.mubr.msk.f32.vlgmr.msra.gmra.mrb[18].mxu0 %vm614_vm1, %v18429_v60  ;;  %16095 = vmatpush3.bf16.xpose.msk.msra.mxu1 %vm18353_vm2, %v16090_v34  ;;  %v16882_v60 = vunpack.i.l.bf16 %v18975_v63  ;;  %v19072_v34 = vpop.permute.xlu0 %16930  ;;  %v23359_v63 = vld [vmem:[#allocation53_spill] sm:$0xff] }
 0x279   :  { %15140 = vmatprep.mubr.msk.f32.mxu1 %vm614_vm1, %v18379_v42  ;;  %16131 = vmatpush3.bf16.xpose.msk.msra.mxu0 %vm18353_vm2, %v16126_v24  ;;  %v16767_v42 = vunpack.i.l.bf16 %v18679_v39  ;;  %v19076_v24 = vpop.permute.xlu1 %16925 }
 0x27a   :  { %15182 = vmatprep.mubr.msk.f32.mxu0 %vm614_vm1, %v18118_v58  ;;  %6184 = vmax.xlane.f32.xlu1 %v6183_v45  ;;  %v16108_v58 = vpack.c.bf16 %v16883_v49, %v16882_v60  ;;  %v16913_v45 = vunpack.i.h.bf16 %v19031_v15  ;;  %v16912_v49 = vunpack.i.l.bf16 %v19031_v15 }
 0x27b   :  { %16098 = vmatprep.subr.msk.bf16.mxu1 %vm18353_vm2, %v16096_v62  ;;  %16140 = vmatprep.subr.msk.bf16.mxu0 %vm18353_vm2, %v16138_v43  ;;  %v16150_v32 = vpack.c.bf16 %v16768_v35, %v16767_v42  ;;  %v16778_v42 = vunpack.i.h.bf16 %v18801_v22 }
 0x27c   :  { %v16946_v39 = vpop.permute.xlu0 %16945  ;;  %v16132_v15 = vpack.c.bf16 %v16913_v45, %v16912_v49  ;;  %v23366_v49 = vld [vmem:[#allocation21_spill] sm:$0xff] }
 0x27d   :  { %v16948_v52 = vunpack.i.h.bf16 %v16946_v39  ;;  %v16947_v37 = vunpack.i.l.bf16 %v16946_v39 }
 0x27f   :  { %15141 = vmatmul.mubr.msk.f32.vlgmr.msra.gmra.mrb[28].mxu1 %vm614_vm1, %v18359_v55  ;;  %v19092_v55 = vpop.permute.xlu1 %16935  ;;  %v16162_v40 = vpack.c.bf16 %v16948_v52, %v16947_v37  ;;  %v16923_v37 = vunpack.i.h.bf16 %v19050_v33 }
 0x280   :  { %15183 = vmatmul.mubr.msk.f32.vlgmr.msra.gmra.mrb[20].mxu0 %vm614_vm1, %v18111_v56  ;;  %16101 = vmatpush3.bf16.xpose.msk.msra.mxu1 %vm18353_vm2, %v16096_v62  ;;  %v16893_v56 = vunpack.i.h.bf16 %v18985_v50  ;;  %v23362_v50 = vld [vmem:[#allocation17_spill] sm:$0xff]  ;;  %v19119_v60 = vpop.permute.xlu0 %16960 }
 0x281   :  { %15147 = vmatprep.mubr.msk.f32.mxu1 %vm614_vm1, %v23359_v63  ;;  %16143 = vmatpush3.bf16.xpose.msk.msra.mxu0 %vm18353_vm2, %v16138_v43 }
 0x282   :  { %15196 = vmatprep.mubr.msk.f32.mxu0 %vm614_vm1, %v18532_v14  ;;  %16110 = vmatprep.subr.msk.bf16.mxu1 %vm18353_vm2, %v16108_v58  ;;  %v16120_v2 = vpack.c.bf16 %v16893_v56, %v16892_v28  ;;  %v23363_v56 = vld [vmem:[#allocation56_spill] sm:$0xff]  ;;  %v23364_v28 = vld [vmem:[#allocation15_spill] sm:$0xff] }
 0x283   :  { %16152 = vmatprep.subr.msk.bf16.mxu0 %vm18353_vm2, %v16150_v32  ;;  %v16941_v14 = vpop.permute.xlu1 %16940 }
 0x284   :  { %v16976_v52 = vpop.permute.xlu0 %16975 }
 0x287   :  { %15148 = vmatmul.mubr.msk.f32.vlgmr.msra.gmra.mrb[30].mxu1 %vm614_vm1, %v23360_v16  ;;  %v16951_v39 = vpop.permute.xlu1 %16950  ;;  %v16922_v16 = vunpack.i.l.bf16 %v19050_v33  ;;  %v23365_v33 = vld [vmem:[#allocation23_spill] sm:$0xff] }
 0x288   :  { %15197 = vmatmul.mubr.msk.f32.vlgmr.msra.gmra.mrb[22].mxu0 %vm614_vm1, %v18481_v13  ;;  %16113 = vmatpush3.bf16.xpose.msk.msra.mxu1 %vm18353_vm2, %v16108_v58  ;;  %v16777_v58 = vunpack.i.l.bf16 %v18801_v22 }
 0x289   :  { %15161 = vmatprep.mubr.msk.f32.mxu1 %vm614_vm1, %v23361_v54  ;;  %16155 = vmatpush3.bf16.xpose.msk.msra.mxu0 %vm18353_vm2, %v16150_v32  ;;  %v16977_v54 = vunpack.i.l.bf16 %v16976_v52 }
 0x28a   :  { %15210 = vmatprep.mubr.msk.f32.mxu0 %vm614_vm1, %v23362_v50  ;;  %16122 = vmatprep.subr.msk.bf16.mxu1 %vm18353_vm2, %v16120_v2  ;;  %v15156_v62 = vpop.f32.mrb[16].mxu0  ;;  %v16174_v22 = vpack.c.bf16 %v16778_v42, %v16777_v58  ;;  %v16942_v50 = vunpack.i.l.bf16 %v16941_v14 }
 0x28b   :  { %16164 = vmatprep.subr.msk.bf16.mxu0 %vm18353_vm2, %v16162_v40  ;;  %v19115_v13 = vadd.f32 %v15156_v62, %v19040_v44  ;;  %v1385_v43 = vpop.f32.mrb[17].mxu0  ;;  %v16788_v62 = vunpack.i.h.bf16 %v18883_v31 }
 0x28c   :  { %v19122_v35 = vadd.f32 %v1385_v43, %v18998_v6  ;;  %v19170_v43 = vpop.permute.xlu0 %16990 }
 0x28d   :  { %v6231_v32 = vsel %vm6179_vm3, %v19115_v13, -inf }
 0x28e   :  { %6232 = vmax.xlane.f32.xlu0 %v6231_v32  ;;  %v6228_v63 = vsel %vm6179_vm3, %v19122_v35, -inf }
 0x28f   :  { %15162 = vmatmul.mubr.msk.f32.vlgmr.msra.gmra.mrb[32].mxu1 %vm614_vm1, %v23363_v56  ;;  %6229 = vmax.xlane.f32.xlu1 %v6228_v63 }
 0x290   :  { %15211 = vmatmul.mubr.msk.f32.vlgmr.msra.gmra.mrb[24].mxu0 %vm614_vm1, %v23364_v28  ;;  %16125 = vmatpush3.bf16.xpose.msk.msra.mxu1 %vm18353_vm2, %v16120_v2  ;;  %v19148_v2 = vpop.permute.xlu1 %16955  ;;  %v16798_v28 = vunpack.i.h.bf16 %v18947_v12 }
 0x291   :  { %15175 = vmatprep.mubr.msk.f32.mxu1 %vm614_vm1, %v18461_v10  ;;  %16167 = vmatpush3.bf16.xpose.msk.msra.mxu0 %vm18353_vm2, %v16162_v40  ;;  %v16978_v10 = vunpack.i.h.bf16 %v16976_v52  ;;  %v16144_v40 = vpack.c.bf16 %v16923_v37, %v16922_v16  ;;  %v23368_v37 = vld [vmem:[#allocation24_spill] sm:$0xff] }
 0x292   :  { %15224 = vmatprep.mubr.msk.f32.mxu0 %vm614_vm1, %v18628_v1  ;;  %16134 = vmatprep.subr.msk.bf16.mxu1 %vm18353_vm2, %v16132_v15 }
 0x293   :  { %16176 = vmatprep.subr.msk.bf16.mxu0 %vm18353_vm2, %v16174_v22  ;;  %v16186_v1 = vpack.c.bf16 %v16978_v10, %v16977_v54 }
 0x297   :  { %15176 = vmatmul.mubr.msk.f32.vlgmr.msra.gmra.mrb[34].mxu1 %vm614_vm1, %v18445_v51  ;;  %v19164_v51 = vpop.permute.xlu1 %16965 }
 0x298   :  { %15225 = vmatmul.mubr.msk.f32.vlgmr.msra.gmra.mrb[26].mxu0 %vm614_vm1, %v18558_v17  ;;  %16137 = vmatpush3.bf16.xpose.msk.msra.mxu1 %vm18353_vm2, %v16132_v15  ;;  %v16943_v17 = vunpack.i.h.bf16 %v16941_v14  ;;  %v16952_v14 = vunpack.i.l.bf16 %v16951_v39 }
 0x299   :  { %15189 = vmatprep.mubr.msk.f32.mxu1 %vm614_vm1, %v18509_v61  ;;  %16179 = vmatpush3.bf16.xpose.msk.msra.mxu0 %vm18353_vm2, %v16174_v22  ;;  %v16787_v61 = vunpack.i.l.bf16 %v18883_v31  ;;  %v17006_v31 = vpop.permute.xlu0 %17005 }
 0x29a   :  { %15238 = vmatprep.mubr.msk.f32.mxu0 %vm614_vm1, %v23365_v33  ;;  %16146 = vmatprep.subr.msk.bf16.mxu1 %vm18353_vm2, %v16144_v40  ;;  %v16156_v45 = vpack.c.bf16 %v16943_v17, %v16942_v50  ;;  %v17008_v63 = vunpack.i.h.bf16 %v17006_v31  ;;  %v17007_v56 = vunpack.i.l.bf16 %v17006_v31  ;;  %v23369_v50 = vld [vmem:[#allocation35_spill] sm:$0xff] }
 0x29b   :  { %16188 = vmatprep.subr.msk.bf16.mxu0 %vm18353_vm2, %v16186_v1  ;;  %v16198_v42 = vpack.c.bf16 %v16788_v62, %v16787_v61  ;;  %v16971_v58 = vpop.permute.xlu1 %16970  ;;  %v23370_v62 = vld [vmem:[#allocation47_spill] sm:$0xff] }
 0x29c   :  { %v16972_v15 = vunpack.i.l.bf16 %v16971_v58  ;;  %v16723_v61 = vunpack.i.h.bf16 %v23370_v62 }
 0x29d   :  { %v19208_v22 = vpop.permute.xlu0 %17020 }
 0x29f   :  { %15190 = vmatmul.mubr.msk.f32.vlgmr.msra.gmra.mrb[36].mxu1 %vm614_vm1, %v18463_v46  ;;  %v16953_v46 = vunpack.i.h.bf16 %v16951_v39  ;;  %v16981_v32 = vpop.permute.xlu1 %16980  ;;  %v23367_v39 = vld [vmem:[#allocation29_spill] sm:$0xff] }
 0x2a0   :  { %15239 = vmatmul.mubr.msk.f32.vlgmr.msra.gmra.mrb[28].mxu0 %vm614_vm1, %v23366_v49  ;;  %16149 = vmatpush3.bf16.xpose.msk.msra.mxu1 %vm18353_vm2, %v16144_v40  ;;  %v16982_v54 = vunpack.i.l.bf16 %v16981_v32 }
 0x2a1   :  { %15203 = vmatprep.mubr.msk.f32.mxu1 %vm614_vm1, %v18556_v27  ;;  %16191 = vmatpush3.bf16.xpose.msk.msra.mxu0 %vm18353_vm2, %v16186_v1  ;;  %v16168_v27 = vpack.c.bf16 %v16953_v46, %v16952_v14  ;;  %v16828_v46 = vunpack.i.h.bf16 %v18969_v4  ;;  %v16827_v14 = vunpack.i.l.bf16 %v18969_v4  ;;  %v23373_v4 = vld [vmem:[#allocation3_spill] sm:$0xff] }
 0x2a2   :  { %15252 = vmatprep.mubr.msk.f32.mxu0 %vm614_vm1, %v18743_v53  ;;  %16158 = vmatprep.subr.msk.bf16.mxu1 %vm18353_vm2, %v16156_v45  ;;  %v16210_v53 = vpack.c.bf16 %v17008_v63, %v17007_v56  ;;  %v23372_v56 = vld [vmem:[#allocation123_spill] sm:$0xff] }
 0x2a3   :  { %16200 = vmatprep.subr.msk.bf16.mxu0 %vm18353_vm2, %v16198_v42 }
 0x2a7   :  { %15204 = vmatmul.mubr.msk.f32.vlgmr.msra.gmra.mrb[38].mxu1 %vm614_vm1, %v18507_v41  ;;  %v19202_v41 = vpop.permute.xlu1 %16985 }
 0x2a8   :  { %15253 = vmatmul.mubr.msk.f32.vlgmr.msra.gmra.mrb[30].mxu0 %vm614_vm1, %v18630_v20  ;;  %16161 = vmatpush3.bf16.xpose.msk.msra.mxu1 %vm18353_vm2, %v16156_v45  ;;  %v16973_v20 = vunpack.i.h.bf16 %v16971_v58  ;;  %v16722_v45 = vunpack.i.l.bf16 %v23370_v62  ;;  %v23383_v62 = vld [vmem:[#allocation143_spill] sm:$0xff] }
 0x2a9   :  { %15217 = vmatprep.mubr.msk.f32.mxu1 %vm614_vm1, %v18604_v5  ;;  %16203 = vmatpush3.bf16.xpose.msk.msra.mxu0 %vm18353_vm2, %v16198_v42  ;;  %v16797_v5 = vunpack.i.l.bf16 %v18947_v12  ;;  %v23371_v42 = vld [vmem:[#allocation30_spill] sm:$0xff] }
 0x2aa   :  { %15266 = vmatprep.mubr.msk.f32.mxu0 %vm614_vm1, %v23367_v39  ;;  %16170 = vmatprep.subr.msk.bf16.mxu1 %vm18353_vm2, %v16168_v27  ;;  %v16180_v52 = vpack.c.bf16 %v16973_v20, %v16972_v15  ;;  %v16246_v58 = vpack.c.bf16 %v16723_v61, %v16722_v45  ;;  %v23375_v20 = vld [vmem:[#allocation95_spill] sm:$0xff]  ;;  %v23385_v61 = vld [vmem:[#allocation137_spill] sm:$0xff] }
 0x2ab   :  { %16212 = vmatprep.subr.msk.bf16.mxu0 %vm18353_vm2, %v16210_v53  ;;  %v16222_v16 = vpack.c.bf16 %v16798_v28, %v16797_v5  ;;  %v19216_v10 = vpop.permute.xlu1 %16995  ;;  %v23376_v28 = vld [vmem:[#allocation2_spill] sm:$0xff]  ;;  %v16833_v45 = vunpack.i.h.bf16 %v23385_v61 }
 0x2af   :  { %15218 = vmatmul.mubr.msk.f32.vlgmr.msra.gmra.mrb[40].mxu1 %vm614_vm1, %v18534_v7  ;;  %v17036_v12 = vpop.permute.xlu0 %17035  ;;  %v16983_v7 = vunpack.i.h.bf16 %v16981_v32  ;;  %v17001_v40 = vpop.permute.xlu1 %17000 }
 0x2b0   :  { %15267 = vmatmul.mubr.msk.f32.vlgmr.msra.gmra.mrb[32].mxu0 %vm614_vm1, %v23368_v37  ;;  %16173 = vmatpush3.bf16.xpose.msk.msra.mxu1 %vm18353_vm2, %v16168_v27  ;;  %v17038_v1 = vunpack.i.h.bf16 %v17036_v12  ;;  %v17037_v33 = vunpack.i.l.bf16 %v17036_v12  ;;  %v23374_v27 = vld [vmem:[#allocation57_spill] sm:$0xff]  ;;  %v23377_v37 = vld [vmem:[#allocation43_spill] sm:$0xff] }
 0x2b1   :  { %15231 = vmatprep.mubr.msk.f32.mxu1 %vm614_vm1, %v18655_v21  ;;  %16215 = vmatpush3.bf16.xpose.msk.msra.mxu0 %vm18353_vm2, %v16210_v53  ;;  %v16192_v21 = vpack.c.bf16 %v16983_v7, %v16982_v54  ;;  %v16738_v53 = vunpack.i.h.bf16 %v23374_v27  ;;  %v16737_v39 = vunpack.i.l.bf16 %v23374_v27  ;;  %v16873_v7 = vunpack.i.h.bf16 %v19005_v30  ;;  %v23392_v27 = vld [vmem:[#allocation39_spill] sm:$0xff] }
 0x2b2   :  { %15280 = vmatprep.mubr.msk.f32.mxu0 %vm614_vm1, %v18843_v19  ;;  %16182 = vmatprep.subr.msk.bf16.mxu1 %vm18353_vm2, %v16180_v52  ;;  %v16234_v17 = vpack.c.bf16 %v17038_v1, %v17037_v33  ;;  %v16872_v54 = vunpack.i.l.bf16 %v19005_v30  ;;  %v23379_v33 = vld [vmem:[#allocation6_spill] sm:$0xff]  ;;  %v16822_v30 = vunpack.i.l.bf16 %v18893_v0 }
 0x2b3   :  { %16224 = vmatprep.subr.msk.bf16.mxu0 %vm18353_vm2, %v16222_v16  ;;  %v17011_v19 = vpop.permute.xlu1 %17010  ;;  %v16270_v5 = vpack.c.bf16 %v16738_v53, %v16737_v39  ;;  %v23393_v39 = vld [vmem:[#allocation8_spill] sm:$0xff] }
 0x2b4   :  { %v17012_v31 = vunpack.i.l.bf16 %v17011_v19  ;;  %v16282_v1 = vpack.c.bf16 %v16873_v7, %v16872_v54  ;;  %v23397_v7 = vld [vmem:[#allocation42_spill] sm:$0xff] }
 0x2b7   :  { %15232 = vmatmul.mubr.msk.f32.vlgmr.msra.gmra.mrb[42].mxu1 %vm614_vm1, %v18582_v36  ;;  %v17003_v36 = vunpack.i.h.bf16 %v17001_v40  ;;  %v19246_v49 = vpop.permute.xlu1 %17015 }
 0x2b8   :  { %15281 = vmatmul.mubr.msk.f32.vlgmr.msra.gmra.mrb[34].mxu0 %vm614_vm1, %v18717_v25  ;;  %16185 = vmatpush3.bf16.xpose.msk.msra.mxu1 %vm18353_vm2, %v16180_v52  ;;  %v17002_v25 = vunpack.i.l.bf16 %v17001_v40  ;;  %v23378_v40 = vld [vmem:[#allocation40_spill] sm:$0xff] }
 0x2b9   :  { %15245 = vmatprep.mubr.msk.f32.mxu1 %vm614_vm1, %v18711_v11  ;;  %16227 = vmatpush3.bf16.xpose.msk.msra.mxu0 %vm18353_vm2, %v16222_v16 }
 0x2ba   :  { %15294 = vmatprep.mubr.msk.f32.mxu0 %vm614_vm1, %v23369_v50  ;;  %16194 = vmatprep.subr.msk.bf16.mxu1 %vm18353_vm2, %v16192_v21  ;;  %v16204_v11 = vpack.c.bf16 %v17003_v36, %v17002_v25  ;;  %v23382_v36 = vld [vmem:[#allocation5_spill] sm:$0xff] }
 0x2bb   :  { %16236 = vmatprep.subr.msk.bf16.mxu0 %vm18353_vm2, %v16234_v17  ;;  %v19266_v32 = vpop.permute.xlu1 %17025 }
 0x2bf   :  { %15246 = vmatmul.mubr.msk.f32.vlgmr.msra.gmra.mrb[44].mxu1 %vm614_vm1, %v18606_v57  ;;  %v17013_v57 = vunpack.i.h.bf16 %v17011_v19  ;;  %v17031_v63 = vpop.permute.xlu1 %17030 }
 0x2c0   :  { %15295 = vmatmul.mubr.msk.f32.vlgmr.msra.gmra.mrb[36].mxu0 %vm614_vm1, %v23371_v42  ;;  %16197 = vmatpush3.bf16.xpose.msk.msra.mxu1 %vm18353_vm2, %v16192_v21  ;;  %v23380_v21 = vld [vmem:[#allocation66_spill] sm:$0xff]  ;;  %v16903_v42 = vunpack.i.h.bf16 %v19021_v47 }
 0x2c1   :  { %15259 = vmatprep.mubr.msk.f32.mxu1 %vm614_vm1, %v18769_v9  ;;  %16239 = vmatpush3.bf16.xpose.msk.msra.mxu0 %vm18353_vm2, %v16234_v17  ;;  %v16216_v9 = vpack.c.bf16 %v17013_v57, %v17012_v31  ;;  %v16753_v19 = vunpack.i.h.bf16 %v23380_v21  ;;  %v23381_v17 = vld [vmem:[#allocation112_spill] sm:$0xff]  ;;  %v23386_v57 = vld [vmem:[#allocation125_spill] sm:$0xff] }
 0x2c2   :  { %15308 = vmatprep.mubr.msk.f32.mxu0 %vm614_vm1, %v18907_v59  ;;  %16206 = vmatprep.subr.msk.bf16.mxu1 %vm18353_vm2, %v16204_v11  ;;  %v16258_v59 = vpack.c.bf16 %v16828_v46, %v16827_v14  ;;  %v23387_v46 = vld [vmem:[#allocation49_spill] sm:$0xff] }
 0x2c3   :  { %16248 = vmatprep.subr.msk.bf16.mxu0 %vm18353_vm2, %v16246_v58  ;;  %v17041_v52 = vpop.permute.xlu1 %17040 }
 0x2c4   :  { %v17043_v16 = vunpack.i.h.bf16 %v17041_v52  ;;  %v17042_v12 = vunpack.i.l.bf16 %v17041_v52 }
 0x2c7   :  { %15260 = vmatmul.mubr.msk.f32.vlgmr.msra.gmra.mrb[46].mxu1 %vm614_vm1, %v18657_v38  ;;  %v17032_v38 = vunpack.i.l.bf16 %v17031_v63 }
 0x2c8   :  { %15309 = vmatmul.mubr.msk.f32.vlgmr.msra.gmra.mrb[38].mxu0 %vm614_vm1, %v18807_v18  ;;  %16209 = vmatpush3.bf16.xpose.msk.msra.mxu1 %vm18353_vm2, %v16204_v11  ;;  %v17033_v18 = vunpack.i.h.bf16 %v17031_v63  ;;  %v16832_v11 = vunpack.i.l.bf16 %v23385_v61 }
 0x2c9   :  { %15273 = vmatprep.mubr.msk.f32.mxu1 %vm614_vm1, %v23372_v56  ;;  %16251 = vmatpush3.bf16.xpose.msk.msra.mxu0 %vm18353_vm2, %v16246_v58  ;;  %v16902_v58 = vunpack.i.l.bf16 %v19021_v47  ;;  %v23390_v47 = vld [vmem:[#allocation148_spill] sm:$0xff] }
 0x2ca   :  { %15322 = vmatprep.mubr.msk.f32.mxu0 %vm614_vm1, %v23373_v4  ;;  %16218 = vmatprep.subr.msk.bf16.mxu1 %vm18353_vm2, %v16216_v9  ;;  %v16228_v15 = vpack.c.bf16 %v17033_v18, %v17032_v38  ;;  %v16264_v31 = vpack.c.bf16 %v16833_v45, %v16832_v11  ;;  %v16868_v63 = vunpack.i.h.bf16 %v23390_v47  ;;  %v16867_v56 = vunpack.i.l.bf16 %v23390_v47  ;;  %v23391_v4 = vld [vmem:[#allocation78_spill] sm:$0xff] }
 0x2cb   :  { %16260 = vmatprep.subr.msk.bf16.mxu0 %vm18353_vm2, %v16258_v59  ;;  %v16306_v14 = vpack.c.bf16 %v16903_v42, %v16902_v58  ;;  %v16763_v18 = vunpack.i.h.bf16 %v23391_v4  ;;  %v16762_v38 = vunpack.i.l.bf16 %v23391_v4  ;;  %v23403_v45 = vld [vmem:[#allocation46_spill] sm:$0xff]  ;;  %v23404_v42 = vld [vmem:[#allocation11_spill] sm:$0xff]  ;;  %v16962_v47 = vunpack.i.l.bf16 %v19119_v60 }
 0x2cc   :  { %v16276_v53 = vpack.c.bf16 %v16868_v63, %v16867_v56  ;;  %v23407_v63 = vld [vmem:[#allocation51_spill] sm:$0xff] }
 0x2cd   :  { %v23408_v4 = vld [vmem:[#allocation67_spill] sm:$0xff] }
 0x2cf   :  { %15274 = vmatmul.mubr.msk.f32.vlgmr.msra.gmra.mrb[48].mxu1 %vm614_vm1, %v23375_v20  ;;  %v16318_v20 = vpack.c.bf16 %v16763_v18, %v16762_v38  ;;  %v23409_v38 = vld [vmem:[#allocation61_spill] sm:$0xff] }
 0x2d0   :  { %15323 = vmatmul.mubr.msk.f32.vlgmr.msra.gmra.mrb[40].mxu0 %vm614_vm1, %v23376_v28  ;;  %16221 = vmatpush3.bf16.xpose.msk.msra.mxu1 %vm18353_vm2, %v16216_v9  ;;  %v23388_v9 = vld [vmem:[#allocation41_spill] sm:$0xff]  ;;  %v23395_v28 = vld [vmem:[#allocation63_spill] sm:$0xff] }
 0x2d1   :  { %15287 = vmatprep.mubr.msk.f32.mxu1 %vm614_vm1, %v18863_v8  ;;  %16263 = vmatpush3.bf16.xpose.msk.msra.mxu0 %vm18353_vm2, %v16258_v59  ;;  %v16240_v8 = vpack.c.bf16 %v17043_v16, %v17042_v12  ;;  %v23389_v59 = vld [vmem:[#allocation9_spill] sm:$0xff]  ;;  %v16933_v16 = vunpack.i.h.bf16 %v19072_v34  ;;  %v16932_v12 = vunpack.i.l.bf16 %v19072_v34 }
 0x2d2   :  { %15336 = vmatprep.mubr.msk.f32.mxu0 %vm614_vm1, %v23377_v37  ;;  %16230 = vmatprep.subr.msk.bf16.mxu1 %vm18353_vm2, %v16228_v15  ;;  %v19397_v34 = vld [vmem:[%s22895_s4 + $0x18] sm:$0xff] }
 0x2d3   :  { %16272 = vmatprep.subr.msk.bf16.mxu0 %vm18353_vm2, %v16270_v5 }
 0x2d7   :  { %15288 = vmatmul.mubr.msk.f32.vlgmr.msra.gmra.mrb[50].mxu1 %vm614_vm1, %v18749_v3  ;;  %v16823_v3 = vunpack.i.h.bf16 %v18893_v0  ;;  %v23384_v0 = vld [vmem:[#allocation52_spill] sm:$0xff] }
 0x2d8   :  { %15337 = vmatmul.mubr.msk.f32.vlgmr.msra.gmra.mrb[42].mxu0 %vm614_vm1, %v23378_v40  ;;  %16233 = vmatpush3.bf16.xpose.msk.msra.mxu1 %vm18353_vm2, %v16228_v15  ;;  %v23394_v15 = vld [vmem:[#allocation45_spill] sm:$0xff]  ;;  %v16330_v40 = vpack.c.bf16 %v16933_v16, %v16932_v12  ;;  %v16938_v16 = vunpack.i.h.bf16 %v19092_v55  ;;  %v16937_v12 = vunpack.i.l.bf16 %v19092_v55 }
 0x2d9   :  { %15301 = vmatprep.mubr.msk.f32.mxu1 %vm614_vm1, %v18895_v23  ;;  %16275 = vmatpush3.bf16.xpose.msk.msra.mxu0 %vm18353_vm2, %v16270_v5  ;;  %v16752_v23 = vunpack.i.l.bf16 %v23380_v21  ;;  %v16252_v50 = vpack.c.bf16 %v16823_v3, %v16822_v30  ;;  %v23396_v5 = vld [vmem:[#allocation150_spill] sm:$0xff]  ;;  %v19408_v30 = vld [vmem:[%s22895_s4 + $0x10] sm:$0xff]  ;;  %v23401_v21 = vld [vmem:[#allocation153_spill] sm:$0xff] }
 0x2da   :  { %15350 = vmatprep.mubr.msk.f32.mxu0 %vm614_vm1, %v23379_v33  ;;  %16242 = vmatprep.subr.msk.bf16.mxu1 %vm18353_vm2, %v16240_v8  ;;  %v16878_v52 = vunpack.i.h.bf16 %v23396_v5  ;;  %v16877_v37 = vunpack.i.l.bf16 %v23396_v5  ;;  %v23400_v33 = vld [vmem:[#allocation12_spill] sm:$0xff]  ;;  %v23419_v55 = vld [vmem:[#allocation25_spill] sm:$0xff] }
 0x2db   :  { %16284 = vmatprep.subr.msk.bf16.mxu0 %vm18353_vm2, %v16282_v1  ;;  %v16294_v25 = vpack.c.bf16 %v16753_v19, %v16752_v23  ;;  %v16898_v19 = vunpack.i.h.bf16 %v23401_v21  ;;  %v16897_v23 = vunpack.i.l.bf16 %v23401_v21  ;;  %v23413_v5 = vld [vmem:[#allocation16_spill] sm:$0xff]  ;;  %v16957_v21 = vunpack.i.l.bf16 %v19148_v2 }
 0x2dc   :  { %v16288_v54 = vpack.c.bf16 %v16878_v52, %v16877_v37  ;;  %v23414_v37 = vld [vmem:[#allocation64_spill] sm:$0xff] }
 0x2dd   :  { %v16300_v11 = vpack.c.bf16 %v16898_v19, %v16897_v23  ;;  %v23420_v19 = vld [vmem:[#allocation135_spill] sm:$0xff] }
 0x2de   :  { %v16793_v23 = vunpack.i.h.bf16 %v23420_v19 }
 0x2df   :  { %15302 = vmatmul.mubr.msk.f32.vlgmr.msra.gmra.mrb[52].mxu1 %vm614_vm1, %v23381_v17 }
 0x2e0   :  { %15351 = vmatmul.mubr.msk.f32.vlgmr.msra.gmra.mrb[44].mxu0 %vm614_vm1, %v23382_v36  ;;  %16245 = vmatpush3.bf16.xpose.msk.msra.mxu1 %vm18353_vm2, %v16240_v8  ;;  %v23398_v8 = vld [vmem:[#allocation60_spill] sm:$0xff] }
 0x2e1   :  { %15315 = vmatprep.mubr.msk.f32.mxu1 %vm614_vm1, %v23383_v62  ;;  %16287 = vmatpush3.bf16.xpose.msk.msra.mxu0 %vm18353_vm2, %v16282_v1  ;;  %v23399_v1 = vld [vmem:[#allocation48_spill] sm:$0xff] }
 0x2e2   :  { %15364 = vmatprep.mubr.msk.f32.mxu0 %vm614_vm1, %v23384_v0  ;;  %16254 = vmatprep.subr.msk.bf16.mxu1 %vm18353_vm2, %v16252_v50  ;;  %v23402_v36 = vld [vmem:[#allocation96_spill] sm:$0xff] }
 0x2e3   :  { %16296 = vmatprep.subr.msk.bf16.mxu0 %vm18353_vm2, %v16294_v25  ;;  %v16772_v62 = vunpack.i.l.bf16 %v23402_v36 }
 0x2e7   :  { %15316 = vmatmul.mubr.msk.f32.vlgmr.msra.gmra.mrb[54].mxu1 %vm614_vm1, %v23386_v57  ;;  %v23405_v57 = vld [vmem:[#allocation54_spill] sm:$0xff] }
 0x2e8   :  { %15365 = vmatmul.mubr.msk.f32.vlgmr.msra.gmra.mrb[46].mxu0 %vm614_vm1, %v23387_v46  ;;  %16257 = vmatpush3.bf16.xpose.msk.msra.mxu1 %vm18353_vm2, %v16252_v50 }
 0x2e9   :  { %15329 = vmatprep.mubr.msk.f32.mxu1 %vm614_vm1, %v23388_v9  ;;  %16299 = vmatpush3.bf16.xpose.msk.msra.mxu0 %vm18353_vm2, %v16294_v25  ;;  %v16773_v25 = vunpack.i.h.bf16 %v23402_v36  ;;  %v16907_v9 = vunpack.i.l.bf16 %v19017_v29  ;;  %v23421_v36 = vld [vmem:[#allocation65_spill] sm:$0xff] }
 0x2ea   :  { %15378 = vmatprep.mubr.msk.f32.mxu0 %vm614_vm1, %v23389_v59  ;;  %16266 = vmatprep.subr.msk.bf16.mxu1 %vm18353_vm2, %v16264_v31  ;;  %v16963_v59 = vunpack.i.h.bf16 %v19119_v60  ;;  %v16928_v60 = vunpack.i.h.bf16 %v19076_v24 }
 0x2eb   :  { %16308 = vmatprep.subr.msk.bf16.mxu0 %vm18353_vm2, %v16306_v14  ;;  %v16342_v58 = vpack.c.bf16 %v16773_v25, %v16772_v62  ;;  %v23422_v62 = vld [vmem:[#allocation22_spill] sm:$0xff] }
 0x2ec   :  { %v16354_v18 = vpack.c.bf16 %v16963_v59, %v16962_v47  ;;  %v23427_v59 = vld [vmem:[#allocation82_spill] sm:$0xff]  ;;  %v16987_v47 = vunpack.i.l.bf16 %v19202_v41 }
 0x2ef   :  { %15330 = vmatmul.mubr.msk.f32.vlgmr.msra.gmra.mrb[56].mxu1 %vm614_vm1, %v23392_v27  ;;  %v16927_v27 = vunpack.i.l.bf16 %v19076_v24  ;;  %v23415_v24 = vld [vmem:[#allocation86_spill] sm:$0xff] }
 0x2f0   :  { %15379 = vmatmul.mubr.msk.f32.vlgmr.msra.gmra.mrb[48].mxu0 %vm614_vm1, %v23393_v39  ;;  %16269 = vmatpush3.bf16.xpose.msk.msra.mxu1 %vm18353_vm2, %v16264_v31  ;;  %v23406_v31 = vld [vmem:[#allocation72_spill] sm:$0xff] }
 0x2f1   :  { %15343 = vmatprep.mubr.msk.f32.mxu1 %vm614_vm1, %v23394_v15  ;;  %16311 = vmatpush3.bf16.xpose.msk.msra.mxu0 %vm18353_vm2, %v16306_v14  ;;  %v16908_v14 = vunpack.i.h.bf16 %v19017_v29  ;;  %v23410_v29 = vld [vmem:[#allocation18_spill] sm:$0xff] }
 0x2f2   :  { %15392 = vmatprep.mubr.msk.f32.mxu0 %vm614_vm1, %v23395_v28  ;;  %16278 = vmatprep.subr.msk.bf16.mxu1 %vm18353_vm2, %v16276_v53  ;;  %v23412_v15 = vld [vmem:[#allocation58_spill] sm:$0xff]  ;;  %v16324_v28 = vpack.c.bf16 %v16928_v60, %v16927_v27  ;;  %v19553_v60 = vld [vmem:[%s22895_s4 + $0x28] sm:$0xff] }
 0x2f3   :  { %16320 = vmatprep.subr.msk.bf16.mxu0 %vm18353_vm2, %v16318_v20  ;;  %v16312_v56 = vpack.c.bf16 %v16908_v14, %v16907_v9  ;;  %v23426_v14 = vld [vmem:[#allocation87_spill] sm:$0xff] }
 0x2f4   :  { %v23432_v27 = vld [vmem:[#allocation91_spill] sm:$0xff] }
 0x2f7   :  { %15344 = vmatmul.mubr.msk.f32.vlgmr.msra.gmra.mrb[58].mxu1 %vm614_vm1, %v23397_v7  ;;  %v16993_v7 = vunpack.i.h.bf16 %v19170_v43 }
 0x2f8   :  { %15393 = vmatmul.mubr.msk.f32.vlgmr.msra.gmra.mrb[50].mxu0 %vm614_vm1, %v23398_v8  ;;  %16281 = vmatpush3.bf16.xpose.msk.msra.mxu1 %vm18353_vm2, %v16276_v53  ;;  %v23411_v53 = vld [vmem:[#allocation120_spill] sm:$0xff]  ;;  %v23416_v8 = vld [vmem:[#allocation62_spill] sm:$0xff] }
 0x2f9   :  { %15357 = vmatprep.mubr.msk.f32.mxu1 %vm614_vm1, %v23399_v1  ;;  %16323 = vmatpush3.bf16.xpose.msk.msra.mxu0 %vm18353_vm2, %v16318_v20  ;;  %v16783_v39 = vunpack.i.h.bf16 %v23411_v53  ;;  %v16782_v20 = vunpack.i.l.bf16 %v23411_v53  ;;  %v23417_v1 = vld [vmem:[#allocation76_spill] sm:$0xff]  ;;  %v19562_v53 = vld [vmem:[%s22895_s4 + $0x20] sm:$0xff] }
 0x2fa   :  { %15406 = vmatprep.mubr.msk.f32.mxu0 %vm614_vm1, %v23400_v33  ;;  %16290 = vmatprep.subr.msk.bf16.mxu1 %vm18353_vm2, %v16288_v54 }
 0x2fb   :  { %16332 = vmatprep.subr.msk.bf16.mxu0 %vm18353_vm2, %v16330_v40  ;;  %v15107_v3 = vpop.f32.mrb[18].mxu1  ;;  %v16366_v52 = vpack.c.bf16 %v16783_v39, %v16782_v20  ;;  %v17051_v39 = vpop.permute.xlu0 %17050  ;;  %v23433_v20 = vld [vmem:[#allocation129_spill] sm:$0xff] }
 0x2fc   :  { %v19413_v17 = vadd.f32 %v15107_v3, %v19397_v34  ;;  %v776_v50 = vpop.f32.mrb[19].mxu1  ;;  %v23418_v3 = vld [vmem:[#allocation71_spill] sm:$0xff] }
 0x2fd   :  { %v19418_v0 = vadd.f32 %v776_v50, %v19408_v30  ;;  %v16792_v50 = vunpack.i.l.bf16 %v23420_v19  ;;  %v17017_v19 = vunpack.i.l.bf16 %v19246_v49 }
 0x2fe   :  { %v6189_v61 = vsel %vm6179_vm3, %v19413_v17, -inf }
 0x2ff   :  { %6190 = vmax.xlane.f32.xlu0 %v6189_v61  ;;  %15358 = vmatmul.mubr.msk.f32.vlgmr.msra.gmra.mrb[60].mxu1 %vm614_vm1, %v23403_v45  ;;  %v6186_v46 = vsel %vm6179_vm3, %v19418_v0, -inf  ;;  %v16390_v61 = vpack.c.bf16 %v16793_v23, %v16792_v50  ;;  %v23423_v45 = vld [vmem:[#allocation75_spill] sm:$0xff]  ;;  %v23438_v23 = vld [vmem:[#allocation44_spill] sm:$0xff] }
 0x300   :  { %15407 = vmatmul.mubr.msk.f32.vlgmr.msra.gmra.mrb[52].mxu0 %vm614_vm1, %v23404_v42  ;;  %16293 = vmatpush3.bf16.xpose.msk.msra.mxu1 %vm18353_vm2, %v16288_v54  ;;  %v16992_v54 = vunpack.i.l.bf16 %v19170_v43  ;;  %v16958_v43 = vunpack.i.h.bf16 %v19148_v2  ;;  %v23424_v2 = vld [vmem:[#allocation108_spill] sm:$0xff]  ;;  %v16967_v42 = vunpack.i.l.bf16 %v19164_v51  ;;  %v16728_v50 = vunpack.i.h.bf16 %v23438_v23 }
 0x301   :  { %15371 = vmatprep.mubr.msk.f32.mxu1 %vm614_vm1, %v23405_v57  ;;  %16335 = vmatpush3.bf16.xpose.msk.msra.mxu0 %vm18353_vm2, %v16330_v40  ;;  %v16336_v40 = vpack.c.bf16 %v16938_v16, %v16937_v12  ;;  %v17022_v57 = vunpack.i.l.bf16 %v19208_v22  ;;  %v17053_v16 = vunpack.i.h.bf16 %v17051_v39  ;;  %v17052_v12 = vunpack.i.l.bf16 %v17051_v39  ;;  %v19645_v39 = vld [vmem:[%s22895_s4 + $0x30] sm:$0xff] }
 0x302   :  { %15420 = vmatprep.mubr.msk.f32.mxu0 %vm614_vm1, %v23406_v31  ;;  %16302 = vmatprep.subr.msk.bf16.mxu1 %vm18353_vm2, %v16300_v11  ;;  %v16378_v33 = vpack.c.bf16 %v16993_v7, %v16992_v54  ;;  %v16348_v25 = vpack.c.bf16 %v16958_v43, %v16957_v21  ;;  %v23425_v31 = vld [vmem:[#allocation70_spill] sm:$0xff]  ;;  %v17018_v21 = vunpack.i.h.bf16 %v19246_v49 }
 0x303   :  { %16344 = vmatprep.subr.msk.bf16.mxu0 %vm18353_vm2, %v16342_v58  ;;  %6187 = vmax.xlane.f32.xlu0 %v6186_v46 }
 0x307   :  { %15372 = vmatmul.mubr.msk.f32.vlgmr.msra.gmra.mrb[62].mxu1 %vm614_vm1, %v23407_v63  ;;  %v23429_v63 = vld [vmem:[#allocation149_spill] sm:$0xff] }
 0x308   :  { %15421 = vmatmul.mubr.msk.f32.vlgmr.msra.gmra.mrb[54].mxu0 %vm614_vm1, %v23408_v4  ;;  %16305 = vmatpush3.bf16.xpose.msk.msra.mxu1 %vm18353_vm2, %v16300_v11  ;;  %v16968_v11 = vunpack.i.h.bf16 %v19164_v51  ;;  %v23428_v51 = vld [vmem:[#allocation31_spill] sm:$0xff]  ;;  %v16802_v4 = vunpack.i.l.bf16 %v23429_v63 }
 0x309   :  { %15385 = vmatprep.mubr.msk.f32.mxu1 %vm614_vm1, %v23409_v38  ;;  %16347 = vmatpush3.bf16.xpose.msk.msra.mxu0 %vm18353_vm2, %v16342_v58  ;;  %v17023_v58 = vunpack.i.h.bf16 %v19208_v22  ;;  %v16988_v22 = vunpack.i.h.bf16 %v19202_v41 }
 0x30a   :  { %15434 = vmatprep.mubr.msk.f32.mxu0 %vm614_vm1, %v23410_v29  ;;  %16314 = vmatprep.subr.msk.bf16.mxu1 %vm18353_vm2, %v16312_v56  ;;  %v16360_v46 = vpack.c.bf16 %v16968_v11, %v16967_v42  ;;  %v23431_v29 = vld [vmem:[#allocation26_spill] sm:$0xff] }
 0x30b   :  { %16356 = vmatprep.subr.msk.bf16.mxu0 %vm18353_vm2, %v16354_v18  ;;  %v16402_v9 = vpack.c.bf16 %v17023_v58, %v17022_v57  ;;  %v16372_v38 = vpack.c.bf16 %v16988_v22, %v16987_v47  ;;  %v23443_v58 = vld [vmem:[#allocation139_spill] sm:$0xff]  ;;  %v23445_v22 = vld [vmem:[#allocation121_spill] sm:$0xff] }
 0x30c   :  { %v16843_v57 = vunpack.i.h.bf16 %v23443_v58 }
 0x30f   :  { %15386 = vmatmul.mubr.msk.f32.vlgmr.msra.gmra.mrb[64].mxu1 %vm614_vm1, %v23412_v15 }
 0x310   :  { %15435 = vmatmul.mubr.msk.f32.vlgmr.msra.gmra.mrb[56].mxu0 %vm614_vm1, %v23413_v5  ;;  %16317 = vmatpush3.bf16.xpose.msk.msra.mxu1 %vm18353_vm2, %v16312_v56  ;;  %v16803_v56 = vunpack.i.h.bf16 %v23429_v63  ;;  %v19628_v63 = vpop.permute.xlu0 %17055 }
 0x311   :  { %15399 = vmatprep.mubr.msk.f32.mxu1 %vm614_vm1, %v23414_v37  ;;  %16359 = vmatpush3.bf16.xpose.msk.msra.mxu0 %vm18353_vm2, %v16354_v18  ;;  %v23430_v18 = vld [vmem:[#allocation73_spill] sm:$0xff]  ;;  %v16997_v37 = vunpack.i.l.bf16 %v19216_v10  ;;  %23446 = vst [vmem:[#allocation53_spill] sm:$0xff] %v19628_v63 }
 0x312   :  { %15448 = vmatprep.mubr.msk.f32.mxu0 %vm614_vm1, %v23415_v24  ;;  %16326 = vmatprep.subr.msk.bf16.mxu1 %vm18353_vm2, %v16324_v28  ;;  %v16414_v41 = vpack.c.bf16 %v16803_v56, %v16802_v4  ;;  %v23447_v56 = vld [vmem:[#allocation126_spill] sm:$0xff] }
 0x313   :  { %16368 = vmatprep.subr.msk.bf16.mxu0 %vm18353_vm2, %v16366_v52 }
 0x317   :  { %15400 = vmatmul.mubr.msk.f32.vlgmr.msra.gmra.mrb[66].mxu1 %vm614_vm1, %v23416_v8  ;;  %v23434_v8 = vld [vmem:[#allocation79_spill] sm:$0xff] }
 0x318   :  { %15449 = vmatmul.mubr.msk.f32.vlgmr.msra.gmra.mrb[58].mxu0 %vm614_vm1, %v23417_v1  ;;  %16329 = vmatpush3.bf16.xpose.msk.msra.mxu1 %vm18353_vm2, %v16324_v28  ;;  %v23435_v1 = vld [vmem:[#allocation104_spill] sm:$0xff] }
 0x319   :  { %15413 = vmatprep.mubr.msk.f32.mxu1 %vm614_vm1, %v23418_v3  ;;  %16371 = vmatpush3.bf16.xpose.msk.msra.mxu0 %vm18353_vm2, %v16366_v52  ;;  %v16998_v52 = vunpack.i.h.bf16 %v19216_v10  ;;  %v16426_v10 = vpack.c.bf16 %v17053_v16, %v17052_v12  ;;  %v23437_v3 = vld [vmem:[#allocation37_spill] sm:$0xff]  ;;  %v19658_v12 = vpop.permute.xlu0 %17070 }
 0x31a   :  { %15462 = vmatprep.mubr.msk.f32.mxu0 %vm614_vm1, %v23419_v55  ;;  %16338 = vmatprep.subr.msk.bf16.mxu1 %vm18353_vm2, %v16336_v40  ;;  %23448 = vst [vmem:[#allocation50_spill] sm:$0xff] %v19658_v12 }
 0x31b   :  { %16380 = vmatprep.subr.msk.bf16.mxu0 %vm18353_vm2, %v16378_v33 }
 0x31f   :  { %15414 = vmatmul.mubr.msk.f32.vlgmr.msra.gmra.mrb[68].mxu1 %vm614_vm1, %v23421_v36  ;;  %v16727_v36 = vunpack.i.l.bf16 %v23438_v23 }
 0x320   :  { %15463 = vmatmul.mubr.msk.f32.vlgmr.msra.gmra.mrb[60].mxu0 %vm614_vm1, %v23422_v62  ;;  %16341 = vmatpush3.bf16.xpose.msk.msra.mxu1 %vm18353_vm2, %v16336_v40  ;;  %v16384_v40 = vpack.c.bf16 %v16998_v52, %v16997_v37  ;;  %v16396_v62 = vpack.c.bf16 %v17018_v21, %v17017_v19 }
 0x321   :  { %15427 = vmatprep.mubr.msk.f32.mxu1 %vm614_vm1, %v23423_v45  ;;  %16383 = vmatpush3.bf16.xpose.msk.msra.mxu0 %vm18353_vm2, %v16378_v33  ;;  %v23436_v33 = vld [vmem:[#allocation102_spill] sm:$0xff]  ;;  %v16438_v49 = vpack.c.bf16 %v16728_v50, %v16727_v36  ;;  %v19686_v36 = vpop.permute.xlu0 %17080 }
 0x322   :  { %15476 = vmatprep.mubr.msk.f32.mxu0 %vm614_vm1, %v23424_v2  ;;  %16350 = vmatprep.subr.msk.bf16.mxu1 %vm18353_vm2, %v16348_v25  ;;  %v23441_v45 = vld [vmem:[#allocation114_spill] sm:$0xff]  ;;  %v23442_v2 = vld [vmem:[#allocation141_spill] sm:$0xff]  ;;  %23452 = vst [vmem:[#allocation17_spill] sm:$0xff] %v19686_v36 }
 0x323   :  { %16392 = vmatprep.subr.msk.bf16.mxu0 %vm18353_vm2, %v16390_v61 }
 0x327   :  { %15428 = vmatmul.mubr.msk.f32.vlgmr.msra.gmra.mrb[70].mxu1 %vm614_vm1, %v23425_v31  ;;  %v16842_v31 = vunpack.i.l.bf16 %v23443_v58 }
 0x328   :  { %15477 = vmatmul.mubr.msk.f32.vlgmr.msra.gmra.mrb[62].mxu0 %vm614_vm1, %v23426_v14  ;;  %16353 = vmatpush3.bf16.xpose.msk.msra.mxu1 %vm18353_vm2, %v16348_v25  ;;  %v23439_v25 = vld [vmem:[#allocation83_spill] sm:$0xff]  ;;  %v17027_v14 = vunpack.i.l.bf16 %v19266_v32 }
 0x329   :  { %15441 = vmatprep.mubr.msk.f32.mxu1 %vm614_vm1, %v23427_v59  ;;  %16395 = vmatpush3.bf16.xpose.msk.msra.mxu0 %vm18353_vm2, %v16390_v61  ;;  %v23440_v61 = vld [vmem:[#allocation32_spill] sm:$0xff]  ;;  %v23444_v59 = vld [vmem:[#allocation93_spill] sm:$0xff]  ;;  %v19626_v47 = vpack.c.bf16 %v16843_v57, %v16842_v31  ;;  %v23455_v57 = vld [vmem:[#allocation138_spill] sm:$0xff] }
 0x32a   :  { %15490 = vmatprep.mubr.msk.f32.mxu0 %vm614_vm1, %v23428_v51  ;;  %16362 = vmatprep.subr.msk.bf16.mxu1 %vm18353_vm2, %v16360_v46 }
 0x32b   :  { %16404 = vmatprep.subr.msk.bf16.mxu0 %vm18353_vm2, %v16402_v9 }
 0x32f   :  { %15442 = vmatmul.mubr.msk.f32.vlgmr.msra.gmra.mrb[72].mxu1 %vm614_vm1, %v23430_v18 }
 0x330   :  { %15491 = vmatmul.mubr.msk.f32.vlgmr.msra.gmra.mrb[64].mxu0 %vm614_vm1, %v23431_v29  ;;  %16365 = vmatpush3.bf16.xpose.msk.msra.mxu1 %vm18353_vm2, %v16360_v46  ;;  %v17028_v46 = vunpack.i.h.bf16 %v19266_v32  ;;  %v19640_v29 = vld [vmem:[%s22895_s4 + $0x38] sm:$0xff] }
 0x331   :  { %15455 = vmatprep.mubr.msk.f32.mxu1 %vm614_vm1, %v23432_v27  ;;  %16407 = vmatpush3.bf16.xpose.msk.msra.mxu0 %vm18353_vm2, %v16402_v9  ;;  %v17046_v9 = vpop.permute.xlu1 %17045 }
 0x332   :  { %15504 = vmatprep.mubr.msk.f32.mxu0 %vm614_vm1, %v23433_v20  ;;  %16374 = vmatprep.subr.msk.bf16.mxu1 %vm18353_vm2, %v16372_v38  ;;  %v15114_v15 = vpop.f32.mrb[20].mxu1  ;;  %v16408_v51 = vpack.c.bf16 %v17028_v46, %v17027_v14  ;;  %v17048_v18 = vunpack.i.h.bf16 %v17046_v9  ;;  %v23456_v14 = vld [vmem:[#allocation151_spill] sm:$0xff] }
 0x333   :  { %16416 = vmatprep.subr.msk.bf16.mxu0 %vm18353_vm2, %v16414_v41  ;;  %v19571_v28 = vadd.f32 %v15114_v15, %v19553_v60  ;;  %v863_v5 = vpop.f32.mrb[21].mxu1 }
 0x334   :  { %v19576_v24 = vadd.f32 %v863_v5, %v19562_v53 }
 0x335   :  { %v6195_v7 = vsel %vm6179_vm3, %v19571_v28, -inf  ;;  %v17061_v32 = vpop.permute.xlu1 %17060 }
 0x336   :  { %6196 = vmax.xlane.f32.xlu0 %v6195_v7  ;;  %v6192_v54 = vsel %vm6179_vm3, %v19576_v24, -inf }
 0x337   :  { %15456 = vmatmul.mubr.msk.f32.vlgmr.msra.gmra.mrb[74].mxu1 %vm614_vm1, %v23434_v8  ;;  %6193 = vmax.xlane.f32.xlu1 %v6192_v54  ;;  %v23449_v54 = vld [vmem:[#allocation98_spill] sm:$0xff] }
 0x338   :  { %15505 = vmatmul.mubr.msk.f32.vlgmr.msra.gmra.mrb[66].mxu0 %vm614_vm1, %v23435_v1  ;;  %16377 = vmatpush3.bf16.xpose.msk.msra.mxu1 %vm18353_vm2, %v16372_v38  ;;  %v17047_v38 = vunpack.i.l.bf16 %v17046_v9  ;;  %v23451_v1 = vld [vmem:[#allocation132_spill] sm:$0xff]  ;;  %v16838_v9 = vunpack.i.h.bf16 %v23456_v14 }
 0x339   :  { %15469 = vmatprep.mubr.msk.f32.mxu1 %vm614_vm1, %v23436_v33  ;;  %16419 = vmatpush3.bf16.xpose.msk.msra.mxu0 %vm18353_vm2, %v16414_v41 }
 0x33a   :  { %15518 = vmatprep.mubr.msk.f32.mxu0 %vm614_vm1, %v23437_v3  ;;  %16386 = vmatprep.subr.msk.bf16.mxu1 %vm18353_vm2, %v16384_v40  ;;  %v15121_v55 = vpop.f32.mrb[22].mxu1  ;;  %v16420_v16 = vpack.c.bf16 %v17048_v18, %v17047_v38  ;;  %v17063_v3 = vunpack.i.h.bf16 %v17061_v32 }
 0x33b   :  { %16428 = vmatprep.subr.msk.bf16.mxu0 %vm18353_vm2, %v16426_v10  ;;  %v950_v43 = vpop.f32.mrb[23].mxu1  ;;  %v19654_v52 = vadd.f32 %v15121_v55, %v19640_v29  ;;  %v17062_v55 = vunpack.i.l.bf16 %v17061_v32 }
 0x33c   :  { %v19661_v7 = vadd.f32 %v950_v43, %v19645_v39 }
 0x33d   :  { %v6201_v33 = vsel %vm6179_vm3, %v19654_v52, -inf }
 0x33e   :  { %v6198_v19 = vsel %vm6179_vm3, %v19661_v7, -inf }
 0x33f   :  { %15470 = vmatmul.mubr.msk.f32.vlgmr.msra.gmra.mrb[76].mxu1 %vm614_vm1, %v23439_v25 }
 0x340   :  { %15519 = vmatmul.mubr.msk.f32.vlgmr.msra.gmra.mrb[68].mxu0 %vm614_vm1, %v23440_v61  ;;  %16389 = vmatpush3.bf16.xpose.msk.msra.mxu1 %vm18353_vm2, %v16384_v40  ;;  %v19667_v40 = vpop.permute.xlu1 %17065 }
 0x341   :  { %15483 = vmatprep.mubr.msk.f32.mxu1 %vm614_vm1, %v23441_v45  ;;  %16431 = vmatpush3.bf16.xpose.msk.msra.mxu0 %vm18353_vm2, %v16426_v10  ;;  %23450 = vst [vmem:[#allocation59_spill] sm:$0xff] %v19667_v40 }
 0x342   :  { %15532 = vmatprep.mubr.msk.f32.mxu0 %vm614_vm1, %v23442_v2  ;;  %16398 = vmatprep.subr.msk.bf16.mxu1 %vm18353_vm2, %v16396_v62  ;;  %v15128_v11 = vpop.f32.mrb[24].mxu1  ;;  %v19701_v2 = vld [vmem:[%s22895_s4] sm:$0xff] }
 0x343   :  { %16439 = vmatprep.subr.bf16.mxu0 %v16438_v49  ;;  %v1037_v42 = vpop.f32.mrb[25].mxu1  ;;  %v19694_v61 = vadd.f32 %v15128_v11, %v19040_v44  ;;  %v6182_v11 = vpop.xlane.xlu0 %6181 }
 0x344   :  { %v19704_v58 = vadd.f32 %v19701_v2, %v1037_v42 }
 0x345   :  { %v6207_v46 = vsel %vm6179_vm3, %v19694_v61, -inf }
 0x347   :  { %15484 = vmatmul.mubr.msk.f32.vlgmr.msra.gmra.mrb[78].mxu1 %vm614_vm1, %v23444_v59  ;;  %v16837_v59 = vunpack.i.l.bf16 %v23456_v14 }
 0x348   :  { %15533 = vmatmul.mubr.msk.f32.vlgmr.msra.gmra.mrb[70].mxu0 %vm614_vm1, %v23445_v22  ;;  %16401 = vmatpush3.bf16.xpose.msk.msra.mxu1 %vm18353_vm2, %v16396_v62  ;;  %v19691_v62 = vpop.permute.xlu1 %17075 }
 0x349   :  { %15497 = vmatprep.mubr.msk.f32.mxu1 %vm614_vm1, %v23447_v56  ;;  %16441 = vmatpush3.bf16.msra.mxu0 %v16438_v49  ;;  %23453 = vst [vmem:[#allocation56_spill] sm:$0xff] %v19691_v62  ;;  %v16432_v49 = vpack.c.bf16 %v17063_v3, %v17062_v55  ;;  %v6204_v56 = vsel %vm6179_vm3, %v19704_v58, -inf  ;;  %v23459_v3 = vld [vmem:[#allocation145_spill] sm:$0xff] }
 0x34a   :  { %16410 = vmatprep.subr.msk.bf16.mxu1 %vm18353_vm2, %v16408_v51  ;;  %16447 = vmatprep.subr.bf16.mxu0 %v19626_v47  ;;  %v19635_v4 = vpop.f32.mrb[26].mxu1 }
 0x34b   :  { %v15170_v41 = vpop.f32.mrb[18].mxu0  ;;  %v1124_v27 = vpop.f32.mrb[27].mxu1 }
 0x34c   :  { %v19648_v20 = vadd.f32 %v15170_v41, %v19553_v60  ;;  %v1559_v15 = vpop.f32.mrb[19].mxu0  ;;  %v6185_v42 = vpop.xlane.xlu1 %6184 }
 0x34d   :  { %v19651_v5 = vadd.f32 %v1559_v15, %v19562_v53  ;;  %v6565_v38 = vsub.f32 %v19048_v26, %v6185_v42  ;;  %v23457_v15 = vld [vmem:[#allocation154_spill] sm:$0xff] }
 0x34e   :  { %v6243_v37 = vsel %vm6179_vm3, %v19648_v20, -inf }
 0x34f   :  { %6244 = vmax.xlane.f32.xlu0 %v6243_v37  ;;  %15498 = vmatmul.mubr.msk.f32.vlgmr.msra.gmra.mrb[80].mxu1 %vm614_vm1, %v23449_v54  ;;  %v6240_v8 = vsel %vm6179_vm3, %v19651_v5, -inf  ;;  %v6564_v37 = vsub.f32 %v23457_v15, %v6182_v11 }
 0x350   :  { %6241 = vmax.xlane.f32.xlu1 %v6240_v8  ;;  %16413 = vmatpush3.bf16.xpose.msk.msra.mxu1 %vm18353_vm2, %v16408_v51  ;;  %v19741_v8 = vadd.f32 %v1124_v27, %v19408_v30 }
 0x351   :  { %15511 = vmatprep.mubr.msk.f32.mxu1 %vm614_vm1, %v23451_v1  ;;  %16422 = vmatprep.subr.msk.bf16.mxu1 %vm18353_vm2, %v16420_v16  ;;  %v23458_v1 = vld [vmem:[#allocation116_spill] sm:$0xff]  ;;  %v6692_v55 = vmul.f32 1.442695, %v6564_v37 }
 0x352   :  { %v19675_v10 = vpop.f32.mrb[28].mxu1  ;;  %v6210_v48 = vsel %vm6179_vm3, %v19741_v8, -inf }
 0x353   :  { %6202 = vmax.xlane.f32.xlu0 %v6201_v33  ;;  %v15184_v43 = vpop.f32.mrb[20].mxu0  ;;  %v19679_v21 = vpop.f32.mrb[29].mxu1  ;;  %v16442_v33 = vpack.c.bf16 %v16838_v9, %v16837_v59  ;;  %v19774_v14 = vadd.f32 %v19675_v10, %v19553_v60 }
 0x354   :  { %v19684_v23 = vadd.f32 %v15184_v43, %v19040_v44  ;;  %v1733_v50 = vpop.f32.mrb[21].mxu0  ;;  %6199 = vmax.xlane.f32.xlu1 %v6198_v19  ;;  %v23460_v19 = vld [vmem:[#allocation152_spill] sm:$0xff]  ;;  %v6230_v59 = vpop.xlane.xlu1 %6229 }
 0x355   :  { %v19689_v25 = vadd.f32 %v1733_v50, %v18998_v6  ;;  %v23454_v6 = vld [vmem:[#allocation109_spill] sm:$0xff]  ;;  %v16848_v50 = vunpack.i.h.bf16 %v23460_v19  ;;  %v6580_v15 = vsub.f32 %v19122_v35, %v6230_v59 }
 0x356   :  { %v6255_v45 = vsel %vm6179_vm3, %v19684_v23, -inf }
 0x357   :  { %6256 = vmax.xlane.f32.xlu0 %v6255_v45  ;;  %15512 = vmatmul.mubr.msk.f32.vlgmr.msra.gmra.mrb[82].mxu1 %vm614_vm1, %v23454_v6  ;;  %v6252_v44 = vsel %vm6179_vm3, %v19689_v25, -inf  ;;  %v16847_v45 = vunpack.i.l.bf16 %v23460_v19  ;;  %v6724_v35 = vmul.f32 1.442695, %v6580_v15 }
 0x358   :  { %6253 = vmax.xlane.f32.xlu1 %v6252_v44  ;;  %16425 = vmatpush3.bf16.xpose.msk.msra.mxu1 %vm18353_vm2, %v16420_v16  ;;  %v19736_v16 = vadd.f32 %v19635_v4, %v19397_v34  ;;  %v6694_v4 = vmul.f32 1.442695, %v6565_v38 }
 0x359   :  { %15525 = vmatprep.mubr.msk.f32.mxu1 %vm614_vm1, %v23455_v57  ;;  %16434 = vmatprep.subr.msk.bf16.mxu1 %vm18353_vm2, %v16432_v49  ;;  %v19786_v38 = vpack.c.bf16 %v16848_v50, %v16847_v45 }
 0x35a   :  { %v19716_v31 = vpop.f32.mrb[30].mxu1  ;;  %v6213_v43 = vsel %vm6179_vm3, %v19736_v16, -inf  ;;  %17354 = vpow2.f32 %v6694_v4 }
 0x35b   :  { %6208 = vmax.xlane.f32.xlu0 %v6207_v46  ;;  %v15198_v51 = vpop.f32.mrb[22].mxu0  ;;  %v19722_v22 = vpop.f32.mrb[31].mxu1  ;;  %17356 = vpow2.f32 %v6692_v55  ;;  %23462 = vst [vmem:[#allocation15_spill] sm:$0xff] %v19786_v38  ;;  %v19811_v45 = vadd.f32 %v19716_v31, %v19640_v29 }
 0x35c   :  { %v19727_v32 = vadd.f32 %v15198_v51, %v19553_v60  ;;  %v1907_v18 = vpop.f32.mrb[23].mxu0  ;;  %6205 = vmax.xlane.f32.xlu1 %v6204_v56  ;;  %v6233_v46 = vpop.xlane.xlu0 %6232  ;;  %v19780_v51 = vadd.f32 %v19679_v21, %v19562_v53  ;;  %v23461_v56 = vld [vmem:[#allocation127_spill] sm:$0xff]  ;;  %v6219_v21 = vsel %vm6179_vm3, %v19774_v14, -inf }
 0x35d   :  { %v19731_v41 = vadd.f32 %v1907_v18, %v19562_v53  ;;  %v6581_v10 = vsub.f32 %v19115_v13, %v6233_v46  ;;  %v6225_v31 = vsel %vm6179_vm3, %v19811_v45, -inf }
 0x35e   :  { %v6267_v54 = vsel %vm6179_vm3, %v19727_v32, -inf }
 0x35f   :  { %6268 = vmax.xlane.f32.xlu0 %v6267_v54  ;;  %15526 = vmatmul.mubr.msk.f32.vlgmr.msra.gmra.mrb[84].mxu1 %vm614_vm1, %v23458_v1  ;;  %v6264_v26 = vsel %vm6179_vm3, %v19731_v41, -inf  ;;  %v6726_v13 = vmul.f32 1.442695, %v6581_v10 }
 0x360   :  { %6265 = vmax.xlane.f32.xlu1 %v6264_v26  ;;  %16437 = vmatpush3.bf16.xpose.msk.msra.mxu1 %vm18353_vm2, %v16432_v49  ;;  %v19764_v49 = vld [vmem:[%s22895_s4 + $0x8] sm:$0xff]  ;;  %v6216_v26 = vsel %vm6179_vm3, %v19780_v51, -inf }
 0x361   :  { %15539 = vmatprep.mubr.msk.f32.mxu1 %vm614_vm1, %v23459_v3  ;;  %16443 = vmatprep.subr.bf16.mxu1 %v16442_v33  ;;  %17358 = vpow2.f32 %v6726_v13 }
 0x362   :  { %v19751_v27 = vpop.f32.mrb[32].mxu1  ;;  %17360 = vpow2.f32 %v6724_v35 }
 0x363   :  { %6214 = vmax.xlane.f32.xlu0 %v6213_v43  ;;  %v15212_v6 = vpop.f32.mrb[24].mxu0  ;;  %v19757_v44 = vpop.f32.mrb[33].mxu1 }
 0x364   :  { %v19767_v11 = vadd.f32 %v19764_v49, %v15212_v6  ;;  %v2081_v57 = vpop.f32.mrb[25].mxu0  ;;  %6211 = vmax.xlane.f32.xlu1 %v6210_v48  ;;  %v19803_v43 = vpop.eup %17354 }
 0x365   :  { %v19770_v42 = vadd.f32 %v19701_v2, %v2081_v57  ;;  %v19807_v50 = vpop.eup %17356  ;;  %v6951_v48 = vsel %vm6179_vm3, %v19803_v43, 0.0  ;;  %v19817_v57 = vadd.f32 %v19722_v22, %v19645_v39 }
 0x366   :  { %v6279_v9 = vsel %vm6179_vm3, %v19767_v11, -inf  ;;  %v6948_v59 = vsel %vm6179_vm3, %v19807_v50, 0.0 }
 0x367   :  { %6280 = vmax.xlane.f32.xlu0 %v6279_v9  ;;  %15540 = vmatmul.mubr.msk.f32.vlgmr.msra.gmra.mrb[86].mxu1 %vm614_vm1, %v23461_v56  ;;  %v6276_v18 = vsel %vm6179_vm3, %v19770_v42, -inf  ;;  %v6222_v22 = vsel %vm6179_vm3, %v19817_v57, -inf }
 0x368   :  { %6277 = vmax.xlane.f32.xlu1 %v6276_v18  ;;  %16445 = vmatpush3.bf16.msra.mxu1 %v16442_v33 }
 0x369   :  { %16451 = vmatprep.subr.bf16.mxu1 %v19786_v38 }
 0x36a   :  { %v15177_v37 = vpop.f32.mrb[34].mxu1 }
 0x36b   :  { %6220 = vmax.xlane.f32.xlu0 %v6219_v21  ;;  %v15226_v54 = vpop.f32.mrb[26].mxu0  ;;  %v1646_v1 = vpop.f32.mrb[35].mxu1 }
 0x36c   :  { %v19796_v4 = vadd.f32 %v15226_v54, %v19553_v60  ;;  %v2255_v33 = vpop.f32.mrb[27].mxu0  ;;  %6217 = vmax.xlane.f32.xlu1 %v6216_v26  ;;  %v19833_v54 = vpop.eup %17358 }
 0x36d   :  { %v19799_v3 = vadd.f32 %v2255_v33, %v19562_v53  ;;  %23463 = vst [vmem:[#allocation23_spill] sm:$0xff] %v19833_v54  ;;  %v19837_v35 = vpop.eup %17360 }
 0x36e   :  { %v6291_v55 = vsel %vm6179_vm3, %v19796_v4, -inf  ;;  %23464 = vst [vmem:[#allocation21_spill] sm:$0xff] %v19837_v35 }
 0x36f   :  { %6292 = vmax.xlane.f32.xlu0 %v6291_v55  ;;  %v6288_v19 = vsel %vm6179_vm3, %v19799_v3, -inf }
 0x370   :  { %6289 = vmax.xlane.f32.xlu1 %v6288_v19  ;;  %v19841_v19 = vadd.f32 %v19751_v27, %v19397_v34 }
 0x372   :  { %v15191_v6 = vpop.f32.mrb[36].mxu1  ;;  %v6237_v27 = vsel %vm6179_vm3, %v19841_v19, -inf }
 0x373   :  { %6952 = vadd.xlane.f32.xlu0 %v6951_v48  ;;  %v15240_v46 = vpop.f32.mrb[28].mxu0  ;;  %v1820_v9 = vpop.f32.mrb[37].mxu1  ;;  %v6999_v48 = vsel %vm6179_vm3, %v19833_v54, 0.0  ;;  %v19867_v54 = vadd.f32 %v1646_v1, %v19645_v39 }
 0x374   :  { %v2429_v56 = vpop.f32.mrb[29].mxu0  ;;  %6949 = vadd.xlane.f32.xlu1 %v6948_v59  ;;  %v19822_v18 = vadd.f32 %v19764_v49, %v15240_v46  ;;  %v19847_v46 = vadd.f32 %v19757_v44, %v19408_v30  ;;  %v6996_v59 = vsel %vm6179_vm3, %v19837_v35, 0.0 }
 0x375   :  { %v19827_v10 = vadd.f32 %v19701_v2, %v2429_v56  ;;  %23469 = vst [vmem:[#allocation30_spill] sm:$0xff] %v19867_v54  ;;  %v6246_v1 = vsel %vm6179_vm3, %v19867_v54, -inf }
 0x376   :  { %v6303_v21 = vsel %vm6179_vm3, %v19822_v18, -inf  ;;  %23465 = vst [vmem:[#allocation29_spill] sm:$0xff] %v19847_v46  ;;  %v6234_v44 = vsel %vm6179_vm3, %v19847_v46, -inf }
 0x377   :  { %6226 = vmax.xlane.f32.xlu0 %v6225_v31  ;;  %v6300_v13 = vsel %vm6179_vm3, %v19827_v10, -inf }
 0x378   :  { %6223 = vmax.xlane.f32.xlu1 %v6222_v22 }
 0x37a   :  { %v15205_v15 = vpop.f32.mrb[38].mxu1 }
 0x37b   :  { %6304 = vmax.xlane.f32.xlu0 %v6303_v21  ;;  %v15254_v26 = vpop.f32.mrb[30].mxu0  ;;  %v1994_v33 = vpop.f32.mrb[39].mxu1 }
 0x37c   :  { %v2603_v55 = vpop.f32.mrb[31].mxu0  ;;  %6301 = vmax.xlane.f32.xlu1 %v6300_v13  ;;  %v19852_v56 = vadd.f32 %v15254_v26, %v19553_v60 }
 0x37d   :  { %v19857_v22 = vadd.f32 %v2603_v55, %v19562_v53 }
 0x37e   :  { %23466 = vst [vmem:[#allocation24_spill] sm:$0xff] %v19852_v56  ;;  %v6315_v26 = vsel %vm6179_vm3, %v19852_v56, -inf }
 0x37f   :  { %7000 = vadd.xlane.f32.xlu0 %v6999_v48  ;;  %23467 = vst [vmem:[#allocation35_spill] sm:$0xff] %v19857_v22  ;;  %v6312_v55 = vsel %vm6179_vm3, %v19857_v22, -inf  ;;  %v19887_v22 = vadd.f32 %v1820_v9, %v19408_v30 }
 0x380   :  { %6997 = vadd.xlane.f32.xlu1 %v6996_v59  ;;  %v19862_v59 = vadd.f32 %v15177_v37, %v19640_v29 }
 0x381   :  { %23473 = vst [vmem:[#allocation95_spill] sm:$0xff] %v19887_v22  ;;  %v6258_v9 = vsel %vm6179_vm3, %v19887_v22, -inf }
 0x382   :  { %v15219_v31 = vpop.f32.mrb[40].mxu1  ;;  %23468 = vst [vmem:[#allocation47_spill] sm:$0xff] %v19862_v59 }
 0x383   :  { %6238 = vmax.xlane.f32.xlu0 %v6237_v27  ;;  %v15268_v21 = vpop.f32.mrb[32].mxu0  ;;  %v2168_v13 = vpop.f32.mrb[41].mxu1 }
 0x384   :  { %v2777_v48 = vpop.f32.mrb[33].mxu0  ;;  %6235 = vmax.xlane.f32.xlu1 %v6234_v44  ;;  %v19872_v27 = vadd.f32 %v19764_v49, %v15268_v21  ;;  %v6249_v44 = vsel %vm6179_vm3, %v19862_v59, -inf }
 0x385   :  { %v19877_v37 = vadd.f32 %v19701_v2, %v2777_v48 }
 0x386   :  { %23470 = vst [vmem:[#allocation123_spill] sm:$0xff] %v19872_v27  ;;  %v6327_v21 = vsel %vm6179_vm3, %v19872_v27, -inf }
 0x387   :  { %6316 = vmax.xlane.f32.xlu0 %v6315_v26  ;;  %23471 = vst [vmem:[#allocation3_spill] sm:$0xff] %v19877_v37  ;;  %v6324_v48 = vsel %vm6179_vm3, %v19877_v37, -inf  ;;  %v19907_v37 = vadd.f32 %v1994_v33, %v19645_v39 }
 0x388   :  { %6313 = vmax.xlane.f32.xlu1 %v6312_v55  ;;  %v19882_v55 = vadd.f32 %v15191_v6, %v19397_v34 }
 0x389   :  { %23477 = vst [vmem:[#allocation6_spill] sm:$0xff] %v19907_v37  ;;  %v6270_v33 = vsel %vm6179_vm3, %v19907_v37, -inf }
 0x38a   :  { %v15233_v35 = vpop.f32.mrb[42].mxu1  ;;  %23472 = vst [vmem:[#allocation57_spill] sm:$0xff] %v19882_v55 }
 0x38b   :  { %6250 = vmax.xlane.f32.xlu0 %v6249_v44  ;;  %v15282_v36 = vpop.f32.mrb[34].mxu0  ;;  %v2342_v56 = vpop.f32.mrb[43].mxu1 }
 0x38c   :  { %v2951_v26 = vpop.f32.mrb[35].mxu0  ;;  %6247 = vmax.xlane.f32.xlu1 %v6246_v1  ;;  %v19892_v44 = vadd.f32 %v15282_v36, %v19553_v60  ;;  %v6261_v1 = vsel %vm6179_vm3, %v19882_v55, -inf }
 0x38d   :  { %v19897_v6 = vadd.f32 %v2951_v26, %v19562_v53 }
 0x38e   :  { %23474 = vst [vmem:[#allocation2_spill] sm:$0xff] %v19892_v44  ;;  %v6339_v36 = vsel %vm6179_vm3, %v19892_v44, -inf }
 0x38f   :  { %6328 = vmax.xlane.f32.xlu0 %v6327_v21  ;;  %23475 = vst [vmem:[#allocation43_spill] sm:$0xff] %v19897_v6  ;;  %v6336_v26 = vsel %vm6179_vm3, %v19897_v6, -inf  ;;  %v19927_v6 = vadd.f32 %v2168_v13, %v19408_v30 }
 0x390   :  { %6325 = vmax.xlane.f32.xlu1 %v6324_v48  ;;  %v19902_v48 = vadd.f32 %v15205_v15, %v19640_v29 }
 0x391   :  { %23481 = vst [vmem:[#allocation143_spill] sm:$0xff] %v19927_v6  ;;  %v6282_v13 = vsel %vm6179_vm3, %v19927_v6, -inf }
 0x392   :  { %v15247_v62 = vpop.f32.mrb[44].mxu1  ;;  %23476 = vst [vmem:[#allocation40_spill] sm:$0xff] %v19902_v48 }
 0x393   :  { %6262 = vmax.xlane.f32.xlu0 %v6261_v1  ;;  %v15296_v27 = vpop.f32.mrb[36].mxu0  ;;  %v2516_v12 = vpop.f32.mrb[45].mxu1 }
 0x394   :  { %v3125_v21 = vpop.f32.mrb[37].mxu0  ;;  %6259 = vmax.xlane.f32.xlu1 %v6258_v9  ;;  %v19912_v1 = vadd.f32 %v19764_v49, %v15296_v27  ;;  %v6273_v9 = vsel %vm6179_vm3, %v19902_v48, -inf }
 0x395   :  { %v19917_v15 = vadd.f32 %v19701_v2, %v3125_v21 }
 0x396   :  { %23478 = vst [vmem:[#allocation66_spill] sm:$0xff] %v19912_v1  ;;  %v6351_v27 = vsel %vm6179_vm3, %v19912_v1, -inf }
 0x397   :  { %6340 = vmax.xlane.f32.xlu0 %v6339_v36  ;;  %23479 = vst [vmem:[#allocation112_spill] sm:$0xff] %v19917_v15  ;;  %v6348_v21 = vsel %vm6179_vm3, %v19917_v15, -inf  ;;  %v19947_v15 = vadd.f32 %v2342_v56, %v19645_v39 }
 0x398   :  { %6337 = vmax.xlane.f32.xlu1 %v6336_v26  ;;  %v19922_v26 = vadd.f32 %v15219_v31, %v19397_v34 }
 0x399   :  { %23485 = vst [vmem:[#allocation49_spill] sm:$0xff] %v19947_v15  ;;  %v6294_v56 = vsel %vm6179_vm3, %v19947_v15, -inf }
 0x39a   :  { %v15261_v40 = vpop.f32.mrb[46].mxu1  ;;  %23480 = vst [vmem:[#allocation5_spill] sm:$0xff] %v19922_v26 }
 0x39b   :  { %6274 = vmax.xlane.f32.xlu0 %v6273_v9  ;;  %v15310_v44 = vpop.f32.mrb[38].mxu0  ;;  %v2690_v38 = vpop.f32.mrb[47].mxu1 }
 0x39c   :  { %v3299_v36 = vpop.f32.mrb[39].mxu0  ;;  %6271 = vmax.xlane.f32.xlu1 %v6270_v33  ;;  %v19932_v9 = vadd.f32 %v15310_v44, %v19553_v60  ;;  %v6285_v33 = vsel %vm6179_vm3, %v19922_v26, -inf }
 0x39d   :  { %v19937_v31 = vadd.f32 %v3299_v36, %v19562_v53 }
 0x39e   :  { %23482 = vst [vmem:[#allocation52_spill] sm:$0xff] %v19932_v9  ;;  %v6363_v44 = vsel %vm6179_vm3, %v19932_v9, -inf }
 0x39f   :  { %6352 = vmax.xlane.f32.xlu0 %v6351_v27  ;;  %23483 = vst [vmem:[#allocation137_spill] sm:$0xff] %v19937_v31  ;;  %v6360_v36 = vsel %vm6179_vm3, %v19937_v31, -inf  ;;  %v19967_v31 = vadd.f32 %v2516_v12, %v19408_v30 }
 0x3a0   :  { %6349 = vmax.xlane.f32.xlu1 %v6348_v21  ;;  %v19942_v21 = vadd.f32 %v15233_v35, %v19640_v29 }
 0x3a1   :  { %23489 = vst [vmem:[#allocation78_spill] sm:$0xff] %v19967_v31  ;;  %v6306_v12 = vsel %vm6179_vm3, %v19967_v31, -inf }
 0x3a2   :  { %v15275_v63 = vpop.f32.mrb[48].mxu1  ;;  %23484 = vst [vmem:[#allocation125_spill] sm:$0xff] %v19942_v21 }
 0x3a3   :  { %6286 = vmax.xlane.f32.xlu0 %v6285_v33  ;;  %v15324_v1 = vpop.f32.mrb[40].mxu0  ;;  %v2864_v37 = vpop.f32.mrb[49].mxu1 }
 0x3a4   :  { %v3473_v27 = vpop.f32.mrb[41].mxu0  ;;  %6283 = vmax.xlane.f32.xlu1 %v6282_v13  ;;  %v19952_v33 = vadd.f32 %v19764_v49, %v15324_v1  ;;  %v6297_v13 = vsel %vm6179_vm3, %v19942_v21, -inf }
 0x3a5   :  { %v19957_v35 = vadd.f32 %v19701_v2, %v3473_v27 }
 0x3a6   :  { %23486 = vst [vmem:[#allocation41_spill] sm:$0xff] %v19952_v33  ;;  %v6375_v1 = vsel %vm6179_vm3, %v19952_v33, -inf }
 0x3a7   :  { %6364 = vmax.xlane.f32.xlu0 %v6363_v44  ;;  %23487 = vst [vmem:[#allocation9_spill] sm:$0xff] %v19957_v35  ;;  %v6372_v27 = vsel %vm6179_vm3, %v19957_v35, -inf  ;;  %v19987_v35 = vadd.f32 %v2690_v38, %v19645_v39 }
 0x3a8   :  { %6361 = vmax.xlane.f32.xlu1 %v6360_v36  ;;  %v19962_v36 = vadd.f32 %v15247_v62, %v19397_v34 }
 0x3a9   :  { %23493 = vst [vmem:[#allocation63_spill] sm:$0xff] %v19987_v35  ;;  %v6318_v38 = vsel %vm6179_vm3, %v19987_v35, -inf }
 0x3aa   :  { %v15289_v6 = vpop.f32.mrb[50].mxu1  ;;  %23488 = vst [vmem:[#allocation148_spill] sm:$0xff] %v19962_v36 }
 0x3ab   :  { %6298 = vmax.xlane.f32.xlu0 %v6297_v13  ;;  %v15338_v9 = vpop.f32.mrb[42].mxu0  ;;  %v3038_v26 = vpop.f32.mrb[51].mxu1 }
 0x3ac   :  { %v3647_v44 = vpop.f32.mrb[43].mxu0  ;;  %6295 = vmax.xlane.f32.xlu1 %v6294_v56  ;;  %v19972_v13 = vadd.f32 %v15338_v9, %v19553_v60  ;;  %v6309_v56 = vsel %vm6179_vm3, %v19962_v36, -inf }
 0x3ad   :  { %v19977_v62 = vadd.f32 %v3647_v44, %v19562_v53 }
 0x3ae   :  { %23490 = vst [vmem:[#allocation39_spill] sm:$0xff] %v19972_v13  ;;  %v6387_v9 = vsel %vm6179_vm3, %v19972_v13, -inf }
 0x3af   :  { %6376 = vmax.xlane.f32.xlu0 %v6375_v1  ;;  %23491 = vst [vmem:[#allocation8_spill] sm:$0xff] %v19977_v62  ;;  %v6384_v44 = vsel %vm6179_vm3, %v19977_v62, -inf  ;;  %v20007_v62 = vadd.f32 %v2864_v37, %v19408_v30 }
 0x3b0   :  { %6373 = vmax.xlane.f32.xlu1 %v6372_v27  ;;  %v19982_v27 = vadd.f32 %v15261_v40, %v19640_v29 }
 0x3b1   :  { %23497 = vst [vmem:[#allocation48_spill] sm:$0xff] %v20007_v62 }
 0x3b2   :  { %v15303_v15 = vpop.f32.mrb[52].mxu1  ;;  %23492 = vst [vmem:[#allocation45_spill] sm:$0xff] %v19982_v27 }
 0x3b3   :  { %6310 = vmax.xlane.f32.xlu0 %v6309_v56  ;;  %v15352_v33 = vpop.f32.mrb[44].mxu0  ;;  %v3212_v21 = vpop.f32.mrb[53].mxu1 }
 0x3b4   :  { %v3821_v1 = vpop.f32.mrb[45].mxu0  ;;  %6307 = vmax.xlane.f32.xlu1 %v6306_v12  ;;  %v19992_v56 = vadd.f32 %v19764_v49, %v15352_v33  ;;  %v6321_v12 = vsel %vm6179_vm3, %v19982_v27, -inf }
 0x3b5   :  { %v19997_v40 = vadd.f32 %v19701_v2, %v3821_v1 }
 0x3b6   :  { %23494 = vst [vmem:[#allocation150_spill] sm:$0xff] %v19992_v56  ;;  %v6399_v33 = vsel %vm6179_vm3, %v19992_v56, -inf }
 0x3b7   :  { %6388 = vmax.xlane.f32.xlu0 %v6387_v9  ;;  %23495 = vst [vmem:[#allocation42_spill] sm:$0xff] %v19997_v40  ;;  %v6396_v1 = vsel %vm6179_vm3, %v19997_v40, -inf }
 0x3b8   :  { %6385 = vmax.xlane.f32.xlu1 %v6384_v44  ;;  %v20002_v44 = vadd.f32 %v15275_v63, %v19397_v34 }
 0x3ba   :  { %v15317_v31 = vpop.f32.mrb[54].mxu1  ;;  %23496 = vst [vmem:[#allocation60_spill] sm:$0xff] %v20002_v44  ;;  %v6333_v63 = vsel %vm6179_vm3, %v20002_v44, -inf  ;;  %v20031_v44 = vadd.f32 %v3038_v26, %v19645_v39 }
 0x3bb   :  { %6322 = vmax.xlane.f32.xlu0 %v6321_v12  ;;  %v15366_v13 = vpop.f32.mrb[46].mxu0  ;;  %v3386_v36 = vpop.f32.mrb[55].mxu1 }
 0x3bc   :  { %v3995_v9 = vpop.f32.mrb[47].mxu0  ;;  %6319 = vmax.xlane.f32.xlu1 %v6318_v38  ;;  %v20012_v12 = vadd.f32 %v15366_v13, %v19553_v60  ;;  %v20026_v13 = vadd.f32 %v15289_v6, %v19640_v29  ;;  %23501 = vst [vmem:[#allocation46_spill] sm:$0xff] %v20031_v44 }
 0x3bd   :  { %v20019_v38 = vadd.f32 %v3995_v9, %v19562_v53 }
 0x3be   :  { %23498 = vst [vmem:[#allocation12_spill] sm:$0xff] %v20012_v12  ;;  %23500 = vst [vmem:[#allocation96_spill] sm:$0xff] %v20026_v13  ;;  %v6345_v6 = vsel %vm6179_vm3, %v20026_v13, -inf  ;;  %v20055_v13 = vadd.f32 %v3212_v21, %v19408_v30 }
 0x3bf   :  { %6400 = vmax.xlane.f32.xlu0 %v6399_v33  ;;  %23499 = vst [vmem:[#allocation153_spill] sm:$0xff] %v20019_v38  ;;  %v6330_v33 = vsel %vm6179_vm3, %v20007_v62, -inf  ;;  %v6408_v9 = vsel %vm6179_vm3, %v20019_v38, -inf  ;;  %v6191_v38 = vpop.xlane.xlu0 %6190 }
 0x3c0   :  { %6397 = vmax.xlane.f32.xlu1 %v6396_v1  ;;  %v6411_v1 = vsel %vm6179_vm3, %v20012_v12, -inf  ;;  %23505 = vst [vmem:[#allocation51_spill] sm:$0xff] %v20055_v13 }
 0x3c2   :  { %v20014_v35 = vpop.f32.mrb[56].mxu1 }
 0x3c3   :  { %6334 = vmax.xlane.f32.xlu0 %v6333_v63  ;;  %v15380_v56 = vpop.f32.mrb[48].mxu0  ;;  %v20021_v37 = vpop.f32.mrb[57].mxu1 }
 0x3c4   :  { %v4169_v40 = vpop.f32.mrb[49].mxu0  ;;  %6331 = vmax.xlane.f32.xlu1 %v6330_v33  ;;  %v20036_v63 = vadd.f32 %v19764_v49, %v15380_v56  ;;  %v20050_v56 = vadd.f32 %v15303_v15, %v19397_v34 }
 0x3c5   :  { %v20043_v33 = vadd.f32 %v19701_v2, %v4169_v40 }
 0x3c6   :  { %23502 = vst [vmem:[#allocation11_spill] sm:$0xff] %v20036_v63  ;;  %23504 = vst [vmem:[#allocation72_spill] sm:$0xff] %v20050_v56  ;;  %v6423_v27 = vsel %vm6179_vm3, %v20036_v63, -inf  ;;  %v6357_v34 = vsel %vm6179_vm3, %v20050_v56, -inf  ;;  %v6194_v56 = vpop.xlane.xlu1 %6193 }
 0x3c7   :  { %6412 = vmax.xlane.f32.xlu0 %v6411_v1  ;;  %23503 = vst [vmem:[#allocation54_spill] sm:$0xff] %v20043_v33  ;;  %v6342_v1 = vsel %vm6179_vm3, %v20031_v44, -inf  ;;  %v6420_v40 = vsel %vm6179_vm3, %v20043_v33, -inf  ;;  %v20076_v33 = vadd.f32 %v15317_v31, %v19640_v29 }
 0x3c8   :  { %6409 = vmax.xlane.f32.xlu1 %v6408_v9 }
 0x3c9   :  { %23508 = vst [vmem:[#allocation18_spill] sm:$0xff] %v20076_v33 }
 0x3ca   :  { %v20038_v62 = vpop.f32.mrb[58].mxu1 }
 0x3cb   :  { %6346 = vmax.xlane.f32.xlu0 %v6345_v6  ;;  %v15394_v12 = vpop.f32.mrb[50].mxu0  ;;  %v20045_v26 = vpop.f32.mrb[59].mxu1 }
 0x3cc   :  { %v4343_v9 = vpop.f32.mrb[51].mxu0  ;;  %6343 = vmax.xlane.f32.xlu1 %v6342_v1  ;;  %v6188_v6 = vpop.xlane.xlu0 %6187  ;;  %v20060_v44 = vadd.f32 %v15394_v12, %v19553_v60  ;;  %v6567_v12 = vsub.f32 %v19413_v17, %v6191_v38  ;;  %v6369_v38 = vsel %vm6179_vm3, %v20076_v33, -inf }
 0x3cd   :  { %v20067_v15 = vadd.f32 %v4343_v9, %v19562_v53 }
 0x3ce   :  { %23506 = vst [vmem:[#allocation67_spill] sm:$0xff] %v20060_v44  ;;  %v6435_v9 = vsel %vm6179_vm3, %v20060_v44, -inf  ;;  %v20113_v44 = vld [vmem:[%s22895_s4 + $0x10] sm:$0xff] }
 0x3cf   :  { %6424 = vmax.xlane.f32.xlu0 %v6423_v27  ;;  %23507 = vst [vmem:[#allocation61_spill] sm:$0xff] %v20067_v15  ;;  %v6354_v27 = vsel %vm6179_vm3, %v20055_v13, -inf  ;;  %v6432_v63 = vsel %vm6179_vm3, %v20067_v15, -inf  ;;  %v20102_v15 = vld [vmem:[%s22895_s4 + $0x18] sm:$0xff] }
 0x3d0   :  { %6421 = vmax.xlane.f32.xlu1 %v6420_v40  ;;  %v6566_v40 = vsub.f32 %v19418_v0, %v6188_v6  ;;  %v6197_v13 = vpop.xlane.xlu0 %6196 }
 0x3d2   :  { %v20062_v48 = vpop.f32.mrb[60].mxu1  ;;  %v6696_v17 = vmul.f32 1.442695, %v6566_v40 }
 0x3d3   :  { %6358 = vmax.xlane.f32.xlu0 %v6357_v34  ;;  %v15408_v30 = vpop.f32.mrb[52].mxu0  ;;  %v20069_v21 = vpop.f32.mrb[61].mxu1  ;;  %v20081_v34 = vadd.f32 %v3386_v36, %v19645_v39 }
 0x3d4   :  { %v4517_v1 = vpop.f32.mrb[53].mxu0  ;;  %6355 = vmax.xlane.f32.xlu1 %v6354_v27  ;;  %v6698_v27 = vmul.f32 1.442695, %v6567_v12  ;;  %v20086_v0 = vadd.f32 %v19764_v49, %v15408_v30 }
 0x3d5   :  { %23509 = vst [vmem:[#allocation120_spill] sm:$0xff] %v20081_v34  ;;  %v20093_v36 = vadd.f32 %v19701_v2, %v4517_v1  ;;  %v20106_v1 = vadd.f32 %v20102_v15, %v20014_v35  ;;  %v6569_v35 = vsub.f32 %v19571_v28, %v6197_v13 }
 0x3d6   :  { %23510 = vst [vmem:[#allocation58_spill] sm:$0xff] %v20086_v0  ;;  %17362 = vpow2.f32 %v6698_v27  ;;  %v20117_v27 = vadd.f32 %v20113_v44, %v20021_v37 }
 0x3d7   :  { %6436 = vmax.xlane.f32.xlu0 %v6435_v9  ;;  %23511 = vst [vmem:[#allocation16_spill] sm:$0xff] %v20093_v36  ;;  %17364 = vpow2.f32 %v6696_v17  ;;  %23512 = vst [vmem:[#allocation64_spill] sm:$0xff] %v20106_v1  ;;  %v6444_v17 = vsel %vm6179_vm3, %v20093_v36, -inf  ;;  %v6381_v37 = vsel %vm6179_vm3, %v20106_v1, -inf }
 0x3d8   :  { %6433 = vmax.xlane.f32.xlu1 %v6432_v63  ;;  %v6366_v63 = vsel %vm6179_vm3, %v20081_v34, -inf  ;;  %23513 = vst [vmem:[#allocation86_spill] sm:$0xff] %v20117_v27  ;;  %v6378_v28 = vsel %vm6179_vm3, %v20117_v27, -inf }
 0x3da   :  { %v20088_v31 = vpop.f32.mrb[62].mxu1 }
 0x3db   :  { %6370 = vmax.xlane.f32.xlu0 %v6369_v38  ;;  %v15422_v6 = vpop.f32.mrb[54].mxu0  ;;  %v20095_v9 = vpop.f32.mrb[63].mxu1  ;;  %v6447_v38 = vsel %vm6179_vm3, %v20086_v0, -inf  ;;  %v6568_v0 = vsub.f32 %v19576_v24, %v6194_v56 }
 0x3dc   :  { %v6245_v12 = vpop.xlane.xlu0 %6244  ;;  %v4691_v40 = vpop.f32.mrb[55].mxu0  ;;  %6367 = vmax.xlane.f32.xlu1 %v6366_v63  ;;  %v20128_v33 = vadd.f32 %v15422_v6, %v19553_v60  ;;  %v6702_v60 = vmul.f32 1.442695, %v6569_v35 }
 0x3dd   :  { %v6242_v30 = vpop.xlane.xlu1 %6241  ;;  %v6585_v56 = vsub.f32 %v19648_v20, %v6245_v12  ;;  %v6700_v1 = vmul.f32 1.442695, %v6568_v0 }
 0x3de   :  { %23514 = vst [vmem:[#allocation62_spill] sm:$0xff] %v20128_v33  ;;  %17366 = vpow2.f32 %v6702_v60 }
 0x3df   :  { %6448 = vmax.xlane.f32.xlu0 %v6447_v38  ;;  %v20135_v38 = vadd.f32 %v4691_v40, %v19562_v53  ;;  %v6584_v53 = vsub.f32 %v19651_v5, %v6242_v30  ;;  %v6459_v40 = vsel %vm6179_vm3, %v20128_v33, -inf  ;;  %v6734_v20 = vmul.f32 1.442695, %v6585_v56 }
 0x3e0   :  { %v20121_v63 = vpop.xlane.xlu0 %6202  ;;  %6445 = vmax.xlane.f32.xlu1 %v6444_v17  ;;  %17368 = vpow2.f32 %v6700_v1  ;;  %v20161_v5 = vadd.f32 %v20038_v62, %v19640_v29 }
 0x3e1   :  { %v20124_v34 = vpop.xlane.xlu1 %6199  ;;  %23515 = vst [vmem:[#allocation76_spill] sm:$0xff] %v20135_v38  ;;  %v6456_v27 = vsel %vm6179_vm3, %v20135_v38, -inf  ;;  %v6732_v0 = vmul.f32 1.442695, %v6584_v53  ;;  %17370 = vpow2.f32 %v6734_v20  ;;  %v6571_v20 = vsub.f32 %v19654_v52, %v20121_v63 }
 0x3e2   :  { %v20130_v22 = vpop.f32.mrb[64].mxu1  ;;  %23518 = vst [vmem:[#allocation135_spill] sm:$0xff] %v20161_v5 }
 0x3e3   :  { %6382 = vmax.xlane.f32.xlu0 %v6381_v37  ;;  %v15436_v36 = vpop.f32.mrb[56].mxu0  ;;  %v20137_v17 = vpop.f32.mrb[65].mxu1  ;;  %17372 = vpow2.f32 %v6732_v0 }
 0x3e4   :  { %v20141_v13 = vpop.xlane.xlu0 %6256  ;;  %v4865_v24 = vpop.f32.mrb[57].mxu0  ;;  %6379 = vmax.xlane.f32.xlu1 %v6378_v28  ;;  %v20180_v38 = vadd.f32 %v19764_v49, %v15436_v36  ;;  %v6570_v36 = vsub.f32 %v19661_v7, %v20124_v34  ;;  %v6706_v34 = vmul.f32 1.442695, %v6571_v20 }
 0x3e5   :  { %v20144_v6 = vpop.xlane.xlu1 %6253  ;;  %v20149_v37 = vpop.eup %17362 }
 0x3e6   :  { %23516 = vst [vmem:[#allocation71_spill] sm:$0xff] %v20149_v37  ;;  %v20153_v55 = vpop.eup %17364  ;;  %v6957_v35 = vsel %vm6179_vm3, %v20149_v37, 0.0  ;;  %23520 = vst [vmem:[#allocation22_spill] sm:$0xff] %v20180_v38  ;;  %v6588_v54 = vsub.f32 %v19689_v25, %v20144_v6  ;;  %17374 = vpow2.f32 %v6706_v34  ;;  %v20235_v25 = vadd.f32 %v20102_v15, %v20062_v48 }
 0x3e7   :  { %6460 = vmax.xlane.f32.xlu0 %v6459_v40  ;;  %23517 = vst [vmem:[#allocation25_spill] sm:$0xff] %v20153_v55  ;;  %v20169_v40 = vadd.f32 %v20045_v26, %v19645_v39  ;;  %v6954_v1 = vsel %vm6179_vm3, %v20153_v55, 0.0  ;;  %v6393_v26 = vsel %vm6179_vm3, %v20161_v5, -inf }
 0x3e8   :  { %v20155_v28 = vpop.xlane.xlu0 %6208  ;;  %6457 = vmax.xlane.f32.xlu1 %v6456_v27  ;;  %23526 = vst [vmem:[#allocation31_spill] sm:$0xff] %v20235_v25  ;;  %v6740_v6 = vmul.f32 1.442695, %v6588_v54 }
 0x3e9   :  { %v20157_v12 = vpop.xlane.xlu1 %6205  ;;  %23519 = vst [vmem:[#allocation65_spill] sm:$0xff] %v20169_v40  ;;  %v6390_v33 = vsel %vm6179_vm3, %v20169_v40, -inf }
 0x3ea   :  { %v20163_v30 = vpop.f32.mrb[66].mxu1 }
 0x3eb   :  { %6958 = vadd.xlane.f32.xlu0 %v6957_v35  ;;  %v15450_v27 = vpop.f32.mrb[58].mxu0  ;;  %v20171_v60 = vpop.f32.mrb[67].mxu1  ;;  %v20185_v35 = vadd.f32 %v19701_v2, %v4865_v24  ;;  %v6471_v24 = vsel %vm6179_vm3, %v20180_v38, -inf  ;;  %v6589_v38 = vsub.f32 %v19684_v23, %v20141_v13 }
 0x3ec   :  { %v20175_v56 = vpop.xlane.xlu0 %6268  ;;  %v5039_v62 = vpop.f32.mrb[59].mxu0  ;;  %6955 = vadd.xlane.f32.xlu1 %v6954_v1 }
 0x3ed   :  { %v20177_v53 = vpop.xlane.xlu1 %6265  ;;  %23521 = vst [vmem:[#allocation75_spill] sm:$0xff] %v20185_v35  ;;  %v6468_v52 = vsel %vm6179_vm3, %v20185_v35, -inf  ;;  %v6742_v23 = vmul.f32 1.442695, %v6589_v38 }
 0x3ef   :  { %6394 = vmax.xlane.f32.xlu0 %v6393_v26  ;;  %v20201_v26 = vpop.eup %17366 }
 0x3f0   :  { %v20189_v37 = vpop.xlane.xlu0 %6214  ;;  %6391 = vmax.xlane.f32.xlu1 %v6390_v33  ;;  %23522 = vst [vmem:[#allocation108_spill] sm:$0xff] %v20201_v26  ;;  %v20209_v33 = vpop.eup %17368  ;;  %v6963_v35 = vsel %vm6179_vm3, %v20201_v26, 0.0  ;;  %v20243_v26 = vadd.f32 %v20113_v44, %v20069_v21  ;;  %v20260_v21 = vld [vmem:[%s22895_s4 + $0x28] sm:$0xff] }
 0x3f1   :  { %v20193_v0 = vpop.xlane.xlu1 %6211  ;;  %23523 = vst [vmem:[#allocation70_spill] sm:$0xff] %v20209_v33  ;;  %v20223_v59 = vpop.eup %17370  ;;  %v6960_v46 = vsel %vm6179_vm3, %v20209_v33, 0.0 }
 0x3f2   :  { %v20197_v1 = vpop.f32.mrb[68].mxu1  ;;  %23524 = vst [vmem:[#allocation87_spill] sm:$0xff] %v20223_v59  ;;  %23528 = vst [vmem:[#allocation73_spill] sm:$0xff] %v20243_v26 }
 0x3f3   :  { %6472 = vmax.xlane.f32.xlu0 %v6471_v24  ;;  %v20203_v40 = vpop.f32.mrb[60].mxu0  ;;  %v20205_v5 = vpop.f32.mrb[69].mxu1  ;;  %v6704_v24 = vmul.f32 1.442695, %v6570_v36 }
 0x3f4   :  { %v20211_v63 = vpop.xlane.xlu0 %6280  ;;  %v20213_v7 = vpop.f32.mrb[61].mxu0  ;;  %6469 = vmax.xlane.f32.xlu1 %v6468_v52 }
 0x3f5   :  { %v20217_v55 = vpop.xlane.xlu1 %6277  ;;  %v20227_v52 = vpop.eup %17372  ;;  %17376 = vpow2.f32 %v6704_v24 }
 0x3f6   :  { %23525 = vst [vmem:[#allocation82_spill] sm:$0xff] %v20227_v52  ;;  %v7008_v48 = vsel %vm6179_vm3, %v20227_v52, 0.0  ;;  %17378 = vpow2.f32 %v6742_v23  ;;  %v20270_v52 = vld [vmem:[%s22895_s4 + $0x20] sm:$0xff] }
 0x3f7   :  { %6964 = vadd.xlane.f32.xlu0 %v6963_v35  ;;  %v7011_v35 = vsel %vm6179_vm3, %v20223_v59, 0.0  ;;  %17380 = vpow2.f32 %v6740_v6  ;;  %v6405_v59 = vsel %vm6179_vm3, %v20235_v25, -inf  ;;  %v20273_v23 = vadd.f32 %v20270_v52, %v5039_v62  ;;  %v20285_v62 = vpop.eup %17374 }
 0x3f8   :  { %v20229_v20 = vpop.xlane.xlu0 %6220  ;;  %6961 = vadd.xlane.f32.xlu1 %v6960_v46  ;;  %v6402_v6 = vsel %vm6179_vm3, %v20243_v26, -inf  ;;  %v6572_v25 = vsub.f32 %v19704_v58, %v20157_v12  ;;  %23533 = vst [vmem:[#allocation104_spill] sm:$0xff] %v20285_v62 }
 0x3f9   :  { %v20231_v13 = vpop.xlane.xlu1 %6217  ;;  %23531 = vst [vmem:[#allocation129_spill] sm:$0xff] %v20273_v23 }
 0x3fa   :  { %v20237_v36 = vpop.f32.mrb[70].mxu1 }
 0x3fb   :  { %23527 = vst [vmem:[#allocation149_spill] sm:$0xff] %v20237_v36  ;;  %7012 = vadd.xlane.f32.xlu0 %v7011_v35  ;;  %v20245_v46 = vpop.f32.mrb[62].mxu0  ;;  %v20247_v38 = vpop.f32.mrb[71].mxu1  ;;  %v20263_v35 = vadd.f32 %v20260_v21, %v15450_v27  ;;  %v6573_v27 = vsub.f32 %v19694_v61, %v20155_v28  ;;  %v6480_v61 = vsel %vm6179_vm3, %v20273_v23, -inf  ;;  %v6969_v23 = vsel %vm6179_vm3, %v20285_v62, 0.0 }
 0x3fc   :  { %23529 = vst [vmem:[#allocation26_spill] sm:$0xff] %v20247_v38  ;;  %v20251_v34 = vpop.xlane.xlu0 %6292  ;;  %v20253_v54 = vpop.f32.mrb[63].mxu0  ;;  %7009 = vadd.xlane.f32.xlu1 %v7008_v48  ;;  %v20327_v62 = vadd.f32 %v20095_v9, %v19645_v39 }
 0x3fd   :  { %v20255_v24 = vpop.xlane.xlu1 %6289  ;;  %23530 = vst [vmem:[#allocation91_spill] sm:$0xff] %v20263_v35  ;;  %v6483_v36 = vsel %vm6179_vm3, %v20263_v35, -inf  ;;  %v6708_v35 = vmul.f32 1.442695, %v6572_v25 }
 0x3fe   :  { %23539 = vst [vmem:[#allocation114_spill] sm:$0xff] %v20327_v62 }
 0x3ff   :  { %6406 = vmax.xlane.f32.xlu0 %v6405_v59  ;;  %v20293_v28 = vpop.eup %17376 }
 0x400   :  { %v6953_v48 = vpop.xlane.xlu0 %6952  ;;  %6403 = vmax.xlane.f32.xlu1 %v6402_v6  ;;  %23535 = vst [vmem:[#allocation37_spill] sm:$0xff] %v20293_v28  ;;  %v6710_v6 = vmul.f32 1.442695, %v6573_v27 }
 0x401   :  { %v6950_v33 = vpop.xlane.xlu1 %6949  ;;  %17382 = vrcp.f32 %v6953_v48  ;;  %v6593_v48 = vsub.f32 %v19727_v32, %v20175_v56 }
 0x402   :  { %v20281_v38 = vpop.f32.mrb[72].mxu1  ;;  %17384 = vrcp.f32 %v6950_v33  ;;  %v6966_v33 = vsel %vm6179_vm3, %v20293_v28, 0.0 }
 0x403   :  { %23532 = vst [vmem:[#allocation79_spill] sm:$0xff] %v20281_v38  ;;  %6484 = vmax.xlane.f32.xlu0 %v6483_v36  ;;  %v20287_v59 = vpop.f32.mrb[64].mxu0  ;;  %v20289_v26 = vpop.f32.mrb[73].mxu1  ;;  %17386 = vpow2.f32 %v6710_v6  ;;  %v6750_v32 = vmul.f32 1.442695, %v6593_v48 }
 0x404   :  { %23534 = vst [vmem:[#allocation102_spill] sm:$0xff] %v20289_v26  ;;  %v20295_v58 = vpop.xlane.xlu0 %6226  ;;  %v20297_v12 = vpop.f32.mrb[65].mxu0  ;;  %6481 = vmax.xlane.f32.xlu1 %v6480_v61  ;;  %v6592_v26 = vsub.f32 %v19731_v41, %v20177_v53  ;;  %v20319_v41 = vadd.f32 %v20088_v31, %v19640_v29  ;;  %17388 = vpow2.f32 %v6708_v35 }
 0x405   :  { %v20301_v36 = vpop.xlane.xlu1 %6223  ;;  %v20307_v38 = vpop.eup %17378  ;;  %17390 = vpow2.f32 %v6750_v32 }
 0x406   :  { %23536 = vst [vmem:[#allocation44_spill] sm:$0xff] %v20307_v38  ;;  %v20311_v61 = vpop.eup %17380  ;;  %23538 = vst [vmem:[#allocation32_spill] sm:$0xff] %v20319_v41  ;;  %v6748_v53 = vmul.f32 1.442695, %v6592_v26 }
 0x407   :  { %6970 = vadd.xlane.f32.xlu0 %v6969_v23  ;;  %23537 = vst [vmem:[#allocation83_spill] sm:$0xff] %v20311_v61  ;;  %v7023_v23 = vsel %vm6179_vm3, %v20307_v38, 0.0  ;;  %v7020_v29 = vsel %vm6179_vm3, %v20311_v61, 0.0  ;;  %v6417_v61 = vsel %vm6179_vm3, %v20319_v41, -inf }
 0x408   :  { %v20313_v27 = vpop.xlane.xlu0 %6304  ;;  %6967 = vadd.xlane.f32.xlu1 %v6966_v33  ;;  %v23541_v33 = vld [vmem:[#allocation55_spill] sm:$0xff]  ;;  %17392 = vpow2.f32 %v6748_v53 }
 0x409   :  { %v20315_v56 = vpop.xlane.xlu1 %6301  ;;  %v16743_v38 = vunpack.i.h.bf16 %v23541_v33  ;;  %v16742_v9 = vunpack.i.l.bf16 %v23541_v33 }
 0x40a   :  { %v20321_v25 = vpop.f32.mrb[74].mxu1 }
 0x40b   :  { %7024 = vadd.xlane.f32.xlu0 %v7023_v23  ;;  %v20329_v6 = vpop.f32.mrb[66].mxu0  ;;  %v20331_v48 = vpop.f32.mrb[75].mxu1  ;;  %v20345_v23 = vadd.f32 %v19764_v49, %v20203_v40  ;;  %v6575_v49 = vsub.f32 %v19736_v16, %v20189_v37 }
 0x40c   :  { %v20335_v31 = vpop.xlane.xlu0 %7000  ;;  %v20337_v26 = vpop.f32.mrb[67].mxu0  ;;  %7021 = vadd.xlane.f32.xlu1 %v7020_v29  ;;  %v20351_v29 = vadd.f32 %v19701_v2, %v20213_v7  ;;  %v6574_v2 = vsub.f32 %v19741_v8, %v20193_v0 }
 0x40d   :  { %23540 = vst [vmem:[#allocation141_spill] sm:$0xff] %v20335_v31  ;;  %v17383_v35 = vpop.eup %17382  ;;  %v20340_v28 = vpop.xlane.xlu1 %6997  ;;  %23543 = vst [vmem:[#allocation93_spill] sm:$0xff] %v20345_v23  ;;  %v6414_v31 = vsel %vm6179_vm3, %v20327_v62, -inf }
 0x40e   :  { %23542 = vst [vmem:[#allocation139_spill] sm:$0xff] %v20340_v28  ;;  %v17385_v39 = vpop.eup %17384  ;;  %23544 = vst [vmem:[#allocation121_spill] sm:$0xff] %v20351_v29  ;;  %v7335_v53 = vmul.f32 %v17383_v35, %v19803_v43  ;;  %v6492_v8 = vsel %vm6179_vm3, %v20351_v29, -inf  ;;  %v6714_v35 = vmul.f32 1.442695, %v6575_v49  ;;  %v20417_v29 = vadd.f32 %v20113_v44, %v20137_v17 }
 0x40f   :  { %6418 = vmax.xlane.f32.xlu0 %v6417_v61  ;;  %v7333_v32 = vmul.f32 %v17385_v39, %v19807_v50  ;;  %v20367_v50 = vpack.c.bf16 %v16743_v38, %v16742_v9  ;;  %v6495_v61 = vsel %vm6179_vm3, %v20345_v23, -inf  ;;  %v20373_v43 = vpop.eup %17386  ;;  %v6712_v39 = vmul.f32 1.442695, %v6574_v2 }
 0x410   :  { %v20356_v28 = vpop.xlane.xlu0 %6238  ;;  %6415 = vmax.xlane.f32.xlu1 %v6414_v31  ;;  %v20382_v0 = vpop.eup %17388  ;;  %v6596_v9 = vsub.f32 %v19770_v42, %v20217_v55  ;;  %17394 = vpow2.f32 %v6714_v35  ;;  %v20409_v42 = vadd.f32 %v20102_v15, %v20130_v22  ;;  %23548 = vst [vmem:[#allocation109_spill] sm:$0xff] %v20417_v29  ;;  %v20433_v17 = vadd.f32 %v20260_v21, %v20245_v46 }
 0x411   :  { %15546 = vmatprep.mubr.msk.f32.mxu0 %vm6179_vm3, %v7333_v32  ;;  %v20362_v40 = vpop.xlane.xlu1 %6235  ;;  %v6975_v32 = vsel %vm6179_vm3, %v20373_v43, 0.0  ;;  %17396 = vpow2.f32 %v6712_v39  ;;  %v20439_v23 = vadd.f32 %v20270_v52, %v20253_v54  ;;  %v6426_v62 = vsel %vm6179_vm3, %v20417_v29, -inf }
 0x412   :  { %15547 = vmatmul.mubr.msk.f32.vlgmr.msra.gmra.mrb[72].mxu0 %vm6179_vm3, %v7335_v53  ;;  %v20369_v7 = vpop.f32.mrb[76].mxu1  ;;  %v20397_v53 = vpop.eup %17390  ;;  %23547 = vst [vmem:[#allocation132_spill] sm:$0xff] %v20409_v42  ;;  %v6756_v55 = vmul.f32 1.442695, %v6596_v9  ;;  %23551 = vst [vmem:[#allocation154_spill] sm:$0xff] %v20433_v17  ;;  %v6576_v46 = vsub.f32 %v19780_v51, %v20231_v13  ;;  %v6507_v54 = vsel %vm6179_vm3, %v20433_v17, -inf  ;;  %v6601_v51 = vsub.f32 %v19796_v4, %v20251_v34 }
 0x413   :  { %16449 = vmatpush3.bf16.msra.mxu0 %v19626_v47  ;;  %6496 = vmax.xlane.f32.xlu0 %v6495_v61  ;;  %v20376_v16 = vpop.f32.mrb[68].mxu0  ;;  %v20378_v37 = vpop.f32.mrb[77].mxu1  ;;  %v6597_v47 = vsub.f32 %v19767_v11, %v20211_v63  ;;  %23545 = vst [vmem:[#allocation126_spill] sm:$0xff] %v20397_v53  ;;  %v6972_v61 = vsel %vm6179_vm3, %v20382_v0, 0.0  ;;  %23552 = vst [vmem:[#allocation116_spill] sm:$0xff] %v20439_v23 }
 0x414   :  { %16455 = vmatprep.subr.bf16.mxu0 %v20367_v50  ;;  %v20385_v38 = vpop.xlane.xlu0 %6316  ;;  %v20387_v31 = vpop.f32.mrb[69].mxu0  ;;  %6493 = vmax.xlane.f32.xlu1 %v6492_v8  ;;  %v6716_v17 = vmul.f32 1.442695, %v6576_v46  ;;  %v6766_v4 = vmul.f32 1.442695, %v6601_v51 }
 0x415   :  { %v20391_v33 = vpop.xlane.xlu1 %6313  ;;  %v20401_v8 = vpop.eup %17392  ;;  %v6758_v11 = vmul.f32 1.442695, %v6597_v47 }
 0x416   :  { %23546 = vst [vmem:[#allocation98_spill] sm:$0xff] %v20401_v8  ;;  %v7032_v22 = vsel %vm6179_vm3, %v20401_v8, 0.0 }
 0x417   :  { %6976 = vadd.xlane.f32.xlu0 %v6975_v32  ;;  %v7035_v32 = vsel %vm6179_vm3, %v20397_v53, 0.0  ;;  %17398 = vpow2.f32 %v6758_v11  ;;  %v6577_v11 = vsub.f32 %v19774_v14, %v20229_v20 }
 0x418   :  { %v20403_v49 = vpop.xlane.xlu0 %6250  ;;  %6973 = vadd.xlane.f32.xlu1 %v6972_v61  ;;  %17400 = vpow2.f32 %v6756_v55 }
 0x419   :  { %v20405_v63 = vpop.xlane.xlu1 %6247  ;;  %v6718_v20 = vmul.f32 1.442695, %v6577_v11 }
 0x41a   :  { %v20411_v2 = vpop.f32.mrb[78].mxu1 }
 0x41b   :  { %7036 = vadd.xlane.f32.xlu0 %v7035_v32  ;;  %v20419_v35 = vpop.f32.mrb[70].mxu0  ;;  %v20421_v47 = vpop.f32.mrb[79].mxu1  ;;  %v6429_v32 = vsel %vm6179_vm3, %v20409_v42, -inf  ;;  %17402 = vpow2.f32 %v6718_v20  ;;  %v20499_v20 = vld [vmem:[%s22895_s4 + $0x30] sm:$0xff] }
 0x41c   :  { %v20425_v61 = vpop.xlane.xlu0 %6328  ;;  %v20427_v39 = vpop.f32.mrb[71].mxu0  ;;  %7033 = vadd.xlane.f32.xlu1 %v7032_v22  ;;  %17404 = vpow2.f32 %v6716_v17  ;;  %v20503_v51 = vadd.f32 %v20499_v20, %v20171_v60 }
 0x41d   :  { %23549 = vst [vmem:[#allocation138_spill] sm:$0xff] %v20425_v61  ;;  %v20429_v9 = vpop.xlane.xlu1 %6325  ;;  %17406 = vpow2.f32 %v6766_v4 }
 0x41e   :  { %23550 = vst [vmem:[#allocation151_spill] sm:$0xff] %v20429_v9  ;;  %23558 = vst [vmem:[#allocation156_spill] sm:$0xff] %v20503_v51 }
 0x41f   :  { %6430 = vmax.xlane.f32.xlu0 %v6429_v32  ;;  %v20455_v32 = vpop.eup %17394 }
 0x420   :  { %v20443_v22 = vpop.xlane.xlu0 %6262  ;;  %6427 = vmax.xlane.f32.xlu1 %v6426_v62  ;;  %v6504_v62 = vsel %vm6179_vm3, %v20439_v23, -inf  ;;  %v20461_v41 = vpop.eup %17396  ;;  %v6981_v53 = vsel %vm6179_vm3, %v20455_v32, 0.0 }
 0x421   :  { %v20447_v55 = vpop.xlane.xlu1 %6259  ;;  %v20473_v8 = vpop.eup %17398  ;;  %v6978_v23 = vsel %vm6179_vm3, %v20461_v41, 0.0 }
 0x422   :  { %v20451_v42 = vpop.f32.mrb[80].mxu1  ;;  %23555 = vst [vmem:[#allocation127_spill] sm:$0xff] %v20473_v8 }
 0x423   :  { %6508 = vmax.xlane.f32.xlu0 %v6507_v54  ;;  %v20457_v29 = vpop.f32.mrb[81].mxu1  ;;  %v6600_v54 = vsub.f32 %v19799_v3, %v20255_v24  ;;  %v20486_v3 = vld [vmem:[%s22895_s4 + $0x38] sm:$0xff] }
 0x424   :  { %v20463_v14 = vpop.xlane.xlu0 %6340  ;;  %6505 = vmax.xlane.f32.xlu1 %v6504_v62  ;;  %v20477_v62 = vpop.eup %17400  ;;  %v20490_v24 = vadd.f32 %v20486_v3, %v20163_v30 }
 0x425   :  { %23553 = vst [vmem:[#allocation145_spill] sm:$0xff] %v20463_v14  ;;  %v20467_v13 = vpop.xlane.xlu1 %6337  ;;  %23556 = vst [vmem:[#allocation55_spill] sm:$0xff] %v20477_v62  ;;  %v7044_v30 = vsel %vm6179_vm3, %v20477_v62, 0.0 }
 0x426   :  { %23554 = vst [vmem:[#allocation152_spill] sm:$0xff] %v20467_v13  ;;  %23557 = vst [vmem:[#allocation155_spill] sm:$0xff] %v20490_v24 }
 0x427   :  { %6982 = vadd.xlane.f32.xlu0 %v6981_v53  ;;  %v6764_v53 = vmul.f32 1.442695, %v6600_v54 }
 0x428   :  { %v20479_v11 = vpop.xlane.xlu0 %6274  ;;  %6979 = vadd.xlane.f32.xlu1 %v6978_v23  ;;  %v7047_v23 = vsel %vm6179_vm3, %v20473_v8, 0.0  ;;  %v20516_v8 = vld [vmem:[%s22895_s4 + $0x8] sm:$0xff] }
 0x429   :  { %v20481_v34 = vpop.xlane.xlu1 %6271  ;;  %17408 = vpow2.f32 %v6764_v53  ;;  %v20520_v60 = vadd.f32 %v20516_v8, %v20287_v59  ;;  %v6438_v53 = vsel %vm6179_vm3, %v20503_v51, -inf  ;;  %v6579_v59 = vsub.f32 %v19811_v45, %v20295_v58 }
 0x42a   :  { %v20492_v46 = vpop.f32.mrb[82].mxu1 }
 0x42b   :  { %7048 = vadd.xlane.f32.xlu0 %v7047_v23  ;;  %v20505_v13 = vpop.f32.mrb[83].mxu1  ;;  %23561 = vst [vmem:[#allocation159_spill] sm:$0xff] %v20520_v60  ;;  %v6441_v23 = vsel %vm6179_vm3, %v20490_v24, -inf  ;;  %v6722_v58 = vmul.f32 1.442695, %v6579_v59 }
 0x42c   :  { %v20509_v17 = vpop.xlane.xlu0 %6352  ;;  %7045 = vadd.xlane.f32.xlu1 %v7044_v30  ;;  %v20527_v30 = vld [vmem:[%s22895_s4] sm:$0xff] }
 0x42d   :  { %23559 = vst [vmem:[#allocation157_spill] sm:$0xff] %v20509_v17  ;;  %v20511_v54 = vpop.xlane.xlu1 %6349  ;;  %v20531_v4 = vadd.f32 %v20527_v30, %v20297_v12  ;;  %v6519_v12 = vsel %vm6179_vm3, %v20520_v60, -inf  ;;  %17410 = vpow2.f32 %v6722_v58 }
 0x42e   :  { %23560 = vst [vmem:[#allocation158_spill] sm:$0xff] %v20511_v54  ;;  %v6578_v54 = vsub.f32 %v19817_v57, %v20301_v36  ;;  %v6605_v57 = vsub.f32 %v19822_v18, %v20313_v27 }
 0x42f   :  { %23562 = vst [vmem:[#allocation160_spill] sm:$0xff] %v20531_v4  ;;  %6442 = vmax.xlane.f32.xlu0 %v6441_v23  ;;  %v20547_v23 = vpop.eup %17402 }
 0x430   :  { %v20535_v62 = vpop.xlane.xlu0 %6286  ;;  %6439 = vmax.xlane.f32.xlu1 %v6438_v53  ;;  %v6516_v53 = vsel %vm6179_vm3, %v20531_v4, -inf  ;;  %v20553_v14 = vpop.eup %17404  ;;  %v6720_v60 = vmul.f32 1.442695, %v6578_v54  ;;  %v6987_v9 = vsel %vm6179_vm3, %v20547_v23, 0.0  ;;  %v6774_v18 = vmul.f32 1.442695, %v6605_v57 }
 0x431   :  { %v20539_v24 = vpop.xlane.xlu1 %6283  ;;  %v20565_v61 = vpop.eup %17406  ;;  %v6984_v4 = vsel %vm6179_vm3, %v20553_v14, 0.0 }
 0x432   :  { %v20543_v17 = vpop.f32.mrb[84].mxu1  ;;  %23564 = vst [vmem:[#allocation162_spill] sm:$0xff] %v20565_v61  ;;  %17412 = vpow2.f32 %v6720_v60  ;;  %v20597_v60 = vadd.f32 %v20260_v21, %v20329_v6  ;;  %v23572_v6 = vld [vmem:[#allocation29_spill] sm:$0xff] }
 0x433   :  { %6520 = vmax.xlane.f32.xlu0 %v6519_v12  ;;  %v20549_v51 = vpop.f32.mrb[85].mxu1  ;;  %v6604_v12 = vsub.f32 %v19827_v10, %v20315_v56  ;;  %v20577_v10 = vadd.f32 %v20102_v15, %v20197_v1  ;;  %17414 = vpow2.f32 %v6774_v18  ;;  %v6583_v18 = vsub.f32 %v19841_v19, %v20356_v28 }
 0x434   :  { %v20555_v45 = vpop.xlane.xlu0 %6364  ;;  %6517 = vmax.xlane.f32.xlu1 %v6516_v53  ;;  %v20569_v53 = vpop.eup %17408  ;;  %23570 = vst [vmem:[#allocation168_spill] sm:$0xff] %v20597_v60 }
 0x435   :  { %v20559_v36 = vpop.xlane.xlu1 %6361  ;;  %23565 = vst [vmem:[#allocation163_spill] sm:$0xff] %v20569_v53  ;;  %23566 = vst [vmem:[#allocation164_spill] sm:$0xff] %v20577_v10  ;;  %v6772_v56 = vmul.f32 1.442695, %v6604_v12  ;;  %v7056_v58 = vsel %vm6179_vm3, %v20569_v53, 0.0  ;;  %v20603_v12 = vadd.f32 %v20270_v52, %v20337_v26 }
 0x436   :  { %23563 = vst [vmem:[#allocation161_spill] sm:$0xff] %v20559_v36  ;;  %v20585_v36 = vadd.f32 %v20113_v44, %v20205_v5  ;;  %v6453_v5 = vsel %vm6179_vm3, %v20577_v10, -inf  ;;  %v6531_v10 = vsel %vm6179_vm3, %v20597_v60, -inf  ;;  %v6730_v19 = vmul.f32 1.442695, %v6583_v18  ;;  %v23577_v18 = vld [vmem:[#allocation149_spill] sm:$0xff] }
 0x437   :  { %6988 = vadd.xlane.f32.xlu0 %v6987_v9  ;;  %v7059_v9 = vsel %vm6179_vm3, %v20565_v61, 0.0  ;;  %17416 = vpow2.f32 %v6772_v56  ;;  %23571 = vst [vmem:[#allocation169_spill] sm:$0xff] %v20603_v12  ;;  %v6582_v61 = vsub.f32 %v23572_v6, %v20362_v40  ;;  %v20617_v26 = vpop.eup %17410 }
 0x438   :  { %v20571_v59 = vpop.xlane.xlu0 %6298  ;;  %6985 = vadd.xlane.f32.xlu1 %v6984_v4  ;;  %23567 = vst [vmem:[#allocation165_spill] sm:$0xff] %v20585_v36  ;;  %v6993_v40 = vsel %vm6179_vm3, %v20617_v26, 0.0  ;;  %17418 = vpow2.f32 %v6730_v19  ;;  %v23582_v19 = vld [vmem:[#allocation47_spill] sm:$0xff] }
 0x439   :  { %v20573_v27 = vpop.xlane.xlu1 %6295  ;;  %v6728_v53 = vmul.f32 1.442695, %v6582_v61  ;;  %v20641_v61 = vadd.f32 %v20486_v3, %v23577_v18 }
 0x43a   :  { %v20579_v54 = vpop.f32.mrb[86].mxu1 }
 0x43b   :  { %7060 = vadd.xlane.f32.xlu0 %v7059_v9  ;;  %v20587_v4 = vpop.f32.mrb[87].mxu1  ;;  %v6450_v9 = vsel %vm6179_vm3, %v20585_v36, -inf  ;;  %23578 = vst [vmem:[#allocation149_spill] sm:$0xff] %v20641_v61  ;;  %17420 = vpow2.f32 %v6728_v53  ;;  %v20659_v53 = vadd.f32 %v20516_v8, %v20376_v16 }
 0x43c   :  { %v20591_v57 = vpop.xlane.xlu0 %6376  ;;  %7057 = vadd.xlane.f32.xlu1 %v7056_v58  ;;  %v20621_v36 = vpop.eup %17412 }
 0x43d   :  { %23568 = vst [vmem:[#allocation166_spill] sm:$0xff] %v20591_v57  ;;  %v20593_v1 = vpop.xlane.xlu1 %6373  ;;  %v20629_v6 = vpop.eup %17414  ;;  %v6587_v57 = vsub.f32 %v23582_v19, %v20403_v49  ;;  %23584 = vst [vmem:[#allocation174_spill] sm:$0xff] %v20659_v53 }
 0x43e   :  { %23569 = vst [vmem:[#allocation167_spill] sm:$0xff] %v20593_v1  ;;  %23575 = vst [vmem:[#allocation171_spill] sm:$0xff] %v20629_v6 }
 0x43f   :  { %6454 = vmax.xlane.f32.xlu0 %v6453_v5  ;;  %v6528_v5 = vsel %vm6179_vm3, %v20603_v12, -inf  ;;  %v6738_v19 = vmul.f32 1.442695, %v6587_v57  ;;  %v23588_v57 = vld [vmem:[#allocation57_spill] sm:$0xff] }
 0x440   :  { %v20607_v58 = vpop.xlane.xlu0 %6310  ;;  %6451 = vmax.xlane.f32.xlu1 %v6450_v9 }
 0x441   :  { %v20611_v56 = vpop.xlane.xlu1 %6307  ;;  %v20633_v60 = vpop.eup %17416  ;;  %17422 = vpow2.f32 %v6738_v19 }
 0x442   :  { %23576 = vst [vmem:[#allocation172_spill] sm:$0xff] %v20633_v60  ;;  %v7068_v1 = vsel %vm6179_vm3, %v20633_v60, 0.0  ;;  %v20667_v60 = vadd.f32 %v20527_v30, %v20387_v31 }
 0x443   :  { %6532 = vmax.xlane.f32.xlu0 %v6531_v10  ;;  %v6990_v10 = vsel %vm6179_vm3, %v20621_v36, 0.0 }
 0x444   :  { %v20623_v9 = vpop.xlane.xlu0 %6388  ;;  %6529 = vmax.xlane.f32.xlu1 %v6528_v5  ;;  %v6540_v31 = vsel %vm6179_vm3, %v20667_v60, -inf }
 0x445   :  { %23573 = vst [vmem:[#allocation29_spill] sm:$0xff] %v20623_v9  ;;  %v20625_v28 = vpop.xlane.xlu1 %6385 }
 0x446   :  { %23574 = vst [vmem:[#allocation170_spill] sm:$0xff] %v20625_v28  ;;  %v7071_v28 = vsel %vm6179_vm3, %v20629_v6, 0.0  ;;  %v23585_v6 = vld [vmem:[#allocation30_spill] sm:$0xff] }
 0x447   :  { %6994 = vadd.xlane.f32.xlu0 %v6993_v40  ;;  %v23579_v40 = vld [vmem:[#allocation26_spill] sm:$0xff]  ;;  %23586 = vst [vmem:[#allocation30_spill] sm:$0xff] %v20667_v60 }
 0x448   :  { %v20635_v12 = vpop.xlane.xlu0 %6322  ;;  %6991 = vadd.xlane.f32.xlu1 %v6990_v10  ;;  %v20647_v9 = vadd.f32 %v20499_v20, %v23579_v40  ;;  %v6586_v40 = vsub.f32 %v23585_v6, %v20405_v63  ;;  %v6543_v63 = vsel %vm6179_vm3, %v20659_v53, -inf  ;;  %v20677_v6 = vpop.eup %17418 }
 0x449   :  { %v20637_v5 = vpop.xlane.xlu1 %6319  ;;  %v20681_v30 = vpop.eup %17420  ;;  %v7005_v60 = vsel %vm6179_vm3, %v20677_v6, 0.0 }
 0x44a   :  { %23580 = vst [vmem:[#allocation26_spill] sm:$0xff] %v20647_v9  ;;  %v6462_v49 = vsel %vm6179_vm3, %v20647_v9, -inf  ;;  %v6736_v8 = vmul.f32 1.442695, %v6586_v40  ;;  %v23590_v40 = vld [vmem:[#allocation79_spill] sm:$0xff] }
 0x44b   :  { %7072 = vadd.xlane.f32.xlu0 %v7071_v28  ;;  %v6465_v28 = vsel %vm6179_vm3, %v20641_v61, -inf  ;;  %v20691_v53 = vadd.f32 %v20102_v15, %v23590_v40 }
 0x44c   :  { %v20651_v10 = vpop.xlane.xlu0 %6400  ;;  %7069 = vadd.xlane.f32.xlu1 %v7068_v1  ;;  %17424 = vpow2.f32 %v6736_v8 }
 0x44d   :  { %23581 = vst [vmem:[#allocation173_spill] sm:$0xff] %v20651_v10  ;;  %v20655_v18 = vpop.xlane.xlu1 %6397  ;;  %23591 = vst [vmem:[#allocation79_spill] sm:$0xff] %v20691_v53 }
 0x44e   :  { %23583 = vst [vmem:[#allocation47_spill] sm:$0xff] %v20655_v18  ;;  %v23593_v18 = vld [vmem:[#allocation102_spill] sm:$0xff] }
 0x44f   :  { %6466 = vmax.xlane.f32.xlu0 %v6465_v28 }
 0x450   :  { %v20671_v1 = vpop.xlane.xlu0 %6334  ;;  %6463 = vmax.xlane.f32.xlu1 %v6462_v49  ;;  %v6591_v49 = vsub.f32 %v23588_v57, %v20443_v22  ;;  %v7002_v22 = vsel %vm6179_vm3, %v20681_v30, 0.0 }
 0x451   :  { %v20673_v16 = vpop.xlane.xlu1 %6331 }
 0x452   :  { %v6746_v57 = vmul.f32 1.442695, %v6591_v49  ;;  %v23598_v49 = vld [vmem:[#allocation40_spill] sm:$0xff] }
 0x453   :  { %6544 = vmax.xlane.f32.xlu0 %v6543_v63  ;;  %v23592_v63 = vld [vmem:[#allocation95_spill] sm:$0xff] }
 0x454   :  { %v20683_v28 = vpop.xlane.xlu0 %6412  ;;  %6541 = vmax.xlane.f32.xlu1 %v6540_v31  ;;  %v6590_v61 = vsub.f32 %v23592_v63, %v20447_v55  ;;  %v20699_v31 = vadd.f32 %v20113_v44, %v23593_v18  ;;  %v20709_v55 = vadd.f32 %v20260_v21, %v20419_v35  ;;  %v6477_v63 = vsel %vm6179_vm3, %v20691_v53, -inf }
 0x455   :  { %23587 = vst [vmem:[#allocation175_spill] sm:$0xff] %v20683_v28  ;;  %v20687_v9 = vpop.xlane.xlu1 %6409  ;;  %17426 = vpow2.f32 %v6746_v57  ;;  %v6595_v21 = vsub.f32 %v23598_v49, %v20479_v11  ;;  %v23647_v28 = vld [vmem:[#allocation104_spill] sm:$0xff] }
 0x456   :  { %23589 = vst [vmem:[#allocation57_spill] sm:$0xff] %v20687_v9  ;;  %23594 = vst [vmem:[#allocation95_spill] sm:$0xff] %v20699_v31  ;;  %v6744_v8 = vmul.f32 1.442695, %v6590_v61  ;;  %v6474_v18 = vsel %vm6179_vm3, %v20699_v31, -inf  ;;  %v23600_v61 = vld [vmem:[#allocation6_spill] sm:$0xff] }
 0x457   :  { %7006 = vadd.xlane.f32.xlu0 %v7005_v60  ;;  %23595 = vst [vmem:[#allocation102_spill] sm:$0xff] %v20709_v55  ;;  %v20715_v60 = vadd.f32 %v20270_v52, %v20427_v39  ;;  %v6594_v53 = vsub.f32 %v23600_v61, %v20481_v34  ;;  %v6555_v52 = vsel %vm6179_vm3, %v20709_v55, -inf  ;;  %v20729_v39 = vpop.eup %17422  ;;  %v6754_v11 = vmul.f32 1.442695, %v6595_v21  ;;  %v23604_v21 = vld [vmem:[#allocation5_spill] sm:$0xff]  ;;  %v23639_v9 = vld [vmem:[#allocation108_spill] sm:$0xff] }
 0x458   :  { %v20703_v19 = vpop.xlane.xlu0 %6346  ;;  %7003 = vadd.xlane.f32.xlu1 %v7002_v22  ;;  %17428 = vpow2.f32 %v6744_v8  ;;  %v20741_v34 = vadd.f32 %v20486_v3, %v20321_v25  ;;  %v7017_v61 = vsel %vm6179_vm3, %v20729_v39, 0.0  ;;  %v6599_v25 = vsub.f32 %v23604_v21, %v20535_v62 }
 0x459   :  { %v20705_v40 = vpop.xlane.xlu1 %6343  ;;  %23596 = vst [vmem:[#allocation176_spill] sm:$0xff] %v20715_v60  ;;  %v6752_v8 = vmul.f32 1.442695, %v6594_v53  ;;  %17430 = vpow2.f32 %v6754_v11  ;;  %v23606_v53 = vld [vmem:[#allocation143_spill] sm:$0xff] }
 0x45a   :  { %23601 = vst [vmem:[#allocation6_spill] sm:$0xff] %v20741_v34  ;;  %v6598_v31 = vsub.f32 %v23606_v53, %v20539_v24  ;;  %v6762_v62 = vmul.f32 1.442695, %v6599_v25  ;;  %v20773_v24 = vadd.f32 %v20102_v15, %v20369_v7  ;;  %v23610_v25 = vld [vmem:[#allocation125_spill] sm:$0xff] }
 0x45b   :  { %6478 = vmax.xlane.f32.xlu0 %v6477_v63  ;;  %v6552_v63 = vsel %vm6179_vm3, %v20715_v60, -inf  ;;  %17432 = vpow2.f32 %v6752_v8  ;;  %v6603_v7 = vsub.f32 %v23610_v25, %v20571_v59 }
 0x45c   :  { %v20719_v22 = vpop.xlane.xlu0 %6424  ;;  %6475 = vmax.xlane.f32.xlu1 %v6474_v18  ;;  %v20733_v18 = vpop.eup %17424  ;;  %23607 = vst [vmem:[#allocation143_spill] sm:$0xff] %v20773_v24  ;;  %v6760_v8 = vmul.f32 1.442695, %v6598_v31  ;;  %17434 = vpow2.f32 %v6762_v62  ;;  %v23612_v31 = vld [vmem:[#allocation49_spill] sm:$0xff] }
 0x45d   :  { %23597 = vst [vmem:[#allocation177_spill] sm:$0xff] %v20719_v22  ;;  %v20723_v35 = vpop.xlane.xlu1 %6421  ;;  %v7014_v60 = vsel %vm6179_vm3, %v20733_v18, 0.0  ;;  %v6770_v59 = vmul.f32 1.442695, %v6603_v7  ;;  %v23616_v7 = vld [vmem:[#allocation148_spill] sm:$0xff]  ;;  %v23628_v22 = vld [vmem:[#allocation71_spill] sm:$0xff] }
 0x45e   :  { %23599 = vst [vmem:[#allocation40_spill] sm:$0xff] %v20723_v35  ;;  %17436 = vpow2.f32 %v6760_v8 }
 0x45f   :  { %6556 = vmax.xlane.f32.xlu0 %v6555_v52  ;;  %v20747_v52 = vadd.f32 %v20499_v20, %v20331_v48  ;;  %v6489_v48 = vsel %vm6179_vm3, %v20741_v34, -inf  ;;  %17438 = vpow2.f32 %v6770_v59 }
 0x460   :  { %v20735_v57 = vpop.xlane.xlu0 %6358  ;;  %6553 = vmax.xlane.f32.xlu1 %v6552_v63 }
 0x461   :  { %v20737_v49 = vpop.xlane.xlu1 %6355  ;;  %23602 = vst [vmem:[#allocation178_spill] sm:$0xff] %v20747_v52 }
 0x463   :  { %7018 = vadd.xlane.f32.xlu0 %v7017_v61  ;;  %v20761_v61 = vpop.eup %17426 }
 0x464   :  { %v20751_v63 = vpop.xlane.xlu0 %6436  ;;  %7015 = vadd.xlane.f32.xlu1 %v7014_v60  ;;  %v20765_v60 = vpop.eup %17428  ;;  %v7029_v53 = vsel %vm6179_vm3, %v20761_v61, 0.0 }
 0x465   :  { %23603 = vst [vmem:[#allocation179_spill] sm:$0xff] %v20751_v63  ;;  %v20755_v55 = vpop.xlane.xlu1 %6433  ;;  %v6486_v63 = vsel %vm6179_vm3, %v20747_v52, -inf  ;;  %v7026_v52 = vsel %vm6179_vm3, %v20765_v60, 0.0 }
 0x466   :  { %23605 = vst [vmem:[#allocation5_spill] sm:$0xff] %v20755_v55  ;;  %v6602_v55 = vsub.f32 %v23612_v31, %v20573_v27  ;;  %v20805_v27 = vadd.f32 %v20486_v3, %v20411_v2  ;;  %v6607_v2 = vsub.f32 %v23616_v7, %v20607_v58 }
 0x467   :  { %6490 = vmax.xlane.f32.xlu0 %v6489_v48  ;;  %v20779_v48 = vadd.f32 %v20113_v44, %v20378_v37  ;;  %v6501_v37 = vsel %vm6179_vm3, %v20773_v24, -inf }
 0x468   :  { %v20767_v11 = vpop.xlane.xlu0 %6370  ;;  %6487 = vmax.xlane.f32.xlu1 %v6486_v63  ;;  %23613 = vst [vmem:[#allocation49_spill] sm:$0xff] %v20805_v27  ;;  %v6768_v8 = vmul.f32 1.442695, %v6602_v55  ;;  %v23618_v55 = vld [vmem:[#allocation78_spill] sm:$0xff]  ;;  %v6778_v58 = vmul.f32 1.442695, %v6607_v2 }
 0x469   :  { %v20769_v21 = vpop.xlane.xlu1 %6367  ;;  %23608 = vst [vmem:[#allocation180_spill] sm:$0xff] %v20779_v48 }
 0x46a   :  { %17440 = vpow2.f32 %v6768_v8  ;;  %v20833_v8 = vadd.f32 %v20102_v15, %v20451_v42 }
 0x46b   :  { %7030 = vadd.xlane.f32.xlu0 %v7029_v53  ;;  %v20793_v53 = vpop.eup %17430 }
 0x46c   :  { %v20783_v63 = vpop.xlane.xlu0 %6448  ;;  %7027 = vadd.xlane.f32.xlu1 %v7026_v52  ;;  %v20797_v52 = vpop.eup %17432  ;;  %v7041_v31 = vsel %vm6179_vm3, %v20793_v53, 0.0  ;;  %23619 = vst [vmem:[#allocation78_spill] sm:$0xff] %v20833_v8  ;;  %v6525_v42 = vsel %vm6179_vm3, %v20833_v8, -inf  ;;  %v23625_v8 = vld [vmem:[#allocation53_spill] sm:$0xff] }
 0x46d   :  { %23609 = vst [vmem:[#allocation181_spill] sm:$0xff] %v20783_v63  ;;  %v20787_v34 = vpop.xlane.xlu1 %6445  ;;  %v6498_v63 = vsel %vm6179_vm3, %v20779_v48, -inf  ;;  %v7038_v48 = vsel %vm6179_vm3, %v20797_v52, 0.0 }
 0x46e   :  { %23611 = vst [vmem:[#allocation125_spill] sm:$0xff] %v20787_v34  ;;  %v6606_v34 = vsub.f32 %v23618_v55, %v20611_v56 }
 0x46f   :  { %6502 = vmax.xlane.f32.xlu0 %v6501_v37  ;;  %v20811_v37 = vadd.f32 %v20499_v20, %v20421_v47  ;;  %v6513_v47 = vsel %vm6179_vm3, %v20805_v27, -inf  ;;  %v17058_v27 = vunpack.i.h.bf16 %v23625_v8 }
 0x470   :  { %v20799_v62 = vpop.xlane.xlu0 %6382  ;;  %6499 = vmax.xlane.f32.xlu1 %v6498_v63  ;;  %v6776_v56 = vmul.f32 1.442695, %v6606_v34 }
 0x471   :  { %v20801_v25 = vpop.xlane.xlu1 %6379  ;;  %23614 = vst [vmem:[#allocation182_spill] sm:$0xff] %v20811_v37 }
 0x473   :  { %7042 = vadd.xlane.f32.xlu0 %v7041_v31  ;;  %v20825_v31 = vpop.eup %17434 }
 0x474   :  { %v20815_v63 = vpop.xlane.xlu0 %6460  ;;  %7039 = vadd.xlane.f32.xlu1 %v7038_v48  ;;  %v20829_v48 = vpop.eup %17436  ;;  %v7053_v55 = vsel %vm6179_vm3, %v20825_v31, 0.0 }
 0x475   :  { %23615 = vst [vmem:[#allocation183_spill] sm:$0xff] %v20815_v63  ;;  %v20819_v24 = vpop.xlane.xlu1 %6457  ;;  %v6510_v63 = vsel %vm6179_vm3, %v20811_v37, -inf  ;;  %v7050_v37 = vsel %vm6179_vm3, %v20829_v48, 0.0  ;;  %v20849_v34 = vpop.eup %17438 }
 0x476   :  { %23617 = vst [vmem:[#allocation148_spill] sm:$0xff] %v20819_v24 }
 0x477   :  { %6514 = vmax.xlane.f32.xlu0 %v6513_v47  ;;  %v20839_v47 = vadd.f32 %v20113_v44, %v20457_v29  ;;  %v20853_v29 = vpop.eup %17440 }
 0x478   :  { %v6959_v59 = vpop.xlane.xlu0 %6958  ;;  %6511 = vmax.xlane.f32.xlu1 %v6510_v63 }
 0x479   :  { %v6956_v7 = vpop.xlane.xlu1 %6955  ;;  %23620 = vst [vmem:[#allocation184_spill] sm:$0xff] %v20839_v47  ;;  %17442 = vrcp.f32 %v6959_v59  ;;  %v6522_v44 = vsel %vm6179_vm3, %v20839_v47, -inf }
 0x47a   :  { %17444 = vrcp.f32 %v6956_v7  ;;  %v20867_v7 = vadd.f32 %v20499_v20, %v20505_v13  ;;  %v23627_v13 = vld [vmem:[#allocation25_spill] sm:$0xff] }
 0x47b   :  { %7054 = vadd.xlane.f32.xlu0 %v7053_v55  ;;  %17446 = vpow2.f32 %v6778_v58  ;;  %v7065_v58 = vsel %vm6179_vm3, %v20849_v34, 0.0 }
 0x47c   :  { %v20843_v63 = vpop.xlane.xlu0 %6394  ;;  %7051 = vadd.xlane.f32.xlu1 %v7050_v37  ;;  %17448 = vpow2.f32 %v6776_v56  ;;  %v20861_v37 = vadd.f32 %v20486_v3, %v20492_v46  ;;  %23624 = vst [vmem:[#allocation188_spill] sm:$0xff] %v20867_v7  ;;  %v7062_v56 = vsel %vm6179_vm3, %v20853_v29, 0.0  ;;  %v17057_v46 = vunpack.i.l.bf16 %v23625_v8 }
 0x47d   :  { %v20845_v15 = vpop.xlane.xlu1 %6391  ;;  %v6534_v24 = vsel %vm6179_vm3, %v20867_v7, -inf }
 0x47e   :  { %23623 = vst [vmem:[#allocation187_spill] sm:$0xff] %v20861_v37 }
 0x47f   :  { %6526 = vmax.xlane.f32.xlu0 %v6525_v42 }
 0x480   :  { %v20855_v2 = vpop.xlane.xlu0 %6472  ;;  %6523 = vmax.xlane.f32.xlu1 %v6522_v44 }
 0x481   :  { %23621 = vst [vmem:[#allocation185_spill] sm:$0xff] %v20855_v2  ;;  %v20857_v59 = vpop.xlane.xlu1 %6469 }
 0x482   :  { %23622 = vst [vmem:[#allocation186_spill] sm:$0xff] %v20857_v59  ;;  %v6537_v59 = vsel %vm6179_vm3, %v20861_v37, -inf }
 0x483   :  { %7066 = vadd.xlane.f32.xlu0 %v7065_v58  ;;  %v17443_v42 = vpop.eup %17442 }
 0x484   :  { %v6965_v55 = vpop.xlane.xlu0 %6964  ;;  %7063 = vadd.xlane.f32.xlu1 %v7062_v56  ;;  %v17445_v47 = vpop.eup %17444  ;;  %v7339_v8 = vmul.f32 %v17443_v42, %v23628_v22  ;;  %v17877_v22 = vld [vmem:[%s22895_s4 + $0x10] sm:$0xff]  ;;  %v23631_v42 = vld [vmem:[#allocation15_spill] sm:$0xff] }
 0x485   :  { %v6962_v44 = vpop.xlane.xlu1 %6961  ;;  %v20875_v2 = vpop.eup %17446  ;;  %17450 = vrcp.f32 %v6965_v55  ;;  %v7337_v58 = vmul.f32 %v17445_v47, %v23627_v13  ;;  %v16458_v55 = vpack.c.bf16 %v17058_v27, %v17057_v46  ;;  %v20912_v46 = vadd.f32 %v20486_v3, %v20579_v54  ;;  %v23638_v54 = vld [vmem:[#allocation70_spill] sm:$0xff] }
 0x486   :  { %23626 = vst [vmem:[#allocation53_spill] sm:$0xff] %v20875_v2  ;;  %v20880_v56 = vpop.eup %17448  ;;  %17452 = vrcp.f32 %v6962_v44  ;;  %v7077_v44 = vsel %vm6179_vm3, %v20875_v2, 0.0 }
 0x487   :  { %6538 = vmax.xlane.f32.xlu0 %v6537_v59  ;;  %15553 = vmatprep.mubr.msk.f32.mxu1 %vm6179_vm3, %v7337_v58  ;;  %v17876_v59 = vld [vmem:[%s22895_s4 + $0x18] sm:$0xff]  ;;  %23634 = vst [vmem:[#allocation190_spill] sm:$0xff] %v20912_v46  ;;  %v6561_v3 = vsel %vm6179_vm3, %v20912_v46, -inf  ;;  %s17883_s4 = smov 8  }
 0x488   :  { %v20882_v35 = vpop.xlane.xlu0 %7012  ;;  %6535 = vmax.xlane.f32.xlu1 %v6534_v24  ;;  %v20892_v47 = vadd.f32 %v17876_v59, %v20543_v17  ;;  %15554 = vmatmul.mubr.msk.f32.vlgmr.msra.gmra.mrb[88].mxu1 %vm6179_vm3, %v7339_v8  ;;  %v20901_v24 = vadd.f32 %v17877_v22, %v20549_v51  ;;  %v7074_v17 = vsel %vm6179_vm3, %v20880_v56, 0.0 }
 0x489   :  { %v20886_v37 = vpop.xlane.xlu1 %7009  ;;  %16453 = vmatpush3.bf16.msra.mxu1 %v23631_v42  ;;  %v23637_v42 = vld [vmem:[#allocation59_spill] sm:$0xff] }
 0x48a   :  { %23629 = vst [vmem:[#allocation25_spill] sm:$0xff] %v20892_v47  ;;  %23630 = vst [vmem:[#allocation71_spill] sm:$0xff] %v20901_v24  ;;  %16459 = vmatprep.subr.bf16.mxu1 %v16458_v55  ;;  %v6549_v51 = vsel %vm6179_vm3, %v20892_v47, -inf  ;;  %v6546_v58 = vsel %vm6179_vm3, %v20901_v24, -inf  ;;  %v17067_v7 = vunpack.i.l.bf16 %v23637_v42 }
 0x48b   :  { %7078 = vadd.xlane.f32.xlu0 %v7077_v44 }
 0x48c   :  { %v20906_v13 = vpop.xlane.xlu0 %6406  ;;  %7075 = vadd.xlane.f32.xlu1 %v7074_v17  ;;  %v17068_v17 = vunpack.i.h.bf16 %v23637_v42 }
 0x48d   :  { %23632 = vst [vmem:[#allocation15_spill] sm:$0xff] %v20906_v13  ;;  %v20908_v27 = vpop.xlane.xlu1 %6403  ;;  %v23656_v13 = vld [vmem:[#allocation45_spill] sm:$0xff] }
 0x48e   :  { %23633 = vst [vmem:[#allocation189_spill] sm:$0xff] %v20908_v27  ;;  %v6611_v10 = vsub.f32 %v23656_v13, %v20635_v12 }
 0x48f   :  { %6550 = vmax.xlane.f32.xlu0 %v6549_v51  ;;  %v17451_v59 = vpop.eup %17450 }
 0x490   :  { %v20918_v8 = vpop.xlane.xlu0 %6484  ;;  %6547 = vmax.xlane.f32.xlu1 %v6546_v58  ;;  %v17453_v22 = vpop.eup %17452  ;;  %v7343_v24 = vmul.f32 %v17451_v59, %v23639_v9 }
 0x491   :  { %23635 = vst [vmem:[#allocation191_spill] sm:$0xff] %v20918_v8  ;;  %v20920_v44 = vpop.xlane.xlu1 %6481  ;;  %v7341_v51 = vmul.f32 %v17453_v22, %v23638_v54  ;;  %v23643_v54 = vld [vmem:[#allocation101_spill] sm:$0xff] }
 0x492   :  { %23636 = vst [vmem:[#allocation192_spill] sm:$0xff] %v20920_v44  ;;  %v16462_v44 = vpack.c.bf16 %v17068_v17, %v17067_v7 }
 0x493   :  { %6562 = vmax.xlane.f32.xlu0 %v6561_v3  ;;  %15560 = vmatprep.mubr.msk.f32.mxu0 %vm6179_vm3, %v7341_v51  ;;  %v23646_v51 = vld [vmem:[#allocation37_spill] sm:$0xff] }
 0x494   :  { %v6971_v47 = vpop.xlane.xlu0 %6970  ;;  %15561 = vmatmul.mubr.msk.f32.vlgmr.msra.gmra.mrb[74].mxu0 %vm6179_vm3, %v7343_v24 }
 0x495   :  { %v6968_v58 = vpop.xlane.xlu1 %6967  ;;  %17454 = vrcp.f32 %v6971_v47  ;;  %16457 = vmatpush3.bf16.msra.mxu0 %v20367_v50  ;;  %v23645_v50 = vld [vmem:[#allocation50_spill] sm:$0xff] }
 0x496   :  { %16463 = vmatprep.subr.bf16.mxu0 %v16462_v44  ;;  %17456 = vrcp.f32 %v6968_v58  ;;  %v17073_v24 = vunpack.i.h.bf16 %v23645_v50  ;;  %v17072_v17 = vunpack.i.l.bf16 %v23645_v50 }
 0x498   :  { %v20931_v42 = vpop.xlane.xlu0 %7024 }
 0x499   :  { %v20933_v46 = vpop.xlane.xlu1 %7021 }
 0x49c   :  { %v20935_v3 = vpop.xlane.xlu0 %6418 }
 0x49d   :  { %23640 = vst [vmem:[#allocation59_spill] sm:$0xff] %v20935_v3  ;;  %v20937_v22 = vpop.xlane.xlu1 %6415 }
 0x49e   :  { %23641 = vst [vmem:[#allocation70_spill] sm:$0xff] %v20937_v22 }
 0x49f   :  { %v17455_v59 = vpop.eup %17454 }
 0x4a0   :  { %v20939_v9 = vpop.xlane.xlu0 %6496  ;;  %v17457_v47 = vpop.eup %17456  ;;  %v7347_v3 = vmul.f32 %v17455_v59, %v23647_v28 }
 0x4a1   :  { %23642 = vst [vmem:[#allocation108_spill] sm:$0xff] %v20939_v9  ;;  %17085 = vrot.lane.b32.xlu1 %v23643_v54, %s17881_s14  ;;  %v20943_v7 = vpop.xlane.xlu1 %6493  ;;  %v7345_v58 = vmul.f32 %v17457_v47, %v23646_v51  ;;  %v16466_v9 = vpack.c.bf16 %v17073_v24, %v17072_v17  ;;  %v23654_v17 = vld [vmem:[#allocation24_spill] sm:$0xff] }
 0x4a2   :  { %23644 = vst [vmem:[#allocation101_spill] sm:$0xff] %v20943_v7  ;;  %v23648_v7 = vld [vmem:[#allocation80_spill] sm:$0xff] }
 0x4a3   :  { %15567 = vmatprep.mubr.msk.f32.mxu1 %vm6179_vm3, %v7345_v58  ;;  %v6609_v58 = vsub.f32 %v23654_v17, %v20385_v38  ;;  %v23657_v17 = vld [vmem:[#allocation63_spill] sm:$0xff] }
 0x4a4   :  { %v6977_v8 = vpop.xlane.xlu0 %6976  ;;  %15568 = vmatmul.mubr.msk.f32.vlgmr.msra.gmra.mrb[90].mxu1 %vm6179_vm3, %v7347_v3 }
 0x4a5   :  { %v6974_v22 = vpop.xlane.xlu1 %6973  ;;  %17458 = vrcp.f32 %v6977_v8  ;;  %16461 = vmatpush3.bf16.msra.mxu1 %v16458_v55  ;;  %v23653_v55 = vld [vmem:[#allocation56_spill] sm:$0xff] }
 0x4a6   :  { %16467 = vmatprep.subr.bf16.mxu1 %v16466_v9  ;;  %17460 = vrcp.f32 %v6974_v22  ;;  %v17078_v24 = vunpack.i.h.bf16 %v23653_v55  ;;  %v17077_v22 = vunpack.i.l.bf16 %v23653_v55 }
 0x4a8   :  { %v20951_v54 = vpop.xlane.xlu0 %7036  ;;  %v20977_v55 = vpack.c.bf16 %v17078_v24, %v17077_v22 }
 0x4a9   :  { %17090 = vrot.lane.b32.xlu0 %v23648_v7, %s17881_s14  ;;  %v20955_v50 = vpop.xlane.xlu1 %7033  ;;  %v23655_v7 = vld [vmem:[#allocation35_spill] sm:$0xff] }
 0x4aa   :  { %v6608_v2 = vsub.f32 %v23655_v7, %v20391_v33  ;;  %v6610_v33 = vsub.f32 %v23657_v17, %v20637_v5  ;;  %v20992_v5 = vadd.f32 %v20499_v20, %v20587_v4 }
 0x4ac   :  { %v20957_v47 = vpop.xlane.xlu0 %6430  ;;  %v6780_v38 = vmul.f32 1.442695, %v6608_v2  ;;  %v6784_v12 = vmul.f32 1.442695, %v6610_v33  ;;  %23660 = vst [vmem:[#allocation35_spill] sm:$0xff] %v20992_v5  ;;  %v6558_v20 = vsel %vm6179_vm3, %v20992_v5, -inf }
 0x4ad   :  { %23649 = vst [vmem:[#allocation50_spill] sm:$0xff] %v20957_v47  ;;  %v20959_v28 = vpop.xlane.xlu1 %6427 }
 0x4ae   :  { %23650 = vst [vmem:[#allocation37_spill] sm:$0xff] %v20959_v28 }
 0x4af   :  { %v17459_v51 = vpop.eup %17458 }
 0x4b0   :  { %v20961_v59 = vpop.xlane.xlu0 %6508  ;;  %v17461_v8 = vpop.eup %17460  ;;  %v7351_v28 = vmul.f32 %v17459_v51, %v20373_v43  ;;  %v23663_v51 = vld [vmem:[#allocation17_spill] sm:$0xff] }
 0x4b1   :  { %23651 = vst [vmem:[#allocation104_spill] sm:$0xff] %v20961_v59  ;;  %v20963_v3 = vpop.xlane.xlu1 %6505  ;;  %v7349_v47 = vmul.f32 %v17461_v8, %v20382_v0 }
 0x4b2   :  { %23652 = vst [vmem:[#allocation80_spill] sm:$0xff] %v20963_v3  ;;  %v6782_v3 = vmul.f32 1.442695, %v6609_v58 }
 0x4b3   :  { %15574 = vmatprep.mubr.msk.f32.mxu0 %vm6179_vm3, %v7349_v47  ;;  %v6786_v47 = vmul.f32 1.442695, %v6611_v10  ;;  %v17083_v10 = vunpack.i.h.bf16 %v23663_v51 }
 0x4b4   :  { %v6983_v27 = vpop.xlane.xlu0 %6982  ;;  %15575 = vmatmul.mubr.msk.f32.vlgmr.msra.gmra.mrb[76].mxu0 %vm6179_vm3, %v7351_v28 }
 0x4b5   :  { %v6980_v59 = vpop.xlane.xlu1 %6979  ;;  %17462 = vrcp.f32 %v6983_v27  ;;  %16465 = vmatpush3.bf16.msra.mxu0 %v16462_v44 }
 0x4b6   :  { %16471 = vmatprep.subr.bf16.mxu0 %v20977_v55  ;;  %17464 = vrcp.f32 %v6980_v59 }
 0x4b7   :  { %17466 = vpow2.f32 %v6782_v3  ;;  %v17082_v3 = vunpack.i.l.bf16 %v23663_v51 }
 0x4b8   :  { %v20982_v43 = vpop.xlane.xlu0 %7048  ;;  %17468 = vpow2.f32 %v6780_v38  ;;  %v23664_v38 = vld [vmem:[#allocation139_spill] sm:$0xff] }
 0x4b9   :  { %v20984_v0 = vpop.xlane.xlu1 %7045  ;;  %17470 = vpow2.f32 %v6786_v47  ;;  %v16474_v17 = vpack.c.bf16 %v17083_v10, %v17082_v3 }
 0x4ba   :  { %17472 = vpow2.f32 %v6784_v12 }
 0x4bb   :  { %17474 = vrcp.f32 %v23664_v38 }
 0x4bc   :  { %v20986_v13 = vpop.xlane.xlu0 %6442 }
 0x4bd   :  { %23658 = vst [vmem:[#allocation56_spill] sm:$0xff] %v20986_v13  ;;  %v20988_v28 = vpop.xlane.xlu1 %6439  ;;  %v23713_v13 = vld [vmem:[#allocation43_spill] sm:$0xff] }
 0x4be   :  { %23659 = vst [vmem:[#allocation24_spill] sm:$0xff] %v20988_v28 }
 0x4bf   :  { %v17463_v27 = vpop.eup %17462 }
 0x4c0   :  { %v20994_v2 = vpop.xlane.xlu0 %6520  ;;  %v17465_v59 = vpop.eup %17464  ;;  %v7355_v58 = vmul.f32 %v17463_v27, %v20455_v32 }
 0x4c1   :  { %23661 = vst [vmem:[#allocation45_spill] sm:$0xff] %v20994_v2  ;;  %v20996_v44 = vpop.xlane.xlu1 %6517  ;;  %v7353_v8 = vmul.f32 %v17465_v59, %v20461_v41  ;;  %v21001_v24 = vpop.eup %17466  ;;  %v23665_v59 = vld [vmem:[#allocation141_spill] sm:$0xff] }
 0x4c2   :  { %23662 = vst [vmem:[#allocation63_spill] sm:$0xff] %v20996_v44  ;;  %v21006_v4 = vpop.eup %17468  ;;  %v7083_v41 = vsel %vm6179_vm3, %v21001_v24, 0.0 }
 0x4c3   :  { %15581 = vmatprep.mubr.msk.f32.mxu1 %vm6179_vm3, %v7353_v8  ;;  %v21013_v32 = vpop.eup %17470  ;;  %v7080_v47 = vsel %vm6179_vm3, %v21006_v4, 0.0 }
 0x4c4   :  { %v6989_v22 = vpop.xlane.xlu0 %6988  ;;  %15582 = vmatmul.mubr.msk.f32.vlgmr.msra.gmra.mrb[92].mxu1 %vm6179_vm3, %v7355_v58  ;;  %v21019_v12 = vpop.eup %17472 }
 0x4c5   :  { %6559 = vmax.xlane.f32.xlu1 %v6558_v20  ;;  %v6986_v7 = vpop.xlane.xlu1 %6985  ;;  %17476 = vrcp.f32 %v6989_v22  ;;  %16469 = vmatpush3.bf16.msra.mxu1 %v16466_v9  ;;  %v7089_v9 = vsel %vm6179_vm3, %v21013_v32, 0.0  ;;  %v7086_v10 = vsel %vm6179_vm3, %v21019_v12, 0.0  ;;  %v17475_v8 = vpop.eup %17474 }
 0x4c6   :  { %16475 = vmatprep.subr.bf16.mxu1 %v16474_v17  ;;  %17478 = vrcp.f32 %v6986_v7 }
 0x4c7   :  { %17480 = vrcp.f32 %v23665_v59  ;;  %v23670_v59 = vld [vmem:[#allocation21_spill] sm:$0xff] }
 0x4c8   :  { %v21015_v33 = vpop.xlane.xlu0 %7060  ;;  %7084 = vadd.xlane.f32.xlu0 %v7083_v41  ;;  %17482 = vrcp.f32 %v20886_v37 }
 0x4c9   :  { %7081 = vadd.xlane.f32.xlu1 %v7080_v47  ;;  %v21021_v27 = vpop.xlane.xlu1 %7057 }
 0x4cc   :  { %v21027_v51 = vpop.xlane.xlu0 %6454  ;;  %7090 = vadd.xlane.f32.xlu0 %v7089_v9  ;;  %v7365_v9 = vmul.f32 %v17475_v8, %v23670_v59 }
 0x4cd   :  { %23666 = vst [vmem:[#allocation17_spill] sm:$0xff] %v21027_v51  ;;  %7087 = vadd.xlane.f32.xlu1 %v7086_v10  ;;  %v21031_v3 = vpop.xlane.xlu1 %6451 }
 0x4ce   :  { %23667 = vst [vmem:[#allocation139_spill] sm:$0xff] %v21031_v3 }
 0x4cf   :  { %v17477_v58 = vpop.eup %17476 }
 0x4d0   :  { %v21033_v22 = vpop.xlane.xlu0 %6532  ;;  %v17479_v7 = vpop.eup %17478  ;;  %v7359_v37 = vmul.f32 %v17477_v58, %v20547_v23  ;;  %v23672_v23 = vld [vmem:[#allocation82_spill] sm:$0xff] }
 0x4d1   :  { %23668 = vst [vmem:[#allocation141_spill] sm:$0xff] %v21033_v22  ;;  %v21035_v20 = vpop.xlane.xlu1 %6529  ;;  %v7357_v38 = vmul.f32 %v17479_v7, %v20553_v14  ;;  %v17481_v47 = vpop.eup %17480  ;;  %v23671_v14 = vld [vmem:[#allocation23_spill] sm:$0xff] }
 0x4d2   :  { %23669 = vst [vmem:[#allocation193_spill] sm:$0xff] %v21035_v20  ;;  %v17483_v5 = vpop.eup %17482  ;;  %v7367_v7 = vmul.f32 %v17481_v47, %v23671_v14 }
 0x4d3   :  { %15588 = vmatprep.mubr.msk.f32.mxu0 %vm6179_vm3, %v7357_v38  ;;  %v7373_v58 = vmul.f32 %v17483_v5, %v23672_v23  ;;  %v23678_v5 = vld [vmem:[#allocation85_spill] sm:$0xff] }
 0x4d4   :  { %v6995_v41 = vpop.xlane.xlu0 %6994  ;;  %15589 = vmatmul.mubr.msk.f32.vlgmr.msra.gmra.mrb[78].mxu0 %vm6179_vm3, %v7359_v37 }
 0x4d5   :  { %v6992_v10 = vpop.xlane.xlu1 %6991  ;;  %17484 = vrcp.f32 %v6995_v41  ;;  %16473 = vmatpush3.bf16.msra.mxu0 %v20977_v55  ;;  %15602 = vmatprep.mubr.msk.f32.mxu0 %vm6179_vm3, %v7365_v9  ;;  %v23675_v55 = vld [vmem:[#allocation13_spill] sm:$0xff] }
 0x4d6   :  { %17486 = vrcp.f32 %v6992_v10 }
 0x4d8   :  { %v21044_v20 = vpop.xlane.xlu0 %7072  ;;  %15603 = vmatmul.mubr.msk.f32.vlgmr.msra.gmra.mrb[80].mxu0 %vm6179_vm3, %v7367_v7 }
 0x4d9   :  { %v21048_v22 = vpop.xlane.xlu1 %7069  ;;  %15616 = vmatprep.mubr.msk.f32.mxu0 %vm6179_vm3, %v7373_v58 }
 0x4dc   :  { %v21052_v8 = vpop.xlane.xlu0 %6466 }
 0x4dd   :  { %23673 = vst [vmem:[#allocation21_spill] sm:$0xff] %v21052_v8  ;;  %v21054_v38 = vpop.xlane.xlu1 %6463  ;;  %v23711_v8 = vld [vmem:[#allocation2_spill] sm:$0xff] }
 0x4de   :  { %23674 = vst [vmem:[#allocation23_spill] sm:$0xff] %v21054_v38  ;;  %17095 = vrot.lane.b32.xlu1 %v23675_v55, %s17881_s14 }
 0x4df   :  { %v17485_v37 = vpop.eup %17484 }
 0x4e0   :  { %v21058_v41 = vpop.xlane.xlu0 %6544  ;;  %v17487_v47 = vpop.eup %17486  ;;  %v7363_v14 = vmul.f32 %v17485_v37, %v20617_v26  ;;  %v23685_v26 = vld [vmem:[#allocation151_spill] sm:$0xff] }
 0x4e1   :  { %23676 = vst [vmem:[#allocation82_spill] sm:$0xff] %v21058_v41  ;;  %v21060_v59 = vpop.xlane.xlu1 %6541  ;;  %v7361_v9 = vmul.f32 %v17487_v47, %v20621_v36  ;;  %v23683_v36 = vld [vmem:[#allocation138_spill] sm:$0xff]  ;;  %v23684_v47 = vld [vmem:[#allocation123_spill] sm:$0xff] }
 0x4e2   :  { %23677 = vst [vmem:[#allocation13_spill] sm:$0xff] %v21060_v59  ;;  %17100 = vrot.lane.b32.xlu0 %v23678_v5, %s17881_s14  ;;  %v6613_v59 = vsub.f32 %v23684_v47, %v23683_v36  ;;  %v23686_v37 = vld [vmem:[#allocation3_spill] sm:$0xff] }
 0x4e3   :  { %15595 = vmatprep.mubr.msk.f32.mxu1 %vm6179_vm3, %v7361_v9 }
 0x4e4   :  { %v7007_v10 = vpop.xlane.xlu0 %7006  ;;  %15596 = vmatmul.mubr.msk.f32.vlgmr.msra.gmra.mrb[94].mxu1 %vm6179_vm3, %v7363_v14  ;;  %v23690_v14 = vld [vmem:[#allocation48_spill] sm:$0xff] }
 0x4e5   :  { %v21066_v7 = vpop.f32.mrb[72].mxu0  ;;  %v7004_v23 = vpop.xlane.xlu1 %7003  ;;  %17488 = vrcp.f32 %v7007_v10  ;;  %16477 = vmatpush3.bf16.msra.mxu1 %v16474_v17  ;;  %v23689_v10 = vld [vmem:[#allocation60_spill] sm:$0xff] }
 0x4e6   :  { %23679 = vst [vmem:[#allocation85_spill] sm:$0xff] %v21066_v7  ;;  %v21069_v58 = vpop.f32.mrb[73].mxu0  ;;  %17490 = vrcp.f32 %v7004_v23  ;;  %v6612_v7 = vsub.f32 %v23686_v37, %v23685_v26  ;;  %v6615_v17 = vsub.f32 %v23689_v10, %v20671_v1  ;;  %v6614_v23 = vsub.f32 %v23690_v14, %v20673_v16 }
 0x4e7   :  { %23680 = vst [vmem:[#allocation194_spill] sm:$0xff] %v21069_v58  ;;  %v6790_v58 = vmul.f32 1.442695, %v6613_v59 }
 0x4e8   :  { %v21072_v55 = vpop.xlane.xlu0 %6478  ;;  %v6788_v44 = vmul.f32 1.442695, %v6612_v7  ;;  %v6794_v36 = vmul.f32 1.442695, %v6615_v17  ;;  %v6792_v26 = vmul.f32 1.442695, %v6614_v23 }
 0x4e9   :  { %23681 = vst [vmem:[#allocation195_spill] sm:$0xff] %v21072_v55  ;;  %v21074_v5 = vpop.xlane.xlu1 %6475  ;;  %17492 = vpow2.f32 %v6790_v58 }
 0x4ea   :  { %23682 = vst [vmem:[#allocation196_spill] sm:$0xff] %v21074_v5  ;;  %17494 = vpow2.f32 %v6788_v44 }
 0x4ec   :  { %v21080_v41 = vpop.xlane.xlu0 %6556 }
 0x4ed   :  { %23687 = vst [vmem:[#allocation138_spill] sm:$0xff] %v21080_v41  ;;  %v21082_v9 = vpop.xlane.xlu1 %6553 }
 0x4ee   :  { %23688 = vst [vmem:[#allocation123_spill] sm:$0xff] %v21082_v9 }
 0x4ef   :  { %v17489_v5 = vpop.eup %17488 }
 0x4f0   :  { %v7019_v2 = vpop.xlane.xlu0 %7018  ;;  %v17491_v38 = vpop.eup %17490  ;;  %v7371_v59 = vmul.f32 %v17489_v5, %v20677_v6 }
 0x4f1   :  { %v7016_v55 = vpop.xlane.xlu1 %7015  ;;  %v7369_v47 = vmul.f32 %v17491_v38, %v20681_v30 }
 0x4f2   :  { %17496 = vrcp.f32 %v7016_v55 }
 0x4f3   :  { %15609 = vmatprep.mubr.msk.f32.mxu1 %vm6179_vm3, %v7369_v47  ;;  %17498 = vpow2.f32 %v6794_v36  ;;  %v21098_v7 = vpop.eup %17492 }
 0x4f4   :  { %v21089_v37 = vpop.xlane.xlu0 %6490  ;;  %15610 = vmatmul.mubr.msk.f32.vlgmr.msra.gmra.mrb[96].mxu1 %vm6179_vm3, %v7371_v59  ;;  %17500 = vpow2.f32 %v6792_v26  ;;  %23693 = vst [vmem:[#allocation60_spill] sm:$0xff] %v21098_v7  ;;  %v21102_v38 = vpop.eup %17494  ;;  %v7095_v10 = vsel %vm6179_vm3, %v21098_v7, 0.0 }
 0x4f5   :  { %23691 = vst [vmem:[#allocation151_spill] sm:$0xff] %v21089_v37  ;;  %v21093_v1 = vpop.xlane.xlu1 %6487  ;;  %23695 = vst [vmem:[#allocation197_spill] sm:$0xff] %v21102_v38  ;;  %v7092_v23 = vsel %vm6179_vm3, %v21102_v38, 0.0  ;;  %17502 = vrcp.f32 %v20882_v35  ;;  %v23710_v37 = vld [vmem:[#allocation145_spill] sm:$0xff]  ;;  %v23715_v38 = vld [vmem:[#allocation87_spill] sm:$0xff] }
 0x4f6   :  { %23692 = vst [vmem:[#allocation3_spill] sm:$0xff] %v21093_v1  ;;  %17504 = vrcp.f32 %v20933_v46  ;;  %v6617_v3 = vsub.f32 %v23711_v8, %v23710_v37 }
 0x4f7   :  { %17506 = vrcp.f32 %v7019_v2 }
 0x4f8   :  { %v21096_v16 = vpop.xlane.xlu0 %7030 }
 0x4f9   :  { %v7028_v44 = vpop.xlane.xlu1 %7027 }
 0x4fa   :  { %17508 = vrcp.f32 %v7028_v44 }
 0x4fc   :  { %v21100_v30 = vpop.xlane.xlu0 %6502  ;;  %v17497_v6 = vpop.eup %17496 }
 0x4fd   :  { %23694 = vst [vmem:[#allocation48_spill] sm:$0xff] %v21100_v30  ;;  %v21104_v58 = vpop.xlane.xlu1 %6499  ;;  %v7377_v55 = vmul.f32 %v17497_v6, %v20733_v18  ;;  %v21111_v17 = vpop.eup %17498 }
 0x4fe   :  { %23696 = vst [vmem:[#allocation198_spill] sm:$0xff] %v21104_v58  ;;  %23697 = vst [vmem:[#allocation199_spill] sm:$0xff] %v21111_v17  ;;  %v21118_v36 = vpop.eup %17500  ;;  %v7101_v18 = vsel %vm6179_vm3, %v21111_v17, 0.0 }
 0x4ff   :  { %15623 = vmatprep.mubr.msk.f32.mxu1 %vm6179_vm3, %v7377_v55  ;;  %23698 = vst [vmem:[#allocation200_spill] sm:$0xff] %v21118_v36  ;;  %v7098_v59 = vsel %vm6179_vm3, %v21118_v36, 0.0  ;;  %v17503_v28 = vpop.eup %17502 }
 0x500   :  { %v21107_v5 = vpop.xlane.xlu0 %7042  ;;  %v17505_v17 = vpop.eup %17504  ;;  %v7375_v36 = vmul.f32 %v17503_v28, %v23715_v38 }
 0x501   :  { %7096 = vadd.xlane.f32.xlu0 %v7095_v10  ;;  %v21114_v14 = vpop.xlane.xlu1 %7039  ;;  %v17507_v44 = vpop.eup %17506 }
 0x502   :  { %7093 = vadd.xlane.f32.xlu1 %v7092_v23 }
 0x504   :  { %v21120_v47 = vpop.xlane.xlu0 %6514  ;;  %v17509_v8 = vpop.eup %17508 }
 0x505   :  { %23699 = vst [vmem:[#allocation201_spill] sm:$0xff] %v21120_v47  ;;  %7102 = vadd.xlane.f32.xlu0 %v7101_v18  ;;  %v21124_v26 = vpop.xlane.xlu1 %6511 }
 0x506   :  { %23700 = vst [vmem:[#allocation202_spill] sm:$0xff] %v21124_v26  ;;  %7099 = vadd.xlane.f32.xlu1 %v7098_v59  ;;  %v23705_v26 = vld [vmem:[#allocation107_spill] sm:$0xff] }
 0x508   :  { %v21128_v6 = vpop.xlane.xlu0 %7054 }
 0x509   :  { %v21130_v55 = vpop.xlane.xlu1 %7051 }
 0x50c   :  { %v21132_v10 = vpop.xlane.xlu0 %6526 }
 0x50d   :  { %23701 = vst [vmem:[#allocation203_spill] sm:$0xff] %v21132_v10  ;;  %v21134_v9 = vpop.xlane.xlu1 %6523  ;;  %v23706_v10 = vld [vmem:[#allocation88_spill] sm:$0xff] }
 0x50e   :  { %23702 = vst [vmem:[#allocation204_spill] sm:$0xff] %v21134_v9 }
 0x510   :  { %v21136_v23 = vpop.xlane.xlu0 %7066 }
 0x511   :  { %v21138_v41 = vpop.xlane.xlu1 %7063 }
 0x514   :  { %v21140_v47 = vpop.xlane.xlu0 %6538 }
 0x515   :  { %23703 = vst [vmem:[#allocation205_spill] sm:$0xff] %v21140_v47  ;;  %v21142_v18 = vpop.xlane.xlu1 %6535 }
 0x516   :  { %23704 = vst [vmem:[#allocation206_spill] sm:$0xff] %v21142_v18 }
 0x517   :  { %17105 = vrot.lane.b32.xlu1 %v23705_v26, %s17881_s14 }
 0x518   :  { %v21146_v59 = vpop.xlane.xlu0 %7078 }
 0x519   :  { %v21148_v58 = vpop.xlane.xlu1 %7075 }
 0x51b   :  { %17110 = vrot.lane.b32.xlu0 %v23706_v10, %s17881_s14  ;;  %v23712_v10 = vld [vmem:[#allocation152_spill] sm:$0xff] }
 0x51c   :  { %v21154_v9 = vpop.xlane.xlu0 %6550  ;;  %v6616_v46 = vsub.f32 %v23713_v13, %v23712_v10  ;;  %v23717_v13 = vld [vmem:[#allocation83_spill] sm:$0xff] }
 0x51d   :  { %23707 = vst [vmem:[#allocation107_spill] sm:$0xff] %v21154_v9  ;;  %v21156_v30 = vpop.xlane.xlu1 %6547  ;;  %v7381_v10 = vmul.f32 %v17505_v17, %v23717_v13 }
 0x51e   :  { %23708 = vst [vmem:[#allocation88_spill] sm:$0xff] %v21156_v30  ;;  %v23714_v30 = vld [vmem:[#allocation96_spill] sm:$0xff]  ;;  %v6796_v37 = vmul.f32 1.442695, %v6616_v46 }
 0x520   :  { %v21158_v18 = vpop.xlane.xlu0 %6562 }
 0x521   :  { %23709 = vst [vmem:[#allocation207_spill] sm:$0xff] %v21158_v18  ;;  %v17086_v26 = vpop.permute.xlu1 %17085  ;;  %v6798_v18 = vmul.f32 1.442695, %v6617_v3 }
 0x522   :  { %v17088_v47 = vunpack.i.h.bf16 %v17086_v26  ;;  %v17087_v1 = vunpack.i.l.bf16 %v17086_v26  ;;  %v6619_v26 = vsub.f32 %v23714_v30, %v20703_v19  ;;  %v7385_v19 = vmul.f32 %v17509_v8, %v20765_v60  ;;  %v23721_v8 = vld [vmem:[#allocation157_spill] sm:$0xff] }
 0x523   :  { %17510 = vpow2.f32 %v6798_v18 }
 0x524   :  { %v17091_v35 = vpop.permute.xlu0 %17090  ;;  %v16478_v51 = vpack.c.bf16 %v17088_v47, %v17087_v1  ;;  %v23716_v1 = vld [vmem:[#allocation46_spill] sm:$0xff]  ;;  %v6802_v3 = vmul.f32 1.442695, %v6619_v26  ;;  %17512 = vpow2.f32 %v6796_v37 }
 0x525   :  { %v17093_v7 = vunpack.i.h.bf16 %v17091_v35  ;;  %v17092_v9 = vunpack.i.l.bf16 %v17091_v35  ;;  %v6618_v47 = vsub.f32 %v23716_v1, %v20705_v40  ;;  %v23720_v35 = vld [vmem:[#allocation94_spill] sm:$0xff] }
 0x526   :  { %16479 = vmatprep.subr.bf16.mxu0 %v16478_v51  ;;  %17514 = vpow2.f32 %v6802_v3  ;;  %v23722_v37 = vld [vmem:[#allocation66_spill] sm:$0xff] }
 0x527   :  { %16481 = vmatpush3.bf16.msra.mxu0 %v16478_v51  ;;  %v16482_v2 = vpack.c.bf16 %v17093_v7, %v17092_v9  ;;  %v7379_v51 = vmul.f32 %v17507_v44, %v20729_v39  ;;  %v6800_v28 = vmul.f32 1.442695, %v6618_v47  ;;  %v6621_v1 = vsub.f32 %v23722_v37, %v23721_v8 }
 0x529   :  { %16483 = vmatprep.subr.bf16.mxu1 %v16482_v2  ;;  %17516 = vpow2.f32 %v6800_v28 }
 0x52a   :  { %15617 = vmatmul.mubr.msk.f32.vlgmr.msra.gmra.mrb[82].mxu0 %vm6179_vm3, %v7375_v36  ;;  %16485 = vmatpush3.bf16.msra.mxu1 %v16482_v2  ;;  %v23718_v36 = vld [vmem:[#allocation19_spill] sm:$0xff]  ;;  %17518 = vrcp.f32 %v20931_v42  ;;  %v23725_v42 = vld [vmem:[#allocation112_spill] sm:$0xff] }
 0x52b   :  { %15630 = vmatprep.mubr.msk.f32.mxu0 %vm6179_vm3, %v7381_v10  ;;  %17520 = vrcp.f32 %v21096_v16  ;;  %v23724_v10 = vld [vmem:[#allocation158_spill] sm:$0xff] }
 0x52c   :  { %17522 = vrcp.f32 %v21114_v14 }
 0x52d   :  { %15624 = vmatmul.mubr.msk.f32.vlgmr.msra.gmra.mrb[98].mxu1 %vm6179_vm3, %v7379_v51  ;;  %v21176_v40 = vpop.eup %17510  ;;  %17524 = vrcp.f32 %v20955_v50  ;;  %v6620_v51 = vsub.f32 %v23725_v42, %v23724_v10 }
 0x52e   :  { %15637 = vmatprep.mubr.msk.f32.mxu1 %vm6179_vm3, %v7385_v19  ;;  %v21178_v9 = vpop.eup %17512  ;;  %v7107_v7 = vsel %vm6179_vm3, %v21176_v40, 0.0 }
 0x52f   :  { %v7104_v60 = vsel %vm6179_vm3, %v21178_v9, 0.0 }
 0x530   :  { %v21182_v39 = vpop.eup %17514 }
 0x531   :  { %v7113_v38 = vsel %vm6179_vm3, %v21182_v39, 0.0 }
 0x533   :  { %v21186_v30 = vpop.eup %17516 }
 0x534   :  { %v7110_v17 = vsel %vm6179_vm3, %v21186_v30, 0.0 }
 0x53a   :  { %7108 = vadd.xlane.f32.xlu0 %v7107_v7  ;;  %v17519_v7 = vpop.eup %17518 }
 0x53b   :  { %7105 = vadd.xlane.f32.xlu1 %v7104_v60 }
 0x53e   :  { %7114 = vadd.xlane.f32.xlu0 %v7113_v38  ;;  %v17521_v38 = vpop.eup %17520 }
 0x53f   :  { %7111 = vadd.xlane.f32.xlu1 %v7110_v17  ;;  %v6806_v17 = vmul.f32 1.442695, %v6621_v1  ;;  %v17523_v37 = vpop.eup %17522 }
 0x540   :  { %v17525_v42 = vpop.eup %17524 }
 0x541   :  { %17526 = vpow2.f32 %v6806_v17 }
 0x550   :  { %17115 = vrot.lane.b32.xlu1 %v23718_v36, %s17881_s14  ;;  %v23727_v36 = vld [vmem:[#allocation72_spill] sm:$0xff] }
 0x552   :  { %v21194_v18 = vpop.xlane.xlu1 %6559 }
 0x553   :  { %23719 = vst [vmem:[#allocation145_spill] sm:$0xff] %v21194_v18  ;;  %v23728_v18 = vld [vmem:[#allocation51_spill] sm:$0xff] }
 0x554   :  { %17120 = vrot.lane.b32.xlu0 %v23720_v35, %s17881_s14  ;;  %v6623_v35 = vsub.f32 %v23727_v36, %v20735_v57  ;;  %v6622_v10 = vsub.f32 %v23728_v18, %v20737_v49  ;;  %v21234_v18 = vpop.eup %17526 }
 0x555   :  { %v21198_v46 = vpop.xlane.xlu0 %7084 }
 0x556   :  { %v21201_v2 = vpop.xlane.xlu1 %7081  ;;  %v6808_v57 = vmul.f32 1.442695, %v6622_v10 }
 0x559   :  { %v21206_v44 = vpop.xlane.xlu0 %7090 }
 0x55a   :  { %v21208_v26 = vpop.xlane.xlu1 %7087 }
 0x55b   :  { %v21212_v47 = vpop.f32.mrb[88].mxu1 }
 0x55c   :  { %23723 = vst [vmem:[#allocation2_spill] sm:$0xff] %v21212_v47  ;;  %v21216_v3 = vpop.f32.mrb[89].mxu1  ;;  %v6804_v47 = vmul.f32 1.442695, %v6620_v51  ;;  %v23730_v51 = vld [vmem:[#allocation98_spill] sm:$0xff] }
 0x55d   :  { %v17101_v13 = vpop.permute.xlu0 %17100  ;;  %23726 = vst [vmem:[#allocation152_spill] sm:$0xff] %v21216_v3 }
 0x55e   :  { %v17103_v16 = vunpack.i.h.bf16 %v17101_v13  ;;  %v17102_v19 = vunpack.i.l.bf16 %v17101_v13  ;;  %v17096_v14 = vpop.permute.xlu1 %17095  ;;  %v7387_v13 = vmul.f32 %v17521_v38, %v20761_v61  ;;  %17528 = vpow2.f32 %v6804_v47 }
 0x55f   :  { %v17098_v28 = vunpack.i.h.bf16 %v17096_v14  ;;  %v17097_v50 = vunpack.i.l.bf16 %v17096_v14  ;;  %v7393_v14 = vmul.f32 %v17523_v37, %v20797_v52  ;;  %v7119_v47 = vsel %vm6179_vm3, %v21234_v18, 0.0  ;;  %v23736_v37 = vld [vmem:[#allocation113_spill] sm:$0xff] }
 0x560   :  { %v16490_v60 = vpack.c.bf16 %v17103_v16, %v17102_v19  ;;  %v6810_v16 = vmul.f32 1.442695, %v6623_v35  ;;  %v23729_v19 = vld [vmem:[#allocation44_spill] sm:$0xff] }
 0x561   :  { %v16486_v8 = vpack.c.bf16 %v17098_v28, %v17097_v50  ;;  %v7383_v1 = vmul.f32 %v17519_v7, %v23729_v19  ;;  %v7389_v28 = vmul.f32 %v17525_v42, %v23730_v51  ;;  %v23738_v42 = vld [vmem:[#allocation97_spill] sm:$0xff] }
 0x562   :  { %16491 = vmatprep.subr.bf16.mxu1 %v16490_v60  ;;  %17530 = vpow2.f32 %v6810_v16 }
 0x563   :  { %16487 = vmatprep.subr.bf16.mxu0 %v16486_v8  ;;  %16493 = vmatpush3.bf16.msra.mxu1 %v16490_v60  ;;  %17532 = vpow2.f32 %v6808_v57 }
 0x564   :  { %16489 = vmatpush3.bf16.msra.mxu0 %v16486_v8  ;;  %17534 = vrcp.f32 %v20951_v54 }
 0x565   :  { %17536 = vrcp.f32 %v21107_v5 }
 0x566   :  { %15638 = vmatmul.mubr.msk.f32.vlgmr.msra.gmra.mrb[100].mxu1 %vm6179_vm3, %v7387_v13  ;;  %17538 = vrcp.f32 %v21130_v55 }
 0x567   :  { %15631 = vmatmul.mubr.msk.f32.vlgmr.msra.gmra.mrb[84].mxu0 %vm6179_vm3, %v7383_v1  ;;  %15651 = vmatprep.mubr.msk.f32.mxu1 %vm6179_vm3, %v7393_v14  ;;  %v21230_v49 = vpop.f32.mrb[74].mxu0  ;;  %17540 = vrcp.f32 %v20984_v0  ;;  %v23739_v14 = vld [vmem:[#allocation52_spill] sm:$0xff] }
 0x568   :  { %15644 = vmatprep.mubr.msk.f32.mxu0 %vm6179_vm3, %v7389_v28  ;;  %23731 = vst [vmem:[#allocation43_spill] sm:$0xff] %v21230_v49  ;;  %v21232_v61 = vpop.f32.mrb[75].mxu0  ;;  %v21236_v52 = vpop.eup %17528  ;;  %v6625_v57 = vsub.f32 %v23739_v14, %v20555_v45  ;;  %v23740_v28 = vld [vmem:[#allocation161_spill] sm:$0xff] }
 0x569   :  { %23732 = vst [vmem:[#allocation96_spill] sm:$0xff] %v21232_v61  ;;  %v7116_v7 = vsel %vm6179_vm3, %v21236_v52, 0.0 }
 0x56c   :  { %v21240_v50 = vpop.eup %17530 }
 0x56d   :  { %v21244_v60 = vpop.eup %17532  ;;  %v7125_v38 = vsel %vm6179_vm3, %v21240_v50, 0.0 }
 0x56e   :  { %v7122_v17 = vsel %vm6179_vm3, %v21244_v60, 0.0 }
 0x573   :  { %7120 = vadd.xlane.f32.xlu0 %v7119_v47  ;;  %v23741_v47 = vld [vmem:[#allocation137_spill] sm:$0xff] }
 0x574   :  { %7117 = vadd.xlane.f32.xlu1 %v7116_v7  ;;  %v6624_v7 = vsub.f32 %v23741_v47, %v23740_v28  ;;  %v23745_v28 = vld [vmem:[#allocation120_spill] sm:$0xff] }
 0x576   :  { %v6812_v61 = vmul.f32 1.442695, %v6624_v7  ;;  %v23747_v7 = vld [vmem:[#allocation55_spill] sm:$0xff] }
 0x577   :  { %7126 = vadd.xlane.f32.xlu0 %v7125_v38  ;;  %v21250_v36 = vpop.f32.mrb[90].mxu1 }
 0x578   :  { %7123 = vadd.xlane.f32.xlu1 %v7122_v17  ;;  %23733 = vst [vmem:[#allocation87_spill] sm:$0xff] %v21250_v36  ;;  %v21252_v35 = vpop.f32.mrb[91].mxu1  ;;  %v23743_v36 = vld [vmem:[#allocation18_spill] sm:$0xff] }
 0x579   :  { %23734 = vst [vmem:[#allocation46_spill] sm:$0xff] %v21252_v35  ;;  %v6627_v49 = vsub.f32 %v23743_v36, %v20767_v11 }
 0x587   :  { %v21254_v8 = vpop.f32.mrb[76].mxu0 }
 0x588   :  { %23735 = vst [vmem:[#allocation83_spill] sm:$0xff] %v21254_v8  ;;  %v21258_v10 = vpop.f32.mrb[77].mxu0 }
 0x589   :  { %17125 = vrot.lane.b32.xlu1 %v23736_v37, %s17881_s14  ;;  %23737 = vst [vmem:[#allocation19_spill] sm:$0xff] %v21258_v10  ;;  %v6814_v10 = vmul.f32 1.442695, %v6625_v57  ;;  %v6818_v57 = vmul.f32 1.442695, %v6627_v49 }
 0x58b   :  { %17542 = vpow2.f32 %v6814_v10 }
 0x58c   :  { %17544 = vpow2.f32 %v6812_v61 }
 0x58d   :  { %17130 = vrot.lane.b32.xlu0 %v23738_v42, %s17881_s14  ;;  %v17535_v42 = vpop.eup %17534  ;;  %17546 = vpow2.f32 %v6818_v57 }
 0x58e   :  { %v21262_v13 = vpop.xlane.xlu0 %7096  ;;  %v17537_v8 = vpop.eup %17536 }
 0x58f   :  { %v21265_v16 = vpop.xlane.xlu1 %7093  ;;  %v17539_v14 = vpop.eup %17538 }
 0x590   :  { %v17541_v47 = vpop.eup %17540  ;;  %v7401_v11 = vmul.f32 %v17539_v14, %v20829_v48 }
 0x592   :  { %v21270_v19 = vpop.xlane.xlu0 %7102 }
 0x593   :  { %v21272_v1 = vpop.xlane.xlu1 %7099 }
 0x596   :  { %v17111_v51 = vpop.permute.xlu0 %17110 }
 0x597   :  { %v17113_v54 = vunpack.i.h.bf16 %v17111_v51  ;;  %v17112_v38 = vunpack.i.l.bf16 %v17111_v51  ;;  %v17106_v17 = vpop.permute.xlu1 %17105  ;;  %v21278_v55 = vpop.f32.mrb[92].mxu1  ;;  %v6626_v51 = vsub.f32 %v23745_v28, %v20769_v21 }
 0x598   :  { %v17108_v37 = vunpack.i.h.bf16 %v17106_v17  ;;  %v17107_v5 = vunpack.i.l.bf16 %v17106_v17  ;;  %23742 = vst [vmem:[#allocation94_spill] sm:$0xff] %v21278_v55  ;;  %v21282_v35 = vpop.f32.mrb[93].mxu1  ;;  %v21294_v21 = vpop.eup %17542 }
 0x599   :  { %v16498_v0 = vpack.c.bf16 %v17113_v54, %v17112_v38  ;;  %23744 = vst [vmem:[#allocation157_spill] sm:$0xff] %v21282_v35  ;;  %v7395_v54 = vmul.f32 %v17537_v8, %v20793_v53  ;;  %v23746_v38 = vld [vmem:[#allocation126_spill] sm:$0xff]  ;;  %v6816_v36 = vmul.f32 1.442695, %v6626_v51  ;;  %v21296_v53 = vpop.eup %17544  ;;  %v7131_v61 = vsel %vm6179_vm3, %v21294_v21, 0.0 }
 0x59a   :  { %v16494_v45 = vpack.c.bf16 %v17108_v37, %v17107_v5  ;;  %v7391_v17 = vmul.f32 %v17535_v42, %v23746_v38  ;;  %v7397_v37 = vmul.f32 %v17541_v47, %v23747_v7  ;;  %v21304_v8 = vpop.eup %17546  ;;  %v7128_v10 = vsel %vm6179_vm3, %v21296_v53, 0.0  ;;  %v23754_v47 = vld [vmem:[#allocation27_spill] sm:$0xff] }
 0x59b   :  { %16499 = vmatprep.subr.bf16.mxu1 %v16498_v0  ;;  %17548 = vpow2.f32 %v6816_v36 }
 0x59c   :  { %16495 = vmatprep.subr.bf16.mxu0 %v16494_v45  ;;  %16501 = vmatpush3.bf16.msra.mxu1 %v16498_v0  ;;  %17550 = vrcp.f32 %v20982_v43 }
 0x59d   :  { %16497 = vmatpush3.bf16.msra.mxu0 %v16494_v45  ;;  %v7137_v45 = vsel %vm6179_vm3, %v21304_v8, 0.0  ;;  %17552 = vrcp.f32 %v21128_v6 }
 0x59e   :  { %17554 = vrcp.f32 %v21138_v41 }
 0x59f   :  { %15652 = vmatmul.mubr.msk.f32.vlgmr.msra.gmra.mrb[102].mxu1 %vm6179_vm3, %v7395_v54  ;;  %v23755_v54 = vld [vmem:[#allocation106_spill] sm:$0xff]  ;;  %17556 = vrcp.f32 %v21021_v27 }
 0x5a0   :  { %15645 = vmatmul.mubr.msk.f32.vlgmr.msra.gmra.mrb[86].mxu0 %vm6179_vm3, %v7391_v17  ;;  %15665 = vmatprep.mubr.msk.f32.mxu1 %vm6179_vm3, %v7401_v11 }
 0x5a1   :  { %15658 = vmatprep.mubr.msk.f32.mxu0 %vm6179_vm3, %v7397_v37  ;;  %v23758_v37 = vld [vmem:[#allocation166_spill] sm:$0xff] }
 0x5a5   :  { %v21308_v5 = vpop.eup %17548 }
 0x5a6   :  { %v7134_v14 = vsel %vm6179_vm3, %v21308_v5, 0.0 }
 0x5a7   :  { %v21298_v49 = vpop.f32.mrb[78].mxu0 }
 0x5a8   :  { %23748 = vst [vmem:[#allocation66_spill] sm:$0xff] %v21298_v49  ;;  %v21300_v48 = vpop.f32.mrb[79].mxu0  ;;  %v23762_v49 = vld [vmem:[#allocation64_spill] sm:$0xff] }
 0x5a9   :  { %23749 = vst [vmem:[#allocation158_spill] sm:$0xff] %v21300_v48 }
 0x5ab   :  { %v21310_v42 = vpop.f32.mrb[80].mxu0 }
 0x5ac   :  { %7132 = vadd.xlane.f32.xlu0 %v7131_v61  ;;  %23750 = vst [vmem:[#allocation112_spill] sm:$0xff] %v21310_v42  ;;  %v21312_v0 = vpop.f32.mrb[81].mxu0  ;;  %v23759_v61 = vld [vmem:[#allocation41_spill] sm:$0xff] }
 0x5ad   :  { %7129 = vadd.xlane.f32.xlu1 %v7128_v10  ;;  %23751 = vst [vmem:[#allocation72_spill] sm:$0xff] %v21312_v0  ;;  %v6629_v10 = vsub.f32 %v23759_v61, %v23758_v37  ;;  %v23763_v37 = vld [vmem:[#allocation86_spill] sm:$0xff] }
 0x5ae   :  { %v6630_v61 = vsub.f32 %v23763_v37, %v20801_v25 }
 0x5af   :  { %v6822_v27 = vmul.f32 1.442695, %v6629_v10 }
 0x5b0   :  { %7138 = vadd.xlane.f32.xlu0 %v7137_v45  ;;  %v23760_v45 = vld [vmem:[#allocation167_spill] sm:$0xff] }
 0x5b1   :  { %7135 = vadd.xlane.f32.xlu1 %v7134_v14  ;;  %v23761_v14 = vld [vmem:[#allocation9_spill] sm:$0xff]  ;;  %17558 = vpow2.f32 %v6822_v27 }
 0x5b7   :  { %v21318_v28 = vpop.f32.mrb[94].mxu1 }
 0x5b8   :  { %23752 = vst [vmem:[#allocation51_spill] sm:$0xff] %v21318_v28  ;;  %v21320_v51 = vpop.f32.mrb[95].mxu1 }
 0x5b9   :  { %23753 = vst [vmem:[#allocation44_spill] sm:$0xff] %v21320_v51  ;;  %v6631_v51 = vsub.f32 %v23762_v49, %v20799_v62  ;;  %v6824_v62 = vmul.f32 1.442695, %v6630_v61  ;;  %v23765_v49 = vld [vmem:[#allocation163_spill] sm:$0xff] }
 0x5c2   :  { %17135 = vrot.lane.b32.xlu1 %v23754_v47, %s17881_s14  ;;  %v6628_v47 = vsub.f32 %v23761_v14, %v23760_v45  ;;  %v23764_v14 = vld [vmem:[#allocation127_spill] sm:$0xff] }
 0x5c4   :  { %v6820_v35 = vmul.f32 1.442695, %v6628_v47 }
 0x5c6   :  { %17140 = vrot.lane.b32.xlu0 %v23755_v54, %s17881_s14  ;;  %17560 = vpow2.f32 %v6820_v35 }
 0x5c7   :  { %v21326_v57 = vpop.xlane.xlu0 %7108  ;;  %v21332_v17 = vpop.f32.mrb[96].mxu1 }
 0x5c8   :  { %v21329_v38 = vpop.xlane.xlu1 %7105  ;;  %23756 = vst [vmem:[#allocation98_spill] sm:$0xff] %v21332_v17  ;;  %v21335_v11 = vpop.f32.mrb[97].mxu1 }
 0x5c9   :  { %23757 = vst [vmem:[#allocation113_spill] sm:$0xff] %v21335_v11  ;;  %v17551_v17 = vpop.eup %17550 }
 0x5ca   :  { %v17553_v11 = vpop.eup %17552  ;;  %v7399_v10 = vmul.f32 %v17551_v17, %v23764_v14  ;;  %v23766_v17 = vld [vmem:[#allocation119_spill] sm:$0xff] }
 0x5cb   :  { %v21338_v36 = vpop.xlane.xlu0 %7114  ;;  %v17555_v48 = vpop.eup %17554  ;;  %v23773_v14 = vld [vmem:[#allocation39_spill] sm:$0xff] }
 0x5cc   :  { %v21340_v7 = vpop.xlane.xlu1 %7111  ;;  %v17557_v45 = vpop.eup %17556 }
 0x5cd   :  { %v21358_v25 = vpop.eup %17558 }
 0x5cf   :  { %v17121_v43 = vpop.permute.xlu0 %17120 }
 0x5d0   :  { %v17123_v6 = vunpack.i.h.bf16 %v17121_v43  ;;  %v17122_v54 = vunpack.i.l.bf16 %v17121_v43  ;;  %v17116_v42 = vpop.permute.xlu1 %17115  ;;  %v6826_v43 = vmul.f32 1.442695, %v6631_v51 }
 0x5d1   :  { %v17118_v0 = vunpack.i.h.bf16 %v17116_v42  ;;  %v17117_v41 = vunpack.i.l.bf16 %v17116_v42  ;;  %v7403_v42 = vmul.f32 %v17553_v11, %v20825_v31  ;;  %v21360_v31 = vpop.eup %17560 }
 0x5d2   :  { %v16506_v28 = vpack.c.bf16 %v17123_v6, %v17122_v54  ;;  %v7409_v6 = vmul.f32 %v17555_v48, %v20853_v29  ;;  %17562 = vpow2.f32 %v6826_v43  ;;  %v7143_v29 = vsel %vm6179_vm3, %v21358_v25, 0.0  ;;  %v23769_v54 = vld [vmem:[#allocation111_spill] sm:$0xff]  ;;  %v23772_v43 = vld [vmem:[#allocation29_spill] sm:$0xff] }
 0x5d3   :  { %v16502_v55 = vpack.c.bf16 %v17118_v0, %v17117_v41  ;;  %v7405_v0 = vmul.f32 %v17557_v45, %v23765_v49  ;;  %17564 = vpow2.f32 %v6824_v62  ;;  %v23774_v62 = vld [vmem:[#allocation170_spill] sm:$0xff] }
 0x5d4   :  { %16507 = vmatprep.subr.bf16.mxu1 %v16506_v28  ;;  %17566 = vrcp.f32 %v21015_v33  ;;  %v23775_v33 = vld [vmem:[#allocation8_spill] sm:$0xff] }
 0x5d5   :  { %16503 = vmatprep.subr.bf16.mxu0 %v16502_v55  ;;  %16509 = vmatpush3.bf16.msra.mxu1 %v16506_v28  ;;  %17568 = vrcp.f32 %v21136_v23  ;;  %v6632_v49 = vsub.f32 %v23775_v33, %v23774_v62 }
 0x5d6   :  { %16505 = vmatpush3.bf16.msra.mxu0 %v16502_v55  ;;  %v7140_v55 = vsel %vm6179_vm3, %v21360_v31, 0.0  ;;  %17570 = vrcp.f32 %v21148_v58 }
 0x5d7   :  { %17572 = vrcp.f32 %v21048_v22 }
 0x5d8   :  { %15666 = vmatmul.mubr.msk.f32.vlgmr.msra.gmra.mrb[104].mxu1 %vm6179_vm3, %v7403_v42 }
 0x5d9   :  { %15659 = vmatmul.mubr.msk.f32.vlgmr.msra.gmra.mrb[88].mxu0 %vm6179_vm3, %v7399_v10  ;;  %15679 = vmatprep.mubr.msk.f32.mxu1 %vm6179_vm3, %v7409_v6  ;;  %v6633_v10 = vsub.f32 %v23773_v14, %v23772_v43  ;;  %v23777_v43 = vld [vmem:[#allocation65_spill] sm:$0xff] }
 0x5da   :  { %15672 = vmatprep.mubr.msk.f32.mxu0 %vm6179_vm3, %v7405_v0  ;;  %v6634_v14 = vsub.f32 %v23777_v43, %v20845_v15 }
 0x5db   :  { %v6830_v22 = vmul.f32 1.442695, %v6633_v10 }
 0x5dc   :  { %v21364_v35 = vpop.eup %17562 }
 0x5dd   :  { %v21368_v48 = vpop.eup %17564  ;;  %v7149_v28 = vsel %vm6179_vm3, %v21364_v35, 0.0  ;;  %17574 = vpow2.f32 %v6830_v22 }
 0x5de   :  { %v7146_v51 = vsel %vm6179_vm3, %v21368_v48, 0.0 }
 0x5e5   :  { %7144 = vadd.xlane.f32.xlu0 %v7143_v29 }
 0x5e6   :  { %7141 = vadd.xlane.f32.xlu1 %v7140_v55 }
 0x5e9   :  { %7150 = vadd.xlane.f32.xlu0 %v7149_v28 }
 0x5ea   :  { %7147 = vadd.xlane.f32.xlu1 %v7146_v51  ;;  %v17567_v51 = vpop.eup %17566 }
 0x5fb   :  { %17145 = vrot.lane.b32.xlu1 %v23766_v17, %s17881_s14  ;;  %v17569_v17 = vpop.eup %17568 }
 0x5fd   :  { %v21376_v11 = vpop.f32.mrb[82].mxu0 }
 0x5fe   :  { %23767 = vst [vmem:[#allocation97_spill] sm:$0xff] %v21376_v11  ;;  %v21378_v47 = vpop.f32.mrb[83].mxu0 }
 0x5ff   :  { %23768 = vst [vmem:[#allocation52_spill] sm:$0xff] %v21378_v47  ;;  %17150 = vrot.lane.b32.xlu0 %v23769_v54, %s17881_s14  ;;  %v23776_v54 = vld [vmem:[#allocation135_spill] sm:$0xff]  ;;  %v6828_v47 = vmul.f32 1.442695, %v6632_v49  ;;  %v23779_v49 = vld [vmem:[#allocation172_spill] sm:$0xff] }
 0x600   :  { %v21382_v41 = vpop.xlane.xlu0 %7120  ;;  %v21384_v27 = vpop.f32.mrb[98].mxu1 }
 0x601   :  { %23770 = vst [vmem:[#allocation161_spill] sm:$0xff] %v21384_v27  ;;  %v21387_v37 = vpop.f32.mrb[99].mxu1  ;;  %v21389_v61 = vpop.xlane.xlu1 %7117  ;;  %v6635_v27 = vsub.f32 %v23776_v54, %v20843_v63  ;;  %17576 = vpow2.f32 %v6828_v47  ;;  %v6832_v63 = vmul.f32 1.442695, %v6634_v14 }
 0x602   :  { %23771 = vst [vmem:[#allocation137_spill] sm:$0xff] %v21387_v37  ;;  %v17571_v37 = vpop.eup %17570 }
 0x603   :  { %v17573_v62 = vpop.eup %17572  ;;  %v6834_v33 = vmul.f32 1.442695, %v6635_v27 }
 0x604   :  { %v21394_v45 = vpop.xlane.xlu0 %7126  ;;  %v21414_v15 = vpop.eup %17574 }
 0x605   :  { %v21396_v42 = vpop.xlane.xlu1 %7123  ;;  %17578 = vpow2.f32 %v6834_v33  ;;  %23780 = vst [vmem:[#allocation18_spill] sm:$0xff] %v21414_v15  ;;  %v23787_v33 = vld [vmem:[#allocation173_spill] sm:$0xff] }
 0x606   :  { %17580 = vpow2.f32 %v6832_v63  ;;  %v23790_v63 = vld [vmem:[#allocation42_spill] sm:$0xff] }
 0x607   :  { %17582 = vrcp.f32 %v21044_v20  ;;  %v23788_v20 = vld [vmem:[#allocation150_spill] sm:$0xff] }
 0x608   :  { %v17131_v6 = vpop.permute.xlu0 %17130  ;;  %17584 = vrcp.f32 %v21146_v59 }
 0x609   :  { %v17133_v0 = vunpack.i.h.bf16 %v17131_v6  ;;  %v17132_v29 = vunpack.i.l.bf16 %v17131_v6  ;;  %v17126_v55 = vpop.permute.xlu1 %17125  ;;  %v7411_v6 = vmul.f32 %v17569_v17, %v20849_v34  ;;  %17586 = vrcp.f32 %v21208_v26 }
 0x60a   :  { %v17128_v28 = vunpack.i.h.bf16 %v17126_v55  ;;  %v17127_v23 = vunpack.i.l.bf16 %v17126_v55  ;;  %v7413_v55 = vmul.f32 %v17573_v62, %v23779_v49  ;;  %17588 = vrcp.f32 %v21201_v2 }
 0x60b   :  { %v16514_v58 = vpack.c.bf16 %v17133_v0, %v17132_v29  ;;  %v23778_v0 = vld [vmem:[#allocation162_spill] sm:$0xff]  ;;  %v7417_v29 = vmul.f32 %v17571_v37, %v20880_v56  ;;  %v21416_v34 = vpop.eup %17576  ;;  %v7155_v56 = vsel %vm6179_vm3, %v21414_v15, 0.0 }
 0x60c   :  { %v16510_v11 = vpack.c.bf16 %v17128_v28, %v17127_v23  ;;  %v7407_v10 = vmul.f32 %v17567_v51, %v23778_v0  ;;  %v7152_v47 = vsel %vm6179_vm3, %v21416_v34, 0.0  ;;  %v23781_v23 = vld [vmem:[#allocation33_spill] sm:$0xff]  ;;  %v23782_v51 = vld [vmem:[#allocation124_spill] sm:$0xff]  ;;  %v6637_v0 = vsub.f32 %v23788_v20, %v23787_v33 }
 0x60d   :  { %16515 = vmatprep.subr.bf16.mxu1 %v16514_v58  ;;  %v23793_v33 = vld [vmem:[#allocation189_spill] sm:$0xff] }
 0x60e   :  { %16511 = vmatprep.subr.bf16.mxu0 %v16510_v11  ;;  %16517 = vmatpush3.bf16.msra.mxu1 %v16514_v58  ;;  %v6838_v2 = vmul.f32 1.442695, %v6637_v0  ;;  %v23794_v20 = vld [vmem:[#allocation73_spill] sm:$0xff] }
 0x60f   :  { %16513 = vmatpush3.bf16.msra.mxu0 %v16510_v11  ;;  %v21420_v11 = vpop.eup %17578  ;;  %v6638_v15 = vsub.f32 %v23794_v20, %v23793_v33 }
 0x610   :  { %v21424_v27 = vpop.eup %17580  ;;  %v7161_v37 = vsel %vm6179_vm3, %v21420_v11, 0.0  ;;  %17590 = vpow2.f32 %v6838_v2 }
 0x611   :  { %15680 = vmatmul.mubr.msk.f32.vlgmr.msra.gmra.mrb[106].mxu1 %vm6179_vm3, %v7411_v6  ;;  %v7158_v28 = vsel %vm6179_vm3, %v21424_v27, 0.0 }
 0x612   :  { %15673 = vmatmul.mubr.msk.f32.vlgmr.msra.gmra.mrb[90].mxu0 %vm6179_vm3, %v7407_v10  ;;  %15693 = vmatprep.mubr.msk.f32.mxu1 %vm6179_vm3, %v7417_v29  ;;  %v23789_v29 = vld [vmem:[#allocation47_spill] sm:$0xff] }
 0x613   :  { %15686 = vmatprep.mubr.msk.f32.mxu0 %vm6179_vm3, %v7413_v55  ;;  %v6636_v49 = vsub.f32 %v23790_v63, %v23789_v29 }
 0x615   :  { %v6836_v3 = vmul.f32 1.442695, %v6636_v49 }
 0x617   :  { %17592 = vpow2.f32 %v6836_v3 }
 0x61e   :  { %7156 = vadd.xlane.f32.xlu0 %v7155_v56 }
 0x61f   :  { %7153 = vadd.xlane.f32.xlu1 %v7152_v47 }
 0x622   :  { %7162 = vadd.xlane.f32.xlu0 %v7161_v37  ;;  %v17583_v37 = vpop.eup %17582 }
 0x623   :  { %7159 = vadd.xlane.f32.xlu1 %v7158_v28 }
 0x634   :  { %17155 = vrot.lane.b32.xlu1 %v23781_v23, %s17881_s14  ;;  %v17585_v23 = vpop.eup %17584 }
 0x638   :  { %17160 = vrot.lane.b32.xlu0 %v23782_v51, %s17881_s14  ;;  %v23791_v51 = vld [vmem:[#allocation15_spill] sm:$0xff] }
 0x639   :  { %v21434_v58 = vpop.xlane.xlu0 %7132  ;;  %v21436_v17 = vpop.f32.mrb[100].mxu1 }
 0x63a   :  { %23783 = vst [vmem:[#allocation120_spill] sm:$0xff] %v21436_v17  ;;  %v21439_v22 = vpop.f32.mrb[101].mxu1  ;;  %v21441_v54 = vpop.xlane.xlu1 %7129 }
 0x63b   :  { %23784 = vst [vmem:[#allocation126_spill] sm:$0xff] %v21439_v22  ;;  %v21444_v43 = vpop.f32.mrb[84].mxu0  ;;  %v17587_v22 = vpop.eup %17586 }
 0x63c   :  { %23785 = vst [vmem:[#allocation55_spill] sm:$0xff] %v21444_v43  ;;  %v21447_v14 = vpop.f32.mrb[85].mxu0  ;;  %v23792_v43 = vld [vmem:[#allocation31_spill] sm:$0xff]  ;;  %v17589_v29 = vpop.eup %17588 }
 0x63d   :  { %23786 = vst [vmem:[#allocation27_spill] sm:$0xff] %v21447_v14  ;;  %v21450_v62 = vpop.xlane.xlu0 %7138  ;;  %v6639_v14 = vsub.f32 %v23792_v43, %v23791_v51  ;;  %v6840_v43 = vmul.f32 1.442695, %v6638_v15  ;;  %v7421_v49 = vmul.f32 %v17589_v29, %v21006_v4 }
 0x63e   :  { %v21452_v6 = vpop.xlane.xlu1 %7135 }
 0x641   :  { %v17141_v10 = vpop.permute.xlu0 %17140 }
 0x642   :  { %v17143_v59 = vunpack.i.h.bf16 %v17141_v10  ;;  %v17142_v55 = vunpack.i.l.bf16 %v17141_v10  ;;  %v17136_v56 = vpop.permute.xlu1 %17135  ;;  %v23795_v10 = vld [vmem:[#allocation53_spill] sm:$0xff] }
 0x643   :  { %v17138_v47 = vunpack.i.h.bf16 %v17136_v56  ;;  %v17137_v26 = vunpack.i.l.bf16 %v17136_v56  ;;  %v7419_v63 = vmul.f32 %v17585_v23, %v23795_v10  ;;  %v7425_v56 = vmul.f32 %v17587_v22, %v21019_v12 }
 0x644   :  { %v16522_v28 = vpack.c.bf16 %v17143_v59, %v17142_v55  ;;  %v6842_v59 = vmul.f32 1.442695, %v6639_v14  ;;  %v23796_v55 = vld [vmem:[#allocation171_spill] sm:$0xff] }
 0x645   :  { %v16518_v17 = vpack.c.bf16 %v17138_v47, %v17137_v26  ;;  %v7415_v0 = vmul.f32 %v17583_v37, %v23796_v55  ;;  %v23799_v26 = vld [vmem:[#allocation128_spill] sm:$0xff]  ;;  %v23800_v37 = vld [vmem:[#allocation131_spill] sm:$0xff] }
 0x646   :  { %16523 = vmatprep.subr.bf16.mxu1 %v16522_v28  ;;  %17594 = vpow2.f32 %v6842_v59 }
 0x647   :  { %16519 = vmatprep.subr.bf16.mxu0 %v16518_v17  ;;  %16525 = vmatpush3.bf16.msra.mxu1 %v16522_v28  ;;  %17596 = vpow2.f32 %v6840_v43 }
 0x648   :  { %16521 = vmatpush3.bf16.msra.mxu0 %v16518_v17  ;;  %v21470_v17 = vpop.eup %17590  ;;  %17598 = vrcp.f32 %v21198_v46  ;;  %v23806_v46 = vld [vmem:[#allocation12_spill] sm:$0xff] }
 0x649   :  { %23797 = vst [vmem:[#allocation106_spill] sm:$0xff] %v21470_v17  ;;  %v21472_v14 = vpop.eup %17592  ;;  %v7167_v12 = vsel %vm6179_vm3, %v21470_v17, 0.0  ;;  %17600 = vrcp.f32 %v21206_v44 }
 0x64a   :  { %15694 = vmatmul.mubr.msk.f32.vlgmr.msra.gmra.mrb[108].mxu1 %vm6179_vm3, %v7419_v63  ;;  %v7164_v4 = vsel %vm6179_vm3, %v21472_v14, 0.0  ;;  %17602 = vrcp.f32 %v21272_v1  ;;  %v23805_v63 = vld [vmem:[#allocation175_spill] sm:$0xff] }
 0x64b   :  { %15687 = vmatmul.mubr.msk.f32.vlgmr.msra.gmra.mrb[92].mxu0 %vm6179_vm3, %v7415_v0  ;;  %15707 = vmatprep.mubr.msk.f32.mxu1 %vm6179_vm3, %v7425_v56  ;;  %17604 = vrcp.f32 %v21265_v16  ;;  %v6641_v59 = vsub.f32 %v23806_v46, %v23805_v63  ;;  %v23807_v0 = vld [vmem:[#allocation57_spill] sm:$0xff]  ;;  %v23811_v63 = vld [vmem:[#allocation70_spill] sm:$0xff] }
 0x64c   :  { %15700 = vmatprep.mubr.msk.f32.mxu0 %vm6179_vm3, %v7421_v49  ;;  %v23808_v56 = vld [vmem:[#allocation153_spill] sm:$0xff]  ;;  %v23812_v46 = vld [vmem:[#allocation114_spill] sm:$0xff] }
 0x64d   :  { %v6640_v43 = vsub.f32 %v23808_v56, %v23807_v0  ;;  %v6846_v16 = vmul.f32 1.442695, %v6641_v59 }
 0x64f   :  { %v6844_v17 = vmul.f32 1.442695, %v6640_v43  ;;  %17606 = vpow2.f32 %v6846_v16  ;;  %v23814_v43 = vld [vmem:[#allocation197_spill] sm:$0xff] }
 0x650   :  { %v21476_v3 = vpop.eup %17594 }
 0x651   :  { %23798 = vst [vmem:[#allocation166_spill] sm:$0xff] %v21476_v3  ;;  %v21480_v15 = vpop.eup %17596  ;;  %v7173_v22 = vsel %vm6179_vm3, %v21476_v3, 0.0  ;;  %v6642_v3 = vsub.f32 %v23812_v46, %v23811_v63  ;;  %17608 = vpow2.f32 %v6844_v17 }
 0x652   :  { %v7170_v47 = vsel %vm6179_vm3, %v21480_v15, 0.0 }
 0x657   :  { %7168 = vadd.xlane.f32.xlu0 %v7167_v12 }
 0x658   :  { %7165 = vadd.xlane.f32.xlu1 %v7164_v4 }
 0x65b   :  { %7174 = vadd.xlane.f32.xlu0 %v7173_v22  ;;  %v17599_v22 = vpop.eup %17598 }
 0x65c   :  { %7171 = vadd.xlane.f32.xlu1 %v7170_v47  ;;  %v7423_v59 = vmul.f32 %v17599_v22, %v21001_v24  ;;  %v23818_v22 = vld [vmem:[#allocation136_spill] sm:$0xff] }
 0x66d   :  { %17165 = vrot.lane.b32.xlu1 %v23799_v26, %s17881_s14  ;;  %v17601_v26 = vpop.eup %17600 }
 0x671   :  { %17170 = vrot.lane.b32.xlu0 %v23800_v37, %s17881_s14  ;;  %v23809_v37 = vld [vmem:[#allocation59_spill] sm:$0xff] }
 0x672   :  { %v21490_v28 = vpop.xlane.xlu0 %7144  ;;  %v21492_v23 = vpop.f32.mrb[102].mxu1 }
 0x673   :  { %23801 = vst [vmem:[#allocation41_spill] sm:$0xff] %v21492_v23  ;;  %v21495_v2 = vpop.f32.mrb[103].mxu1  ;;  %v21497_v51 = vpop.xlane.xlu1 %7141  ;;  %v23810_v23 = vld [vmem:[#allocation32_spill] sm:$0xff] }
 0x674   :  { %23802 = vst [vmem:[#allocation167_spill] sm:$0xff] %v21495_v2  ;;  %v21500_v33 = vpop.f32.mrb[86].mxu0 }
 0x675   :  { %23803 = vst [vmem:[#allocation9_spill] sm:$0xff] %v21500_v33  ;;  %v21503_v20 = vpop.f32.mrb[87].mxu0  ;;  %v6643_v33 = vsub.f32 %v23810_v23, %v23809_v37  ;;  %v6848_v23 = vmul.f32 1.442695, %v6642_v3 }
 0x676   :  { %23804 = vst [vmem:[#allocation64_spill] sm:$0xff] %v21503_v20  ;;  %v21506_v29 = vpop.xlane.xlu0 %7150  ;;  %v17603_v20 = vpop.eup %17602 }
 0x677   :  { %v21508_v10 = vpop.xlane.xlu1 %7147  ;;  %v17605_v0 = vpop.eup %17604  ;;  %v6850_v56 = vmul.f32 1.442695, %v6643_v33 }
 0x679   :  { %17610 = vpow2.f32 %v6850_v56  ;;  %v23823_v56 = vld [vmem:[#allocation177_spill] sm:$0xff] }
 0x67a   :  { %v17151_v55 = vpop.permute.xlu0 %17150  ;;  %17612 = vpow2.f32 %v6848_v23  ;;  %v23826_v23 = vld [vmem:[#allocation54_spill] sm:$0xff] }
 0x67b   :  { %v17153_v44 = vunpack.i.h.bf16 %v17151_v55  ;;  %v17152_v49 = vunpack.i.l.bf16 %v17151_v55  ;;  %v17146_v12 = vpop.permute.xlu1 %17145  ;;  %v7427_v55 = vmul.f32 %v17601_v26, %v21013_v32  ;;  %v21526_v32 = vpop.eup %17606  ;;  %17614 = vrcp.f32 %v21262_v13  ;;  %v23824_v13 = vld [vmem:[#allocation11_spill] sm:$0xff] }
 0x67c   :  { %v17148_v4 = vunpack.i.h.bf16 %v17146_v12  ;;  %v17147_v1 = vunpack.i.l.bf16 %v17146_v12  ;;  %v7429_v12 = vmul.f32 %v17605_v0, %v23814_v43  ;;  %23815 = vst [vmem:[#allocation86_spill] sm:$0xff] %v21526_v32  ;;  %v7179_v24 = vsel %vm6179_vm3, %v21526_v32, 0.0 }
 0x67d   :  { %v16530_v47 = vpack.c.bf16 %v17153_v44, %v17152_v49  ;;  %v23813_v44 = vld [vmem:[#allocation200_spill] sm:$0xff]  ;;  %17616 = vrcp.f32 %v21270_v19 }
 0x67e   :  { %v16526_v2 = vpack.c.bf16 %v17148_v4, %v17147_v1  ;;  %v7433_v49 = vmul.f32 %v17603_v20, %v23813_v44  ;;  %v23817_v1 = vld [vmem:[#allocation36_spill] sm:$0xff]  ;;  %17618 = vrcp.f32 %v21340_v7 }
 0x67f   :  { %16531 = vmatprep.subr.bf16.mxu1 %v16530_v47  ;;  %17620 = vrcp.f32 %v21329_v38 }
 0x680   :  { %16527 = vmatprep.subr.bf16.mxu0 %v16526_v2  ;;  %16533 = vmatpush3.bf16.msra.mxu1 %v16530_v47 }
 0x681   :  { %16529 = vmatpush3.bf16.msra.mxu0 %v16526_v2  ;;  %v21528_v2 = vpop.eup %17608 }
 0x682   :  { %v7176_v3 = vsel %vm6179_vm3, %v21528_v2, 0.0 }
 0x683   :  { %15708 = vmatmul.mubr.msk.f32.vlgmr.msra.gmra.mrb[110].mxu1 %vm6179_vm3, %v7427_v55  ;;  %v21532_v17 = vpop.eup %17610 }
 0x684   :  { %15701 = vmatmul.mubr.msk.f32.vlgmr.msra.gmra.mrb[94].mxu0 %vm6179_vm3, %v7423_v59  ;;  %15721 = vmatprep.mubr.msk.f32.mxu1 %vm6179_vm3, %v7433_v49  ;;  %23816 = vst [vmem:[#allocation127_spill] sm:$0xff] %v21532_v17  ;;  %v21536_v33 = vpop.eup %17612  ;;  %v7185_v20 = vsel %vm6179_vm3, %v21532_v17, 0.0  ;;  %v6645_v59 = vsub.f32 %v23824_v13, %v23823_v56  ;;  %v23825_v49 = vld [vmem:[#allocation40_spill] sm:$0xff]  ;;  %v23829_v56 = vld [vmem:[#allocation37_spill] sm:$0xff] }
 0x685   :  { %15714 = vmatprep.mubr.msk.f32.mxu0 %vm6179_vm3, %v7429_v12  ;;  %v7182_v4 = vsel %vm6179_vm3, %v21536_v33, 0.0  ;;  %v6644_v43 = vsub.f32 %v23826_v23, %v23825_v49  ;;  %v23830_v13 = vld [vmem:[#allocation109_spill] sm:$0xff] }
 0x686   :  { %v6854_v38 = vmul.f32 1.442695, %v6645_v59  ;;  %v6646_v17 = vsub.f32 %v23830_v13, %v23829_v56 }
 0x687   :  { %v6852_v32 = vmul.f32 1.442695, %v6644_v43 }
 0x688   :  { %17622 = vpow2.f32 %v6854_v38 }
 0x689   :  { %17624 = vpow2.f32 %v6852_v32 }
 0x690   :  { %7180 = vadd.xlane.f32.xlu0 %v7179_v24 }
 0x691   :  { %7177 = vadd.xlane.f32.xlu1 %v7176_v3 }
 0x694   :  { %7186 = vadd.xlane.f32.xlu0 %v7185_v20  ;;  %v17615_v20 = vpop.eup %17614 }
 0x695   :  { %7183 = vadd.xlane.f32.xlu1 %v7182_v4 }
 0x6a6   :  { %17175 = vrot.lane.b32.xlu1 %v23817_v1, %s17881_s14  ;;  %v17617_v1 = vpop.eup %17616 }
 0x6aa   :  { %17180 = vrot.lane.b32.xlu0 %v23818_v22, %s17881_s14  ;;  %v23827_v22 = vld [vmem:[#allocation50_spill] sm:$0xff] }
 0x6ab   :  { %v21546_v47 = vpop.xlane.xlu0 %7156  ;;  %v21548_v26 = vpop.f32.mrb[104].mxu1 }
 0x6ac   :  { %23819 = vst [vmem:[#allocation163_spill] sm:$0xff] %v21548_v26  ;;  %v21551_v16 = vpop.f32.mrb[105].mxu1  ;;  %v21553_v37 = vpop.xlane.xlu1 %7153 }
 0x6ad   :  { %23820 = vst [vmem:[#allocation119_spill] sm:$0xff] %v21551_v16  ;;  %v21556_v63 = vpop.f32.mrb[88].mxu0  ;;  %v17619_v16 = vpop.eup %17618 }
 0x6ae   :  { %23821 = vst [vmem:[#allocation111_spill] sm:$0xff] %v21556_v63  ;;  %v21559_v46 = vpop.f32.mrb[89].mxu0  ;;  %v23828_v63 = vld [vmem:[#allocation132_spill] sm:$0xff]  ;;  %v17621_v49 = vpop.eup %17620 }
 0x6af   :  { %23822 = vst [vmem:[#allocation29_spill] sm:$0xff] %v21559_v46  ;;  %v21562_v0 = vpop.xlane.xlu0 %7162  ;;  %v6647_v46 = vsub.f32 %v23828_v63, %v23827_v22  ;;  %v6856_v63 = vmul.f32 1.442695, %v6646_v17  ;;  %v7437_v43 = vmul.f32 %v17621_v49, %v21178_v9 }
 0x6b0   :  { %v21564_v55 = vpop.xlane.xlu1 %7159 }
 0x6b3   :  { %v17161_v44 = vpop.permute.xlu0 %17160 }
 0x6b4   :  { %v17163_v19 = vunpack.i.h.bf16 %v17161_v44  ;;  %v17162_v12 = vunpack.i.l.bf16 %v17161_v44  ;;  %v17156_v24 = vpop.permute.xlu1 %17155  ;;  %v23831_v44 = vld [vmem:[#allocation199_spill] sm:$0xff] }
 0x6b5   :  { %v17158_v3 = vunpack.i.h.bf16 %v17156_v24  ;;  %v17157_v7 = vunpack.i.l.bf16 %v17156_v24  ;;  %v7435_v23 = vmul.f32 %v17617_v1, %v23831_v44  ;;  %v7441_v24 = vmul.f32 %v17619_v16, %v21186_v30 }
 0x6b6   :  { %v16538_v4 = vpack.c.bf16 %v17163_v19, %v17162_v12  ;;  %v6858_v19 = vmul.f32 1.442695, %v6647_v46  ;;  %v23832_v12 = vld [vmem:[#allocation60_spill] sm:$0xff] }
 0x6b7   :  { %v16534_v26 = vpack.c.bf16 %v17158_v3, %v17157_v7  ;;  %v7431_v59 = vmul.f32 %v17615_v20, %v23832_v12  ;;  %v23835_v7 = vld [vmem:[#allocation140_spill] sm:$0xff] }
 0x6b8   :  { %16539 = vmatprep.subr.bf16.mxu1 %v16538_v4  ;;  %17626 = vpow2.f32 %v6858_v19  ;;  %v23836_v20 = vld [vmem:[#allocation144_spill] sm:$0xff] }
 0x6b9   :  { %16535 = vmatprep.subr.bf16.mxu0 %v16534_v26  ;;  %16541 = vmatpush3.bf16.msra.mxu1 %v16538_v4  ;;  %17628 = vpow2.f32 %v6856_v63 }
 0x6ba   :  { %16537 = vmatpush3.bf16.msra.mxu0 %v16534_v26  ;;  %v21582_v26 = vpop.eup %17622  ;;  %17630 = vrcp.f32 %v21326_v57  ;;  %v23842_v57 = vld [vmem:[#allocation67_spill] sm:$0xff] }
 0x6bb   :  { %23833 = vst [vmem:[#allocation39_spill] sm:$0xff] %v21582_v26  ;;  %v21584_v46 = vpop.eup %17624  ;;  %v7191_v30 = vsel %vm6179_vm3, %v21582_v26, 0.0  ;;  %17632 = vrcp.f32 %v21338_v36 }
 0x6bc   :  { %15722 = vmatmul.mubr.msk.f32.vlgmr.msra.gmra.mrb[112].mxu1 %vm6179_vm3, %v7435_v23  ;;  %v7188_v9 = vsel %vm6179_vm3, %v21584_v46, 0.0  ;;  %17634 = vrcp.f32 %v21396_v42  ;;  %v23841_v23 = vld [vmem:[#allocation179_spill] sm:$0xff] }
 0x6bd   :  { %15715 = vmatmul.mubr.msk.f32.vlgmr.msra.gmra.mrb[96].mxu0 %vm6179_vm3, %v7431_v59  ;;  %15735 = vmatprep.mubr.msk.f32.mxu1 %vm6179_vm3, %v7441_v24  ;;  %17636 = vrcp.f32 %v21389_v61  ;;  %v6649_v19 = vsub.f32 %v23842_v57, %v23841_v23  ;;  %v23843_v59 = vld [vmem:[#allocation5_spill] sm:$0xff]  ;;  %v23847_v23 = vld [vmem:[#allocation24_spill] sm:$0xff] }
 0x6be   :  { %15728 = vmatprep.mubr.msk.f32.mxu0 %vm6179_vm3, %v7437_v43  ;;  %v23844_v24 = vld [vmem:[#allocation61_spill] sm:$0xff]  ;;  %v23848_v57 = vld [vmem:[#allocation156_spill] sm:$0xff] }
 0x6bf   :  { %v6648_v63 = vsub.f32 %v23844_v24, %v23843_v59  ;;  %v6862_v61 = vmul.f32 1.442695, %v6649_v19 }
 0x6c1   :  { %v6860_v26 = vmul.f32 1.442695, %v6648_v63  ;;  %17638 = vpow2.f32 %v6862_v61 }
 0x6c2   :  { %v21588_v32 = vpop.eup %17626 }
 0x6c3   :  { %23834 = vst [vmem:[#allocation170_spill] sm:$0xff] %v21588_v32  ;;  %v21592_v17 = vpop.eup %17628  ;;  %v7197_v16 = vsel %vm6179_vm3, %v21588_v32, 0.0  ;;  %v6650_v32 = vsub.f32 %v23848_v57, %v23847_v23  ;;  %17640 = vpow2.f32 %v6860_v26  ;;  %v23855_v23 = vld [vmem:[#allocation181_spill] sm:$0xff] }
 0x6c4   :  { %v7194_v3 = vsel %vm6179_vm3, %v21592_v17, 0.0 }
 0x6c9   :  { %7192 = vadd.xlane.f32.xlu0 %v7191_v30 }
 0x6ca   :  { %7189 = vadd.xlane.f32.xlu1 %v7188_v9 }
 0x6cd   :  { %7198 = vadd.xlane.f32.xlu0 %v7197_v16  ;;  %v17631_v16 = vpop.eup %17630 }
 0x6ce   :  { %7195 = vadd.xlane.f32.xlu1 %v7194_v3  ;;  %v7439_v19 = vmul.f32 %v17631_v16, %v21176_v40 }
 0x6df   :  { %17185 = vrot.lane.b32.xlu1 %v23835_v7, %s17881_s14  ;;  %v17633_v7 = vpop.eup %17632 }
 0x6e3   :  { %17190 = vrot.lane.b32.xlu0 %v23836_v20, %s17881_s14  ;;  %v23845_v20 = vld [vmem:[#allocation56_spill] sm:$0xff] }
 0x6e4   :  { %v21602_v4 = vpop.xlane.xlu0 %7168  ;;  %v21604_v1 = vpop.f32.mrb[106].mxu1 }
 0x6e5   :  { %23837 = vst [vmem:[#allocation8_spill] sm:$0xff] %v21604_v1  ;;  %v21607_v38 = vpop.f32.mrb[107].mxu1  ;;  %v21609_v22 = vpop.xlane.xlu1 %7165  ;;  %v23846_v1 = vld [vmem:[#allocation155_spill] sm:$0xff] }
 0x6e6   :  { %23838 = vst [vmem:[#allocation135_spill] sm:$0xff] %v21607_v38  ;;  %v21612_v56 = vpop.f32.mrb[90].mxu0  ;;  %v6651_v38 = vsub.f32 %v23846_v1, %v23845_v20  ;;  %v6864_v1 = vmul.f32 1.442695, %v6650_v32 }
 0x6e7   :  { %23839 = vst [vmem:[#allocation65_spill] sm:$0xff] %v21612_v56  ;;  %v21615_v13 = vpop.f32.mrb[91].mxu0 }
 0x6e8   :  { %23840 = vst [vmem:[#allocation162_spill] sm:$0xff] %v21615_v13  ;;  %v21618_v49 = vpop.xlane.xlu0 %7174  ;;  %v17635_v13 = vpop.eup %17634  ;;  %v6866_v24 = vmul.f32 1.442695, %v6651_v38 }
 0x6e9   :  { %v21620_v44 = vpop.xlane.xlu1 %7171  ;;  %v17637_v59 = vpop.eup %17636 }
 0x6ea   :  { %v7445_v63 = vmul.f32 %v17637_v59, %v21236_v52  ;;  %17642 = vpow2.f32 %v6866_v24  ;;  %v23858_v24 = vld [vmem:[#allocation16_spill] sm:$0xff] }
 0x6eb   :  { %17644 = vpow2.f32 %v6864_v1 }
 0x6ec   :  { %v17171_v12 = vpop.permute.xlu0 %17170  ;;  %17646 = vrcp.f32 %v21382_v41  ;;  %v23856_v41 = vld [vmem:[#allocation58_spill] sm:$0xff] }
 0x6ed   :  { %v17173_v36 = vunpack.i.h.bf16 %v17171_v12  ;;  %v17172_v43 = vunpack.i.l.bf16 %v17171_v12  ;;  %v17166_v30 = vpop.permute.xlu1 %17165  ;;  %v7443_v12 = vmul.f32 %v17633_v7, %v21182_v39  ;;  %v21638_v39 = vpop.eup %17638  ;;  %17648 = vrcp.f32 %v21394_v45 }
 0x6ee   :  { %v17168_v9 = vunpack.i.h.bf16 %v17166_v30  ;;  %v17167_v42 = vunpack.i.l.bf16 %v17166_v30  ;;  %v21640_v38 = vpop.eup %17640  ;;  %v7203_v40 = vsel %vm6179_vm3, %v21638_v39, 0.0  ;;  %17650 = vrcp.f32 %v21452_v6 }
 0x6ef   :  { %v16546_v3 = vpack.c.bf16 %v17173_v36, %v17172_v43  ;;  %v7449_v36 = vmul.f32 %v17635_v13, %v21244_v60  ;;  %v7200_v52 = vsel %vm6179_vm3, %v21640_v38, 0.0  ;;  %v23849_v13 = vld [vmem:[#allocation4_spill] sm:$0xff]  ;;  %17652 = vrcp.f32 %v21441_v54 }
 0x6f0   :  { %v16542_v56 = vpack.c.bf16 %v17168_v9, %v17167_v42  ;;  %v23850_v43 = vld [vmem:[#allocation68_spill] sm:$0xff]  ;;  %v6653_v57 = vsub.f32 %v23856_v41, %v23855_v23  ;;  %v23861_v23 = vld [vmem:[#allocation139_spill] sm:$0xff]  ;;  %v23862_v41 = vld [vmem:[#allocation165_spill] sm:$0xff] }
 0x6f1   :  { %16547 = vmatprep.subr.bf16.mxu1 %v16546_v3 }
 0x6f2   :  { %16543 = vmatprep.subr.bf16.mxu0 %v16542_v56  ;;  %16549 = vmatpush3.bf16.msra.mxu1 %v16546_v3  ;;  %v6870_v54 = vmul.f32 1.442695, %v6653_v57 }
 0x6f3   :  { %16545 = vmatpush3.bf16.msra.mxu0 %v16542_v56 }
 0x6f4   :  { %v21644_v60 = vpop.eup %17642  ;;  %17654 = vpow2.f32 %v6870_v54 }
 0x6f5   :  { %15736 = vmatmul.mubr.msk.f32.vlgmr.msra.gmra.mrb[114].mxu1 %vm6179_vm3, %v7443_v12  ;;  %v21648_v26 = vpop.eup %17644  ;;  %v7209_v32 = vsel %vm6179_vm3, %v21644_v60, 0.0  ;;  %v23857_v12 = vld [vmem:[#allocation125_spill] sm:$0xff] }
 0x6f6   :  { %15729 = vmatmul.mubr.msk.f32.vlgmr.msra.gmra.mrb[98].mxu0 %vm6179_vm3, %v7439_v19  ;;  %15749 = vmatprep.mubr.msk.f32.mxu1 %vm6179_vm3, %v7449_v36  ;;  %v7206_v56 = vsel %vm6179_vm3, %v21648_v26, 0.0  ;;  %v6652_v19 = vsub.f32 %v23858_v24, %v23857_v12 }
 0x6f7   :  { %15742 = vmatprep.mubr.msk.f32.mxu0 %vm6179_vm3, %v7445_v63 }
 0x702   :  { %7204 = vadd.xlane.f32.xlu0 %v7203_v40  ;;  %v17647_v40 = vpop.eup %17646 }
 0x703   :  { %7201 = vadd.xlane.f32.xlu1 %v7200_v52  ;;  %v7447_v57 = vmul.f32 %v17647_v40, %v21234_v18 }
 0x706   :  { %7210 = vadd.xlane.f32.xlu0 %v7209_v32  ;;  %v17649_v32 = vpop.eup %17648 }
 0x707   :  { %7207 = vadd.xlane.f32.xlu1 %v7206_v56  ;;  %v23859_v56 = vld [vmem:[#allocation17_spill] sm:$0xff] }
 0x718   :  { %17195 = vrot.lane.b32.xlu1 %v23849_v13, %s17881_s14  ;;  %v23860_v13 = vld [vmem:[#allocation164_spill] sm:$0xff] }
 0x71c   :  { %17200 = vrot.lane.b32.xlu0 %v23850_v43, %s17881_s14  ;;  %v6655_v43 = vsub.f32 %v23860_v13, %v23859_v56 }
 0x71d   :  { %v21658_v30 = vpop.xlane.xlu0 %7180  ;;  %v21660_v9 = vpop.f32.mrb[108].mxu1 }
 0x71e   :  { %23851 = vst [vmem:[#allocation172_spill] sm:$0xff] %v21660_v9  ;;  %v21663_v42 = vpop.f32.mrb[109].mxu1  ;;  %v21665_v16 = vpop.xlane.xlu1 %7177  ;;  %v6868_v9 = vmul.f32 1.442695, %v6652_v19  ;;  %v6874_v24 = vmul.f32 1.442695, %v6655_v43 }
 0x71f   :  { %23852 = vst [vmem:[#allocation33_spill] sm:$0xff] %v21663_v42  ;;  %v21668_v3 = vpop.f32.mrb[92].mxu0  ;;  %v6654_v42 = vsub.f32 %v23862_v41, %v23861_v23  ;;  %v23869_v23 = vld [vmem:[#allocation183_spill] sm:$0xff] }
 0x720   :  { %23853 = vst [vmem:[#allocation124_spill] sm:$0xff] %v21668_v3  ;;  %v21671_v7 = vpop.f32.mrb[93].mxu0  ;;  %17656 = vpow2.f32 %v6868_v9 }
 0x721   :  { %23854 = vst [vmem:[#allocation173_spill] sm:$0xff] %v21671_v7  ;;  %v21674_v61 = vpop.xlane.xlu0 %7186  ;;  %v17651_v7 = vpop.eup %17650  ;;  %17658 = vpow2.f32 %v6874_v24  ;;  %v23872_v24 = vld [vmem:[#allocation76_spill] sm:$0xff] }
 0x722   :  { %v21676_v20 = vpop.xlane.xlu1 %7183  ;;  %v17653_v12 = vpop.eup %17652 }
 0x723   :  { %v7453_v19 = vmul.f32 %v17653_v12, %v21296_v53 }
 0x725   :  { %v17181_v59 = vpop.permute.xlu0 %17180 }
 0x726   :  { %v17183_v45 = vunpack.i.h.bf16 %v17181_v59  ;;  %v17182_v36 = vunpack.i.l.bf16 %v17181_v59  ;;  %v17176_v1 = vpop.permute.xlu1 %17175  ;;  %v7451_v59 = vmul.f32 %v17649_v32, %v21240_v50  ;;  %v21694_v50 = vpop.eup %17654 }
 0x727   :  { %v17178_v63 = vunpack.i.h.bf16 %v17176_v1  ;;  %v17177_v6 = vunpack.i.l.bf16 %v17176_v1  ;;  %v7215_v18 = vsel %vm6179_vm3, %v21694_v50, 0.0  ;;  %v23863_v1 = vld [vmem:[#allocation89_spill] sm:$0xff] }
 0x728   :  { %v16554_v52 = vpack.c.bf16 %v17183_v45, %v17182_v36  ;;  %v7457_v45 = vmul.f32 %v17651_v7, %v21308_v5  ;;  %v6872_v36 = vmul.f32 1.442695, %v6654_v42 }
 0x729   :  { %v16550_v3 = vpack.c.bf16 %v17178_v63, %v17177_v6  ;;  %v23864_v63 = vld [vmem:[#allocation69_spill] sm:$0xff] }
 0x72a   :  { %16555 = vmatprep.subr.bf16.mxu1 %v16554_v52  ;;  %17660 = vpow2.f32 %v6872_v36 }
 0x72b   :  { %16551 = vmatprep.subr.bf16.mxu0 %v16550_v3  ;;  %16557 = vmatpush3.bf16.msra.mxu1 %v16554_v52  ;;  %17662 = vrcp.f32 %v21434_v58  ;;  %v23870_v58 = vld [vmem:[#allocation62_spill] sm:$0xff] }
 0x72c   :  { %16553 = vmatpush3.bf16.msra.mxu0 %v16550_v3  ;;  %v21696_v3 = vpop.eup %17656  ;;  %17664 = vrcp.f32 %v21450_v62  ;;  %v6657_v41 = vsub.f32 %v23870_v58, %v23869_v23  ;;  %v23875_v23 = vld [vmem:[#allocation23_spill] sm:$0xff]  ;;  %v23876_v58 = vld [vmem:[#allocation26_spill] sm:$0xff] }
 0x72d   :  { %v21700_v5 = vpop.eup %17658  ;;  %v7212_v53 = vsel %vm6179_vm3, %v21696_v3, 0.0  ;;  %17666 = vrcp.f32 %v21508_v10 }
 0x72e   :  { %15750 = vmatmul.mubr.msk.f32.vlgmr.msra.gmra.mrb[116].mxu1 %vm6179_vm3, %v7451_v59  ;;  %v7221_v42 = vsel %vm6179_vm3, %v21700_v5, 0.0  ;;  %17668 = vrcp.f32 %v21497_v51  ;;  %v23871_v59 = vld [vmem:[#allocation148_spill] sm:$0xff]  ;;  %v6878_v51 = vmul.f32 1.442695, %v6657_v41 }
 0x72f   :  { %15743 = vmatmul.mubr.msk.f32.vlgmr.msra.gmra.mrb[100].mxu0 %vm6179_vm3, %v7447_v57  ;;  %15763 = vmatprep.mubr.msk.f32.mxu1 %vm6179_vm3, %v7457_v45  ;;  %v6656_v57 = vsub.f32 %v23872_v24, %v23871_v59 }
 0x730   :  { %15756 = vmatprep.mubr.msk.f32.mxu0 %vm6179_vm3, %v7453_v19  ;;  %17670 = vpow2.f32 %v6878_v51 }
 0x734   :  { %v21704_v9 = vpop.eup %17660 }
 0x735   :  { %v7218_v7 = vsel %vm6179_vm3, %v21704_v9, 0.0 }
 0x73b   :  { %7216 = vadd.xlane.f32.xlu0 %v7215_v18  ;;  %v17663_v18 = vpop.eup %17662 }
 0x73c   :  { %7213 = vadd.xlane.f32.xlu1 %v7212_v53  ;;  %v7455_v41 = vmul.f32 %v17663_v18, %v21294_v21 }
 0x73f   :  { %7222 = vadd.xlane.f32.xlu0 %v7221_v42  ;;  %v17665_v42 = vpop.eup %17664 }
 0x740   :  { %7219 = vadd.xlane.f32.xlu1 %v7218_v7  ;;  %v23873_v7 = vld [vmem:[#allocation21_spill] sm:$0xff] }
 0x751   :  { %17205 = vrot.lane.b32.xlu1 %v23863_v1, %s17881_s14  ;;  %v23874_v1 = vld [vmem:[#allocation149_spill] sm:$0xff] }
 0x755   :  { %17210 = vrot.lane.b32.xlu0 %v23864_v63, %s17881_s14  ;;  %v6659_v63 = vsub.f32 %v23874_v1, %v23873_v7 }
 0x756   :  { %v21714_v6 = vpop.xlane.xlu0 %7192  ;;  %v21716_v40 = vpop.f32.mrb[110].mxu1 }
 0x757   :  { %23865 = vst [vmem:[#allocation150_spill] sm:$0xff] %v21716_v40  ;;  %v21719_v52 = vpop.f32.mrb[111].mxu1  ;;  %v21721_v32 = vpop.xlane.xlu1 %7189  ;;  %v6882_v24 = vmul.f32 1.442695, %v6659_v63 }
 0x758   :  { %23866 = vst [vmem:[#allocation47_spill] sm:$0xff] %v21719_v52  ;;  %v21724_v54 = vpop.f32.mrb[94].mxu0  ;;  %v17667_v52 = vpop.eup %17666 }
 0x759   :  { %23867 = vst [vmem:[#allocation42_spill] sm:$0xff] %v21724_v54  ;;  %v21727_v56 = vpop.f32.mrb[95].mxu0  ;;  %v6876_v54 = vmul.f32 1.442695, %v6656_v57  ;;  %v17669_v59 = vpop.eup %17668 }
 0x75a   :  { %23868 = vst [vmem:[#allocation15_spill] sm:$0xff] %v21727_v56  ;;  %v21730_v13 = vpop.xlane.xlu0 %7198  ;;  %v6658_v56 = vsub.f32 %v23876_v58, %v23875_v23  ;;  %v7461_v57 = vmul.f32 %v17669_v59, %v21360_v31  ;;  %v23883_v23 = vld [vmem:[#allocation185_spill] sm:$0xff] }
 0x75b   :  { %v21732_v43 = vpop.xlane.xlu1 %7195  ;;  %17672 = vpow2.f32 %v6876_v54 }
 0x75c   :  { %17674 = vpow2.f32 %v6882_v24  ;;  %v23886_v24 = vld [vmem:[#allocation75_spill] sm:$0xff] }
 0x75e   :  { %v17191_v12 = vpop.permute.xlu0 %17190 }
 0x75f   :  { %v17193_v62 = vunpack.i.h.bf16 %v17191_v12  ;;  %v17192_v45 = vunpack.i.l.bf16 %v17191_v12  ;;  %v17186_v36 = vpop.permute.xlu1 %17185  ;;  %v7459_v12 = vmul.f32 %v17665_v42, %v21304_v8  ;;  %v21750_v8 = vpop.eup %17670 }
 0x760   :  { %v17188_v19 = vunpack.i.h.bf16 %v17186_v36  ;;  %v17187_v10 = vunpack.i.l.bf16 %v17186_v36  ;;  %v7227_v21 = vsel %vm6179_vm3, %v21750_v8, 0.0  ;;  %v23877_v36 = vld [vmem:[#allocation7_spill] sm:$0xff] }
 0x761   :  { %v16562_v53 = vpack.c.bf16 %v17193_v62, %v17192_v45  ;;  %v7465_v62 = vmul.f32 %v17667_v52, %v21368_v48  ;;  %v6880_v45 = vmul.f32 1.442695, %v6658_v56 }
 0x762   :  { %v16558_v40 = vpack.c.bf16 %v17188_v19, %v17187_v10  ;;  %v23878_v19 = vld [vmem:[#allocation74_spill] sm:$0xff] }
 0x763   :  { %16563 = vmatprep.subr.bf16.mxu1 %v16562_v53  ;;  %17676 = vpow2.f32 %v6880_v45 }
 0x764   :  { %16559 = vmatprep.subr.bf16.mxu0 %v16558_v40  ;;  %16565 = vmatpush3.bf16.msra.mxu1 %v16562_v53  ;;  %17678 = vrcp.f32 %v21490_v28  ;;  %v23884_v28 = vld [vmem:[#allocation22_spill] sm:$0xff] }
 0x765   :  { %16561 = vmatpush3.bf16.msra.mxu0 %v16558_v40  ;;  %v21752_v40 = vpop.eup %17672  ;;  %17680 = vrcp.f32 %v21506_v29  ;;  %v6661_v58 = vsub.f32 %v23884_v28, %v23883_v23  ;;  %v23889_v23 = vld [vmem:[#allocation196_spill] sm:$0xff]  ;;  %v23890_v28 = vld [vmem:[#allocation95_spill] sm:$0xff] }
 0x766   :  { %v21756_v48 = vpop.eup %17674  ;;  %v7224_v31 = vsel %vm6179_vm3, %v21752_v40, 0.0  ;;  %17682 = vrcp.f32 %v21564_v55 }
 0x767   :  { %15764 = vmatmul.mubr.msk.f32.vlgmr.msra.gmra.mrb[118].mxu1 %vm6179_vm3, %v7459_v12  ;;  %v7233_v54 = vsel %vm6179_vm3, %v21756_v48, 0.0  ;;  %17684 = vrcp.f32 %v21553_v37  ;;  %v23885_v12 = vld [vmem:[#allocation186_spill] sm:$0xff]  ;;  %v6886_v37 = vmul.f32 1.442695, %v6661_v58 }
 0x768   :  { %15757 = vmatmul.mubr.msk.f32.vlgmr.msra.gmra.mrb[102].mxu0 %vm6179_vm3, %v7455_v41  ;;  %15777 = vmatprep.mubr.msk.f32.mxu1 %vm6179_vm3, %v7465_v62  ;;  %v6660_v41 = vsub.f32 %v23886_v24, %v23885_v12 }
 0x769   :  { %15770 = vmatprep.mubr.msk.f32.mxu0 %vm6179_vm3, %v7461_v57  ;;  %17686 = vpow2.f32 %v6886_v37 }
 0x76d   :  { %v21760_v52 = vpop.eup %17676 }
 0x76e   :  { %v7230_v56 = vsel %vm6179_vm3, %v21760_v52, 0.0 }
 0x774   :  { %7228 = vadd.xlane.f32.xlu0 %v7227_v21  ;;  %v17679_v21 = vpop.eup %17678 }
 0x775   :  { %7225 = vadd.xlane.f32.xlu1 %v7224_v31  ;;  %v7463_v58 = vmul.f32 %v17679_v21, %v21358_v25 }
 0x778   :  { %7234 = vadd.xlane.f32.xlu0 %v7233_v54  ;;  %v17681_v54 = vpop.eup %17680 }
 0x779   :  { %7231 = vadd.xlane.f32.xlu1 %v7230_v56  ;;  %v23887_v56 = vld [vmem:[#allocation195_spill] sm:$0xff] }
 0x78a   :  { %17215 = vrot.lane.b32.xlu1 %v23877_v36, %s17881_s14  ;;  %v23888_v36 = vld [vmem:[#allocation79_spill] sm:$0xff] }
 0x78e   :  { %17220 = vrot.lane.b32.xlu0 %v23878_v19, %s17881_s14  ;;  %v6663_v19 = vsub.f32 %v23888_v36, %v23887_v56 }
 0x78f   :  { %v21770_v10 = vpop.xlane.xlu0 %7204  ;;  %v21772_v18 = vpop.f32.mrb[112].mxu1 }
 0x790   :  { %23879 = vst [vmem:[#allocation31_spill] sm:$0xff] %v21772_v18  ;;  %v21775_v53 = vpop.f32.mrb[113].mxu1  ;;  %v21777_v42 = vpop.xlane.xlu1 %7201  ;;  %v6884_v18 = vmul.f32 1.442695, %v6660_v41  ;;  %v6890_v24 = vmul.f32 1.442695, %v6663_v19 }
 0x791   :  { %23880 = vst [vmem:[#allocation189_spill] sm:$0xff] %v21775_v53  ;;  %v21780_v51 = vpop.f32.mrb[96].mxu0  ;;  %v6662_v53 = vsub.f32 %v23890_v28, %v23889_v23  ;;  %v23897_v23 = vld [vmem:[#allocation191_spill] sm:$0xff] }
 0x792   :  { %23881 = vst [vmem:[#allocation73_spill] sm:$0xff] %v21780_v51  ;;  %v21783_v7 = vpop.f32.mrb[97].mxu0  ;;  %17688 = vpow2.f32 %v6884_v18 }
 0x793   :  { %23882 = vst [vmem:[#allocation53_spill] sm:$0xff] %v21783_v7  ;;  %v21786_v1 = vpop.xlane.xlu0 %7210  ;;  %v17683_v7 = vpop.eup %17682  ;;  %17690 = vpow2.f32 %v6890_v24  ;;  %v23900_v24 = vld [vmem:[#allocation129_spill] sm:$0xff] }
 0x794   :  { %v21788_v63 = vpop.xlane.xlu1 %7207  ;;  %v17685_v12 = vpop.eup %17684 }
 0x795   :  { %v7469_v41 = vmul.f32 %v17685_v12, %v21416_v34 }
 0x797   :  { %v17201_v59 = vpop.permute.xlu0 %17200 }
 0x798   :  { %v17203_v29 = vunpack.i.h.bf16 %v17201_v59  ;;  %v17202_v62 = vunpack.i.l.bf16 %v17201_v59  ;;  %v17196_v45 = vpop.permute.xlu1 %17195  ;;  %v7467_v59 = vmul.f32 %v17681_v54, %v21364_v35  ;;  %v21806_v35 = vpop.eup %17686 }
 0x799   :  { %v17198_v57 = vunpack.i.h.bf16 %v17196_v45  ;;  %v17197_v55 = vunpack.i.l.bf16 %v17196_v45  ;;  %v7239_v25 = vsel %vm6179_vm3, %v21806_v35, 0.0  ;;  %v23891_v45 = vld [vmem:[#allocation99_spill] sm:$0xff] }
 0x79a   :  { %v16570_v31 = vpack.c.bf16 %v17203_v29, %v17202_v62  ;;  %v7473_v29 = vmul.f32 %v17683_v7, %v21424_v27  ;;  %v6888_v62 = vmul.f32 1.442695, %v6662_v53 }
 0x79b   :  { %v16566_v51 = vpack.c.bf16 %v17198_v57, %v17197_v55  ;;  %v23892_v57 = vld [vmem:[#allocation77_spill] sm:$0xff] }
 0x79c   :  { %16571 = vmatprep.subr.bf16.mxu1 %v16570_v31  ;;  %17692 = vpow2.f32 %v6888_v62 }
 0x79d   :  { %16567 = vmatprep.subr.bf16.mxu0 %v16566_v51  ;;  %16573 = vmatpush3.bf16.msra.mxu1 %v16570_v31  ;;  %17694 = vrcp.f32 %v21546_v47  ;;  %v23898_v47 = vld [vmem:[#allocation91_spill] sm:$0xff] }
 0x79e   :  { %16569 = vmatpush3.bf16.msra.mxu0 %v16566_v51  ;;  %v21808_v51 = vpop.eup %17688  ;;  %17696 = vrcp.f32 %v21562_v0  ;;  %v6665_v28 = vsub.f32 %v23898_v47, %v23897_v23  ;;  %v23903_v23 = vld [vmem:[#allocation3_spill] sm:$0xff]  ;;  %v23904_v47 = vld [vmem:[#allocation178_spill] sm:$0xff] }
 0x79f   :  { %v21812_v27 = vpop.eup %17690  ;;  %v7236_v34 = vsel %vm6179_vm3, %v21808_v51, 0.0  ;;  %17698 = vrcp.f32 %v21620_v44 }
 0x7a0   :  { %15778 = vmatmul.mubr.msk.f32.vlgmr.msra.gmra.mrb[120].mxu1 %vm6179_vm3, %v7467_v59  ;;  %v7245_v53 = vsel %vm6179_vm3, %v21812_v27, 0.0  ;;  %17700 = vrcp.f32 %v21609_v22  ;;  %v23899_v59 = vld [vmem:[#allocation192_spill] sm:$0xff]  ;;  %v6894_v22 = vmul.f32 1.442695, %v6665_v28 }
 0x7a1   :  { %15771 = vmatmul.mubr.msk.f32.vlgmr.msra.gmra.mrb[104].mxu0 %vm6179_vm3, %v7463_v58  ;;  %15791 = vmatprep.mubr.msk.f32.mxu1 %vm6179_vm3, %v7473_v29  ;;  %v6664_v58 = vsub.f32 %v23900_v24, %v23899_v59 }
 0x7a2   :  { %15784 = vmatprep.mubr.msk.f32.mxu0 %vm6179_vm3, %v7469_v41  ;;  %17702 = vpow2.f32 %v6894_v22 }
 0x7a6   :  { %v21816_v18 = vpop.eup %17692 }
 0x7a7   :  { %v7242_v7 = vsel %vm6179_vm3, %v21816_v18, 0.0 }
 0x7ad   :  { %7240 = vadd.xlane.f32.xlu0 %v7239_v25  ;;  %v17695_v25 = vpop.eup %17694 }
 0x7ae   :  { %7237 = vadd.xlane.f32.xlu1 %v7236_v34 }
 0x7b1   :  { %7246 = vadd.xlane.f32.xlu0 %v7245_v53  ;;  %v17697_v53 = vpop.eup %17696 }
 0x7b2   :  { %7243 = vadd.xlane.f32.xlu1 %v7242_v7  ;;  %v23901_v7 = vld [vmem:[#allocation151_spill] sm:$0xff] }
 0x7c3   :  { %17225 = vrot.lane.b32.xlu1 %v23891_v45, %s17881_s14  ;;  %v23902_v45 = vld [vmem:[#allocation6_spill] sm:$0xff] }
 0x7c7   :  { %17230 = vrot.lane.b32.xlu0 %v23892_v57, %s17881_s14  ;;  %v6667_v57 = vsub.f32 %v23902_v45, %v23901_v7 }
 0x7c8   :  { %v21826_v55 = vpop.xlane.xlu0 %7216  ;;  %v21828_v21 = vpop.f32.mrb[114].mxu1 }
 0x7c9   :  { %23893 = vst [vmem:[#allocation171_spill] sm:$0xff] %v21828_v21  ;;  %v21831_v31 = vpop.f32.mrb[115].mxu1  ;;  %v21833_v54 = vpop.xlane.xlu1 %7213  ;;  %v6898_v24 = vmul.f32 1.442695, %v6667_v57 }
 0x7ca   :  { %23894 = vst [vmem:[#allocation128_spill] sm:$0xff] %v21831_v31  ;;  %v21836_v37 = vpop.f32.mrb[98].mxu0  ;;  %v17699_v31 = vpop.eup %17698 }
 0x7cb   :  { %23895 = vst [vmem:[#allocation131_spill] sm:$0xff] %v21836_v37  ;;  %v21839_v56 = vpop.f32.mrb[99].mxu0  ;;  %v6892_v37 = vmul.f32 1.442695, %v6664_v58  ;;  %v17701_v59 = vpop.eup %17700 }
 0x7cc   :  { %23896 = vst [vmem:[#allocation175_spill] sm:$0xff] %v21839_v56  ;;  %v21842_v36 = vpop.xlane.xlu0 %7222  ;;  %v6666_v56 = vsub.f32 %v23904_v47, %v23903_v23  ;;  %v7477_v58 = vmul.f32 %v17701_v59, %v21472_v14  ;;  %v23913_v59 = vld [vmem:[#allocation108_spill] sm:$0xff] }
 0x7cd   :  { %v21844_v19 = vpop.xlane.xlu1 %7219  ;;  %17704 = vpow2.f32 %v6892_v37 }
 0x7ce   :  { %17706 = vpow2.f32 %v6898_v24 }
 0x7d0   :  { %v17211_v12 = vpop.permute.xlu0 %17210 }
 0x7d1   :  { %v17213_v0 = vunpack.i.h.bf16 %v17211_v12  ;;  %v17212_v29 = vunpack.i.l.bf16 %v17211_v12  ;;  %v17206_v62 = vpop.permute.xlu1 %17205  ;;  %v7475_v12 = vmul.f32 %v17697_v53, %v21420_v11  ;;  %v21862_v11 = vpop.eup %17702 }
 0x7d2   :  { %v17208_v41 = vunpack.i.h.bf16 %v17206_v62  ;;  %v17207_v44 = vunpack.i.l.bf16 %v17206_v62  ;;  %v6896_v62 = vmul.f32 1.442695, %v6666_v56  ;;  %23906 = vst [vmem:[#allocation12_spill] sm:$0xff] %v21862_v11 }
 0x7d3   :  { %v16578_v34 = vpack.c.bf16 %v17213_v0, %v17212_v29  ;;  %v23905_v0 = vld [vmem:[#allocation18_spill] sm:$0xff]  ;;  %v7481_v29 = vmul.f32 %v17699_v31, %v21480_v15  ;;  %v7251_v15 = vsel %vm6179_vm3, %v21862_v11, 0.0 }
 0x7d4   :  { %v16574_v21 = vpack.c.bf16 %v17208_v41, %v17207_v44  ;;  %v7471_v28 = vmul.f32 %v17695_v25, %v23905_v0  ;;  %17708 = vpow2.f32 %v6896_v62  ;;  %v23907_v44 = vld [vmem:[#allocation10_spill] sm:$0xff]  ;;  %v23908_v25 = vld [vmem:[#allocation81_spill] sm:$0xff] }
 0x7d5   :  { %16579 = vmatprep.subr.bf16.mxu1 %v16578_v34  ;;  %17710 = vrcp.f32 %v21602_v4  ;;  %v23914_v4 = vld [vmem:[#allocation93_spill] sm:$0xff] }
 0x7d6   :  { %16575 = vmatprep.subr.bf16.mxu0 %v16574_v21  ;;  %16581 = vmatpush3.bf16.msra.mxu1 %v16578_v34  ;;  %17712 = vrcp.f32 %v21618_v49  ;;  %v23915_v0 = vld [vmem:[#allocation101_spill] sm:$0xff] }
 0x7d7   :  { %16577 = vmatpush3.bf16.msra.mxu0 %v16574_v21  ;;  %v21864_v21 = vpop.eup %17704  ;;  %17714 = vrcp.f32 %v21676_v20 }
 0x7d8   :  { %v21868_v31 = vpop.eup %17706  ;;  %v7248_v14 = vsel %vm6179_vm3, %v21864_v21, 0.0  ;;  %17716 = vrcp.f32 %v21665_v16 }
 0x7d9   :  { %15792 = vmatmul.mubr.msk.f32.vlgmr.msra.gmra.mrb[122].mxu1 %vm6179_vm3, %v7475_v12  ;;  %v7257_v56 = vsel %vm6179_vm3, %v21868_v31, 0.0  ;;  %v6669_v12 = vsub.f32 %v23914_v4, %v23913_v59  ;;  %v23919_v59 = vld [vmem:[#allocation198_spill] sm:$0xff]  ;;  %v23920_v4 = vld [vmem:[#allocation180_spill] sm:$0xff] }
 0x7da   :  { %15785 = vmatmul.mubr.msk.f32.vlgmr.msra.gmra.mrb[106].mxu0 %vm6179_vm3, %v7471_v28  ;;  %15805 = vmatprep.mubr.msk.f32.mxu1 %vm6179_vm3, %v7481_v29  ;;  %v23916_v28 = vld [vmem:[#allocation121_spill] sm:$0xff]  ;;  %v6670_v11 = vsub.f32 %v23920_v4, %v23919_v59 }
 0x7db   :  { %15798 = vmatprep.mubr.msk.f32.mxu0 %vm6179_vm3, %v7477_v58  ;;  %v6668_v29 = vsub.f32 %v23916_v28, %v23915_v0  ;;  %v6902_v16 = vmul.f32 1.442695, %v6669_v12 }
 0x7dd   :  { %17718 = vpow2.f32 %v6902_v16 }
 0x7de   :  { %v21872_v37 = vpop.eup %17708 }
 0x7df   :  { %v7254_v41 = vsel %vm6179_vm3, %v21872_v37, 0.0 }
 0x7e6   :  { %7252 = vadd.xlane.f32.xlu0 %v7251_v15 }
 0x7e7   :  { %7249 = vadd.xlane.f32.xlu1 %v7248_v14  ;;  %v17711_v14 = vpop.eup %17710 }
 0x7ea   :  { %7258 = vadd.xlane.f32.xlu0 %v7257_v56 }
 0x7eb   :  { %7255 = vadd.xlane.f32.xlu1 %v7254_v41  ;;  %v17713_v41 = vpop.eup %17712 }
 0x7fc   :  { %17235 = vrot.lane.b32.xlu1 %v23907_v44, %s17881_s14  ;;  %v23917_v44 = vld [vmem:[#allocation48_spill] sm:$0xff] }
 0x800   :  { %17240 = vrot.lane.b32.xlu0 %v23908_v25, %s17881_s14  ;;  %v23918_v25 = vld [vmem:[#allocation143_spill] sm:$0xff] }
 0x801   :  { %v21882_v34 = vpop.xlane.xlu0 %7228  ;;  %v21884_v53 = vpop.f32.mrb[116].mxu1 }
 0x802   :  { %23909 = vst [vmem:[#allocation57_spill] sm:$0xff] %v21884_v53  ;;  %v21887_v22 = vpop.f32.mrb[117].mxu1  ;;  %v21889_v7 = vpop.xlane.xlu1 %7225 }
 0x803   :  { %23910 = vst [vmem:[#allocation153_spill] sm:$0xff] %v21887_v22  ;;  %v21892_v45 = vpop.f32.mrb[100].mxu0  ;;  %v17715_v53 = vpop.eup %17714  ;;  %v6900_v22 = vmul.f32 1.442695, %v6668_v29 }
 0x804   :  { %23911 = vst [vmem:[#allocation59_spill] sm:$0xff] %v21892_v45  ;;  %v21895_v57 = vpop.f32.mrb[101].mxu0  ;;  %v6671_v45 = vsub.f32 %v23918_v25, %v23917_v44  ;;  %v17717_v0 = vpop.eup %17716 }
 0x805   :  { %23912 = vst [vmem:[#allocation32_spill] sm:$0xff] %v21895_v57  ;;  %v21898_v23 = vpop.xlane.xlu0 %7234  ;;  %17720 = vpow2.f32 %v6900_v22  ;;  %v7485_v29 = vmul.f32 %v17717_v0, %v21528_v2 }
 0x806   :  { %v21900_v47 = vpop.xlane.xlu1 %7231 }
 0x809   :  { %v17221_v24 = vpop.permute.xlu0 %17220 }
 0x80a   :  { %v17223_v49 = vunpack.i.h.bf16 %v17221_v24  ;;  %v17222_v62 = vunpack.i.l.bf16 %v17221_v24  ;;  %v17216_v58 = vpop.permute.xlu1 %17215  ;;  %v23921_v24 = vld [vmem:[#allocation166_spill] sm:$0xff] }
 0x80b   :  { %v17218_v15 = vunpack.i.h.bf16 %v17216_v58  ;;  %v17217_v20 = vunpack.i.l.bf16 %v17216_v58  ;;  %v7483_v28 = vmul.f32 %v17713_v41, %v23921_v24  ;;  %v7489_v58 = vmul.f32 %v17715_v53, %v21536_v33 }
 0x80c   :  { %v16586_v56 = vpack.c.bf16 %v17223_v49, %v17222_v62  ;;  %v6906_v49 = vmul.f32 1.442695, %v6671_v45  ;;  %v23922_v62 = vld [vmem:[#allocation106_spill] sm:$0xff] }
 0x80d   :  { %v16582_v57 = vpack.c.bf16 %v17218_v15, %v17217_v20  ;;  %v7479_v12 = vmul.f32 %v17711_v14, %v23922_v62  ;;  %v6904_v15 = vmul.f32 1.442695, %v6670_v11  ;;  %v23925_v14 = vld [vmem:[#allocation105_spill] sm:$0xff] }
 0x80e   :  { %16587 = vmatprep.subr.bf16.mxu1 %v16586_v56  ;;  %17722 = vpow2.f32 %v6906_v49 }
 0x80f   :  { %16583 = vmatprep.subr.bf16.mxu0 %v16582_v57  ;;  %16589 = vmatpush3.bf16.msra.mxu1 %v16586_v56  ;;  %17724 = vpow2.f32 %v6904_v15  ;;  %v23926_v56 = vld [vmem:[#allocation84_spill] sm:$0xff] }
 0x810   :  { %16585 = vmatpush3.bf16.msra.mxu0 %v16582_v57  ;;  %v21918_v57 = vpop.eup %17718  ;;  %17726 = vrcp.f32 %v21658_v30  ;;  %v23932_v30 = vld [vmem:[#allocation154_spill] sm:$0xff] }
 0x811   :  { %23923 = vst [vmem:[#allocation70_spill] sm:$0xff] %v21918_v57  ;;  %v21920_v45 = vpop.eup %17720  ;;  %v7263_v33 = vsel %vm6179_vm3, %v21918_v57, 0.0  ;;  %17728 = vrcp.f32 %v21674_v61  ;;  %v23936_v57 = vld [vmem:[#allocation49_spill] sm:$0xff] }
 0x812   :  { %15806 = vmatmul.mubr.msk.f32.vlgmr.msra.gmra.mrb[124].mxu1 %vm6179_vm3, %v7483_v28  ;;  %v7260_v2 = vsel %vm6179_vm3, %v21920_v45, 0.0  ;;  %17730 = vrcp.f32 %v21732_v43  ;;  %v23931_v28 = vld [vmem:[#allocation104_spill] sm:$0xff] }
 0x813   :  { %15799 = vmatmul.mubr.msk.f32.vlgmr.msra.gmra.mrb[108].mxu0 %vm6179_vm3, %v7479_v12  ;;  %15819 = vmatprep.mubr.msk.f32.mxu1 %vm6179_vm3, %v7489_v58  ;;  %17732 = vrcp.f32 %v21721_v32  ;;  %v6673_v49 = vsub.f32 %v23932_v30, %v23931_v28  ;;  %v23933_v12 = vld [vmem:[#allocation80_spill] sm:$0xff]  ;;  %v23937_v28 = vld [vmem:[#allocation202_spill] sm:$0xff] }
 0x814   :  { %15812 = vmatprep.mubr.msk.f32.mxu0 %vm6179_vm3, %v7485_v29  ;;  %v23934_v58 = vld [vmem:[#allocation116_spill] sm:$0xff]  ;;  %v23938_v30 = vld [vmem:[#allocation182_spill] sm:$0xff] }
 0x815   :  { %v6672_v15 = vsub.f32 %v23934_v58, %v23933_v12  ;;  %v6910_v32 = vmul.f32 1.442695, %v6673_v49 }
 0x817   :  { %17734 = vpow2.f32 %v6910_v32 }
 0x818   :  { %v21924_v11 = vpop.eup %17722 }
 0x819   :  { %23924 = vst [vmem:[#allocation114_spill] sm:$0xff] %v21924_v11  ;;  %v21928_v53 = vpop.eup %17724  ;;  %v7269_v22 = vsel %vm6179_vm3, %v21924_v11, 0.0 }
 0x81a   :  { %v7266_v20 = vsel %vm6179_vm3, %v21928_v53, 0.0 }
 0x81f   :  { %7264 = vadd.xlane.f32.xlu0 %v7263_v33 }
 0x820   :  { %7261 = vadd.xlane.f32.xlu1 %v7260_v2 }
 0x823   :  { %7270 = vadd.xlane.f32.xlu0 %v7269_v22  ;;  %v17727_v22 = vpop.eup %17726 }
 0x824   :  { %7267 = vadd.xlane.f32.xlu1 %v7266_v20 }
 0x835   :  { %17245 = vrot.lane.b32.xlu1 %v23925_v14, %s17881_s14  ;;  %v17729_v14 = vpop.eup %17728 }
 0x839   :  { %17250 = vrot.lane.b32.xlu0 %v23926_v56, %s17881_s14  ;;  %v23935_v56 = vld [vmem:[#allocation201_spill] sm:$0xff] }
 0x83a   :  { %v21938_v41 = vpop.xlane.xlu0 %7240  ;;  %v21940_v16 = vpop.f32.mrb[118].mxu1  ;;  %v6675_v11 = vsub.f32 %v23936_v57, %v23935_v56 }
 0x83b   :  { %23927 = vst [vmem:[#allocation200_spill] sm:$0xff] %v21940_v16  ;;  %v21943_v44 = vpop.f32.mrb[119].mxu1  ;;  %v21945_v25 = vpop.xlane.xlu1 %7237 }
 0x83c   :  { %23928 = vst [vmem:[#allocation197_spill] sm:$0xff] %v21943_v44  ;;  %v21948_v59 = vpop.f32.mrb[102].mxu0  ;;  %v17731_v44 = vpop.eup %17730 }
 0x83d   :  { %23929 = vst [vmem:[#allocation36_spill] sm:$0xff] %v21948_v59  ;;  %v21951_v4 = vpop.f32.mrb[103].mxu0  ;;  %v6908_v59 = vmul.f32 1.442695, %v6672_v15  ;;  %v17733_v12 = vpop.eup %17732 }
 0x83e   :  { %23930 = vst [vmem:[#allocation136_spill] sm:$0xff] %v21951_v4  ;;  %v21954_v0 = vpop.xlane.xlu0 %7246  ;;  %v6674_v4 = vsub.f32 %v23938_v30, %v23937_v28  ;;  %v7493_v15 = vmul.f32 %v17733_v12, %v21584_v46 }
 0x83f   :  { %v21956_v24 = vpop.xlane.xlu1 %7243  ;;  %17736 = vpow2.f32 %v6908_v59 }
 0x840   :  { %v6912_v57 = vmul.f32 1.442695, %v6674_v4 }
 0x842   :  { %v17231_v62 = vpop.permute.xlu0 %17230 }
 0x843   :  { %v17233_v61 = vunpack.i.h.bf16 %v17231_v62  ;;  %v17232_v29 = vunpack.i.l.bf16 %v17231_v62  ;;  %v17226_v33 = vpop.permute.xlu1 %17225  ;;  %v23939_v62 = vld [vmem:[#allocation127_spill] sm:$0xff] }
 0x844   :  { %v17228_v2 = vunpack.i.h.bf16 %v17226_v33  ;;  %v17227_v43 = vunpack.i.l.bf16 %v17226_v33  ;;  %v7491_v58 = vmul.f32 %v17729_v14, %v23939_v62  ;;  %v7497_v33 = vmul.f32 %v17731_v44, %v21592_v17 }
 0x845   :  { %v16594_v20 = vpack.c.bf16 %v17233_v61, %v17232_v29  ;;  %v6914_v61 = vmul.f32 1.442695, %v6675_v11  ;;  %v23940_v29 = vld [vmem:[#allocation86_spill] sm:$0xff] }
 0x846   :  { %v16590_v16 = vpack.c.bf16 %v17228_v2, %v17227_v43  ;;  %v7487_v49 = vmul.f32 %v17727_v22, %v23940_v29  ;;  %v23945_v43 = vld [vmem:[#allocation14_spill] sm:$0xff] }
 0x847   :  { %16595 = vmatprep.subr.bf16.mxu1 %v16594_v20  ;;  %17738 = vpow2.f32 %v6914_v61  ;;  %v23946_v22 = vld [vmem:[#allocation90_spill] sm:$0xff] }
 0x848   :  { %16591 = vmatprep.subr.bf16.mxu0 %v16590_v16  ;;  %16597 = vmatpush3.bf16.msra.mxu1 %v16594_v20  ;;  %17740 = vpow2.f32 %v6912_v57 }
 0x849   :  { %16593 = vmatpush3.bf16.msra.mxu0 %v16590_v16  ;;  %v21974_v16 = vpop.eup %17734  ;;  %17742 = vrcp.f32 %v21714_v6  ;;  %v23950_v6 = vld [vmem:[#allocation159_spill] sm:$0xff] }
 0x84a   :  { %23941 = vst [vmem:[#allocation177_spill] sm:$0xff] %v21974_v16  ;;  %v21976_v11 = vpop.eup %17736  ;;  %v7275_v17 = vsel %vm6179_vm3, %v21974_v16, 0.0  ;;  %17744 = vrcp.f32 %v21730_v13 }
 0x84b   :  { %15820 = vmatmul.mubr.msk.f32.vlgmr.msra.gmra.mrb[126].mxu1 %vm6179_vm3, %v7491_v58  ;;  %23942 = vst [vmem:[#allocation11_spill] sm:$0xff] %v21976_v11  ;;  %v7272_v46 = vsel %vm6179_vm3, %v21976_v11, 0.0  ;;  %17746 = vrcp.f32 %v21788_v63  ;;  %v23949_v58 = vld [vmem:[#allocation45_spill] sm:$0xff] }
 0x84c   :  { %15813 = vmatmul.mubr.msk.f32.vlgmr.msra.gmra.mrb[110].mxu0 %vm6179_vm3, %v7487_v49  ;;  %15833 = vmatprep.mubr.msk.f32.mxu1 %vm6179_vm3, %v7497_v33  ;;  %17748 = vrcp.f32 %v21777_v42  ;;  %v6677_v61 = vsub.f32 %v23950_v6, %v23949_v58  ;;  %v23951_v49 = vld [vmem:[#allocation63_spill] sm:$0xff]  ;;  %v23952_v33 = vld [vmem:[#allocation160_spill] sm:$0xff] }
 0x84d   :  { %15826 = vmatprep.mubr.msk.f32.mxu0 %vm6179_vm3, %v7493_v15  ;;  %v6676_v57 = vsub.f32 %v23952_v33, %v23951_v49  ;;  %v23955_v58 = vld [vmem:[#allocation204_spill] sm:$0xff] }
 0x84e   :  { %v6918_v42 = vmul.f32 1.442695, %v6677_v61  ;;  %v23956_v6 = vld [vmem:[#allocation184_spill] sm:$0xff] }
 0x84f   :  { %v6916_v11 = vmul.f32 1.442695, %v6676_v57 }
 0x850   :  { %17750 = vpow2.f32 %v6918_v42 }
 0x851   :  { %v21980_v44 = vpop.eup %17738  ;;  %17752 = vpow2.f32 %v6916_v11 }
 0x852   :  { %23943 = vst [vmem:[#allocation40_spill] sm:$0xff] %v21980_v44  ;;  %v21984_v59 = vpop.eup %17740  ;;  %v7281_v4 = vsel %vm6179_vm3, %v21980_v44, 0.0 }
 0x853   :  { %23944 = vst [vmem:[#allocation54_spill] sm:$0xff] %v21984_v59  ;;  %v7278_v2 = vsel %vm6179_vm3, %v21984_v59, 0.0  ;;  %v6678_v59 = vsub.f32 %v23956_v6, %v23955_v58 }
 0x858   :  { %7276 = vadd.xlane.f32.xlu0 %v7275_v17 }
 0x859   :  { %7273 = vadd.xlane.f32.xlu1 %v7272_v46 }
 0x85c   :  { %7282 = vadd.xlane.f32.xlu0 %v7281_v4  ;;  %v17743_v4 = vpop.eup %17742 }
 0x85d   :  { %7279 = vadd.xlane.f32.xlu1 %v7278_v2 }
 0x86e   :  { %17255 = vrot.lane.b32.xlu1 %v23945_v43, %s17881_s14  ;;  %v17745_v43 = vpop.eup %17744 }
 0x86f   :  { %v17747_v16 = vpop.eup %17746 }
 0x870   :  { %v17749_v49 = vpop.eup %17748 }
 0x871   :  { %v7501_v57 = vmul.f32 %v17749_v49, %v21640_v38 }
 0x872   :  { %17260 = vrot.lane.b32.xlu0 %v23946_v22, %s17881_s14  ;;  %v23953_v22 = vld [vmem:[#allocation203_spill] sm:$0xff] }
 0x873   :  { %v21994_v20 = vpop.xlane.xlu0 %7252  ;;  %v21996_v14 = vpop.f32.mrb[120].mxu1 }
 0x874   :  { %v21999_v32 = vpop.f32.mrb[121].mxu1  ;;  %v22001_v56 = vpop.xlane.xlu1 %7249 }
 0x875   :  { %v22004_v28 = vpop.f32.mrb[104].mxu0 }
 0x876   :  { %23947 = vst [vmem:[#allocation50_spill] sm:$0xff] %v22004_v28  ;;  %v22007_v30 = vpop.f32.mrb[105].mxu0  ;;  %v23954_v28 = vld [vmem:[#allocation78_spill] sm:$0xff] }
 0x877   :  { %23948 = vst [vmem:[#allocation132_spill] sm:$0xff] %v22007_v30  ;;  %v22010_v12 = vpop.xlane.xlu0 %7258  ;;  %v6679_v30 = vsub.f32 %v23954_v28, %v23953_v22  ;;  %v6920_v28 = vmul.f32 1.442695, %v6678_v59 }
 0x878   :  { %v22012_v62 = vpop.xlane.xlu1 %7255 }
 0x87b   :  { %v17241_v29 = vpop.permute.xlu0 %17240 }
 0x87c   :  { %v17243_v13 = vunpack.i.h.bf16 %v17241_v29  ;;  %v17242_v15 = vunpack.i.l.bf16 %v17241_v29  ;;  %v17236_v17 = vpop.permute.xlu1 %17235  ;;  %v23957_v29 = vld [vmem:[#allocation170_spill] sm:$0xff] }
 0x87d   :  { %v17238_v46 = vunpack.i.h.bf16 %v17236_v17  ;;  %v17237_v63 = vunpack.i.l.bf16 %v17236_v17  ;;  %v7499_v33 = vmul.f32 %v17745_v43, %v23957_v29  ;;  %v7505_v17 = vmul.f32 %v17747_v16, %v21648_v26 }
 0x87e   :  { %v16602_v2 = vpack.c.bf16 %v17243_v13, %v17242_v15  ;;  %v6922_v13 = vmul.f32 1.442695, %v6679_v30  ;;  %v23958_v15 = vld [vmem:[#allocation39_spill] sm:$0xff] }
 0x87f   :  { %v16598_v44 = vpack.c.bf16 %v17238_v46, %v17237_v63  ;;  %v7495_v61 = vmul.f32 %v17743_v4, %v23958_v15  ;;  %v23963_v63 = vld [vmem:[#allocation110_spill] sm:$0xff]  ;;  %v23964_v4 = vld [vmem:[#allocation92_spill] sm:$0xff] }
 0x880   :  { %16603 = vmatprep.subr.bf16.mxu1 %v16602_v2  ;;  %17754 = vpow2.f32 %v6922_v13 }
 0x881   :  { %16599 = vmatprep.subr.bf16.mxu0 %v16598_v44  ;;  %16605 = vmatpush3.bf16.msra.mxu1 %v16602_v2  ;;  %17756 = vpow2.f32 %v6920_v28 }
 0x882   :  { %16601 = vmatpush3.bf16.msra.mxu0 %v16598_v44  ;;  %v22030_v44 = vpop.eup %17750  ;;  %17758 = vrcp.f32 %v21770_v10  ;;  %v23968_v10 = vld [vmem:[#allocation168_spill] sm:$0xff] }
 0x883   :  { %23959 = vst [vmem:[#allocation37_spill] sm:$0xff] %v22030_v44  ;;  %v22032_v30 = vpop.eup %17752  ;;  %v7287_v26 = vsel %vm6179_vm3, %v22030_v44, 0.0  ;;  %17760 = vrcp.f32 %v21786_v1 }
 0x884   :  { %15834 = vmatmul.mubr.msk.f32.vlgmr.msra.gmra.mrb[128].mxu1 %vm6179_vm3, %v7499_v33  ;;  %23960 = vst [vmem:[#allocation109_spill] sm:$0xff] %v22032_v30  ;;  %v7284_v38 = vsel %vm6179_vm3, %v22032_v30, 0.0  ;;  %17762 = vrcp.f32 %v21844_v19  ;;  %v23967_v33 = vld [vmem:[#allocation141_spill] sm:$0xff] }
 0x885   :  { %15827 = vmatmul.mubr.msk.f32.vlgmr.msra.gmra.mrb[112].mxu0 %vm6179_vm3, %v7495_v61  ;;  %15847 = vmatprep.mubr.msk.f32.mxu1 %vm6179_vm3, %v7505_v17  ;;  %17764 = vrcp.f32 %v21833_v54  ;;  %v6681_v13 = vsub.f32 %v23968_v10, %v23967_v33  ;;  %v23969_v61 = vld [vmem:[#allocation193_spill] sm:$0xff]  ;;  %v23973_v33 = vld [vmem:[#allocation206_spill] sm:$0xff]  ;;  %v23974_v10 = vld [vmem:[#allocation188_spill] sm:$0xff] }
 0x886   :  { %15840 = vmatprep.mubr.msk.f32.mxu0 %vm6179_vm3, %v7501_v57  ;;  %v23970_v17 = vld [vmem:[#allocation169_spill] sm:$0xff] }
 0x887   :  { %v6680_v28 = vsub.f32 %v23970_v17, %v23969_v61  ;;  %v6926_v54 = vmul.f32 1.442695, %v6681_v13 }
 0x889   :  { %17766 = vpow2.f32 %v6926_v54 }
 0x88a   :  { %v22036_v16 = vpop.eup %17754 }
 0x88b   :  { %23961 = vst [vmem:[#allocation199_spill] sm:$0xff] %v22036_v16  ;;  %v22040_v11 = vpop.eup %17756  ;;  %v7293_v59 = vsel %vm6179_vm3, %v22036_v16, 0.0  ;;  %v23972_v16 = vld [vmem:[#allocation187_spill] sm:$0xff] }
 0x88c   :  { %23962 = vst [vmem:[#allocation60_spill] sm:$0xff] %v22040_v11  ;;  %v7290_v46 = vsel %vm6179_vm3, %v22040_v11, 0.0 }
 0x891   :  { %7288 = vadd.xlane.f32.xlu0 %v7287_v26 }
 0x892   :  { %7285 = vadd.xlane.f32.xlu1 %v7284_v38 }
 0x895   :  { %7294 = vadd.xlane.f32.xlu0 %v7293_v59  ;;  %v17759_v59 = vpop.eup %17758 }
 0x896   :  { %7291 = vadd.xlane.f32.xlu1 %v7290_v46  ;;  %v7503_v13 = vmul.f32 %v17759_v59, %v21638_v39 }
 0x8a7   :  { %17265 = vrot.lane.b32.xlu1 %v23963_v63, %s17881_s14  ;;  %v17761_v63 = vpop.eup %17760 }
 0x8a8   :  { %v17763_v30 = vpop.eup %17762 }
 0x8a9   :  { %v17765_v61 = vpop.eup %17764 }
 0x8ab   :  { %17270 = vrot.lane.b32.xlu0 %v23964_v4, %s17881_s14  ;;  %v23971_v4 = vld [vmem:[#allocation205_spill] sm:$0xff] }
 0x8ac   :  { %v22050_v2 = vpop.xlane.xlu0 %7264  ;;  %v22052_v43 = vpop.f32.mrb[122].mxu1  ;;  %v6683_v11 = vsub.f32 %v23972_v16, %v23971_v4 }
 0x8ad   :  { %23965 = vst [vmem:[#allocation140_spill] sm:$0xff] %v22052_v43  ;;  %v22055_v42 = vpop.f32.mrb[123].mxu1  ;;  %v22057_v22 = vpop.xlane.xlu1 %7261  ;;  %v6924_v43 = vmul.f32 1.442695, %v6680_v28  ;;  %v7509_v28 = vmul.f32 %v17765_v61, %v21696_v3 }
 0x8ae   :  { %23966 = vst [vmem:[#allocation144_spill] sm:$0xff] %v22055_v42  ;;  %v22060_v58 = vpop.f32.mrb[106].mxu0  ;;  %v6682_v42 = vsub.f32 %v23974_v10, %v23973_v33  ;;  %v6930_v17 = vmul.f32 1.442695, %v6683_v11  ;;  %v23981_v33 = vld [vmem:[#allocation82_spill] sm:$0xff] }
 0x8af   :  { %v22063_v6 = vpop.f32.mrb[107].mxu0  ;;  %17768 = vpow2.f32 %v6924_v43 }
 0x8b0   :  { %v22066_v49 = vpop.xlane.xlu0 %7270  ;;  %v6928_v16 = vmul.f32 1.442695, %v6682_v42  ;;  %17770 = vpow2.f32 %v6930_v17  ;;  %v23977_v42 = vld [vmem:[#allocation20_spill] sm:$0xff]  ;;  %v23984_v17 = vld [vmem:[#allocation30_spill] sm:$0xff] }
 0x8b1   :  { %v22068_v29 = vpop.xlane.xlu1 %7267 }
 0x8b2   :  { %17772 = vpow2.f32 %v6928_v16 }
 0x8b3   :  { %17774 = vrcp.f32 %v21826_v55  ;;  %v23982_v55 = vld [vmem:[#allocation174_spill] sm:$0xff] }
 0x8b4   :  { %v17251_v15 = vpop.permute.xlu0 %17250  ;;  %17776 = vrcp.f32 %v21842_v36  ;;  %v6685_v10 = vsub.f32 %v23982_v55, %v23981_v33  ;;  %v23987_v33 = vld [vmem:[#allocation88_spill] sm:$0xff]  ;;  %v23988_v55 = vld [vmem:[#allocation71_spill] sm:$0xff] }
 0x8b5   :  { %v17253_v1 = vunpack.i.h.bf16 %v17251_v15  ;;  %v17252_v57 = vunpack.i.l.bf16 %v17251_v15  ;;  %v17246_v26 = vpop.permute.xlu1 %17245  ;;  %v7507_v15 = vmul.f32 %v17761_v63, %v21644_v60  ;;  %v22086_v60 = vpop.eup %17766  ;;  %17778 = vrcp.f32 %v21900_v47 }
 0x8b6   :  { %v17248_v38 = vunpack.i.h.bf16 %v17246_v26  ;;  %v17247_v19 = vunpack.i.l.bf16 %v17246_v26  ;;  %v7299_v39 = vsel %vm6179_vm3, %v22086_v60, 0.0  ;;  %17780 = vrcp.f32 %v21889_v7 }
 0x8b7   :  { %v16610_v46 = vpack.c.bf16 %v17253_v1, %v17252_v57  ;;  %v7513_v1 = vmul.f32 %v17763_v30, %v21704_v9  ;;  %v23978_v57 = vld [vmem:[#allocation100_spill] sm:$0xff]  ;;  %v6934_v7 = vmul.f32 1.442695, %v6685_v10 }
 0x8b8   :  { %v16606_v44 = vpack.c.bf16 %v17248_v38, %v17247_v19 }
 0x8b9   :  { %16611 = vmatprep.subr.bf16.mxu1 %v16610_v46  ;;  %17782 = vpow2.f32 %v6934_v7 }
 0x8ba   :  { %16607 = vmatprep.subr.bf16.mxu0 %v16606_v44  ;;  %16613 = vmatpush3.bf16.msra.mxu1 %v16610_v46 }
 0x8bb   :  { %16609 = vmatpush3.bf16.msra.mxu0 %v16606_v44  ;;  %v22088_v44 = vpop.eup %17768 }
 0x8bc   :  { %v22092_v9 = vpop.eup %17770  ;;  %v7296_v3 = vsel %vm6179_vm3, %v22088_v44, 0.0 }
 0x8bd   :  { %15848 = vmatmul.mubr.msk.f32.vlgmr.msra.gmra.mrb[130].mxu1 %vm6179_vm3, %v7507_v15  ;;  %23975 = vst [vmem:[#allocation179_spill] sm:$0xff] %v22092_v9  ;;  %v22096_v30 = vpop.eup %17772  ;;  %v7305_v11 = vsel %vm6179_vm3, %v22092_v9, 0.0  ;;  %v23983_v15 = vld [vmem:[#allocation13_spill] sm:$0xff] }
 0x8be   :  { %15841 = vmatmul.mubr.msk.f32.vlgmr.msra.gmra.mrb[114].mxu0 %vm6179_vm3, %v7503_v13  ;;  %15861 = vmatprep.mubr.msk.f32.mxu1 %vm6179_vm3, %v7513_v1  ;;  %23976 = vst [vmem:[#allocation67_spill] sm:$0xff] %v22096_v30  ;;  %v7302_v43 = vsel %vm6179_vm3, %v22096_v30, 0.0  ;;  %v6684_v13 = vsub.f32 %v23984_v17, %v23983_v15  ;;  %v6686_v30 = vsub.f32 %v23988_v55, %v23987_v33  ;;  %v23995_v33 = vld [vmem:[#allocation138_spill] sm:$0xff] }
 0x8bf   :  { %15854 = vmatprep.mubr.msk.f32.mxu0 %vm6179_vm3, %v7509_v28 }
 0x8c0   :  { %v6932_v9 = vmul.f32 1.442695, %v6684_v13 }
 0x8c2   :  { %17784 = vpow2.f32 %v6932_v9 }
 0x8ca   :  { %7300 = vadd.xlane.f32.xlu0 %v7299_v39  ;;  %v17775_v39 = vpop.eup %17774 }
 0x8cb   :  { %7297 = vadd.xlane.f32.xlu1 %v7296_v3  ;;  %v7511_v10 = vmul.f32 %v17775_v39, %v21694_v50 }
 0x8ce   :  { %7306 = vadd.xlane.f32.xlu0 %v7305_v11  ;;  %v17777_v11 = vpop.eup %17776 }
 0x8cf   :  { %7303 = vadd.xlane.f32.xlu1 %v7302_v43  ;;  %v23985_v43 = vld [vmem:[#allocation107_spill] sm:$0xff] }
 0x8e0   :  { %17275 = vrot.lane.b32.xlu1 %v23977_v42, %s17881_s14  ;;  %v23986_v42 = vld [vmem:[#allocation25_spill] sm:$0xff] }
 0x8e4   :  { %17280 = vrot.lane.b32.xlu0 %v23978_v57, %s17881_s14  ;;  %v6687_v57 = vsub.f32 %v23986_v42, %v23985_v43 }
 0x8e5   :  { %v22106_v26 = vpop.xlane.xlu0 %7276  ;;  %v22108_v38 = vpop.f32.mrb[124].mxu1 }
 0x8e6   :  { %v22111_v19 = vpop.f32.mrb[125].mxu1  ;;  %v22113_v59 = vpop.xlane.xlu1 %7273  ;;  %v6938_v17 = vmul.f32 1.442695, %v6687_v57 }
 0x8e7   :  { %v22116_v46 = vpop.f32.mrb[108].mxu0 }
 0x8e8   :  { %23979 = vst [vmem:[#allocation5_spill] sm:$0xff] %v22116_v46  ;;  %v22119_v63 = vpop.f32.mrb[109].mxu0  ;;  %17786 = vpow2.f32 %v6938_v17  ;;  %v23998_v17 = vld [vmem:[#allocation176_spill] sm:$0xff] }
 0x8e9   :  { %23980 = vst [vmem:[#allocation61_spill] sm:$0xff] %v22119_v63  ;;  %v22122_v54 = vpop.xlane.xlu0 %7282  ;;  %v17779_v63 = vpop.eup %17778 }
 0x8ea   :  { %v22124_v4 = vpop.xlane.xlu1 %7279  ;;  %v17781_v15 = vpop.eup %17780 }
 0x8eb   :  { %v7517_v13 = vmul.f32 %v17781_v15, %v21752_v40 }
 0x8ed   :  { %v17261_v61 = vpop.permute.xlu0 %17260 }
 0x8ee   :  { %v17263_v36 = vunpack.i.h.bf16 %v17261_v61  ;;  %v17262_v1 = vunpack.i.l.bf16 %v17261_v61  ;;  %v17256_v16 = vpop.permute.xlu1 %17255  ;;  %v7515_v61 = vmul.f32 %v17777_v11, %v21700_v5  ;;  %v22142_v5 = vpop.eup %17782 }
 0x8ef   :  { %v17258_v28 = vunpack.i.h.bf16 %v17256_v16  ;;  %v17257_v47 = vunpack.i.l.bf16 %v17256_v16  ;;  %23989 = vst [vmem:[#allocation56_spill] sm:$0xff] %v22142_v5  ;;  %v7311_v50 = vsel %vm6179_vm3, %v22142_v5, 0.0  ;;  %v23993_v16 = vld [vmem:[#allocation117_spill] sm:$0xff] }
 0x8f0   :  { %v16618_v3 = vpack.c.bf16 %v17263_v36, %v17262_v1  ;;  %v7521_v36 = vmul.f32 %v17779_v63, %v21760_v52  ;;  %v6936_v1 = vmul.f32 1.442695, %v6686_v30 }
 0x8f1   :  { %v16614_v46 = vpack.c.bf16 %v17258_v28, %v17257_v47  ;;  %v23994_v28 = vld [vmem:[#allocation103_spill] sm:$0xff] }
 0x8f2   :  { %16619 = vmatprep.subr.bf16.mxu1 %v16618_v3  ;;  %17788 = vpow2.f32 %v6936_v1 }
 0x8f3   :  { %16615 = vmatprep.subr.bf16.mxu0 %v16614_v46  ;;  %16621 = vmatpush3.bf16.msra.mxu1 %v16618_v3  ;;  %17790 = vrcp.f32 %v21882_v34  ;;  %v23996_v34 = vld [vmem:[#allocation102_spill] sm:$0xff] }
 0x8f4   :  { %16617 = vmatpush3.bf16.msra.mxu0 %v16614_v46  ;;  %v22144_v46 = vpop.eup %17784  ;;  %17792 = vrcp.f32 %v21898_v23  ;;  %v6689_v55 = vsub.f32 %v23996_v34, %v23995_v33  ;;  %v24001_v33 = vld [vmem:[#allocation145_spill] sm:$0xff]  ;;  %v24002_v34 = vld [vmem:[#allocation35_spill] sm:$0xff] }
 0x8f5   :  { %23990 = vst [vmem:[#allocation155_spill] sm:$0xff] %v22144_v46  ;;  %v22148_v52 = vpop.eup %17786  ;;  %v7308_v40 = vsel %vm6179_vm3, %v22144_v46, 0.0  ;;  %17794 = vrcp.f32 %v21956_v24  ;;  %v6690_v46 = vsub.f32 %v24002_v34, %v24001_v33  ;;  %v24007_v33 = vld [vmem:[#allocation118_spill] sm:$0xff] }
 0x8f6   :  { %15862 = vmatmul.mubr.msk.f32.vlgmr.msra.gmra.mrb[132].mxu1 %vm6179_vm3, %v7515_v61  ;;  %23991 = vst [vmem:[#allocation24_spill] sm:$0xff] %v22148_v52  ;;  %v7317_v30 = vsel %vm6179_vm3, %v22148_v52, 0.0  ;;  %17796 = vrcp.f32 %v21945_v25  ;;  %v23997_v61 = vld [vmem:[#allocation123_spill] sm:$0xff]  ;;  %v6942_v25 = vmul.f32 1.442695, %v6689_v55 }
 0x8f7   :  { %15855 = vmatmul.mubr.msk.f32.vlgmr.msra.gmra.mrb[116].mxu0 %vm6179_vm3, %v7511_v10  ;;  %15875 = vmatprep.mubr.msk.f32.mxu1 %vm6179_vm3, %v7521_v36  ;;  %v6688_v10 = vsub.f32 %v23998_v17, %v23997_v61 }
 0x8f8   :  { %15868 = vmatprep.mubr.msk.f32.mxu0 %vm6179_vm3, %v7517_v13  ;;  %17798 = vpow2.f32 %v6942_v25 }
 0x8f9   :  { %v6940_v5 = vmul.f32 1.442695, %v6688_v10 }
 0x8fb   :  { %17800 = vpow2.f32 %v6940_v5 }
 0x8fc   :  { %v22152_v9 = vpop.eup %17788 }
 0x8fd   :  { %23992 = vst [vmem:[#allocation156_spill] sm:$0xff] %v22152_v9  ;;  %v7314_v63 = vsel %vm6179_vm3, %v22152_v9, 0.0 }
 0x903   :  { %7312 = vadd.xlane.f32.xlu0 %v7311_v50  ;;  %v17791_v50 = vpop.eup %17790 }
 0x904   :  { %7309 = vadd.xlane.f32.xlu1 %v7308_v40  ;;  %v7519_v55 = vmul.f32 %v17791_v50, %v21750_v8 }
 0x907   :  { %7318 = vadd.xlane.f32.xlu0 %v7317_v30  ;;  %v17793_v30 = vpop.eup %17792 }
 0x908   :  { %7315 = vadd.xlane.f32.xlu1 %v7314_v63  ;;  %v23999_v63 = vld [vmem:[#allocation207_spill] sm:$0xff]  ;;  %v17795_v9 = vpop.eup %17794 }
 0x909   :  { %v17797_v61 = vpop.eup %17796 }
 0x90a   :  { %v7525_v10 = vmul.f32 %v17797_v61, %v21808_v51 }
 0x919   :  { %17285 = vrot.lane.b32.xlu1 %v23993_v16, %s17881_s14  ;;  %v24000_v16 = vld [vmem:[#allocation190_spill] sm:$0xff] }
 0x91d   :  { %17290 = vrot.lane.b32.xlu0 %v23994_v28, %s17881_s14  ;;  %v6691_v28 = vsub.f32 %v24000_v16, %v23999_v63 }
 0x91e   :  { %v22162_v47 = vpop.xlane.xlu0 %7288  ;;  %v22164_v39 = vpop.f32.mrb[126].mxu1 }
 0x91f   :  { %v22167_v3 = vpop.f32.mrb[127].mxu1  ;;  %v22169_v11 = vpop.xlane.xlu1 %7285  ;;  %v6946_v17 = vmul.f32 1.442695, %v6691_v28  ;;  %v24006_v28 = vld [vmem:[#allocation34_spill] sm:$0xff] }
 0x920   :  { %v22172_v7 = vpop.f32.mrb[110].mxu0 }
 0x921   :  { %v22175_v43 = vpop.f32.mrb[111].mxu0  ;;  %17802 = vpow2.f32 %v6946_v17 }
 0x922   :  { %v22178_v42 = vpop.xlane.xlu0 %7294 }
 0x923   :  { %v22180_v57 = vpop.xlane.xlu1 %7291 }
 0x926   :  { %v17271_v15 = vpop.permute.xlu0 %17270 }
 0x927   :  { %v17273_v23 = vunpack.i.h.bf16 %v17271_v15  ;;  %v17272_v36 = vunpack.i.l.bf16 %v17271_v15  ;;  %v17266_v1 = vpop.permute.xlu1 %17265  ;;  %v7523_v15 = vmul.f32 %v17793_v30, %v21756_v48  ;;  %v22198_v48 = vpop.eup %17798 }
 0x928   :  { %v17268_v13 = vunpack.i.h.bf16 %v17266_v1  ;;  %v17267_v24 = vunpack.i.l.bf16 %v17266_v1  ;;  %v7323_v8 = vsel %vm6179_vm3, %v22198_v48, 0.0  ;;  %v24003_v1 = vld [vmem:[#allocation28_spill] sm:$0xff] }
 0x929   :  { %v16626_v40 = vpack.c.bf16 %v17273_v23, %v17272_v36  ;;  %v7529_v23 = vmul.f32 %v17795_v9, %v21816_v18  ;;  %v6944_v36 = vmul.f32 1.442695, %v6690_v46 }
 0x92a   :  { %v16622_v52 = vpack.c.bf16 %v17268_v13, %v17267_v24  ;;  %v24004_v13 = vld [vmem:[#allocation115_spill] sm:$0xff]  ;;  %v24005_v24 = vld [vmem:[#allocation122_spill] sm:$0xff] }
 0x92b   :  { %16627 = vmatprep.subr.bf16.mxu1 %v16626_v40  ;;  %17804 = vpow2.f32 %v6944_v36 }
 0x92c   :  { %16623 = vmatprep.subr.bf16.mxu0 %v16622_v52  ;;  %16629 = vmatpush3.bf16.msra.mxu1 %v16626_v40  ;;  %17806 = vrcp.f32 %v21954_v0  ;;  %v24008_v0 = vld [vmem:[#allocation130_spill] sm:$0xff] }
 0x92d   :  { %16625 = vmatpush3.bf16.msra.mxu0 %v16622_v52  ;;  %v22200_v52 = vpop.eup %17800  ;;  %17808 = vrcp.f32 %v22012_v62  ;;  %v24009_v62 = vld [vmem:[#allocation133_spill] sm:$0xff] }
 0x92e   :  { %v22204_v18 = vpop.eup %17802  ;;  %v7320_v51 = vsel %vm6179_vm3, %v22200_v52, 0.0  ;;  %17810 = vrcp.f32 %v21938_v41  ;;  %v24010_v41 = vld [vmem:[#allocation38_spill] sm:$0xff] }
 0x92f   :  { %15876 = vmatmul.mubr.msk.f32.vlgmr.msra.gmra.mrb[134].mxu1 %vm6179_vm3, %v7523_v15  ;;  %v7329_v46 = vsel %vm6179_vm3, %v22204_v18, 0.0  ;;  %17812 = vrcp.f32 %v22001_v56 }
 0x930   :  { %15869 = vmatmul.mubr.msk.f32.vlgmr.msra.gmra.mrb[118].mxu0 %vm6179_vm3, %v7519_v55  ;;  %15889 = vmatprep.mubr.msk.f32.mxu1 %vm6179_vm3, %v7529_v23  ;;  %17814 = vrcp.f32 %v22010_v12  ;;  %v24036_v12 = vld [vmem:[#allocation167_spill] sm:$0xff] }
 0x931   :  { %15882 = vmatprep.mubr.msk.f32.mxu0 %vm6179_vm3, %v7525_v10  ;;  %17816 = vrcp.f32 %v22068_v29 }
 0x932   :  { %17818 = vrcp.f32 %v21994_v20  ;;  %v24038_v20 = vld [vmem:[#allocation119_spill] sm:$0xff] }
 0x933   :  { %17820 = vrcp.f32 %v22057_v22 }
 0x934   :  { %17822 = vrcp.f32 %v22066_v49 }
 0x935   :  { %v22208_v5 = vpop.eup %17804  ;;  %17824 = vrcp.f32 %v22050_v2 }
 0x936   :  { %v7326_v9 = vsel %vm6179_vm3, %v22208_v5, 0.0  ;;  %17826 = vrcp.f32 %v22124_v4 }
 0x937   :  { %17828 = vrcp.f32 %v22113_v59  ;;  %v24064_v59 = vld [vmem:[#allocation144_spill] sm:$0xff] }
 0x938   :  { %17830 = vrcp.f32 %v22106_v26 }
 0x939   :  { %17832 = vrcp.f32 %v22169_v11 }
 0x93a   :  { %17834 = vrcp.f32 %v22122_v54  ;;  %v24066_v54 = vld [vmem:[#allocation114_spill] sm:$0xff] }
 0x93b   :  { %17836 = vrcp.f32 %v22162_v47 }
 0x93c   :  { %7324 = vadd.xlane.f32.xlu0 %v7323_v8  ;;  %v24011_v8 = vld [vmem:[#allocation134_spill] sm:$0xff] }
 0x93d   :  { %7321 = vadd.xlane.f32.xlu1 %v7320_v51  ;;  %v17807_v51 = vpop.eup %17806  ;;  %17838 = vrcp.f32 %v22180_v57 }
 0x940   :  { %7330 = vadd.xlane.f32.xlu0 %v7329_v46 }
 0x941   :  { %7327 = vadd.xlane.f32.xlu1 %v7326_v9  ;;  %v17809_v9 = vpop.eup %17808 }
 0x952   :  { %17295 = vrot.lane.b32.xlu1 %v24003_v1, %s17881_s14  ;;  %v17811_v1 = vpop.eup %17810 }
 0x956   :  { %17300 = vrot.lane.b32.xlu0 %v24004_v13, %s17881_s14  ;;  %17305 = vrot.lane.b32.xlu1 %v24005_v24, %s17881_s14  ;;  %v17813_v13 = vpop.eup %17812  ;;  %v24012_v24 = vld [vmem:[#allocation142_spill] sm:$0xff] }
 0x957   :  { %v22220_v50 = vpop.xlane.xlu0 %7300  ;;  %v22222_v40 = vpop.f32.mrb[128].mxu1 }
 0x958   :  { %v22224_v30 = vpop.f32.mrb[129].mxu1  ;;  %v22226_v25 = vpop.xlane.xlu1 %7297 }
 0x959   :  { %v22229_v63 = vpop.f32.mrb[112].mxu0  ;;  %17840 = vrcp.f32 %v22226_v25 }
 0x95a   :  { %v22232_v16 = vpop.f32.mrb[113].mxu0  ;;  %17315 = vrot.lane.b32.xlu0 %v24006_v28, %s17881_s14  ;;  %17310 = vrot.lane.b32.xlu1 %v24007_v33, %s17881_s14  ;;  %v24013_v28 = vld [vmem:[#allocation146_spill] sm:$0xff]  ;;  %v7531_v33 = vmul.f32 %v17807_v51, %v21812_v27  ;;  %v24016_v27 = vld [vmem:[#allocation96_spill] sm:$0xff]  ;;  %v24026_v51 = vld [vmem:[#allocation113_spill] sm:$0xff]  ;;  %17842 = vrcp.f32 %v22178_v42 }
 0x95b   :  { %v22239_v34 = vpop.xlane.xlu0 %7306  ;;  %17844 = vrcp.f32 %v22220_v50  ;;  %v24068_v42 = vld [vmem:[#allocation54_spill] sm:$0xff]  ;;  %v24069_v50 = vld [vmem:[#allocation11_spill] sm:$0xff] }
 0x95c   :  { %v22242_v61 = vpop.xlane.xlu1 %7303 }
 0x95e   :  { %17325 = vrot.lane.b32.xlu0 %v24008_v0, %s17881_s14  ;;  %17320 = vrot.lane.b32.xlu1 %v24009_v62, %s17881_s14  ;;  %v7537_v0 = vmul.f32 %v17809_v9, %v21872_v37  ;;  %v7527_v62 = vmul.f32 %v17811_v1, %v21806_v35  ;;  %v24017_v35 = vld [vmem:[#allocation2_spill] sm:$0xff]  ;;  %v24019_v37 = vld [vmem:[#allocation43_spill] sm:$0xff]  ;;  %v24028_v9 = vld [vmem:[#allocation52_spill] sm:$0xff] }
 0x95f   :  { %v17281_v15 = vpop.permute.xlu0 %17280  ;;  %v24029_v1 = vld [vmem:[#allocation98_spill] sm:$0xff] }
 0x960   :  { %v17283_v17 = vunpack.i.h.bf16 %v17281_v15  ;;  %v17282_v55 = vunpack.i.l.bf16 %v17281_v15  ;;  %v17276_v23 = vpop.permute.xlu1 %17275  ;;  %v7533_v15 = vmul.f32 %v17813_v13, %v21864_v21  ;;  %v24018_v21 = vld [vmem:[#allocation46_spill] sm:$0xff]  ;;  %v24030_v13 = vld [vmem:[#allocation137_spill] sm:$0xff] }
 0x961   :  { %v17278_v36 = vunpack.i.h.bf16 %v17276_v23  ;;  %v17277_v10 = vunpack.i.l.bf16 %v17276_v23  ;;  %v24020_v23 = vld [vmem:[#allocation157_spill] sm:$0xff] }
 0x962   :  { %17335 = vrot.lane.b32.xlu0 %v24010_v41, %s17881_s14  ;;  %17330 = vrot.lane.b32.xlu1 %v24011_v8, %s17881_s14  ;;  %v16634_v56 = vpack.c.bf16 %v17283_v17, %v17282_v55  ;;  %v24014_v17 = vld [vmem:[#allocation152_spill] sm:$0xff]  ;;  %v24015_v55 = vld [vmem:[#allocation147_spill] sm:$0xff]  ;;  %v24023_v41 = vld [vmem:[#allocation94_spill] sm:$0xff] }
 0x963   :  { %v16630_v46 = vpack.c.bf16 %v17278_v36, %v17277_v10  ;;  %v24021_v36 = vld [vmem:[#allocation87_spill] sm:$0xff]  ;;  %v24022_v10 = vld [vmem:[#allocation158_spill] sm:$0xff]  ;;  %v24024_v8 = vld [vmem:[#allocation44_spill] sm:$0xff] }
 0x964   :  { %16635 = vmatprep.subr.bf16.mxu1 %v16634_v56 }
 0x965   :  { %16631 = vmatprep.subr.bf16.mxu0 %v16630_v46  ;;  %16637 = vmatpush3.bf16.msra.mxu1 %v16634_v56  ;;  %v24025_v56 = vld [vmem:[#allocation66_spill] sm:$0xff] }
 0x966   :  { %17345 = vrot.lane.b32.xlu0 %v24012_v24, %s17881_s14  ;;  %17340 = vrot.lane.b32.xlu1 %v24013_v28, %s17881_s14  ;;  %v24031_v24 = vld [vmem:[#allocation97_spill] sm:$0xff]  ;;  %v24032_v28 = vld [vmem:[#allocation126_spill] sm:$0xff] }
 0x967   :  { %16633 = vmatpush3.bf16.msra.mxu0 %v16630_v46  ;;  %v24027_v46 = vld [vmem:[#allocation51_spill] sm:$0xff] }
 0x968   :  { %15890 = vmatmul.mubr.msk.f32.vlgmr.msra.gmra.mrb[136].mxu1 %vm6179_vm3, %v7531_v33  ;;  %v24033_v33 = vld [vmem:[#allocation161_spill] sm:$0xff] }
 0x969   :  { %15903 = vmatprep.mubr.msk.f32.mxu1 %vm6179_vm3, %v7537_v0 }
 0x96a   :  { %15883 = vmatmul.mubr.msk.f32.vlgmr.msra.gmra.mrb[120].mxu0 %vm6179_vm3, %v7527_v62  ;;  %13188 = vrot.lane.b32.xlu0 %v24014_v17, %s17883_s4 }
 0x96b   :  { %17350 = vrot.lane.b32.xlu1 %v24015_v55, %s17881_s14  ;;  %15896 = vmatprep.mubr.msk.f32.mxu0 %vm6179_vm3, %v7533_v15 }
 0x96e   :  { %13316 = vrot.lane.b32.xlu0 %v24016_v27, %s17884_s1  ;;  %v24034_v27 = vld [vmem:[#allocation64_spill] sm:$0xff] }
 0x96f   :  { %13190 = vrot.lane.b32.xlu1 %v24017_v35, %s17883_s4  ;;  %v24035_v35 = vld [vmem:[#allocation120_spill] sm:$0xff] }
 0x972   :  { %13444 = vrot.lane.b32.xlu0 %v24018_v21, %s17885_s30 }
 0x973   :  { %13318 = vrot.lane.b32.xlu1 %v24019_v37, %s17884_s1 }
 0x976   :  { %13192 = vrot.lane.b32.xlu0 %v24020_v23, %s17883_s4 }
 0x977   :  { %13446 = vrot.lane.b32.xlu1 %v24021_v36, %s17885_s30  ;;  %v24037_v36 = vld [vmem:[#allocation9_spill] sm:$0xff] }
 0x97a   :  { %13320 = vrot.lane.b32.xlu0 %v24022_v10, %s17884_s1 }
 0x97b   :  { %13194 = vrot.lane.b32.xlu1 %v24023_v41, %s17883_s4 }
 0x97e   :  { %13448 = vrot.lane.b32.xlu0 %v24024_v8, %s17885_s30 }
 0x97f   :  { %13322 = vrot.lane.b32.xlu1 %v24025_v56, %s17884_s1 }
 0x982   :  { %13196 = vrot.lane.b32.xlu0 %v24026_v51, %s17883_s4 }
 0x983   :  { %13450 = vrot.lane.b32.xlu1 %v24027_v46, %s17885_s30  ;;  %v24039_v46 = vld [vmem:[#allocation41_spill] sm:$0xff] }
 0x986   :  { %13324 = vrot.lane.b32.xlu0 %v24028_v9, %s17884_s1  ;;  %v17815_v9 = vpop.eup %17814  ;;  %17846 = vrcp.f32 %v22242_v61 }
 0x987   :  { %13198 = vrot.lane.b32.xlu1 %v24029_v1, %s17883_s4 }
 0x98a   :  { %13452 = vrot.lane.b32.xlu0 %v24030_v13, %s17885_s30  ;;  %v17817_v13 = vpop.eup %17816 }
 0x98b   :  { %13326 = vrot.lane.b32.xlu1 %v24031_v24, %s17884_s1  ;;  %v17819_v24 = vpop.eup %17818 }
 0x98e   :  { %13200 = vrot.lane.b32.xlu0 %v24032_v28, %s17883_s4  ;;  %v17821_v28 = vpop.eup %17820 }
 0x98f   :  { %13454 = vrot.lane.b32.xlu1 %v24033_v33, %s17885_s30  ;;  %v24040_v33 = vld [vmem:[#allocation163_spill] sm:$0xff] }
 0x990   :  { %v22304_v0 = vpop.xlane.xlu0 %7312  ;;  %v22306_v62 = vpop.f32.mrb[130].mxu1 }
 0x991   :  { %v22308_v15 = vpop.f32.mrb[131].mxu1  ;;  %v22310_v17 = vpop.xlane.xlu1 %7309 }
 0x992   :  { %v22313_v55 = vpop.f32.mrb[114].mxu0  ;;  %13328 = vrot.lane.b32.xlu0 %v24034_v27, %s17884_s1  ;;  %v24041_v27 = vld [vmem:[#allocation162_spill] sm:$0xff]  ;;  %17848 = vrcp.f32 %v22310_v17 }
 0x993   :  { %13202 = vrot.lane.b32.xlu1 %v24035_v35, %s17883_s4  ;;  %v22320_v21 = vpop.f32.mrb[115].mxu0  ;;  %v7539_v35 = vmul.f32 %v17815_v9, %v21868_v31  ;;  %v24045_v31 = vld [vmem:[#allocation8_spill] sm:$0xff]  ;;  %v24053_v9 = vld [vmem:[#allocation31_spill] sm:$0xff]  ;;  %17850 = vrcp.f32 %v22239_v34 }
 0x994   :  { %v22323_v37 = vpop.xlane.xlu0 %7318  ;;  %17852 = vrcp.f32 %v22304_v0 }
 0x995   :  { %v22326_v23 = vpop.xlane.xlu1 %7315 }
 0x996   :  { %13456 = vrot.lane.b32.xlu0 %v24036_v12, %s17885_s30  ;;  %v7545_v12 = vmul.f32 %v17817_v13, %v21928_v53  ;;  %v24046_v53 = vld [vmem:[#allocation33_spill] sm:$0xff]  ;;  %v24055_v13 = vld [vmem:[#allocation131_spill] sm:$0xff] }
 0x997   :  { %13330 = vrot.lane.b32.xlu1 %v24037_v36, %s17884_s1  ;;  %v24042_v36 = vld [vmem:[#allocation12_spill] sm:$0xff] }
 0x998   :  { %v17291_v29 = vpop.permute.xlu0 %17290 }
 0x999   :  { %v17293_v10 = vunpack.i.h.bf16 %v17291_v29  ;;  %v17292_v41 = vunpack.i.l.bf16 %v17291_v29  ;;  %v17286_v8 = vpop.permute.xlu1 %17285  ;;  %v7535_v29 = vmul.f32 %v17819_v24, %v24042_v36  ;;  %v24056_v24 = vld [vmem:[#allocation128_spill] sm:$0xff]  ;;  %v24062_v36 = vld [vmem:[#allocation197_spill] sm:$0xff] }
 0x99a   :  { %v17288_v56 = vunpack.i.h.bf16 %v17286_v8  ;;  %v17287_v51 = vunpack.i.l.bf16 %v17286_v8  ;;  %13204 = vrot.lane.b32.xlu0 %v24038_v20, %s17883_s4  ;;  %v24044_v8 = vld [vmem:[#allocation135_spill] sm:$0xff] }
 0x99b   :  { %13458 = vrot.lane.b32.xlu1 %v24039_v46, %s17885_s30  ;;  %v16642_v22 = vpack.c.bf16 %v17293_v10, %v17292_v41  ;;  %v7541_v10 = vmul.f32 %v17821_v28, %v21920_v45  ;;  %v24043_v41 = vld [vmem:[#allocation65_spill] sm:$0xff]  ;;  %v24048_v45 = vld [vmem:[#allocation15_spill] sm:$0xff]  ;;  %v24051_v46 = vld [vmem:[#allocation150_spill] sm:$0xff] }
 0x99c   :  { %v16638_v1 = vpack.c.bf16 %v17288_v56, %v17287_v51  ;;  %v24047_v56 = vld [vmem:[#allocation172_spill] sm:$0xff]  ;;  %v24049_v51 = vld [vmem:[#allocation42_spill] sm:$0xff]  ;;  %v24050_v20 = vld [vmem:[#allocation47_spill] sm:$0xff] }
 0x99d   :  { %16643 = vmatprep.subr.bf16.mxu1 %v16642_v22  ;;  %v24057_v28 = vld [vmem:[#allocation171_spill] sm:$0xff] }
 0x99e   :  { %16639 = vmatprep.subr.bf16.mxu0 %v16638_v1  ;;  %16645 = vmatpush3.bf16.msra.mxu1 %v16642_v22  ;;  %v24052_v22 = vld [vmem:[#allocation189_spill] sm:$0xff] }
 0x99f   :  { %13206 = vrot.lane.b32.xlu1 %v24040_v33, %s17883_s4  ;;  %13332 = vrot.lane.b32.xlu0 %v24041_v27, %s17884_s1  ;;  %v24058_v33 = vld [vmem:[#allocation153_spill] sm:$0xff] }
 0x9a0   :  { %16641 = vmatpush3.bf16.msra.mxu0 %v16638_v1  ;;  %v24054_v1 = vld [vmem:[#allocation175_spill] sm:$0xff]  ;;  %v24059_v27 = vld [vmem:[#allocation57_spill] sm:$0xff] }
 0x9a1   :  { %15904 = vmatmul.mubr.msk.f32.vlgmr.msra.gmra.mrb[138].mxu1 %vm6179_vm3, %v7539_v35  ;;  %v24060_v35 = vld [vmem:[#allocation136_spill] sm:$0xff] }
 0x9a2   :  { %15917 = vmatprep.mubr.msk.f32.mxu1 %vm6179_vm3, %v7545_v12  ;;  %v24061_v12 = vld [vmem:[#allocation36_spill] sm:$0xff] }
 0x9a3   :  { %15897 = vmatmul.mubr.msk.f32.vlgmr.msra.gmra.mrb[122].mxu0 %vm6179_vm3, %v7535_v29  ;;  %13334 = vrot.lane.b32.xlu1 %v24043_v41, %s17884_s1 }
 0x9a4   :  { %13460 = vrot.lane.b32.xlu0 %v24044_v8, %s17885_s30  ;;  %15910 = vmatprep.mubr.msk.f32.mxu0 %vm6179_vm3, %v7541_v10 }
 0x9a7   :  { %13462 = vrot.lane.b32.xlu1 %v24045_v31, %s17885_s30  ;;  %v24063_v31 = vld [vmem:[#allocation200_spill] sm:$0xff] }
 0x9a8   :  { %13208 = vrot.lane.b32.xlu0 %v24046_v53, %s17883_s4 }
 0x9ab   :  { %13210 = vrot.lane.b32.xlu1 %v24047_v56, %s17883_s4 }
 0x9ac   :  { %13336 = vrot.lane.b32.xlu0 %v24048_v45, %s17884_s1 }
 0x9af   :  { %13338 = vrot.lane.b32.xlu1 %v24049_v51, %s17884_s1 }
 0x9b0   :  { %13464 = vrot.lane.b32.xlu0 %v24050_v20, %s17885_s30 }
 0x9b3   :  { %13466 = vrot.lane.b32.xlu1 %v24051_v46, %s17885_s30 }
 0x9b4   :  { %13212 = vrot.lane.b32.xlu0 %v24052_v22, %s17883_s4  ;;  %v17823_v22 = vpop.eup %17822  ;;  %17854 = vrcp.f32 %v22326_v23 }
 0x9b5   :  { %v7547_v47 = vmul.f32 %v17823_v22, %v24066_v54 }
 0x9b7   :  { %13214 = vrot.lane.b32.xlu1 %v24053_v9, %s17883_s4 }
 0x9b8   :  { %13340 = vrot.lane.b32.xlu0 %v24054_v1, %s17884_s1  ;;  %v17825_v1 = vpop.eup %17824 }
 0x9bb   :  { %13342 = vrot.lane.b32.xlu1 %v24055_v13, %s17884_s1 }
 0x9bc   :  { %13468 = vrot.lane.b32.xlu0 %v24056_v24, %s17885_s30  ;;  %v17827_v24 = vpop.eup %17826 }
 0x9bf   :  { %13470 = vrot.lane.b32.xlu1 %v24057_v28, %s17885_s30  ;;  %v17829_v28 = vpop.eup %17828 }
 0x9c0   :  { %13216 = vrot.lane.b32.xlu0 %v24058_v33, %s17883_s4 }
 0x9c3   :  { %13218 = vrot.lane.b32.xlu1 %v24059_v27, %s17883_s4 }
 0x9c4   :  { %13344 = vrot.lane.b32.xlu0 %v24060_v35, %s17884_s1 }
 0x9c7   :  { %13346 = vrot.lane.b32.xlu1 %v24061_v12, %s17884_s1 }
 0x9c8   :  { %13472 = vrot.lane.b32.xlu0 %v24062_v36, %s17885_s30  ;;  %v24067_v36 = vld [vmem:[#allocation70_spill] sm:$0xff] }
 0x9c9   :  { %v22388_v29 = vpop.xlane.xlu0 %7324  ;;  %v22390_v10 = vpop.f32.mrb[132].mxu1 }
 0x9ca   :  { %v22392_v41 = vpop.f32.mrb[133].mxu1  ;;  %v22394_v8 = vpop.xlane.xlu1 %7321 }
 0x9cb   :  { %13474 = vrot.lane.b32.xlu1 %v24063_v31, %s17885_s30  ;;  %v22399_v53 = vpop.f32.mrb[116].mxu0  ;;  %v7543_v31 = vmul.f32 %v17825_v1, %v24067_v36  ;;  %v24071_v1 = vld [vmem:[#allocation109_spill] sm:$0xff]  ;;  %17856 = vrcp.f32 %v22394_v8  ;;  %v24074_v8 = vld [vmem:[#allocation60_spill] sm:$0xff] }
 0x9cc   :  { %13220 = vrot.lane.b32.xlu0 %v21999_v32, %s17883_s4  ;;  %v22403_v56 = vpop.f32.mrb[117].mxu0  ;;  %17858 = vrcp.f32 %v22323_v37 }
 0x9cd   :  { %v22406_v45 = vpop.xlane.xlu0 %7330  ;;  %17860 = vrcp.f32 %v22388_v29 }
 0x9ce   :  { %v22409_v51 = vpop.xlane.xlu1 %7327 }
 0x9cf   :  { %13222 = vrot.lane.b32.xlu1 %v21996_v14, %s17883_s4 }
 0x9d0   :  { %13348 = vrot.lane.b32.xlu0 %v22063_v6, %s17884_s1 }
 0x9d1   :  { %v17301_v49 = vpop.permute.xlu0 %17300 }
 0x9d2   :  { %v17303_v32 = vunpack.i.h.bf16 %v17301_v49  ;;  %v17302_v20 = vunpack.i.l.bf16 %v17301_v49  ;;  %v17296_v2 = vpop.permute.xlu1 %17295  ;;  %v7553_v49 = vmul.f32 %v17827_v24, %v24068_v42  ;;  %v24075_v42 = vld [vmem:[#allocation199_spill] sm:$0xff] }
 0x9d3   :  { %v17298_v46 = vunpack.i.h.bf16 %v17296_v2  ;;  %v17297_v4 = vunpack.i.l.bf16 %v17296_v2  ;;  %13350 = vrot.lane.b32.xlu1 %v22060_v58, %s17884_s1  ;;  %v24065_v58 = vld [vmem:[#allocation140_spill] sm:$0xff] }
 0x9d4   :  { %13476 = vrot.lane.b32.xlu0 %v24064_v59, %s17885_s30  ;;  %v16650_v14 = vpack.c.bf16 %v17303_v32, %v17302_v20  ;;  %v17831_v32 = vpop.eup %17830  ;;  %v7549_v20 = vmul.f32 %v17829_v28, %v24069_v50  ;;  %17862 = vrcp.f32 %v22409_v51 }
 0x9d5   :  { %v17316_v6 = vpop.permute.xlu0 %17315  ;;  %v16646_v9 = vpack.c.bf16 %v17298_v46, %v17297_v4  ;;  %v17833_v61 = vpop.eup %17832  ;;  %17864 = vrcp.f32 %v22406_v45  ;;  %v24077_v45 = vld [vmem:[#allocation155_spill] sm:$0xff] }
 0x9d6   :  { %16651 = vmatprep.subr.bf16.mxu1 %v16650_v14  ;;  %v17306_v26 = vpop.permute.xlu1 %17305  ;;  %v17318_v33 = vunpack.i.h.bf16 %v17316_v6  ;;  %v17317_v57 = vunpack.i.l.bf16 %v17316_v6  ;;  %v24070_v6 = vld [vmem:[#allocation177_spill] sm:$0xff] }
 0x9d7   :  { %v17308_v11 = vunpack.i.h.bf16 %v17306_v26  ;;  %v17307_v13 = vunpack.i.l.bf16 %v17306_v26  ;;  %13478 = vrot.lane.b32.xlu1 %v24065_v58, %s17885_s30  ;;  %16647 = vmatprep.subr.bf16.mxu0 %v16646_v9 }
 0x9d8   :  { %13224 = vrot.lane.b32.xlu0 %v22111_v19, %s17883_s4  ;;  %16653 = vmatpush3.bf16.msra.mxu1 %v16650_v14  ;;  %v17835_v14 = vpop.eup %17834 }
 0x9d9   :  { %16649 = vmatpush3.bf16.msra.mxu0 %v16646_v9  ;;  %v17326_v27 = vpop.permute.xlu0 %17325  ;;  %v16654_v35 = vpack.c.bf16 %v17308_v11, %v17307_v13  ;;  %v7551_v9 = vmul.f32 %v17831_v32, %v24070_v6  ;;  %v17837_v26 = vpop.eup %17836  ;;  %v7557_v11 = vmul.f32 %v17833_v61, %v24071_v1  ;;  %v24078_v6 = vld [vmem:[#allocation179_spill] sm:$0xff] }
 0x9da   :  { %v17311_v12 = vpop.permute.xlu1 %17310  ;;  %v17328_v2 = vunpack.i.h.bf16 %v17326_v27  ;;  %v17327_v46 = vunpack.i.l.bf16 %v17326_v27  ;;  %v17839_v13 = vpop.eup %17838  ;;  %v24073_v27 = vld [vmem:[#allocation37_spill] sm:$0xff] }
 0x9db   :  { %15918 = vmatmul.mubr.msk.f32.vlgmr.msra.gmra.mrb[140].mxu1 %vm6179_vm3, %v7547_v47  ;;  %v17313_v19 = vunpack.i.h.bf16 %v17311_v12  ;;  %v17312_v25 = vunpack.i.l.bf16 %v17311_v12  ;;  %13226 = vrot.lane.b32.xlu1 %v22108_v38, %s17883_s4  ;;  %v16662_v38 = vpack.c.bf16 %v17318_v33, %v17317_v57  ;;  %v17841_v24 = vpop.eup %17840  ;;  %v24072_v47 = vld [vmem:[#allocation40_spill] sm:$0xff]  ;;  %v7561_v36 = vmul.f32 %v17839_v13, %v24074_v8 }
 0x9dc   :  { %13352 = vrot.lane.b32.xlu0 %v22175_v43, %s17884_s1  ;;  %15911 = vmatmul.mubr.msk.f32.vlgmr.msra.gmra.mrb[124].mxu0 %vm6179_vm3, %v7543_v31  ;;  %v16670_v58 = vpack.c.bf16 %v17328_v2, %v17327_v46  ;;  %v7555_v28 = vmul.f32 %v17835_v14, %v24072_v47  ;;  %v17843_v33 = vpop.eup %17842  ;;  %v24076_v2 = vld [vmem:[#allocation67_spill] sm:$0xff]  ;;  %v24081_v47 = vld [vmem:[#allocation194_spill] sm:$0xff] }
 0x9dd   :  { %16655 = vmatprep.subr.bf16.mxu0 %v16654_v35  ;;  %15931 = vmatprep.mubr.msk.f32.mxu1 %vm6179_vm3, %v7553_v49  ;;  %v17336_v4 = vpop.permute.xlu0 %17335  ;;  %v16658_v59 = vpack.c.bf16 %v17313_v19, %v17312_v25  ;;  %v17845_v12 = vpop.eup %17844  ;;  %v7563_v49 = vmul.f32 %v17843_v33, %v24075_v42  ;;  %v24082_v33 = vld [vmem:[#allocation24_spill] sm:$0xff] }
 0x9de   :  { %16657 = vmatpush3.bf16.msra.mxu0 %v16654_v35  ;;  %15924 = vmatprep.mubr.msk.f32.mxu0 %vm6179_vm3, %v7549_v20  ;;  %v17321_v17 = vpop.permute.xlu1 %17320  ;;  %v17338_v54 = vunpack.i.h.bf16 %v17336_v4  ;;  %v17337_v0 = vunpack.i.l.bf16 %v17336_v4  ;;  %v7559_v35 = vmul.f32 %v17837_v26, %v24073_v27  ;;  %v17847_v31 = vpop.eup %17846  ;;  %v24079_v26 = vld [vmem:[#allocation56_spill] sm:$0xff] }
 0x9df   :  { %16663 = vmatprep.subr.bf16.mxu0 %v16662_v38  ;;  %v17323_v43 = vunpack.i.h.bf16 %v17321_v17  ;;  %v17322_v22 = vunpack.i.l.bf16 %v17321_v17  ;;  %13354 = vrot.lane.b32.xlu1 %v22172_v7, %s17884_s1  ;;  %v17849_v25 = vpop.eup %17848  ;;  %v7569_v46 = vmul.f32 %v17847_v31, %v24076_v2 }
 0x9e0   :  { %13480 = vrot.lane.b32.xlu0 %v22167_v3, %s17885_s30  ;;  %16659 = vmatprep.subr.bf16.mxu1 %v16658_v59  ;;  %v17851_v51 = vpop.eup %17850 }
 0x9e1   :  { %15925 = vmatmul.mubr.msk.f32.vlgmr.msra.gmra.mrb[126].mxu0 %vm6179_vm3, %v7551_v9  ;;  %16661 = vmatpush3.bf16.msra.mxu1 %v16658_v59  ;;  %v17346_v34 = vpop.permute.xlu0 %17345  ;;  %v16666_v7 = vpack.c.bf16 %v17323_v43, %v17322_v22  ;;  %v7573_v59 = vmul.f32 %v17849_v25, %v24077_v45  ;;  %v7571_v9 = vmul.f32 %v17851_v51, %v24078_v6 }
 0x9e2   :  { %16665 = vmatpush3.bf16.msra.mxu0 %v16662_v38  ;;  %15938 = vmatprep.mubr.msk.f32.mxu0 %vm6179_vm3, %v7557_v11  ;;  %v17331_v3 = vpop.permute.xlu1 %17330  ;;  %v17348_v50 = vunpack.i.h.bf16 %v17346_v34  ;;  %v17347_v20 = vunpack.i.l.bf16 %v17346_v34  ;;  %v17853_v38 = vpop.eup %17852  ;;  %v24080_v34 = vld [vmem:[#allocation156_spill] sm:$0xff] }
 0x9e3   :  { %16671 = vmatprep.subr.bf16.mxu0 %v16670_v58  ;;  %v17333_v23 = vunpack.i.h.bf16 %v17331_v3  ;;  %v17332_v57 = vunpack.i.l.bf16 %v17331_v3  ;;  %13482 = vrot.lane.b32.xlu1 %v22164_v39, %s17885_s30  ;;  %v7565_v39 = vmul.f32 %v17841_v24, %v22088_v44  ;;  %v7567_v44 = vmul.f32 %v17845_v12, %v22086_v60  ;;  %v17855_v14 = vpop.eup %17854  ;;  %v13637_v24 = vld [vmem:[%s22896_s2] sm:$0xff] }
 0x9e4   :  { %13228 = vrot.lane.b32.xlu0 %v22224_v30, %s17883_s4  ;;  %15932 = vmatmul.mubr.msk.f32.vlgmr.msra.gmra.mrb[142].mxu1 %vm6179_vm3, %v7555_v28  ;;  %v16678_v30 = vpack.c.bf16 %v17338_v54, %v17337_v0  ;;  %v17857_v22 = vpop.eup %17856  ;;  %v7575_v1 = vmul.f32 %v17853_v38, %v24079_v26 }
 0x9e5   :  { %15939 = vmatmul.mubr.msk.f32.vlgmr.msra.gmra.mrb[128].mxu0 %vm6179_vm3, %v7559_v35  ;;  %16667 = vmatprep.subr.bf16.mxu1 %v16666_v7  ;;  %v13189_v19 = vpop.permute.xlu0 %13188  ;;  %v16674_v32 = vpack.c.bf16 %v17333_v23, %v17332_v57  ;;  %v17859_v13 = vpop.eup %17858  ;;  %v13639_v35 = vld [vmem:[%s22896_s2 + $0x10] sm:$0xff] }
 0x9e6   :  { %16669 = vmatpush3.bf16.msra.mxu1 %v16666_v7  ;;  %15945 = vmatprep.mubr.msk.f32.mxu1 %vm6179_vm3, %v7561_v36  ;;  %v17341_v37 = vpop.permute.xlu1 %17340  ;;  %v17861_v54 = vpop.eup %17860  ;;  %v13540_v28 = vsel %vm614_vm1, %v24081_v47, %v13189_v19  ;;  %v7579_v23 = vmul.f32 %v17859_v13, %v24082_v33  ;;  %v24089_v33 = vld [vmem:[#allocation55_spill] sm:$0xff] }
 0x9e7   :  { %16673 = vmatpush3.bf16.msra.mxu0 %v16670_v58  ;;  %15952 = vmatprep.mubr.msk.f32.mxu0 %vm6179_vm3, %v7565_v39  ;;  %v17343_v29 = vunpack.i.h.bf16 %v17341_v37  ;;  %v17342_v61 = vunpack.i.l.bf16 %v17341_v37  ;;  %v7577_v58 = vmul.f32 %v17855_v14, %v24080_v34  ;;  %v17863_v3 = vpop.eup %17862  ;;  %v7583_v36 = vmul.f32 %v17861_v54, %v22198_v48  ;;  %v24084_v37 = vld [vmem:[#allocation19_spill] sm:$0xff]  ;;  %v24086_v14 = vld [vmem:[#allocation72_spill] sm:$0xff] }
 0x9e8   :  { %16679 = vmatprep.subr.bf16.mxu0 %v16678_v30  ;;  %13230 = vrot.lane.b32.xlu1 %v22222_v40, %s17883_s4  ;;  %v16686_v40 = vpack.c.bf16 %v17348_v50, %v17347_v20  ;;  %v17865_v12 = vpop.eup %17864  ;;  %v7585_v19 = vmul.f32 %v17863_v3, %v22208_v5  ;;  %v24083_v5 = vld [vmem:[#allocation85_spill] sm:$0xff] }
 0x9e9   :  { %13356 = vrot.lane.b32.xlu0 %v22320_v21, %s17884_s1  ;;  %15946 = vmatmul.mubr.msk.f32.vlgmr.msra.gmra.mrb[144].mxu1 %vm6179_vm3, %v7563_v49  ;;  %v13317_v4 = vpop.permute.xlu0 %13316  ;;  %v16682_v21 = vpack.c.bf16 %v17343_v29, %v17342_v61 }
 0x9ea   :  { %15953 = vmatmul.mubr.msk.f32.vlgmr.msra.gmra.mrb[130].mxu0 %vm6179_vm3, %v7567_v44  ;;  %16675 = vmatprep.subr.bf16.mxu1 %v16674_v32  ;;  %v17351_v17 = vpop.permute.xlu1 %17350  ;;  %v13572_v8 = vsel %vm6179_vm3, %v13540_v28, %v13317_v4  ;;  %v24085_v44 = vld [vmem:[#allocation83_spill] sm:$0xff] }
 0x9eb   :  { %16677 = vmatpush3.bf16.msra.mxu1 %v16674_v32  ;;  %15959 = vmatprep.mubr.msk.f32.mxu1 %vm6179_vm3, %v7569_v46  ;;  %v17353_v60 = vunpack.i.h.bf16 %v17351_v17  ;;  %v17352_v43 = vunpack.i.l.bf16 %v17351_v17 }
 0x9ec   :  { %16681 = vmatpush3.bf16.msra.mxu0 %v16678_v30  ;;  %15966 = vmatprep.mubr.msk.f32.mxu0 %vm6179_vm3, %v7573_v59 }
 0x9ed   :  { %16687 = vmatprep.subr.bf16.mxu0 %v16686_v40  ;;  %13358 = vrot.lane.b32.xlu1 %v22313_v55, %s17884_s1  ;;  %v13445_v11 = vpop.permute.xlu0 %13444  ;;  %v13638_v55 = vld [vmem:[%s22896_s2 + $0x8] sm:$0xff]  ;;  %v16690_v0 = vpack.c.bf16 %v17353_v60, %v17352_v43 }
 0x9ee   :  { %13484 = vrot.lane.b32.xlu0 %v22308_v15, %s17885_s30  ;;  %15960 = vmatmul.mubr.msk.f32.vlgmr.msra.gmra.mrb[146].mxu1 %vm6179_vm3, %v7571_v9  ;;  %v13191_v7 = vpop.permute.xlu1 %13190  ;;  %v7581_v15 = vmul.f32 %v17857_v22, %v22200_v52  ;;  %v16694_v57 = vpack.c.bf16 %v13638_v55, %v13637_v24  ;;  %v13640_v52 = vld [vmem:[%s22896_s2 + $0x18] sm:$0xff]  ;;  %v13605_v39 = vsel %vm13604_vm4, %v13572_v8, %v13445_v11  ;;  %v24088_v24 = vld [vmem:[#allocation27_spill] sm:$0xff] }
 0x9ef   :  { %15967 = vmatmul.mubr.msk.f32.vlgmr.msra.gmra.mrb[132].mxu0 %vm6179_vm3, %v7575_v1  ;;  %16683 = vmatprep.subr.bf16.mxu1 %v16682_v21  ;;  %v16698_v25 = vpack.c.bf16 %v13640_v52, %v13639_v35  ;;  %v13541_v30 = vsel %vm614_vm1, %v24083_v5, %v13191_v7  ;;  %v24087_v1 = vld [vmem:[#allocation112_spill] sm:$0xff] }
 0x9f0   :  { %16685 = vmatpush3.bf16.msra.mxu1 %v16682_v21  ;;  %15973 = vmatprep.mubr.msk.f32.mxu1 %vm6179_vm3, %v7577_v58 }
 0x9f1   :  { %16689 = vmatpush3.bf16.msra.mxu0 %v16686_v40  ;;  %15980 = vmatprep.mubr.msk.f32.mxu0 %vm6179_vm3, %v7581_v15  ;;  %v13193_v27 = vpop.permute.xlu0 %13192 }
 0x9f2   :  { %13486 = vrot.lane.b32.xlu1 %v22306_v62, %s17885_s30  ;;  %13232 = vrot.lane.b32.xlu0 %v22392_v41, %s17883_s4  ;;  %v13319_v31 = vpop.permute.xlu1 %13318  ;;  %v7587_v62 = vmul.f32 %v17865_v12, %v22204_v18  ;;  %v13542_v42 = vsel %vm614_vm1, %v24084_v37, %v13193_v27  ;;  %v24090_v12 = vld [vmem:[#allocation29_spill] sm:$0xff] }
 0x9f3   :  { %15974 = vmatmul.mubr.msk.f32.vlgmr.msra.gmra.mrb[148].mxu1 %vm6179_vm3, %v7579_v23  ;;  %16691 = vmatprep.subr.bf16.mxu1 %v16690_v0  ;;  %v13573_v49 = vsel %vm6179_vm3, %v13541_v30, %v13319_v31 }
 0x9f4   :  { %15981 = vmatmul.mubr.msk.f32.vlgmr.msra.gmra.mrb[134].mxu0 %vm6179_vm3, %v7583_v36  ;;  %16693 = vmatpush3.bf16.msra.mxu1 %v16690_v0 }
 0x9f5   :  { %15987 = vmatprep.mubr.msk.f32.mxu1 %vm6179_vm3, %v7585_v19  ;;  %16695 = vmatprep.subr.bf16.mxu0 %v16694_v57  ;;  %v13321_v41 = vpop.permute.xlu0 %13320 }
 0x9f6   :  { %15998 = vmatprep.mubr.msk.f32.mxu0 %vm56_vm0, %v13605_v39  ;;  %16697 = vmatpush3.bf16.msra.mxu0 %v16694_v57  ;;  %v13447_v48 = vpop.permute.xlu1 %13446  ;;  %v13574_v32 = vsel %vm6179_vm3, %v13542_v42, %v13321_v41  ;;  %v24091_v41 = vld [vmem:[#allocation111_spill] sm:$0xff] }
 0x9f7   :  { %13234 = vrot.lane.b32.xlu1 %v22390_v10, %s17883_s4  ;;  %15988 = vmatmul.mubr.msk.f32.vlgmr.msra.gmra.mrb[150].mxu1 %vm6179_vm3, %v7587_v62  ;;  %v13606_v50 = vsel %vm13604_vm4, %v13573_v49, %v13447_v48  ;;  %v24092_v49 = vld [vmem:[#allocation173_spill] sm:$0xff] }
 0x9f8   :  { %16699 = vmatprep.subr.bf16.mxu0 %v16698_v25 }
 0x9f9   :  { %v13449_v18 = vpop.permute.xlu0 %13448 }
 0x9fa   :  { %16701 = vmatpush3.bf16.msra.mxu0 %v16698_v25  ;;  %v13195_v20 = vpop.permute.xlu1 %13194  ;;  %v13607_v10 = vsel %vm13604_vm4, %v13574_v32, %v13449_v18 }
 0x9fb   :  { %v13543_v51 = vsel %vm614_vm1, %v24085_v44, %v13195_v20  ;;  %v24093_v44 = vld [vmem:[#allocation124_spill] sm:$0xff] }
 0x9fd   :  { %15999 = vmatmul.mubr.msk.f32.vlgmr.msra.gmra.mrb[136].mxu0 %vm56_vm0, %v13606_v50  ;;  %v13197_v29 = vpop.permute.xlu0 %13196 }
 0x9fe   :  { %16001 = vmatprep.mubr.msk.f32.mxu0 %vm56_vm0, %v13607_v10  ;;  %v13323_v61 = vpop.permute.xlu1 %13322  ;;  %v13544_v40 = vsel %vm614_vm1, %v24086_v14, %v13197_v29 }
 0x9ff   :  { %v13575_v46 = vsel %vm6179_vm3, %v13543_v51, %v13323_v61 }
 0xa01   :  { %v13325_v2 = vpop.permute.xlu0 %13324 }
 0xa02   :  { %v15877_v4 = vpop.f32.mrb[134].mxu1  ;;  %v13451_v38 = vpop.permute.xlu1 %13450  ;;  %v13576_v43 = vsel %vm6179_vm3, %v13544_v40, %v13325_v2 }
 0xa03   :  { %v13608_v45 = vsel %vm13604_vm4, %v13575_v46, %v13451_v38  ;;  %v15870_v59 = vpop.f32.mrb[118].mxu0  ;;  %v11755_v17 = vpop.f32.mrb[135].mxu1 }
 0xa04   :  { %16002 = vmatmul.mubr.msk.f32.gmra.mrb[138].mxu0 %vm56_vm0, %v13608_v45  ;;  %13362 = vrot.lane.b32.xlu1 %v15870_v59, %s17884_s1  ;;  %v11668_v60 = vpop.f32.mrb[119].mxu0  ;;  %v24094_v45 = vld [vmem:[#allocation53_spill] sm:$0xff] }
 0xa05   :  { %v13453_v21 = vpop.permute.xlu0 %13452  ;;  %13360 = vrot.lane.b32.xlu0 %v11668_v60, %s17884_s1 }
 0xa06   :  { %v13609_v22 = vsel %vm13604_vm4, %v13576_v43, %v13453_v21  ;;  %v13199_v6 = vpop.permute.xlu1 %13198 }
 0xa07   :  { %16004 = vmatprep.mubr.msk.f32.mxu0 %vm56_vm0, %v13609_v22  ;;  %v13545_v11 = vsel %vm614_vm1, %v24087_v1, %v13199_v6 }
 0xa08   :  { %13490 = vrot.lane.b32.xlu1 %v15877_v4, %s17885_s30 }
 0xa09   :  { %v13201_v9 = vpop.permute.xlu0 %13200  ;;  %13488 = vrot.lane.b32.xlu0 %v11755_v17, %s17885_s30 }
 0xa0a   :  { %v13327_v26 = vpop.permute.xlu1 %13326  ;;  %v13546_v55 = vsel %vm614_vm1, %v24088_v24, %v13201_v9  ;;  %v24095_v9 = vld [vmem:[#allocation73_spill] sm:$0xff]  ;;  %v24096_v24 = vld [vmem:[#allocation32_spill] sm:$0xff] }
 0xa0b   :  { %v13577_v34 = vsel %vm6179_vm3, %v13545_v11, %v13327_v26 }
 0xa0d   :  { %v13329_v13 = vpop.permute.xlu0 %13328 }
 0xa0e   :  { %v13455_v58 = vpop.permute.xlu1 %13454  ;;  %v13578_v54 = vsel %vm6179_vm3, %v13546_v55, %v13329_v13 }
 0xa0f   :  { %v13610_v7 = vsel %vm13604_vm4, %v13577_v34, %v13455_v58 }
 0xa10   :  { %16005 = vmatmul.mubr.msk.f32.gmra.mrb[140].mxu0 %vm56_vm0, %v13610_v7 }
 0xa11   :  { %v13457_v0 = vpop.permute.xlu0 %13456 }
 0xa12   :  { %v13611_v15 = vsel %vm13604_vm4, %v13578_v54, %v13457_v0  ;;  %v13203_v3 = vpop.permute.xlu1 %13202 }
 0xa13   :  { %16007 = vmatprep.mubr.msk.f32.mxu0 %vm56_vm0, %v13611_v15  ;;  %v13547_v23 = vsel %vm614_vm1, %v24089_v33, %v13203_v3  ;;  %v24097_v33 = vld [vmem:[#allocation59_spill] sm:$0xff] }
 0xa15   :  { %v13205_v47 = vpop.permute.xlu0 %13204 }
 0xa16   :  { %v13331_v28 = vpop.permute.xlu1 %13330  ;;  %v13548_v8 = vsel %vm614_vm1, %v24090_v12, %v13205_v47  ;;  %v24098_v12 = vld [vmem:[#allocation132_spill] sm:$0xff] }
 0xa17   :  { %v13579_v27 = vsel %vm6179_vm3, %v13547_v23, %v13331_v28 }
 0xa19   :  { %v13333_v57 = vpop.permute.xlu0 %13332 }
 0xa1a   :  { %v13459_v35 = vpop.permute.xlu1 %13458  ;;  %v13580_v36 = vsel %vm6179_vm3, %v13548_v8, %v13333_v57 }
 0xa1b   :  { %v13612_v52 = vsel %vm13604_vm4, %v13579_v27, %v13459_v35 }
 0xa1c   :  { %16008 = vmatmul.mubr.msk.f32.gmra.mrb[142].mxu0 %vm56_vm0, %v13612_v52 }
 0xa1d   :  { %v13461_v31 = vpop.permute.xlu0 %13460 }
 0xa1e   :  { %v13613_v39 = vsel %vm13604_vm4, %v13580_v36, %v13461_v31  ;;  %v13207_v19 = vpop.permute.xlu1 %13206 }
 0xa1f   :  { %16010 = vmatprep.mubr.msk.f32.mxu0 %vm56_vm0, %v13613_v39  ;;  %v13549_v48 = vsel %vm614_vm1, %v24091_v41, %v13207_v19  ;;  %v24099_v41 = vld [vmem:[#allocation50_spill] sm:$0xff] }
 0xa21   :  { %v13209_v25 = vpop.permute.xlu0 %13208 }
 0xa22   :  { %v13335_v62 = vpop.permute.xlu1 %13334  ;;  %v13550_v18 = vsel %vm614_vm1, %v24092_v49, %v13209_v25  ;;  %v24100_v49 = vld [vmem:[#allocation61_spill] sm:$0xff] }
 0xa23   :  { %v13581_v30 = vsel %vm6179_vm3, %v13549_v48, %v13335_v62 }
 0xa25   :  { %v13337_v5 = vpop.permute.xlu0 %13336 }
 0xa26   :  { %v13463_v37 = vpop.permute.xlu1 %13462  ;;  %v13582_v32 = vsel %vm6179_vm3, %v13550_v18, %v13337_v5 }
 0xa27   :  { %v13614_v42 = vsel %vm13604_vm4, %v13581_v30, %v13463_v37 }
 0xa28   :  { %16011 = vmatmul.mubr.msk.f32.gmra.mrb[144].mxu0 %vm56_vm0, %v13614_v42 }
 0xa29   :  { %v13465_v50 = vpop.permute.xlu0 %13464 }
 0xa2a   :  { %v13615_v20 = vsel %vm13604_vm4, %v13582_v32, %v13465_v50  ;;  %v13211_v10 = vpop.permute.xlu1 %13210 }
 0xa2b   :  { %16013 = vmatprep.mubr.msk.f32.mxu0 %vm56_vm0, %v13615_v20  ;;  %v13551_v51 = vsel %vm614_vm1, %v24093_v44, %v13211_v10  ;;  %v24101_v44 = vld [vmem:[#allocation5_spill] sm:$0xff] }
 0xa2d   :  { %v13213_v29 = vpop.permute.xlu0 %13212 }
 0xa2e   :  { %v13339_v61 = vpop.permute.xlu1 %13338  ;;  %v13552_v59 = vsel %vm614_vm1, %v24094_v45, %v13213_v29 }
 0xa2f   :  { %v13583_v46 = vsel %vm6179_vm3, %v13551_v51, %v13339_v61 }
 0xa31   :  { %v13341_v2 = vpop.permute.xlu0 %13340 }
 0xa32   :  { %v13467_v4 = vpop.permute.xlu1 %13466  ;;  %v13584_v17 = vsel %vm6179_vm3, %v13552_v59, %v13341_v2 }
 0xa33   :  { %v13616_v38 = vsel %vm13604_vm4, %v13583_v46, %v13467_v4 }
 0xa34   :  { %16014 = vmatmul.mubr.msk.f32.gmra.mrb[146].mxu0 %vm56_vm0, %v13616_v38 }
 0xa35   :  { %v13469_v14 = vpop.permute.xlu0 %13468 }
 0xa36   :  { %v13617_v40 = vsel %vm13604_vm4, %v13584_v17, %v13469_v14  ;;  %v13215_v60 = vpop.permute.xlu1 %13214 }
 0xa37   :  { %16016 = vmatprep.mubr.msk.f32.mxu0 %vm56_vm0, %v13617_v40  ;;  %v13553_v26 = vsel %vm614_vm1, %v24095_v9, %v13215_v60 }
 0xa39   :  { %v13217_v43 = vpop.permute.xlu0 %13216 }
 0xa3a   :  { %v13343_v21 = vpop.permute.xlu1 %13342  ;;  %v13554_v55 = vsel %vm614_vm1, %v24096_v24, %v13217_v43 }
 0xa3b   :  { %v15891_v22 = vpop.f32.mrb[136].mxu1  ;;  %v13585_v13 = vsel %vm6179_vm3, %v13553_v26, %v13343_v21 }
 0xa3c   :  { %v11929_v6 = vpop.f32.mrb[137].mxu1  ;;  %13238 = vrot.lane.b32.xlu1 %v15891_v22, %s17883_s4 }
 0xa3d   :  { %v22596_v1 = vpop.f32.mrb[120].mxu0  ;;  %v13345_v11 = vpop.permute.xlu0 %13344  ;;  %13236 = vrot.lane.b32.xlu0 %v11929_v6, %s17883_s4 }
 0xa3e   :  { %v22600_v34 = vpop.f32.mrb[121].mxu0  ;;  %v13471_v58 = vpop.permute.xlu1 %13470  ;;  %v13586_v54 = vsel %vm6179_vm3, %v13554_v55, %v13345_v11 }
 0xa3f   :  { %v13618_v7 = vsel %vm13604_vm4, %v13585_v13, %v13471_v58 }
 0xa40   :  { %16017 = vmatmul.mubr.msk.f32.gmra.mrb[148].mxu0 %vm56_vm0, %v13618_v7 }
 0xa41   :  { %v13473_v0 = vpop.permute.xlu0 %13472 }
 0xa42   :  { %v13619_v15 = vsel %vm13604_vm4, %v13586_v54, %v13473_v0  ;;  %v13219_v3 = vpop.permute.xlu1 %13218 }
 0xa43   :  { %16019 = vmatprep.mubr.msk.f32.mxu0 %vm56_vm0, %v13619_v15  ;;  %v13555_v23 = vsel %vm614_vm1, %v24097_v33, %v13219_v3 }
 0xa45   :  { %v13221_v47 = vpop.permute.xlu0 %13220 }
 0xa46   :  { %v13347_v28 = vpop.permute.xlu1 %13346  ;;  %v13556_v8 = vsel %vm614_vm1, %v24098_v12, %v13221_v47 }
 0xa47   :  { %v13587_v27 = vsel %vm6179_vm3, %v13555_v23, %v13347_v28 }
 0xa49   :  { %v13349_v57 = vpop.permute.xlu0 %13348 }
 0xa4a   :  { %v13475_v35 = vpop.permute.xlu1 %13474  ;;  %v13588_v36 = vsel %vm6179_vm3, %v13556_v8, %v13349_v57 }
 0xa4b   :  { %v13620_v52 = vsel %vm13604_vm4, %v13587_v27, %v13475_v35 }
 0xa4c   :  { %16020 = vmatmul.mubr.msk.f32.gmra.mrb[150].mxu0 %vm56_vm0, %v13620_v52 }
 0xa4d   :  { %v13477_v31 = vpop.permute.xlu0 %13476 }
 0xa4e   :  { %v13621_v39 = vsel %vm13604_vm4, %v13588_v36, %v13477_v31  ;;  %v13223_v19 = vpop.permute.xlu1 %13222 }
 0xa4f   :  { %16022 = vmatprep.mubr.msk.f32.mxu0 %vm56_vm0, %v13621_v39  ;;  %v13557_v48 = vsel %vm614_vm1, %v24099_v41, %v13223_v19 }
 0xa51   :  { %v13225_v25 = vpop.permute.xlu0 %13224 }
 0xa52   :  { %v13351_v62 = vpop.permute.xlu1 %13350  ;;  %v13558_v18 = vsel %vm614_vm1, %v24100_v49, %v13225_v25 }
 0xa53   :  { %v13589_v30 = vsel %vm6179_vm3, %v13557_v48, %v13351_v62 }
 0xa55   :  { %v13353_v5 = vpop.permute.xlu0 %13352 }
 0xa56   :  { %v13479_v37 = vpop.permute.xlu1 %13478  ;;  %v13590_v32 = vsel %vm6179_vm3, %v13558_v18, %v13353_v5 }
 0xa57   :  { %v13622_v42 = vsel %vm13604_vm4, %v13589_v30, %v13479_v37 }
 0xa58   :  { %16023 = vmatmul.mubr.msk.f32.gmra.mrb[152].mxu0 %vm56_vm0, %v13622_v42 }
 0xa59   :  { %v13481_v50 = vpop.permute.xlu0 %13480 }
 0xa5a   :  { %v13623_v20 = vsel %vm13604_vm4, %v13590_v32, %v13481_v50  ;;  %v13227_v10 = vpop.permute.xlu1 %13226  ;;  %v22688_v32 = vld [vmem:[%s22897_s3] ss:$0 sm:$0xff] }
 0xa5b   :  { %16025 = vmatprep.mubr.msk.f32.mxu0 %vm56_vm0, %v13623_v20  ;;  %v13559_v51 = vsel %vm614_vm1, %v24101_v44, %v13227_v10 }
 0xa5d   :  { %v13229_v29 = vpop.permute.xlu0 %13228 }
 0xa5e   :  { %v13355_v61 = vpop.permute.xlu1 %13354  ;;  %v13560_v45 = vsel %vm614_vm1, %v22232_v16, %v13229_v29 }
 0xa5f   :  { %v13591_v46 = vsel %vm6179_vm3, %v13559_v51, %v13355_v61 }
 0xa61   :  { %v13357_v2 = vpop.permute.xlu0 %13356 }
 0xa62   :  { %v13483_v4 = vpop.permute.xlu1 %13482  ;;  %v13592_v59 = vsel %vm6179_vm3, %v13560_v45, %v13357_v2 }
 0xa63   :  { %v13624_v38 = vsel %vm13604_vm4, %v13591_v46, %v13483_v4 }
 0xa64   :  { %16026 = vmatmul.mubr.msk.f32.gmra.mrb[154].mxu0 %vm56_vm0, %v13624_v38 }
 0xa65   :  { %v13485_v17 = vpop.permute.xlu0 %13484 }
 0xa66   :  { %v13625_v14 = vsel %vm13604_vm4, %v13592_v59, %v13485_v17  ;;  %v13231_v40 = vpop.permute.xlu1 %13230 }
 0xa67   :  { %16028 = vmatprep.mubr.msk.f32.mxu0 %vm56_vm0, %v13625_v14  ;;  %v13561_v43 = vsel %vm614_vm1, %v22229_v63, %v13231_v40 }
 0xa69   :  { %v13233_v9 = vpop.permute.xlu0 %13232 }
 0xa6a   :  { %v13359_v60 = vpop.permute.xlu1 %13358  ;;  %v13562_v63 = vsel %vm614_vm1, %v22403_v56, %v13233_v9 }
 0xa6b   :  { %v13593_v21 = vsel %vm6179_vm3, %v13561_v43, %v13359_v60 }
 0xa6e   :  { %v13487_v22 = vpop.permute.xlu1 %13486 }
 0xa6f   :  { %v13626_v6 = vsel %vm13604_vm4, %v13593_v21, %v13487_v22 }
 0xa70   :  { %16029 = vmatmul.mubr.msk.f32.gmra.mrb[156].mxu0 %vm56_vm0, %v13626_v6 }
 0xa72   :  { %v13235_v16 = vpop.permute.xlu1 %13234 }
 0xa73   :  { %v13563_v54 = vsel %vm614_vm1, %v22399_v53, %v13235_v16 }
 0xa74   :  { %v15905_v26 = vpop.f32.mrb[138].mxu1 }
 0xa75   :  { %v12103_v11 = vpop.f32.mrb[139].mxu1 }
 0xa76   :  { %v15898_v13 = vpop.f32.mrb[122].mxu0  ;;  %v13363_v58 = vpop.permute.xlu1 %13362 }
 0xa77   :  { %13366 = vrot.lane.b32.xlu1 %v15898_v13, %s17884_s1  ;;  %v12016_v7 = vpop.f32.mrb[123].mxu0  ;;  %v13361_v24 = vpop.permute.xlu0 %13360  ;;  %v13595_v3 = vsel %vm6179_vm3, %v13563_v54, %v13363_v58 }
 0xa78   :  { %13364 = vrot.lane.b32.xlu0 %v12016_v7, %s17884_s1  ;;  %v13594_v0 = vsel %vm6179_vm3, %v13562_v63, %v13361_v24 }
 0xa7a   :  { %v13491_v55 = vpop.permute.xlu1 %13490 }
 0xa7b   :  { %13494 = vrot.lane.b32.xlu1 %v15905_v26, %s17885_s30  ;;  %v13489_v15 = vpop.permute.xlu0 %13488  ;;  %v13628_v28 = vsel %vm13604_vm4, %v13595_v3, %v13491_v55 }
 0xa7c   :  { %v13627_v47 = vsel %vm13604_vm4, %v13594_v0, %v13489_v15  ;;  %13492 = vrot.lane.b32.xlu0 %v12103_v11, %s17885_s30 }
 0xa7d   :  { %16031 = vmatprep.mubr.msk.f32.mxu0 %vm56_vm0, %v13627_v47 }
 0xa7e   :  { %16032 = vmatmul.mubr.msk.f32.gmra.mrb[158].mxu0 %vm56_vm0, %v13628_v28 }
 0xaae   :  { %v15919_v56 = vpop.f32.mrb[140].mxu1  ;;  %v13239_v45 = vpop.permute.xlu1 %13238 }
 0xaaf   :  { %v12277_v33 = vpop.f32.mrb[141].mxu1  ;;  %13242 = vrot.lane.b32.xlu1 %v15919_v56, %s17883_s4  ;;  %v22659_v53 = vpop.f32.mrb[124].mxu0  ;;  %v13565_v21 = vsel %vm614_vm1, %v22596_v1, %v13239_v45 }
 0xab0   :  { %13240 = vrot.lane.b32.xlu0 %v12277_v33, %s17883_s4  ;;  %v22662_v23 = vpop.f32.mrb[125].mxu0  ;;  %v13237_v17 = vpop.permute.xlu0 %13236 }
 0xab1   :  { %v13564_v60 = vsel %vm614_vm1, %v22600_v34, %v13237_v17 }
 0xab4   :  { %v15926_v57 = vpop.f32.mrb[126].mxu0 }
 0xab5   :  { %13370 = vrot.lane.b32.xlu1 %v15926_v57, %s17884_s1  ;;  %v12364_v27 = vpop.f32.mrb[127].mxu0 }
 0xab6   :  { %13368 = vrot.lane.b32.xlu0 %v12364_v27, %s17884_s1 }
 0xab7   :  { %v15933_v35 = vpop.f32.mrb[142].mxu1 }
 0xab8   :  { %v22666_v52 = vpop.f32.mrb[128].mxu0  ;;  %v12451_v12 = vpop.f32.mrb[143].mxu1 }
 0xab9   :  { %13498 = vrot.lane.b32.xlu1 %v15933_v35, %s17885_s30  ;;  %v22669_v8 = vpop.f32.mrb[129].mxu0 }
 0xaba   :  { %13496 = vrot.lane.b32.xlu0 %v12451_v12, %s17885_s30 }
 0xabc   :  { %v15947_v36 = vpop.f32.mrb[144].mxu1 }
 0xabd   :  { %v15954_v31 = vpop.f32.mrb[130].mxu0  ;;  %v12625_v39 = vpop.f32.mrb[145].mxu1  ;;  %13246 = vrot.lane.b32.xlu1 %v15947_v36, %s17883_s4 }
 0xabe   :  { %v12712_v19 = vpop.f32.mrb[131].mxu0  ;;  %13244 = vrot.lane.b32.xlu0 %v12625_v39, %s17883_s4 }
 0xac1   :  { %v15961_v25 = vpop.f32.mrb[146].mxu1  ;;  %13374 = vrot.lane.b32.xlu1 %v15954_v31, %s17884_s1 }
 0xac2   :  { %v22675_v62 = vpop.f32.mrb[132].mxu0  ;;  %v12799_v41 = vpop.f32.mrb[147].mxu1  ;;  %13372 = vrot.lane.b32.xlu0 %v12712_v19, %s17884_s1 }
 0xac3   :  { %v22678_v48 = vpop.f32.mrb[133].mxu0 }
 0xac5   :  { %13502 = vrot.lane.b32.xlu1 %v15961_v25, %s17885_s30 }
 0xac6   :  { %v15975_v5 = vpop.f32.mrb[148].mxu1  ;;  %13500 = vrot.lane.b32.xlu0 %v12799_v41, %s17885_s30 }
 0xac7   :  { %v15982_v30 = vpop.f32.mrb[134].mxu0  ;;  %v12973_v37 = vpop.f32.mrb[149].mxu1 }
 0xac8   :  { %v13060_v42 = vpop.f32.mrb[135].mxu0 }
 0xac9   :  { %13250 = vrot.lane.b32.xlu1 %v15975_v5, %s17883_s4 }
 0xaca   :  { %v15989_v49 = vpop.f32.mrb[150].mxu1  ;;  %13248 = vrot.lane.b32.xlu0 %v12973_v37, %s17883_s4 }
 0xacb   :  { %v13147_v18 = vpop.f32.mrb[151].mxu1 }
 0xacd   :  { %13378 = vrot.lane.b32.xlu1 %v15982_v30, %s17884_s1 }
 0xace   :  { %13376 = vrot.lane.b32.xlu0 %v13060_v42, %s17884_s1 }
 0xad0   :  { %v16000_v50 = vpop.f32.mrb[136].mxu0 }
 0xad1   :  { %v13816_v20 = vadd.f32 %v16000_v50, %v22688_v32  ;;  %v13810_v10 = vpop.f32.mrb[137].mxu0  ;;  %13506 = vrot.lane.b32.xlu1 %v15989_v49, %s17885_s30 }
 0xad2   :  { %v13811_v29 = vadd.f32 %v22688_v32, %v13810_v10  ;;  %13504 = vrot.lane.b32.xlu0 %v13147_v18, %s17885_s30 }
 0xad3   :  { %13970 = vst.msk [vmem:[%s22898_s5 + $0x8] sm:$0xff] %vm56_vm0, %v13816_v20 }
 0xad4   :  { %13969 = vst.msk [vmem:[%s22898_s5] sm:$0xff] %vm56_vm0, %v13811_v29 }
 0xad7   :  { %v16003_v61 = vpop.f32.mrb[138].mxu0 }
 0xad8   :  { %v13826_v44 = vadd.f32 %v16003_v61, %v22688_v32  ;;  %v13820_v51 = vpop.f32.mrb[139].mxu0 }
 0xad9   :  { %v13821_v2 = vadd.f32 %v22688_v32, %v13820_v51 }
 0xada   :  { %13972 = vst.msk [vmem:[%s22898_s5 + $0x18] sm:$0xff] %vm56_vm0, %v13826_v44 }
 0xadb   :  { %13971 = vst.msk [vmem:[%s22898_s5 + $0x10] sm:$0xff] %vm56_vm0, %v13821_v2 }
 0xae3   :  { %v16006_v46 = vpop.f32.mrb[140].mxu0 }
 0xae4   :  { %v13836_v4 = vadd.f32 %v16006_v46, %v22688_v32  ;;  %v13830_v38 = vpop.f32.mrb[141].mxu0 }
 0xae5   :  { %v13831_v59 = vadd.f32 %v22688_v32, %v13830_v38 }
 0xae6   :  { %13974 = vst.msk [vmem:[%s22898_s5 + $0x28] sm:$0xff] %vm56_vm0, %v13836_v4 }
 0xae7   :  { %13973 = vst.msk [vmem:[%s22898_s5 + $0x20] sm:$0xff] %vm56_vm0, %v13831_v59 }
 0xae9   :  { %v13367_v14 = vpop.permute.xlu1 %13366 }
 0xaea   :  { %v13365_v40 = vpop.permute.xlu0 %13364  ;;  %v13597_v16 = vsel %vm6179_vm3, %v13565_v21, %v13367_v14 }
 0xaeb   :  { %v13596_v22 = vsel %vm6179_vm3, %v13564_v60, %v13365_v40 }
 0xaed   :  { %v13495_v43 = vpop.permute.xlu1 %13494 }
 0xaee   :  { %v13493_v6 = vpop.permute.xlu0 %13492  ;;  %v13630_v11 = vsel %vm13604_vm4, %v13597_v16, %v13495_v43 }
 0xaef   :  { %v13629_v9 = vsel %vm13604_vm4, %v13596_v22, %v13493_v6  ;;  %v16009_v26 = vpop.f32.mrb[142].mxu0 }
 0xaf0   :  { %v13846_v13 = vadd.f32 %v16009_v26, %v22688_v32  ;;  %16034 = vmatprep.mubr.msk.f32.mxu0 %vm56_vm0, %v13629_v9  ;;  %v13840_v58 = vpop.f32.mrb[143].mxu0 }
 0xaf1   :  { %v13841_v34 = vadd.f32 %v22688_v32, %v13840_v58  ;;  %16035 = vmatmul.mubr.msk.f32.gmra.mrb[160].mxu0 %vm56_vm0, %v13630_v11 }
 0xaf2   :  { %13976 = vst.msk [vmem:[%s22898_s5 + $0x38] sm:$0xff] %vm56_vm0, %v13846_v13 }
 0xaf3   :  { %13975 = vst.msk [vmem:[%s22898_s5 + $0x30] sm:$0xff] %vm56_vm0, %v13841_v34 }
 0xafb   :  { %v16012_v1 = vpop.f32.mrb[144].mxu0 }
 0xafc   :  { %v13856_v7 = vadd.f32 %v16012_v1, %v22688_v32  ;;  %v13850_v24 = vpop.f32.mrb[145].mxu0 }
 0xafd   :  { %v13851_v63 = vadd.f32 %v22688_v32, %v13850_v24 }
 0xafe   :  { %13978 = vst.msk [vmem:[%s22898_s5 + $0x48] sm:$0xff] %vm56_vm0, %v13856_v7 }
 0xaff   :  { %13977 = vst.msk [vmem:[%s22898_s5 + $0x40] sm:$0xff] %vm56_vm0, %v13851_v63 }
 0xb07   :  { %v16015_v55 = vpop.f32.mrb[146].mxu0 }
 0xb08   :  { %v13866_v54 = vadd.f32 %v16015_v55, %v22688_v32  ;;  %v13860_v0 = vpop.f32.mrb[147].mxu0 }
 0xb09   :  { %v13861_v15 = vadd.f32 %v22688_v32, %v13860_v0 }
 0xb0a   :  { %13980 = vst.msk [vmem:[%s22898_s5 + $0x58] sm:$0xff] %vm56_vm0, %v13866_v54 }
 0xb0b   :  { %13979 = vst.msk [vmem:[%s22898_s5 + $0x50] sm:$0xff] %vm56_vm0, %v13861_v15 }
 0xb13   :  { %v16018_v3 = vpop.f32.mrb[148].mxu0 }
 0xb14   :  { %v13876_v47 = vadd.f32 %v16018_v3, %v22688_v32  ;;  %v13870_v28 = vpop.f32.mrb[149].mxu0 }
 0xb15   :  { %v13871_v56 = vadd.f32 %v22688_v32, %v13870_v28 }
 0xb16   :  { %13982 = vst.msk [vmem:[%s22898_s5 + $0x68] sm:$0xff] %vm56_vm0, %v13876_v47 }
 0xb17   :  { %13981 = vst.msk [vmem:[%s22898_s5 + $0x60] sm:$0xff] %vm56_vm0, %v13871_v56 }
 0xb1f   :  { %v16021_v33 = vpop.f32.mrb[150].mxu0 }
 0xb20   :  { %v13886_v57 = vadd.f32 %v16021_v33, %v22688_v32  ;;  %v13880_v27 = vpop.f32.mrb[151].mxu0 }
 0xb21   :  { %v13243_v35 = vpop.permute.xlu1 %13242  ;;  %v13881_v12 = vadd.f32 %v22688_v32, %v13880_v27 }
 0xb22   :  { %13984 = vst.msk [vmem:[%s22898_s5 + $0x78] sm:$0xff] %vm56_vm0, %v13886_v57  ;;  %v13241_v36 = vpop.permute.xlu0 %13240  ;;  %v13567_v5 = vsel %vm614_vm1, %v22659_v53, %v13243_v35 }
 0xb23   :  { %13983 = vst.msk [vmem:[%s22898_s5 + $0x70] sm:$0xff] %vm56_vm0, %v13881_v12  ;;  %v13566_v19 = vsel %vm614_vm1, %v22662_v23, %v13241_v36 }
 0xb27   :  { %v13371_v31 = vpop.permute.xlu1 %13370 }
 0xb28   :  { %v13369_v39 = vpop.permute.xlu0 %13368  ;;  %v13599_v18 = vsel %vm6179_vm3, %v13567_v5, %v13371_v31 }
 0xb29   :  { %v13598_v30 = vsel %vm6179_vm3, %v13566_v19, %v13369_v39 }
 0xb2b   :  { %v13499_v25 = vpop.permute.xlu1 %13498  ;;  %v16024_v41 = vpop.f32.mrb[152].mxu0 }
 0xb2c   :  { %v13497_v37 = vpop.permute.xlu0 %13496  ;;  %v13896_v42 = vadd.f32 %v16024_v41, %v22688_v32  ;;  %v13890_v49 = vpop.f32.mrb[153].mxu0  ;;  %v13632_v10 = vsel %vm13604_vm4, %v13599_v18, %v13499_v25 }
 0xb2d   :  { %v13631_v50 = vsel %vm13604_vm4, %v13598_v30, %v13497_v37  ;;  %v13891_v20 = vadd.f32 %v22688_v32, %v13890_v49 }
 0xb2e   :  { %13986 = vst.msk [vmem:[%s22898_s5 + $0x88] sm:$0xff] %vm56_vm0, %v13896_v42  ;;  %16037 = vmatprep.mubr.msk.f32.mxu0 %vm56_vm0, %v13631_v50 }
 0xb2f   :  { %13985 = vst.msk [vmem:[%s22898_s5 + $0x80] sm:$0xff] %vm56_vm0, %v13891_v20  ;;  %v13247_v53 = vpop.permute.xlu1 %13246  ;;  %16038 = vmatmul.mubr.msk.f32.gmra.mrb[162].mxu0 %vm56_vm0, %v13632_v10 }
 0xb30   :  { %v13245_v23 = vpop.permute.xlu0 %13244  ;;  %v13569_v46 = vsel %vm614_vm1, %v22666_v52, %v13247_v53 }
 0xb31   :  { %v13568_v44 = vsel %vm614_vm1, %v22669_v8, %v13245_v23 }
 0xb33   :  { %v13375_v29 = vpop.permute.xlu1 %13374 }
 0xb34   :  { %v13373_v61 = vpop.permute.xlu0 %13372  ;;  %v13601_v17 = vsel %vm6179_vm3, %v13569_v46, %v13375_v29 }
 0xb35   :  { %v13600_v4 = vsel %vm6179_vm3, %v13568_v44, %v13373_v61 }
 0xb37   :  { %v13503_v51 = vpop.permute.xlu1 %13502  ;;  %v16027_v2 = vpop.f32.mrb[154].mxu0 }
 0xb38   :  { %v13501_v38 = vpop.permute.xlu0 %13500  ;;  %v13906_v45 = vadd.f32 %v16027_v2, %v22688_v32  ;;  %v13900_v59 = vpop.f32.mrb[155].mxu0  ;;  %v13634_v60 = vsel %vm13604_vm4, %v13601_v17, %v13503_v51 }
 0xb39   :  { %v13633_v14 = vsel %vm13604_vm4, %v13600_v4, %v13501_v38  ;;  %v13901_v40 = vadd.f32 %v22688_v32, %v13900_v59 }
 0xb3a   :  { %13988 = vst.msk [vmem:[%s22898_s5 + $0x98] sm:$0xff] %vm56_vm0, %v13906_v45  ;;  %16040 = vmatprep.mubr.msk.f32.mxu0 %vm56_vm0, %v13633_v14 }
 0xb3b   :  { %13987 = vst.msk [vmem:[%s22898_s5 + $0x90] sm:$0xff] %vm56_vm0, %v13901_v40  ;;  %v13251_v52 = vpop.permute.xlu1 %13250  ;;  %16041 = vmatmul.mubr.msk.f32.gmra.mrb[164].mxu0 %vm56_vm0, %v13634_v60 }
 0xb3c   :  { %v13249_v8 = vpop.permute.xlu0 %13248  ;;  %v13571_v9 = vsel %vm614_vm1, %v22675_v62, %v13251_v52 }
 0xb3d   :  { %v13570_v22 = vsel %vm614_vm1, %v22678_v48, %v13249_v8 }
 0xb3f   :  { %v13379_v43 = vpop.permute.xlu1 %13378 }
 0xb40   :  { %v13377_v21 = vpop.permute.xlu0 %13376  ;;  %v13603_v34 = vsel %vm6179_vm3, %v13571_v9, %v13379_v43 }
 0xb41   :  { %v13602_v26 = vsel %vm6179_vm3, %v13570_v22, %v13377_v21 }
 0xb43   :  { %v13507_v6 = vpop.permute.xlu1 %13506  ;;  %v16030_v16 = vpop.f32.mrb[156].mxu0 }
 0xb44   :  { %v13505_v11 = vpop.permute.xlu0 %13504  ;;  %v13916_v13 = vadd.f32 %v16030_v16, %v22688_v32  ;;  %v13910_v58 = vpop.f32.mrb[157].mxu0  ;;  %v13636_v24 = vsel %vm13604_vm4, %v13603_v34, %v13507_v6 }
 0xb45   :  { %v13635_v1 = vsel %vm13604_vm4, %v13602_v26, %v13505_v11  ;;  %v13911_v7 = vadd.f32 %v22688_v32, %v13910_v58 }
 0xb46   :  { %13990 = vst.msk [vmem:[%s22898_s5 + $0xa8] sm:$0xff] %vm56_vm0, %v13916_v13  ;;  %16043 = vmatprep.mubr.msk.f32.mxu0 %vm56_vm0, %v13635_v1 }
 0xb47   :  { %13989 = vst.msk [vmem:[%s22898_s5 + $0xa0] sm:$0xff] %vm56_vm0, %v13911_v7  ;;  %16044 = vmatmul.mubr.msk.f32.gmra.mrb[166].mxu0 %vm56_vm0, %v13636_v24 }
 0xb51   :  { %v16033_v62 = vpop.f32.mrb[158].mxu0 }
 0xb52   :  { %v13926_v48 = vadd.f32 %v16033_v62, %v22688_v32  ;;  %v13920_v63 = vpop.f32.mrb[159].mxu0 }
 0xb53   :  { %v13921_v55 = vadd.f32 %v22688_v32, %v13920_v63 }
 0xb54   :  { %13992 = vst.msk [vmem:[%s22898_s5 + $0xb8] sm:$0xff] %vm56_vm0, %v13926_v48 }
 0xb55   :  { %13991 = vst.msk [vmem:[%s22898_s5 + $0xb0] sm:$0xff] %vm56_vm0, %v13921_v55 }
 0xbc4   :  { %v16036_v54 = vpop.f32.mrb[160].mxu0 }
 0xbc5   :  { %v13936_v0 = vadd.f32 %v16036_v54, %v22688_v32  ;;  %v13930_v15 = vpop.f32.mrb[161].mxu0 }
 0xbc6   :  { %v13931_v3 = vadd.f32 %v22688_v32, %v13930_v15 }
 0xbc7   :  { %13994 = vst.msk [vmem:[%s22898_s5 + $0xc8] sm:$0xff] %vm56_vm0, %v13936_v0 }
 0xbc8   :  { %13993 = vst.msk [vmem:[%s22898_s5 + $0xc0] sm:$0xff] %vm56_vm0, %v13931_v3 }
 0xc02   :  { %v16039_v47 = vpop.f32.mrb[162].mxu0 }
 0xc03   :  { %v13946_v28 = vadd.f32 %v16039_v47, %v22688_v32  ;;  %v13940_v56 = vpop.f32.mrb[163].mxu0 }
 0xc04   :  { %v13941_v33 = vadd.f32 %v22688_v32, %v13940_v56 }
 0xc05   :  { %13996 = vst.msk [vmem:[%s22898_s5 + $0xd8] sm:$0xff] %vm56_vm0, %v13946_v28 }
 0xc06   :  { %13995 = vst.msk [vmem:[%s22898_s5 + $0xd0] sm:$0xff] %vm56_vm0, %v13941_v33 }
 0xc0e   :  { %v16042_v57 = vpop.f32.mrb[164].mxu0 }
 0xc0f   :  { %v13956_v27 = vadd.f32 %v16042_v57, %v22688_v32  ;;  %v13950_v35 = vpop.f32.mrb[165].mxu0 }
 0xc10   :  { %v13951_v12 = vadd.f32 %v22688_v32, %v13950_v35 }
 0xc11   :  { %13998 = vst.msk [vmem:[%s22898_s5 + $0xe8] sm:$0xff] %vm56_vm0, %v13956_v27 }
 0xc12   :  { %13997 = vst.msk [vmem:[%s22898_s5 + $0xe0] sm:$0xff] %vm56_vm0, %v13951_v12 }
 0xc1a   :  { %v16045_v36 = vpop.f32.mrb[166].mxu0 }
 0xc1b   :  { %v13966_v31 = vadd.f32 %v16045_v36, %v22688_v32  ;;  %v13960_v39 = vpop.f32.mrb[167].mxu0 }
 0xc1c   :  { %v13961_v19 = vadd.f32 %v22688_v32, %v13960_v39 }
 0xc1d   :  { %14000 = vst.msk [vmem:[%s22898_s5 + $0xf8] sm:$0xff] %vm56_vm0, %v13966_v31 }
 0xc1e   :  { %13999 = vst.msk [vmem:[%s22898_s5 + $0xf0] sm:$0xff] %vm56_vm0, %v13961_v19 }

</bundles_post_ra>
